<compile_context>
chip_gen: v7x
topology: tpu7x:2x2x1
jax: 0.10.0
libtpu: 0.0.40
codegen_flags: <defaults>
</compile_context>

<pallas_src>
import functools

import jax
import jax.numpy as jnp
from jax.experimental import pallas as pl
from jax.experimental.pallas import tpu as pltpu

# High-precision XLA matmuls for the pure-JAX reference check (Pallas path unaffected).
jax.config.update("jax_default_matmul_precision", "highest")

N_MELS = 80            # len(field); PostConvNet(80, rnn_size) hard-codes 80 mel channels
C_PAD = 128            # lane-dense channel slab: [mel 0:80 | stop 80 | zeros 81:127]
KERNEL_SIZE = 5
N_CONV_LAYERS = 5
_ROW_TILE = 256        # row-tile target; sized for v5e 16 MiB scoped VMEM / v7x 64 MiB VMEM


def _round_up(x, m):
    return ((x + m - 1) // m) * m


# --------------------------------------------------------------------------
# Kernel 1: fused mel + stop projection (one lane-dense matmul, tiled over rows)
# --------------------------------------------------------------------------
def _proj_kernel(x_ref, w_ref, b_ref, o_ref, *, stop_lane):
    y = (jnp.dot(x_ref[...], w_ref[...], preferred_element_type=jnp.float32)
         + b_ref[...])                                          # (TM, C_PAD)
    sig = 1.0 / (1.0 + jnp.exp(-y))
    lane = jax.lax.broadcasted_iota(jnp.int32, y.shape, dimension=1)
    o_ref[...] = jnp.where(lane == stop_lane, sig, y)           # sigmoid only on stop lane


def mel_stop_projection(x2d, w_pack, b_pack, *, stop_lane):
    M, D = x2d.shape
    C = w_pack.shape[1]
    tm = min(_ROW_TILE, _round_up(max(M, 1), 8))
    return pl.pallas_call(
        functools.partial(_proj_kernel, stop_lane=stop_lane),
        out_shape=jax.ShapeDtypeStruct((M, C), jnp.float32),
        grid=(pl.cdiv(M, tm),),
        in_specs=[
            pl.BlockSpec((tm, D), lambda i: (i, 0)),
            pl.BlockSpec((D, C), lambda i: (0, 0)),
            pl.BlockSpec((1, C), lambda i: (0, 0)),
        ],
        out_specs=pl.BlockSpec((tm, C), lambda i: (i, 0)),
        compiler_params=pltpu.CompilerParams(dimension_semantics=("parallel",)),
    )(x2d, w_pack, b_pack)


# --------------------------------------------------------------------------
# Kernel 2: fused PostConvNet (5 causal convs) + residual add
#
# Rows are (frame n, time t) in row-major order (time axis == PyTorch batch b).
# Tap with weight index k reads the input at time t - (K-1-k); the shift is a
# sublane shift of the whole slab, masked with the per-row time index so no data
# leaks across frames.  One im2col matmul per layer; activations never hit HBM.
# --------------------------------------------------------------------------
def _postnet_kernel(x_ref, t_ref, w_ref, b_ref, o_ref, *, K, T, n_layers):
    x = x_ref[...]                      # (R, C)   rows = frames*T, lanes = padded channels
    t_idx = t_ref[...]                  # (R, 1)   int32 time index of each row
    R, C = x.shape

    h = x
    for li in range(n_layers):
        taps = []
        for k in range(K):
            d = K - 1 - k               # how far back in time this tap looks
            if d == 0:
                taps.append(h)
            elif d >= T:                # tap falls entirely in the causal zero padding
                taps.append(jnp.zeros_like(h))
            else:
                shifted = jnp.concatenate(
                    [jnp.zeros((d, C), h.dtype), h[: R - d, :]], axis=0)
                taps.append(jnp.where(t_idx >= d, shifted, 0.0))
        x_im = jnp.concatenate(taps, axis=-1)                   # (R, K*C)
        y = (jnp.dot(x_im, w_ref[li], preferred_element_type=jnp.float32)
             + b_ref[li])                                       # (R, C)
        h = jnp.tanh(y) if li < n_layers - 1 else y
    o_ref[...] = x + h                  # residual: mel + postconv(mel)


def fused_postnet(proj, t_idx, w_all, b_all, *, T):
    M, C = proj.shape
    n_layers, KC, _ = w_all.shape
    K = KC // C
    n_frames = M // T
    # frames-per-block so that rows-per-block is a multiple of 8 (sublane granularity);
    # block boundaries stay frame-aligned so causal shifts never cross blocks.
    fb = max(1, min(n_frames, _ROW_TILE // max(T, 1)))
    while fb < n_frames and (fb * T) % 8 != 0:
        fb += 1
    R = M if fb >= n_frames else fb * T
    return pl.pallas_call(
        functools.partial(_postnet_kernel, K=K, T=T, n_layers=n_layers),
        out_shape=jax.ShapeDtypeStruct((M, C), jnp.float32),
        grid=(pl.cdiv(M, R),),
        in_specs=[
            pl.BlockSpec((R, C), lambda i: (i, 0)),
            pl.BlockSpec((R, 1), lambda i: (i, 0)),
            pl.BlockSpec((n_layers, KC, C), lambda i: (0, 0, 0)),
            pl.BlockSpec((n_layers, 1, C), lambda i: (0, 0, 0)),
        ],
        out_specs=pl.BlockSpec((R, C), lambda i: (i, 0)),
        compiler_params=pltpu.CompilerParams(dimension_semantics=("parallel",)),
    )(proj, t_idx, w_all, b_all)


# --------------------------------------------------------------------------
# SpeechGenerator.forward
# --------------------------------------------------------------------------
def speech_generator_forward(inputs, packed):
    # TODO(synk): has_vocoder branch (MagGenerater) and find_eos are outside forward.
    l, b, d = inputs.shape
    x2d = inputs.reshape(l * b, d)

    proj = mel_stop_projection(
        x2d, packed["proj_w"], packed["proj_b"], stop_lane=N_MELS)      # (l*b, 128)
    mel = proj[:, :N_MELS].reshape(l, b, N_MELS)
    stop = proj[:, N_MELS:N_MELS + 1].reshape(l, b, 1)                  # sigmoid applied

    # mel.view(-1, b, 80): with len(field) == 80 this is a pure reshape, so the
    # post-net frames are exactly the proj rows (conv length axis == batch b).
    t_idx = jnp.broadcast_to(
        jnp.arange(b, dtype=jnp.int32)[None, :], (l, b)).reshape(l * b, 1)
    post = fused_postnet(proj, t_idx, packed["post_w"], packed["post_b"], T=b)
    post_mel = post[:, :N_MELS].reshape(-1, b, N_MELS)
    return mel, post_mel, stop


# --------------------------------------------------------------------------
# Parameters: natural layout + one-time packing into lane-dense fused slabs
# --------------------------------------------------------------------------
def make_params(key, rnn_size, n_mels=N_MELS, n_hidden=None, kernel_size=KERNEL_SIZE):
    if n_hidden is None:
        n_hidden = rnn_size
    ks = jax.random.split(key, 4 + 2 * N_CONV_LAYERS)
    s = 0.1

    def nrm(k, shape):
        return (s * jax.random.normal(k, shape)).astype(jnp.float32)

    cin = [n_mels] + [n_hidden] * (N_CONV_LAYERS - 1)
    cout = [n_hidden] * (N_CONV_LAYERS - 1) + [n_mels]
    post = {}
    for i in range(N_CONV_LAYERS):
        post[f"w{i}"] = nrm(ks[4 + 2 * i], (kernel_size, cin[i], cout[i]))
        post[f"b{i}"] = nrm(ks[5 + 2 * i], (cout[i],))
    return {
        "linear_w": nrm(ks[0], (rnn_size, n_mels)),
        "linear_b": nrm(ks[1], (n_mels,)),
        "stop_w": nrm(ks[2], (rnn_size, 1)),
        "stop_b": nrm(ks[3], (1,)),
        "post": post,
    }


def pack_params(params):
    """Bake the stop head into the mel projection and build lane-dense im2col weights."""
    d, n_mels = params["linear_w"].shape
    assert n_mels + 1 <= C_PAD
    proj_w = jnp.zeros((d, C_PAD), jnp.float32)
    proj_w = proj_w.at[:, :n_mels].set(params["linear_w"])
    proj_w = proj_w.at[:, n_mels].set(params["stop_w"][:, 0])
    proj_b = jnp.zeros((1, C_PAD), jnp.float32)
    proj_b = proj_b.at[0, :n_mels].set(params["linear_b"])
    proj_b = proj_b.at[0, n_mels].set(params["stop_b"][0])

    w_all, b_all = [], []
    for i in range(N_CONV_LAYERS):
        w = params["post"][f"w{i}"]                       # (K, Cin, Cout)
        bb = params["post"][f"b{i}"]                      # (Cout,)
        K, cin, cout = w.shape
        assert cin <= C_PAD and cout <= C_PAD, "TODO(synk): support >128 conv channels"
        wp = jnp.zeros((K, C_PAD, C_PAD), jnp.float32).at[:, :cin, :cout].set(w)
        w_all.append(wp.reshape(K * C_PAD, C_PAD))
        b_all.append(jnp.zeros((1, C_PAD), jnp.float32).at[0, :cout].set(bb))
    return {
        "proj_w": proj_w,
        "proj_b": proj_b,
        "post_w": jnp.stack(w_all),                       # (5, K*128, 128)
        "post_b": jnp.stack(b_all),                       # (5, 1, 128)
    }


# --------------------------------------------------------------------------
# Pure-JAX reference (same reconstructed PostConvNet semantics)
# --------------------------------------------------------------------------
def reference_forward(inputs, params):
    l, b, d = inputs.shape
    mel = jnp.einsum("lbd,dm->lbm", inputs, params["linear_w"]) + params["linear_b"]
    stop_logit = jnp.einsum("lbd,do->lbo", inputs, params["stop_w"]) + params["stop_b"]
    stop = 1.0 / (1.0 + jnp.exp(-stop_logit))

    x = mel.reshape(-1, b, N_MELS)                        # (N, T=b, 80)
    h = x
    for i in range(N_CONV_LAYERS):
        w = params["post"][f"w{i}"]                       # (K, Cin, Cout)
        bb = params["post"][f"b{i}"]
        K = w.shape[0]
        hp = jnp.pad(h, ((0, 0), (K - 1, 0), (0, 0)))     # causal left pad along T
        y = sum(jnp.einsum("ntc,co->nto", hp[:, k:k + b, :], w[k])
                for k in range(K)) + bb
        h = jnp.tanh(y) if i < N_CONV_LAYERS - 1 else y
    post_mel = x + h
    return mel, post_mel, stop


if __name__ == "__main__":
    L, B, D = 8, 2, 32          # seq_len, batch, rnn_size

    key = jax.random.PRNGKey(0)
    k_in, k_par = jax.random.split(key)
    inputs = jax.random.normal(k_in, (L, B, D), dtype=jnp.float32)
    params = make_params(k_par, rnn_size=D, n_hidden=D)
    packed = pack_params(params)

    fwd = jax.jit(speech_generator_forward)
    mel, post_mel, stop = fwd(inputs, packed)
    jax.block_until_ready((mel, post_mel, stop))

    assert mel.shape == (L, B, N_MELS)
    assert post_mel.shape == (L, B, N_MELS)
    assert stop.shape == (L, B, 1)
    assert bool(jnp.all(jnp.isfinite(mel)))
    assert bool(jnp.all(jnp.isfinite(post_mel)))
    assert bool(jnp.all((stop >= 0.0) & (stop <= 1.0)))

    ref_mel, ref_post, ref_stop = reference_forward(inputs, params)
    assert float(jnp.max(jnp.abs(mel - ref_mel))) < 2e-2
    assert float(jnp.max(jnp.abs(post_mel - ref_post))) < 2e-2
    assert float(jnp.max(jnp.abs(stop - ref_stop))) < 2e-2

    print("KERNEL_OK")
</pallas_src>

<mosaic_0001>
module attributes {stable_mosaic.version = 11 : i64} {
  func.func @_proj_kernel(%arg0: i32, %arg1: memref<16x32xf32, #tpu.memory_space<vmem>>, %arg2: memref<32x128xf32, #tpu.memory_space<vmem>>, %arg3: memref<1x128xf32, #tpu.memory_space<vmem>>, %arg4: memref<16x128xf32, #tpu.memory_space<vmem>>) attributes {dimension_semantics = [#tpu.dimension_semantics<parallel>], iteration_bounds = array<i64: 1>, scalar_prefetch = 0 : i64, scratch_operands = 0 : i64, tpu.core_type = #tpu.core_type<tc>, window_params = [{transform_indices = @transform_0, window_bounds = array<i64: 16, 32>}, {pipeline_mode = #tpu.pipeline_mode<synchronous>, transform_indices = @transform_1, window_bounds = array<i64: 32, 128>}, {pipeline_mode = #tpu.pipeline_mode<synchronous>, transform_indices = @transform_2, window_bounds = array<i64: 1, 128>}, {transform_indices = @transform_3, window_bounds = array<i64: 16, 128>}]} {
    %c0 = arith.constant 0 : index
    %c0_0 = arith.constant 0 : index
    %0 = vector.load %arg1[%c0, %c0_0] : memref<16x32xf32, #tpu.memory_space<vmem>>, vector<16x32xf32>
    %c0_1 = arith.constant 0 : index
    %c0_2 = arith.constant 0 : index
    %1 = vector.load %arg2[%c0_1, %c0_2] : memref<32x128xf32, #tpu.memory_space<vmem>>, vector<32x128xf32>
    %cst = arith.constant dense<0.000000e+00> : vector<16x128xf32>
    %2 = tpu.matmul %0, %1, %cst {dimension_numbers = #tpu.dot_dimension_numbers<[1], [0], [0], [1], [0, 0, 1, 1], [], []>, precision = #tpu.contract_precision<fp32>} : vector<16x32xf32>, vector<32x128xf32>, vector<16x128xf32> -> vector<16x128xf32>
    %c0_3 = arith.constant 0 : index
    %c0_4 = arith.constant 0 : index
    %3 = vector.load %arg3[%c0_3, %c0_4] : memref<1x128xf32, #tpu.memory_space<vmem>>, vector<1x128xf32>
    %4 = vector.broadcast %3 : vector<1x128xf32> to vector<16x128xf32>
    %5 = arith.addf %2, %4 : vector<16x128xf32>
    %cst_5 = arith.constant 0.000000e+00 : f32
    %6 = vector.broadcast %cst_5 : f32 to vector<16x128xf32>
    %7 = arith.subf %6, %5 : vector<16x128xf32>
    %8 = math.exp %7 : vector<16x128xf32>
    %cst_6 = arith.constant 1.000000e+00 : f32
    %9 = vector.broadcast %cst_6 : f32 to vector<16x128xf32>
    %10 = arith.addf %9, %8 : vector<16x128xf32>
    %cst_7 = arith.constant 1.000000e+00 : f32
    %11 = vector.broadcast %cst_7 : f32 to vector<16x128xf32>
    %12 = arith.divf %11, %10 : vector<16x128xf32>
    %13 = tpu.iota {dimensions = array<i32: 1>} : vector<16x128xi32>
    %c80_i32 = arith.constant 80 : i32
    %14 = vector.broadcast %c80_i32 : i32 to vector<16x128xi32>
    %15 = arith.cmpi eq, %13, %14 : vector<16x128xi32>
    %16 = arith.select %15, %12, %5 : vector<16x128xi1>, vector<16x128xf32>
    %c0_8 = arith.constant 0 : index
    %c0_9 = arith.constant 0 : index
    %17 = vector.load %arg4[%c0_8, %c0_9] : memref<16x128xf32, #tpu.memory_space<vmem>>, vector<16x128xf32>
    tpu.vector_store %arg4[%c0_8, %c0_9], %16 {strides = array<i32>} : memref<16x128xf32, #tpu.memory_space<vmem>>, vector<16x128xf32>,
    return
  }
  func.func @transform_0(%arg0: i32) -> (i32, i32) {
    %c0_i32 = arith.constant 0 : i32
    %c0_i32_0 = arith.constant 0 : i32
    return %arg0, %c0_i32 : i32, i32
  }
  func.func @transform_1(%arg0: i32) -> (i32, i32) {
    %c0_i32 = arith.constant 0 : i32
    %c0_i32_0 = arith.constant 0 : i32
    %c0_i32_1 = arith.constant 0 : i32
    return %c0_i32, %c0_i32_0 : i32, i32
  }
  func.func @transform_2(%arg0: i32) -> (i32, i32) {
    %c0_i32 = arith.constant 0 : i32
    %c0_i32_0 = arith.constant 0 : i32
    %c0_i32_1 = arith.constant 0 : i32
    return %c0_i32, %c0_i32_0 : i32, i32
  }
  func.func @transform_3(%arg0: i32) -> (i32, i32) {
    %c0_i32 = arith.constant 0 : i32
    %c0_i32_0 = arith.constant 0 : i32
    return %arg0, %c0_i32 : i32, i32
  }
}

module attributes {stable_mosaic.version = 11 : i64} {
  func.func @_postnet_kernel(%arg0: i32, %arg1: memref<16x128xf32, #tpu.memory_space<vmem>>, %arg2: memref<16x1xi32, #tpu.memory_space<vmem>>, %arg3: memref<5x640x128xf32, #tpu.memory_space<vmem>>, %arg4: memref<5x1x128xf32, #tpu.memory_space<vmem>>, %arg5: memref<16x128xf32, #tpu.memory_space<vmem>>) attributes {dimension_semantics = [#tpu.dimension_semantics<parallel>], iteration_bounds = array<i64: 1>, scalar_prefetch = 0 : i64, scratch_operands = 0 : i64, tpu.core_type = #tpu.core_type<tc>, window_params = [{transform_indices = @transform_0, window_bounds = array<i64: 16, 128>}, {transform_indices = @transform_1, window_bounds = array<i64: 16, 1>}, {pipeline_mode = #tpu.pipeline_mode<synchronous>, transform_indices = @transform_2, window_bounds = array<i64: 5, 640, 128>}, {pipeline_mode = #tpu.pipeline_mode<synchronous>, transform_indices = @transform_3, window_bounds = array<i64: 5, 1, 128>}, {transform_indices = @transform_4, window_bounds = array<i64: 16, 128>}]} {
    %c0 = arith.constant 0 : index
    %c0_0 = arith.constant 0 : index
    %0 = vector.load %arg1[%c0, %c0_0] : memref<16x128xf32, #tpu.memory_space<vmem>>, vector<16x128xf32>
    %c0_1 = arith.constant 0 : index
    %c0_2 = arith.constant 0 : index
    %1 = vector.load %arg2[%c0_1, %c0_2] : memref<16x1xi32, #tpu.memory_space<vmem>>, vector<16x1xi32>
    %cst = arith.constant 0.000000e+00 : f32
    %2 = vector.broadcast %cst : f32 to vector<16x128xf32>
    %cst_3 = arith.constant 0.000000e+00 : f32
    %3 = vector.broadcast %cst_3 : f32 to vector<16x128xf32>
    %cst_4 = arith.constant 0.000000e+00 : f32
    %4 = vector.broadcast %cst_4 : f32 to vector<16x128xf32>
    %cst_5 = arith.constant 0.000000e+00 : f32
    %5 = vector.broadcast %cst_5 : f32 to vector<1x128xf32>
    %6 = vector.extract_strided_slice %0 {offsets = [0, 0], sizes = [15, 128], strides = [1, 1]} : vector<16x128xf32> to vector<15x128xf32>
    %7 = tpu.concatenate %5, %6 in 0 : vector<1x128xf32>, vector<15x128xf32> -> vector<16x128xf32>
    %c1_i32 = arith.constant 1 : i32
    %8 = vector.broadcast %c1_i32 : i32 to vector<16x1xi32>
    %9 = arith.cmpi sge, %1, %8 : vector<16x1xi32>
    %cst_6 = arith.constant 0.000000e+00 : f32
    %10 = vector.shape_cast %9 : vector<16x1xi1> to vector<16x1xi1>
    %11 = vector.broadcast %10 : vector<16x1xi1> to vector<16x128xi1>
    %12 = vector.broadcast %cst_6 : f32 to vector<16x128xf32>
    %13 = arith.select %11, %7, %12 : vector<16x128xi1>, vector<16x128xf32>
    %14 = tpu.concatenate %2, %3, %4, %13, %0 in 1 : vector<16x128xf32>, vector<16x128xf32>, vector<16x128xf32>, vector<16x128xf32>, vector<16x128xf32> -> vector<16x640xf32>
    %c0_7 = arith.constant 0 : index
    %c0_8 = arith.constant 0 : index
    %c0_9 = arith.constant 0 : index
    %15 = vector.load %arg3[%c0_7, %c0_8, %c0_9] : memref<5x640x128xf32, #tpu.memory_space<vmem>>, vector<1x640x128xf32>
    %16 = vector.shape_cast %15 : vector<1x640x128xf32> to vector<640x128xf32>
    %cst_10 = arith.constant dense<0.000000e+00> : vector<16x128xf32>
    %17 = tpu.matmul %14, %16, %cst_10 {dimension_numbers = #tpu.dot_dimension_numbers<[1], [0], [0], [1], [0, 0, 1, 1], [], []>, precision = #tpu.contract_precision<fp32>} : vector<16x640xf32>, vector<640x128xf32>, vector<16x128xf32> -> vector<16x128xf32>
    %c0_11 = arith.constant 0 : index
    %c0_12 = arith.constant 0 : index
    %c0_13 = arith.constant 0 : index
    %18 = vector.load %arg4[%c0_11, %c0_12, %c0_13] : memref<5x1x128xf32, #tpu.memory_space<vmem>>, vector<1x1x128xf32>
    %19 = vector.shape_cast %18 : vector<1x1x128xf32> to vector<1x128xf32>
    %20 = vector.broadcast %19 : vector<1x128xf32> to vector<16x128xf32>
    %21 = arith.addf %17, %20 : vector<16x128xf32>
    %22 = math.tanh %21 : vector<16x128xf32>
    %cst_14 = arith.constant 0.000000e+00 : f32
    %23 = vector.broadcast %cst_14 : f32 to vector<16x128xf32>
    %cst_15 = arith.constant 0.000000e+00 : f32
    %24 = vector.broadcast %cst_15 : f32 to vector<16x128xf32>
    %cst_16 = arith.constant 0.000000e+00 : f32
    %25 = vector.broadcast %cst_16 : f32 to vector<16x128xf32>
    %cst_17 = arith.constant 0.000000e+00 : f32
    %26 = vector.broadcast %cst_17 : f32 to vector<1x128xf32>
    %27 = vector.extract_strided_slice %22 {offsets = [0, 0], sizes = [15, 128], strides = [1, 1]} : vector<16x128xf32> to vector<15x128xf32>
    %28 = tpu.concatenate %26, %27 in 0 : vector<1x128xf32>, vector<15x128xf32> -> vector<16x128xf32>
    %c1_i32_18 = arith.constant 1 : i32
    %29 = vector.broadcast %c1_i32_18 : i32 to vector<16x1xi32>
    %30 = arith.cmpi sge, %1, %29 : vector<16x1xi32>
    %cst_19 = arith.constant 0.000000e+00 : f32
    %31 = vector.shape_cast %30 : vector<16x1xi1> to vector<16x1xi1>
    %32 = vector.broadcast %31 : vector<16x1xi1> to vector<16x128xi1>
    %33 = vector.broadcast %cst_19 : f32 to vector<16x128xf32>
    %34 = arith.select %32, %28, %33 : vector<16x128xi1>, vector<16x128xf32>
    %35 = tpu.concatenate %23, %24, %25, %34, %22 in 1 : vector<16x128xf32>, vector<16x128xf32>, vector<16x128xf32>, vector<16x128xf32>, vector<16x128xf32> -> vector<16x640xf32>
    %c1 = arith.constant 1 : index
    %c0_20 = arith.constant 0 : index
    %c0_21 = arith.constant 0 : index
    %36 = vector.load %arg3[%c1, %c0_20, %c0_21] : memref<5x640x128xf32, #tpu.memory_space<vmem>>, vector<1x640x128xf32>
    %37 = vector.shape_cast %36 : vector<1x640x128xf32> to vector<640x128xf32>
    %cst_22 = arith.constant dense<0.000000e+00> : vector<16x128xf32>
    %38 = tpu.matmul %35, %37, %cst_22 {dimension_numbers = #tpu.dot_dimension_numbers<[1], [0], [0], [1], [0, 0, 1, 1], [], []>, precision = #tpu.contract_precision<fp32>} : vector<16x640xf32>, vector<640x128xf32>, vector<16x128xf32> -> vector<16x128xf32>
    %c1_23 = arith.constant 1 : index
    %c0_24 = arith.constant 0 : index
    %c0_25 = arith.constant 0 : index
    %39 = vector.load %arg4[%c1_23, %c0_24, %c0_25] : memref<5x1x128xf32, #tpu.memory_space<vmem>>, vector<1x1x128xf32>
    %40 = vector.shape_cast %39 : vector<1x1x128xf32> to vector<1x128xf32>
    %41 = vector.broadcast %40 : vector<1x128xf32> to vector<16x128xf32>
    %42 = arith.addf %38, %41 : vector<16x128xf32>
    %43 = math.tanh %42 : vector<16x128xf32>
    %cst_26 = arith.constant 0.000000e+00 : f32
    %44 = vector.broadcast %cst_26 : f32 to vector<16x128xf32>
    %cst_27 = arith.constant 0.000000e+00 : f32
    %45 = vector.broadcast %cst_27 : f32 to vector<16x128xf32>
    %cst_28 = arith.constant 0.000000e+00 : f32
    %46 = vector.broadcast %cst_28 : f32 to vector<16x128xf32>
    %cst_29 = arith.constant 0.000000e+00 : f32
    %47 = vector.broadcast %cst_29 : f32 to vector<1x128xf32>
    %48 = vector.extract_strided_slice %43 {offsets = [0, 0], sizes = [15, 128], strides = [1, 1]} : vector<16x128xf32> to vector<15x128xf32>
    %49 = tpu.concatenate %47, %48 in 0 : vector<1x128xf32>, vector<15x128xf32> -> vector<16x128xf32>
    %c1_i32_30 = arith.constant 1 : i32
    %50 = vector.broadcast %c1_i32_30 : i32 to vector<16x1xi32>
    %51 = arith.cmpi sge, %1, %50 : vector<16x1xi32>
    %cst_31 = arith.constant 0.000000e+00 : f32
    %52 = vector.shape_cast %51 : vector<16x1xi1> to vector<16x1xi1>
    %53 = vector.broadcast %52 : vector<16x1xi1> to vector<16x128xi1>
    %54 = vector.broadcast %cst_31 : f32 to vector<16x128xf32>
    %55 = arith.select %53, %49, %54 : vector<16x128xi1>, vector<16x128xf32>
    %56 = tpu.concatenate %44, %45, %46, %55, %43 in 1 : vector<16x128xf32>, vector<16x128xf32>, vector<16x128xf32>, vector<16x128xf32>, vector<16x128xf32> -> vector<16x640xf32>
    %c2 = arith.constant 2 : index
    %c0_32 = arith.constant 0 : index
    %c0_33 = arith.constant 0 : index
    %57 = vector.load %arg3[%c2, %c0_32, %c0_33] : memref<5x640x128xf32, #tpu.memory_space<vmem>>, vector<1x640x128xf32>
    %58 = vector.shape_cast %57 : vector<1x640x128xf32> to vector<640x128xf32>
    %cst_34 = arith.constant dense<0.000000e+00> : vector<16x128xf32>
    %59 = tpu.matmul %56, %58, %cst_34 {dimension_numbers = #tpu.dot_dimension_numbers<[1], [0], [0], [1], [0, 0, 1, 1], [], []>, precision = #tpu.contract_precision<fp32>} : vector<16x640xf32>, vector<640x128xf32>, vector<16x128xf32> -> vector<16x128xf32>
    %c2_35 = arith.constant 2 : index
    %c0_36 = arith.constant 0 : index
    %c0_37 = arith.constant 0 : index
    %60 = vector.load %arg4[%c2_35, %c0_36, %c0_37] : memref<5x1x128xf32, #tpu.memory_space<vmem>>, vector<1x1x128xf32>
    %61 = vector.shape_cast %60 : vector<1x1x128xf32> to vector<1x128xf32>
    %62 = vector.broadcast %61 : vector<1x128xf32> to vector<16x128xf32>
    %63 = arith.addf %59, %62 : vector<16x128xf32>
    %64 = math.tanh %63 : vector<16x128xf32>
    %cst_38 = arith.constant 0.000000e+00 : f32
    %65 = vector.broadcast %cst_38 : f32 to vector<16x128xf32>
    %cst_39 = arith.constant 0.000000e+00 : f32
    %66 = vector.broadcast %cst_39 : f32 to vector<16x128xf32>
    %cst_40 = arith.constant 0.000000e+00 : f32
    %67 = vector.broadcast %cst_40 : f32 to vector<16x128xf32>
    %cst_41 = arith.constant 0.000000e+00 : f32
    %68 = vector.broadcast %cst_41 : f32 to vector<1x128xf32>
    %69 = vector.extract_strided_slice %64 {offsets = [0, 0], sizes = [15, 128], strides = [1, 1]} : vector<16x128xf32> to vector<15x128xf32>
    %70 = tpu.concatenate %68, %69 in 0 : vector<1x128xf32>, vector<15x128xf32> -> vector<16x128xf32>
    %c1_i32_42 = arith.constant 1 : i32
    %71 = vector.broadcast %c1_i32_42 : i32 to vector<16x1xi32>
    %72 = arith.cmpi sge, %1, %71 : vector<16x1xi32>
    %cst_43 = arith.constant 0.000000e+00 : f32
    %73 = vector.shape_cast %72 : vector<16x1xi1> to vector<16x1xi1>
    %74 = vector.broadcast %73 : vector<16x1xi1> to vector<16x128xi1>
    %75 = vector.broadcast %cst_43 : f32 to vector<16x128xf32>
    %76 = arith.select %74, %70, %75 : vector<16x128xi1>, vector<16x128xf32>
    %77 = tpu.concatenate %65, %66, %67, %76, %64 in 1 : vector<16x128xf32>, vector<16x128xf32>, vector<16x128xf32>, vector<16x128xf32>, vector<16x128xf32> -> vector<16x640xf32>
    %c3 = arith.constant 3 : index
    %c0_44 = arith.constant 0 : index
    %c0_45 = arith.constant 0 : index
    %78 = vector.load %arg3[%c3, %c0_44, %c0_45] : memref<5x640x128xf32, #tpu.memory_space<vmem>>, vector<1x640x128xf32>
    %79 = vector.shape_cast %78 : vector<1x640x128xf32> to vector<640x128xf32>
    %cst_46 = arith.constant dense<0.000000e+00> : vector<16x128xf32>
    %80 = tpu.matmul %77, %79, %cst_46 {dimension_numbers = #tpu.dot_dimension_numbers<[1], [0], [0], [1], [0, 0, 1, 1], [], []>, precision = #tpu.contract_precision<fp32>} : vector<16x640xf32>, vector<640x128xf32>, vector<16x128xf32> -> vector<16x128xf32>
    %c3_47 = arith.constant 3 : index
    %c0_48 = arith.constant 0 : index
    %c0_49 = arith.constant 0 : index
    %81 = vector.load %arg4[%c3_47, %c0_48, %c0_49] : memref<5x1x128xf32, #tpu.memory_space<vmem>>, vector<1x1x128xf32>
    %82 = vector.shape_cast %81 : vector<1x1x128xf32> to vector<1x128xf32>
    %83 = vector.broadcast %82 : vector<1x128xf32> to vector<16x128xf32>
    %84 = arith.addf %80, %83 : vector<16x128xf32>
    %85 = math.tanh %84 : vector<16x128xf32>
    %cst_50 = arith.constant 0.000000e+00 : f32
    %86 = vector.broadcast %cst_50 : f32 to vector<16x128xf32>
    %cst_51 = arith.constant 0.000000e+00 : f32
    %87 = vector.broadcast %cst_51 : f32 to vector<16x128xf32>
    %cst_52 = arith.constant 0.000000e+00 : f32
    %88 = vector.broadcast %cst_52 : f32 to vector<16x128xf32>
    %cst_53 = arith.constant 0.000000e+00 : f32
    %89 = vector.broadcast %cst_53 : f32 to vector<1x128xf32>
    %90 = vector.extract_strided_slice %85 {offsets = [0, 0], sizes = [15, 128], strides = [1, 1]} : vector<16x128xf32> to vector<15x128xf32>
    %91 = tpu.concatenate %89, %90 in 0 : vector<1x128xf32>, vector<15x128xf32> -> vector<16x128xf32>
    %c1_i32_54 = arith.constant 1 : i32
    %92 = vector.broadcast %c1_i32_54 : i32 to vector<16x1xi32>
    %93 = arith.cmpi sge, %1, %92 : vector<16x1xi32>
    %cst_55 = arith.constant 0.000000e+00 : f32
    %94 = vector.shape_cast %93 : vector<16x1xi1> to vector<16x1xi1>
    %95 = vector.broadcast %94 : vector<16x1xi1> to vector<16x128xi1>
    %96 = vector.broadcast %cst_55 : f32 to vector<16x128xf32>
    %97 = arith.select %95, %91, %96 : vector<16x128xi1>, vector<16x128xf32>
    %98 = tpu.concatenate %86, %87, %88, %97, %85 in 1 : vector<16x128xf32>, vector<16x128xf32>, vector<16x128xf32>, vector<16x128xf32>, vector<16x128xf32> -> vector<16x640xf32>
    %c4 = arith.constant 4 : index
    %c0_56 = arith.constant 0 : index
    %c0_57 = arith.constant 0 : index
    %99 = vector.load %arg3[%c4, %c0_56, %c0_57] : memref<5x640x128xf32, #tpu.memory_space<vmem>>, vector<1x640x128xf32>
    %100 = vector.shape_cast %99 : vector<1x640x128xf32> to vector<640x128xf32>
    %cst_58 = arith.constant dense<0.000000e+00> : vector<16x128xf32>
    %101 = tpu.matmul %98, %100, %cst_58 {dimension_numbers = #tpu.dot_dimension_numbers<[1], [0], [0], [1], [0, 0, 1, 1], [], []>, precision = #tpu.contract_precision<fp32>} : vector<16x640xf32>, vector<640x128xf32>, vector<16x128xf32> -> vector<16x128xf32>
    %c4_59 = arith.constant 4 : index
    %c0_60 = arith.constant 0 : index
    %c0_61 = arith.constant 0 : index
    %102 = vector.load %arg4[%c4_59, %c0_60, %c0_61] : memref<5x1x128xf32, #tpu.memory_space<vmem>>, vector<1x1x128xf32>
    %103 = vector.shape_cast %102 : vector<1x1x128xf32> to vector<1x128xf32>
    %104 = vector.broadcast %103 : vector<1x128xf32> to vector<16x128xf32>
    %105 = arith.addf %101, %104 : vector<16x128xf32>
    %106 = arith.addf %0, %105 : vector<16x128xf32>
    %c0_62 = arith.constant 0 : index
    %c0_63 = arith.constant 0 : index
    %107 = vector.load %arg5[%c0_62, %c0_63] : memref<16x128xf32, #tpu.memory_space<vmem>>, vector<16x128xf32>
    tpu.vector_store %arg5[%c0_62, %c0_63], %106 {strides = array<i32>} : memref<16x128xf32, #tpu.memory_space<vmem>>, vector<16x128xf32>,
    return
  }
  func.func @transform_0(%arg0: i32) -> (i32, i32) {
    %c0_i32 = arith.constant 0 : i32
    %c0_i32_0 = arith.constant 0 : i32
    return %arg0, %c0_i32 : i32, i32
  }
  func.func @transform_1(%arg0: i32) -> (i32, i32) {
    %c0_i32 = arith.constant 0 : i32
    %c0_i32_0 = arith.constant 0 : i32
    return %arg0, %c0_i32 : i32, i32
  }
  func.func @transform_2(%arg0: i32) -> (i32, i32, i32) {
    %c0_i32 = arith.constant 0 : i32
    %c0_i32_0 = arith.constant 0 : i32
    %c0_i32_1 = arith.constant 0 : i32
    %c0_i32_2 = arith.constant 0 : i32
    return %c0_i32, %c0_i32_0, %c0_i32_1 : i32, i32, i32
  }
  func.func @transform_3(%arg0: i32) -> (i32, i32, i32) {
    %c0_i32 = arith.constant 0 : i32
    %c0_i32_0 = arith.constant 0 : i32
    %c0_i32_1 = arith.constant 0 : i32
    %c0_i32_2 = arith.constant 0 : i32
    return %c0_i32, %c0_i32_0, %c0_i32_1 : i32, i32, i32
  }
  func.func @transform_4(%arg0: i32) -> (i32, i32) {
    %c0_i32 = arith.constant 0 : i32
    %c0_i32_0 = arith.constant 0 : i32
    return %arg0, %c0_i32 : i32, i32
  }
}

</mosaic_0001>

<bundles_post_ra>
// kernel: speech_generator_forward.2
= control target key start
LH: loop header
LB: loop body
LE: loop exit
PB: predicated region body
PF: predicated region fallthrough
CT: control target
= control target key end

     0   :  { %8 = vsyncpa [#allocation3], 0  ;;  %s958_s0 = inlined_call_operand.hbm [shape: f32[16,32], index: 0, kind: input, shape index: {}]   ;;  %s959_s1 = inlined_call_operand.hbm [shape: f32[32,128], index: 1, kind: input, shape index: {}]   ;;  %s960_s2 = inlined_call_operand.hbm [shape: f32[1,128], index: 2, kind: input, shape index: {}]   ;;  %s961_s3 = inlined_call_operand.vmem [shape: f32[16,128], index: 3, kind: output, shape index: {}]  }
   0x1   :  { %9 = vsyncpa [#allocation5], 0  ;;  %s872_s12 = smov [#allocation4]   ;;  %s873_s14 = smov [#allocation2]  }
   0x2   :  { %s27_s13 = sshll.u32 %s872_s12, 4  ;;  %s15_s15 = sshll.u32 %s873_s14, 4  ;;  %s28_s13 = int_to_ptr.vmem [resolvable:$true] %s27_s13  ;;  %s897_s15 = int_to_ptr.vmem [resolvable:$true] %s15_s15 }
   0x3   :  { %s802_s18 = scalar_lea.hbm %s959_s1, 512 }
   0x4   :  { %p803_p0 = scmp.ne.s32.totalorder %s959_s1, %s802_s18  ;;  %p806_p1 = scmp.lt.u32.totalorder %s802_s18, %s959_s1 }
   0x6   :  { %p808_p2 = pnand %p806_p1, %p803_p0 }
   0x8   :  { %811 = shalt.err (!%p808_p2)
}
   0x9   :  { %s812_s23 = scalar_lea.vmem %s28_s13, 512  ;;  %p817_p4 = scmp.lt.s32.totalorder %s28_s13, %s28_s13 }
   0xa   :  { %p813_p3 = scmp.ne.s32.totalorder %s28_s13, %s812_s23  ;;  %p818_p5 = scmp.lt.s32.totalorder %s812_s23, %s812_s23 }
   0xc   :  { %p819_p6 = por %p818_p5, %p817_p4 }
   0xe   :  { %p820_p7 = pnand %p819_p6, %p813_p3 }
  0x10   :  { %823 = shalt.err (!%p820_p7)
}
  0x11   :  { %s874_s24 = smov 128   ;;  %s875_s25 = smov 8  }
  0x12   :  { %33 = dma.hbm_to_vmem [thread:$0]  %s959_s1, 512, %s28_s13, [#allocation5], %s874_s24, %s874_s24, %s875_s25  }
  0x13   :  { %s824_s30 = scalar_lea.hbm %s958_s0, 256 }
  0x14   :  { %p825_p8 = scmp.ne.s32.totalorder %s958_s0, %s824_s30  ;;  %p828_p9 = scmp.lt.u32.totalorder %s824_s30, %s958_s0 }
  0x16   :  { %p830_p10 = pnand %p828_p9, %p825_p8 }
  0x18   :  { %833 = shalt.err (!%p830_p10)
}
  0x19   :  { %s834_s8 = scalar_lea.vmem %s897_s15, 256  ;;  %p839_p12 = scmp.lt.s32.totalorder %s897_s15, %s897_s15 }
  0x1a   :  { %p835_p11 = scmp.ne.s32.totalorder %s897_s15, %s834_s8  ;;  %p840_p13 = scmp.lt.s32.totalorder %s834_s8, %s834_s8 }
  0x1c   :  { %p841_p0 = por %p840_p13, %p839_p12 }
  0x1e   :  { %p842_p1 = pnand %p841_p0, %p835_p11 }
  0x20   :  { %845 = shalt.err (!%p842_p1)
}
  0x21   :  { %21 = dma.hbm_to_vmem [thread:$0]  %s958_s0, 256, %s897_s15, [#allocation3], %s874_s24, %s874_s24, %s875_s25  }
  0x22   :  { %s876_s10 = smov [#allocation6]   ;;  %s846_s14 = scalar_lea.hbm %s960_s2, 16 }
  0x23   :  { %s40_s11 = sshll.u32 %s876_s10, 4  ;;  %p847_p2 = scmp.ne.s32.totalorder %s960_s2, %s846_s14  ;;  %s41_s11 = int_to_ptr.vmem [resolvable:$true] %s40_s11 }
  0x24   :  { %p850_p3 = scmp.lt.u32.totalorder %s846_s14, %s960_s2 }
  0x26   :  { %p852_p4 = pnand %p850_p3, %p847_p2 }
  0x28   :  { %855 = shalt.err (!%p852_p4)
}
  0x29   :  { %s856_s20 = scalar_lea.vmem %s41_s11, 16  ;;  %s860_s0 = scalar_lea.vmem %s41_s11, 32 }
  0x2a   :  { %p857_p5 = scmp.ne.s32.totalorder %s41_s11, %s856_s20  ;;  %p861_p6 = scmp.lt.s32.totalorder %s41_s11, %s41_s11 }
  0x2b   :  { %p862_p7 = scmp.lt.s32.totalorder %s860_s0, %s856_s20 }
  0x2d   :  { %p863_p8 = por %p862_p7, %p861_p6 }
  0x2f   :  { %p864_p9 = pnand %p863_p8, %p857_p5 }
  0x31   :  { %867 = shalt.err (!%p864_p9)
}
  0x32   :  { %43 = dma.hbm_to_vmem [thread:$0]  %s960_s2, 16, %s41_s11, [#allocation5]  }
  0x33   :  { %868 = dma.done.wait [#allocation3], 256  }
  0x34   :  { %869 = vsyncadd [#allocation3], 4294967040 }
  0x35   :  { %870 = dma.done.wait [#allocation5], 528  }
  0x36   :  { %871 = vsyncadd [#allocation5], 4294966768  ;;  %vm66_vm0 = vcmask 261120   ;;  %v55_v0 = vld [vmem:[#allocation4] sm:$0xff]  ;;  %v56_v1 = vld [vmem:[#allocation4 + $0x8] sm:$0xff]  ;;  %v613_v63 = vlaneseq }
  0x37   :  { %v57_v2 = vld [vmem:[#allocation4 + $0x10] sm:$0xff]  ;;  %v74_v3 = vand.u32 4294901760, %v55_v0  ;;  %v77_v4 = vand.u32 4294901760, %v56_v1  ;;  %v58_v5 = vld [vmem:[#allocation4 + $0x18] sm:$0xff]  ;;  %v626_v46 = vld [vmem:[#allocation6] ss:$0 sm:$0xff] }
  0x38   :  { %v80_v6 = vand.u32 4294901760, %v57_v2  ;;  %v53_v7 = vld [vmem:[#allocation2] sm:$0xff]  ;;  %v54_v8 = vld [vmem:[#allocation2 + $0x8] sm:$0xff]  ;;  %v83_v9 = vand.u32 4294901760, %v58_v5 }
  0x39   :  { %v68_v10 = vsel %vm66_vm0, %v53_v7, 0  ;;  %v71_v11 = vsel %vm66_vm0, %v54_v8, 0  ;;  %v729_v12 = vpack.c.bf16 %v77_v4, %v74_v3  ;;  %v164_v15 = vsub.f32 %v55_v0, %v74_v3 }
  0x3a   :  { %v940_v13 = vand.u32 4294901760, %v68_v10  ;;  %v942_v14 = vand.u32 4294901760, %v71_v11  ;;  %v733_v16 = vpack.c.bf16 %v83_v9, %v80_v6  ;;  %v171_v17 = vsub.f32 %v56_v1, %v77_v4 }
  0x3b   :  { %v178_v18 = vsub.f32 %v57_v2, %v80_v6  ;;  %v185_v19 = vsub.f32 %v58_v5, %v83_v9  ;;  %730 = vmatprep.subr.bf16.mxu1 %v729_v12  ;;  %754 = vmatprep.subr.bf16.mxu0 %v729_v12  ;;  %v165_v22 = vand.u32 4294901760, %v164_v15  ;;  %v614_v0 = vand.u32 127, %v613_v63 }
  0x3c   :  { %v143_v20 = vsub.f32 %v68_v10, %v940_v13  ;;  %v153_v21 = vsub.f32 %v71_v11, %v942_v14  ;;  %732 = vmatpush3.bf16.msra.mxu1 %v729_v12  ;;  %756 = vmatpush3.bf16.msra.mxu0 %v729_v12  ;;  %v172_v23 = vand.u32 4294901760, %v171_v17  ;;  %v745_v44 = vpack.c.bf16 %v171_v17, %v164_v15 }
  0x3d   :  { %v179_v24 = vand.u32 4294901760, %v178_v18  ;;  %v186_v25 = vand.u32 4294901760, %v185_v19  ;;  %734 = vmatprep.subr.bf16.mxu1 %v733_v16  ;;  %758 = vmatprep.subr.bf16.mxu0 %v733_v16  ;;  %v166_v28 = vsub.f32 %v164_v15, %v165_v22  ;;  %v749_v45 = vpack.c.bf16 %v185_v19, %v178_v18 }
  0x3e   :  { %v144_v26 = vand.u32 4294901760, %v143_v20  ;;  %v154_v27 = vand.u32 4294901760, %v153_v21  ;;  %v173_v29 = vsub.f32 %v171_v17, %v172_v23  ;;  %v761_v30 = vpack.c.bf16 %v172_v23, %v165_v22 }
  0x3f   :  { %v180_v31 = vsub.f32 %v178_v18, %v179_v24  ;;  %v187_v32 = vsub.f32 %v185_v19, %v186_v25  ;;  %v167_v35 = vand.u32 4294901760, %v166_v28  ;;  %v765_v43 = vpack.c.bf16 %v186_v25, %v179_v24 }
  0x40   :  { %v145_v33 = vsub.f32 %v143_v20, %v144_v26  ;;  %704 = vmatprep.mubr.f32.mxu0 %v144_v26  ;;  %v155_v34 = vsub.f32 %v153_v21, %v154_v27  ;;  %736 = vmatpush3.bf16.msra.mxu1 %v733_v16  ;;  %v174_v36 = vand.u32 4294901760, %v173_v29  ;;  %vm615_vm1 = vcmp.eq.s32.totalorder %v614_v0, 80 }
  0x41   :  { %760 = vmatpush3.bf16.msra.mxu0 %v733_v16  ;;  %v181_v37 = vand.u32 4294901760, %v180_v31  ;;  %v188_v38 = vand.u32 4294901760, %v187_v32 }
  0x42   :  { %v146_v39 = vand.u32 4294901760, %v145_v33  ;;  %v156_v40 = vand.u32 4294901760, %v155_v34  ;;  %762 = vmatprep.subr.bf16.mxu0 %v761_v30  ;;  %v737_v41 = vpack.c.bf16 %v174_v36, %v167_v35 }
  0x43   :  { %v741_v42 = vpack.c.bf16 %v188_v38, %v181_v37 }
  0x44   :  { %671 = vmatprep.mubr.f32.mxu1 %v146_v39  ;;  %705 = vmatmul.mubr.f32.vlgmr.msra.gmra.mrb[0].mxu0 %v154_v27 }
  0x45   :  { %672 = vmatmul.mubr.f32.vlgmr.msra.gmra.mrb[0].mxu1 %v156_v40  ;;  %738 = vmatprep.subr.bf16.mxu1 %v737_v41 }
  0x46   :  { %740 = vmatpush3.bf16.msra.mxu1 %v737_v41  ;;  %764 = vmatpush3.bf16.msra.mxu0 %v761_v30 }
  0x47   :  { %742 = vmatprep.subr.bf16.mxu1 %v741_v42  ;;  %766 = vmatprep.subr.bf16.mxu0 %v765_v43 }
  0x48   :  { %682 = vmatprep.mubr.f32.mxu1 %v940_v13  ;;  %715 = vmatprep.mubr.f32.mxu0 %v940_v13 }
  0x4a   :  { %744 = vmatpush3.bf16.msra.mxu1 %v741_v42  ;;  %768 = vmatpush3.bf16.msra.mxu0 %v765_v43 }
  0x4b   :  { %746 = vmatprep.subr.bf16.mxu1 %v745_v44  ;;  %770 = vmatprep.subr.bf16.mxu0 %v729_v12 }
  0x4d   :  { %683 = vmatmul.mubr.f32.vlgmr.msra.gmra.mrb[0].mxu1 %v942_v14  ;;  %716 = vmatmul.mubr.f32.vlgmr.msra.gmra.mrb[0].mxu0 %v942_v14 }
  0x4e   :  { %748 = vmatpush3.bf16.msra.mxu1 %v745_v44  ;;  %772 = vmatpush3.bf16.msra.mxu0 %v729_v12 }
  0x4f   :  { %750 = vmatprep.subr.bf16.mxu1 %v749_v45  ;;  %774 = vmatprep.subr.bf16.mxu0 %v733_v16 }
  0x50   :  { %693 = vmatprep.mubr.f32.mxu1 %v143_v20  ;;  %726 = vmatprep.mubr.f32.mxu0 %v940_v13 }
  0x52   :  { %752 = vmatpush3.bf16.msra.mxu1 %v749_v45  ;;  %776 = vmatpush3.bf16.msra.mxu0 %v733_v16 }
  0x55   :  { %694 = vmatmul.mubr.f32.vlgmr.msra.gmra.mrb[0].mxu1 %v153_v21  ;;  %727 = vmatmul.mubr.f32.vlgmr.msra.gmra.mrb[0].mxu0 %v942_v14 }
 0x128   :  { %v695_v47 = vpop.f32.mrb[0].mxu1  ;;  %v728_v48 = vpop.f32.mrb[0].mxu0 }
 0x129   :  { %v777_v49 = vadd.f32 %v695_v47, %v626_v46  ;;  %v335_v50 = vpop.f32.mrb[1].mxu1  ;;  %v591_v51 = vpop.f32.mrb[1].mxu0 }
 0x12a   :  { %v779_v52 = vadd.f32 %v626_v46, %v335_v50 }
 0x12b   :  { %v778_v53 = vadd.f32 %v777_v49, %v728_v48 }
 0x12c   :  { %v780_v54 = vadd.f32 %v779_v52, %v591_v51 }
 0x12d   :  { %v602_v55 = vsub.f32 0.0, %v778_v53 }
 0x12e   :  { %v601_v56 = vsub.f32 0.0, %v780_v54 }
 0x12f   :  { %v605_v57 = vmul.f32 1.442695, %v602_v55 }
 0x130   :  { %v603_v58 = vmul.f32 1.442695, %v601_v56 }
 0x131   :  { %794 = vpow2.f32 %v605_v57 }
 0x132   :  { %796 = vpow2.f32 %v603_v58 }
 0x13b   :  { %v795_v59 = vpop.eup %794 }
 0x13c   :  { %v797_v60 = vpop.eup %796  ;;  %v608_v61 = vadd.f32 1.0, %v795_v59 }
 0x13d   :  { %v607_v62 = vadd.f32 1.0, %v797_v60 }
 0x13e   :  { %798 = vrcp.f32 %v608_v61 }
 0x13f   :  { %800 = vrcp.f32 %v607_v62 }
 0x148   :  { %v799_v1 = vpop.eup %798 }
 0x149   :  { %v801_v2 = vpop.eup %800  ;;  %v617_v3 = vsel %vm615_vm1, %v799_v1, %v778_v53 }
 0x14a   :  { %619 = vst [vmem:[%s961_s3 + $0x8] sm:$0xff] %v617_v3  ;;  %v616_v4 = vsel %vm615_vm1, %v801_v2, %v780_v54 }
 0x14b   :  { %618 = vst [vmem:[%s961_s3] sm:$0xff] %v616_v4 }
 0x14c   :  { %624 = vsyncpa [#allocation3], 1 }
 0x14d   :  { %625 = vsyncpa [#allocation5], 1 }

// kernel: speech_generator_forward.3
= control target key start
LH: loop header
LB: loop body
LE: loop exit
PB: predicated region body
PF: predicated region fallthrough
CT: control target
= control target key end

     0   :  { %9 = vsyncpa [#allocation3], 0  ;;  %s27527_s0 = inlined_call_operand.vmem [shape: f32[16,128], index: 0, kind: input, shape index: {}]   ;;  %s27528_s1 = inlined_call_operand.vmem [shape: s32[16,1], index: 1, kind: input, shape index: {}]   ;;  %s27529_s2 = inlined_call_operand.hbm [shape: f32[5,640,128], index: 2, kind: input, shape index: {}]   ;;  %s27530_s3 = inlined_call_operand.hbm [shape: f32[5,1,128], index: 3, kind: input, shape index: {}]   ;;  %s27531_s4 = inlined_call_operand.hbm [shape: f32[16,128], index: 4, kind: output, shape index: {}]  }
   0x1   :  { %10 = vsyncpa [#allocation6], 0 }
   0x2   :  { %11 = vsyncpa [#allocation4], 0  ;;  %s19711_s15 = smov [#allocation2]   ;;  %s19639_s19 = scalar_lea.hbm %s27529_s2, 51200 }
   0x3   :  { %s21_s16 = sshll.u32 %s19711_s15, 4  ;;  %p19640_p0 = scmp.ne.s32.totalorder %s27529_s2, %s19639_s19  ;;  %s22_s16 = int_to_ptr.vmem [resolvable:$true] %s21_s16 }
   0x4   :  { %p19643_p1 = scmp.lt.u32.totalorder %s19639_s19, %s27529_s2 }
   0x6   :  { %p19645_p2 = pnand %p19643_p1, %p19640_p0 }
   0x8   :  { %19648 = shalt.err (!%p19645_p2)
}
   0x9   :  { %s19649_s24 = scalar_lea.vmem %s22_s16, 51200  ;;  %p19654_p4 = scmp.lt.s32.totalorder %s22_s16, %s22_s16 }
   0xa   :  { %p19650_p3 = scmp.ne.s32.totalorder %s22_s16, %s19649_s24  ;;  %p19655_p5 = scmp.lt.s32.totalorder %s19649_s24, %s19649_s24 }
   0xc   :  { %p19656_p6 = por %p19655_p5, %p19654_p4 }
   0xe   :  { %p19657_p7 = pnand %p19656_p6, %p19650_p3 }
  0x10   :  { %19660 = shalt.err (!%p19657_p7)
}
  0x11   :  { %s19712_s25 = smov 128   ;;  %s19713_s26 = smov 8  }
  0x12   :  { %27 = dma.hbm_to_vmem [thread:$0]  %s27529_s2, 51200, %s22_s16, [#allocation3], %s19712_s25, %s19712_s25, %s19713_s26  }
  0x13   :  { %s19714_s29 = smov [#allocation5]   ;;  %s19661_s7 = scalar_lea.hbm %s27530_s3, 80 }
  0x14   :  { %s33_s30 = sshll.u32 %s19714_s29, 4  ;;  %p19662_p8 = scmp.ne.s32.totalorder %s27530_s3, %s19661_s7  ;;  %s34_s30 = int_to_ptr.vmem [resolvable:$true] %s33_s30 }
  0x15   :  { %p19665_p9 = scmp.lt.u32.totalorder %s19661_s7, %s27530_s3 }
  0x17   :  { %p19667_p10 = pnand %p19665_p9, %p19662_p8 }
  0x19   :  { %19670 = shalt.err (!%p19667_p10)
}
  0x1a   :  { %s19671_s12 = scalar_lea.vmem %s34_s30, 80  ;;  %s19675_s2 = scalar_lea.vmem %s34_s30, 96 }
  0x1b   :  { %p19672_p11 = scmp.ne.s32.totalorder %s34_s30, %s19671_s12  ;;  %p19676_p12 = scmp.lt.s32.totalorder %s34_s30, %s34_s30 }
  0x1c   :  { %p19677_p13 = scmp.lt.s32.totalorder %s19675_s2, %s19671_s12 }
  0x1e   :  { %p19678_p0 = por %p19677_p13, %p19676_p12 }
  0x20   :  { %p19679_p1 = pnand %p19678_p0, %p19672_p11 }
  0x22   :  { %19682 = shalt.err (!%p19679_p1)
}
  0x23   :  { %s19715_s13 = smov 16   ;;  %s19716_s14 = smov 1  }
  0x24   :  { %39 = dma.hbm_to_vmem [thread:$0]  %s27530_s3, 80, %s34_s30, [#allocation6], %s19715_s13, %s19715_s13, %s19716_s14  }
  0x25   :  { %19705 = dma.done.wait [#allocation3], 51200  }
  0x26   :  { %19706 = vsyncadd [#allocation3], 4294916096 }
  0x27   :  { %19707 = dma.done.wait [#allocation6], 80  }
  0x28   :  { %19708 = vsyncadd [#allocation6], 4294967216  ;;  %v19717_v0 = vmov 0   ;;  %v27532_v1 = vmov 0.0   ;;  %v48_v2 = vld [vmem:[%s27528_s1] sm:$0xff]  ;;  %v90_v4 = vld [vmem:[#allocation2 + $0x88] sm:$0xff] }
  0x29   :  { %19620 = vset.pattern.permute.xlu0 %v19717_v0  ;;  %256 = vmatprep.mubr.f32.mxu1 %v27532_v1  ;;  %v89_v3 = vld [vmem:[#allocation2 + $0x80] sm:$0xff]  ;;  %vm59_vm0 = vcmp.ge.s32.totalorder %v48_v2, 1  ;;  %v212_v6 = vand.u32 4294901760, %v90_v4  ;;  %v74_v8 = vld [vmem:[#allocation2 + $0x8] sm:$0xff]  ;;  %v91_v13 = vld [vmem:[#allocation2 + $0x90] sm:$0xff]  ;;  %vm52_vm2 = vcmask 1040384  }
  0x2a   :  { %908 = vmatprep.mubr.f32.mxu0 %v27532_v1  ;;  %v209_v5 = vand.u32 4294901760, %v89_v3  ;;  %v73_v7 = vld [vmem:[#allocation2] sm:$0xff]  ;;  %v49_v9 = vld [vmem:[%s27528_s1 + $0x8] sm:$0xff]  ;;  %v61_v10 = vsel %vm59_vm0, 1, %v19717_v0  ;;  %v164_v12 = vand.u32 4294901760, %v74_v8  ;;  %v92_v14 = vld [vmem:[#allocation2 + $0x98] sm:$0xff] }
  0x2b   :  { %v161_v11 = vand.u32 4294901760, %v73_v7  ;;  %vm60_vm1 = vcmp.ge.s32.totalorder %v49_v9, 1  ;;  %64 = vperm.xlu0 %19620, %v61_v10   ;;  %v75_v16 = vld [vmem:[#allocation2 + $0x10] sm:$0xff]  ;;  %v76_v17 = vld [vmem:[#allocation2 + $0x18] sm:$0xff]  ;;  %v93_v18 = vld [vmem:[#allocation2 + $0xa0] sm:$0xff]  ;;  %v215_v21 = vand.u32 4294901760, %v91_v13  ;;  %v19799_v51 = vsub.f32 %v90_v4, %v212_v6 }
  0x2c   :  { %v19780_v15 = vpack.c.bf16 %v212_v6, %v209_v5  ;;  %v62_v20 = vsel %vm60_vm1, 1, %v19717_v0  ;;  %v94_v22 = vld [vmem:[#allocation2 + $0xa8] sm:$0xff]  ;;  %v77_v23 = vld [vmem:[#allocation2 + $0x20] sm:$0xff]  ;;  %v218_v25 = vand.u32 4294901760, %v92_v14  ;;  %v167_v26 = vand.u32 4294901760, %v75_v16  ;;  %v95_v32 = vld [vmem:[#allocation2 + $0xb0] sm:$0xff] }
  0x2d   :  { %v19782_v19 = vpack.c.bf16 %v164_v12, %v161_v11  ;;  %v78_v24 = vld [vmem:[#allocation2 + $0x28] sm:$0xff]  ;;  %v170_v27 = vand.u32 4294901760, %v76_v17  ;;  %v221_v28 = vand.u32 4294901760, %v93_v18  ;;  %v224_v29 = vand.u32 4294901760, %v94_v22  ;;  %v96_v35 = vld [vmem:[#allocation2 + $0xb8] sm:$0xff]  ;;  %v79_v36 = vld [vmem:[#allocation2 + $0x30] sm:$0xff] }
  0x2e   :  { %16672 = vmatprep.subr.bf16.mxu1 %v19780_v15  ;;  %v173_v30 = vand.u32 4294901760, %v77_v23  ;;  %v176_v31 = vand.u32 4294901760, %v78_v24  ;;  %v19786_v33 = vpack.c.bf16 %v218_v25, %v215_v21  ;;  %v80_v37 = vld [vmem:[#allocation2 + $0x38] sm:$0xff]  ;;  %v97_v39 = vld [vmem:[#allocation2 + $0xc0] sm:$0xff]  ;;  %v98_v40 = vld [vmem:[#allocation2 + $0xc8] sm:$0xff]  ;;  %v227_v41 = vand.u32 4294901760, %v95_v32 }
  0x2f   :  { %16674 = vmatpush3.bf16.msra.mxu1 %v19782_v19  ;;  %67 = vperm.xlu0 %19620, %v62_v20   ;;  %v19788_v34 = vpack.c.bf16 %v170_v27, %v167_v26  ;;  %v19790_v38 = vpack.c.bf16 %v224_v29, %v221_v28  ;;  %v230_v43 = vand.u32 4294901760, %v96_v35  ;;  %v179_v44 = vand.u32 4294901760, %v79_v36  ;;  %v81_v48 = vld [vmem:[#allocation2 + $0x40] sm:$0xff]  ;;  %v82_v49 = vld [vmem:[#allocation2 + $0x48] sm:$0xff]  ;;  %v99_v54 = vld [vmem:[#allocation2 + $0xd0] sm:$0xff]  ;;  %s19719_s23 = smov [#allocation7]  }
  0x30   :  { %16676 = vmatprep.subr.bf16.mxu1 %v19786_v33  ;;  %v19794_v42 = vpack.c.bf16 %v176_v31, %v173_v30  ;;  %v182_v45 = vand.u32 4294901760, %v80_v37  ;;  %v233_v46 = vand.u32 4294901760, %v97_v39  ;;  %v236_v47 = vand.u32 4294901760, %v98_v40  ;;  %v100_v55 = vld [vmem:[#allocation2 + $0xd8] sm:$0xff]  ;;  %s12783_s24 = sshll.u32 %s19719_s23, 4  ;;  %s12784_s24 = int_to_ptr.vmem [resolvable:$true] %s12783_s24 }
  0x31   :  { %v19797_v50 = vsub.f32 %v89_v3, %v209_v5  ;;  %v19801_v52 = vsub.f32 %v73_v7, %v161_v11  ;;  %v19803_v53 = vpack.c.bf16 %v230_v43, %v227_v41  ;;  %v19805_v56 = vsub.f32 %v74_v8, %v164_v12  ;;  %v83_v5 = vld [vmem:[#allocation2 + $0x50] sm:$0xff]  ;;  %v19823_v6 = vld [vmem:[#allocation2 + $0x58] sm:$0xff]  ;;  %v19833_v11 = vld [vmem:[#allocation2 + $0xe0] sm:$0xff]  ;;  %s19683_s5 = scalar_lea.vmem %s12784_s24, 256  ;;  %p19688_p3 = scmp.lt.s32.totalorder %s12784_s24, %s12784_s24 }
  0x32   :  { %28359 = vst [vmem:[#allocation11_spill] sm:$0xff] %v19794_v42  ;;  %v19807_v57 = vsub.f32 %v91_v13, %v215_v21  ;;  %v19809_v58 = vsub.f32 %v92_v14, %v218_v25  ;;  %v19811_v59 = vsub.f32 %v75_v16, %v167_v26  ;;  %v19813_v60 = vsub.f32 %v76_v17, %v170_v27  ;;  %v19835_v12 = vld [vmem:[#allocation2 + $0xe8] sm:$0xff]  ;;  %p19684_p2 = scmp.ne.s32.totalorder %s12784_s24, %s19683_s5  ;;  %p19689_p4 = scmp.lt.s32.totalorder %s19683_s5, %s19683_s5 }
  0x33   :  { %16678 = vmatpush3.bf16.msra.mxu1 %v19788_v34  ;;  %28360 = vst [vmem:[#allocation12_spill] sm:$0xff] %v19803_v53  ;;  %v19816_v61 = vpack.c.bf16 %v182_v45, %v179_v44  ;;  %v185_v62 = vand.u32 4294901760, %v81_v48  ;;  %v188_v63 = vand.u32 4294901760, %v82_v49  ;;  %v19818_v0 = vsub.f32 %v93_v18, %v221_v28  ;;  %v19845_v18 = vld [vmem:[#allocation2 + $0x60] sm:$0xff] }
  0x34   :  { %16680 = vmatprep.subr.bf16.mxu1 %v19790_v38  ;;  %v19821_v2 = vpack.c.bf16 %v236_v47, %v233_v46  ;;  %v239_v3 = vand.u32 4294901760, %v99_v54  ;;  %v242_v4 = vand.u32 4294901760, %v100_v55  ;;  %v19825_v7 = vsub.f32 %v94_v22, %v224_v29  ;;  %v19862_v29 = vld [vmem:[#allocation2 + $0xf0] sm:$0xff]  ;;  %p19690_p5 = por %p19689_p4, %p19688_p3 }
  0x35   :  { %28361 = vst [vmem:[#allocation13_spill] sm:$0xff] %v19816_v61  ;;  %v19827_v8 = vsub.f32 %v77_v23, %v173_v30  ;;  %v19829_v9 = vsub.f32 %v78_v24, %v176_v31  ;;  %v19831_v10 = vsub.f32 %v95_v32, %v227_v41  ;;  %v19837_v13 = vsub.f32 %v96_v35, %v230_v43  ;;  %v19853_v24 = vld [vmem:[#allocation2 + $0x68] sm:$0xff]  ;;  %v19864_v30 = vld [vmem:[#allocation2 + $0xf8] sm:$0xff] }
  0x36   :  { %28362 = vst [vmem:[#allocation14_spill] sm:$0xff] %v19821_v2  ;;  %v19839_v14 = vsub.f32 %v79_v36, %v179_v44  ;;  %v19841_v16 = vsub.f32 %v80_v37, %v182_v45  ;;  %v19843_v17 = vsub.f32 %v97_v39, %v233_v46  ;;  %v19848_v20 = vsub.f32 %v98_v40, %v236_v47  ;;  %v19871_v36 = vld [vmem:[#allocation2 + $0x70] sm:$0xff]  ;;  %v19877_v41 = vld [vmem:[#allocation2 + $0x78] sm:$0xff]  ;;  %p19691_p6 = pnand %p19690_p5, %p19684_p2 }
  0x37   :  { %16682 = vmatpush3.bf16.msra.mxu1 %v19794_v42  ;;  %v19850_v21 = vpack.c.bf16 %v188_v63, %v185_v62  ;;  %v191_v22 = vand.u32 4294901760, %v83_v5  ;;  %v194_v23 = vand.u32 4294901760, %v19823_v6  ;;  %v19856_v25 = vsub.f32 %v81_v48, %v185_v62 }
  0x38   :  { %16684 = vmatprep.subr.bf16.mxu1 %v19803_v53  ;;  %v19858_v26 = vpack.c.bf16 %v242_v4, %v239_v3  ;;  %v245_v27 = vand.u32 4294901760, %v19833_v11  ;;  %v248_v28 = vand.u32 4294901760, %v19835_v12  ;;  %v19866_v31 = vsub.f32 %v82_v49, %v188_v63 }
  0x39   :  { %28363 = vst [vmem:[#allocation15_spill] sm:$0xff] %v19850_v21  ;;  %v19868_v32 = vsub.f32 %v99_v54, %v239_v3  ;;  %v197_v35 = vand.u32 4294901760, %v19845_v18  ;;  %v27534_v37 = vand.u32 4294901760, %v19797_v50  ;;  %v19874_v39 = vsub.f32 %v100_v55, %v242_v4 }
  0x3a   :  { %28364 = vst [vmem:[#allocation16_spill] sm:$0xff] %v19858_v26  ;;  %v27536_v40 = vand.u32 4294901760, %v19853_v24  ;;  %v27535_v43 = vand.u32 4294901760, %v19799_v51  ;;  %v27537_v44 = vand.u32 4294901760, %v19801_v52  ;;  %v19882_v45 = vpack.c.bf16 %v194_v23, %v191_v22 }
  0x3b   :  { %16686 = vmatpush3.bf16.msra.mxu1 %v19816_v61  ;;  %v27541_v46 = vand.u32 4294901760, %v19862_v29  ;;  %v27540_v47 = vand.u32 4294901760, %v19864_v30  ;;  %v19888_v49 = vpack.c.bf16 %v248_v28, %v245_v27  ;;  %v383_v55 = vsub.f32 %v19797_v50, %v27534_v37 }
  0x3c   :  { %16688 = vmatprep.subr.bf16.mxu1 %v19821_v2  ;;  %28365 = vst [vmem:[#allocation17_spill] sm:$0xff] %v19882_v45  ;;  %v390_v62 = vsub.f32 %v19799_v51, %v27535_v43  ;;  %v27544_v3 = vand.u32 4294901760, %v19807_v57  ;;  %v27547_v4 = vand.u32 4294901760, %v19809_v58  ;;  %v19901_v48 = vsub.f32 %v83_v5, %v191_v22 }
  0x3d   :  { %28366 = vst [vmem:[#allocation18_spill] sm:$0xff] %v19888_v49  ;;  %v19905_v54 = vpack.c.bf16 %v27536_v40, %v197_v35  ;;  %v271_v37 = vsub.f32 %v19801_v52, %v27537_v44  ;;  %v19916_v63 = vpack.c.bf16 %v27540_v47, %v27541_v46  ;;  %v28369_v5 = vand.u32 4294901760, %v19805_v56 }
  0x3e   :  { %v397_v40 = vsub.f32 %v19807_v57, %v27544_v3  ;;  %v404_v44 = vsub.f32 %v19809_v58, %v27547_v4  ;;  %v384_v43 = vand.u32 4294901760, %v383_v55  ;;  %v391_v1 = vand.u32 4294901760, %v390_v62 }
  0x3f   :  { %16690 = vmatpush3.bf16.msra.mxu1 %v19850_v21  ;;  %28367 = vst [vmem:[#allocation19_spill] sm:$0xff] %v19905_v54  ;;  %28368 = vst [vmem:[#allocation20_spill] sm:$0xff] %v19916_v63  ;;  %v278_v22 = vsub.f32 %v19805_v56, %v28369_v5  ;;  %v19931_v46 = vsub.f32 %v19823_v6, %v194_v23  ;;  %v28370_v5 = vand.u32 4294901760, %v19871_v36  ;;  %v28373_v21 = vand.u32 4294901760, %v19811_v59 }
  0x40   :  { %16692 = vmatprep.subr.bf16.mxu1 %v19858_v26  ;;  %v28371_v26 = vand.u32 4294901760, %v19877_v41  ;;  %v28374_v55 = vand.u32 4294901760, %v19813_v60  ;;  %v28375_v47 = vand.u32 4294901760, %v19818_v0  ;;  %v28376_v23 = vand.u32 4294901760, %v19825_v7 }
  0x41   :  { %v285_v4 = vsub.f32 %v19811_v59, %v28373_v21  ;;  %v398_v2 = vand.u32 4294901760, %v397_v40  ;;  %v405_v21 = vand.u32 4294901760, %v404_v44 }
  0x42   :  { %v19937_v3 = vpack.c.bf16 %v28371_v26, %v28370_v5  ;;  %v292_v62 = vsub.f32 %v19813_v60, %v28374_v55  ;;  %v411_v6 = vsub.f32 %v19818_v0, %v28375_v47  ;;  %v279_v5 = vand.u32 4294901760, %v278_v22 }
  0x43   :  { %16694 = vmatpush3.bf16.msra.mxu1 %v19882_v45  ;;  %v272_v45 = vand.u32 4294901760, %v271_v37  ;;  %v19955_v55 = vsub.f32 %v19833_v11, %v245_v27  ;;  %v16703_v37 = vpack.c.bf16 %v391_v1, %v384_v43  ;;  %v27556_v47 = vand.u32 4294901760, %v19831_v10 }
  0x44   :  { %16696 = vmatprep.subr.bf16.mxu1 %v19888_v49  ;;  %28372 = vst [vmem:[#allocation21_spill] sm:$0xff] %v19937_v3  ;;  %v418_v49 = vsub.f32 %v19825_v7, %v28376_v23  ;;  %v19961_v23 = vsub.f32 %v19835_v12, %v248_v28  ;;  %v19964_v26 = vsub.f32 %v19845_v18, %v197_v35  ;;  %v286_v40 = vand.u32 4294901760, %v285_v4 }
  0x45   :  { %v293_v44 = vand.u32 4294901760, %v292_v62  ;;  %v412_v22 = vand.u32 4294901760, %v411_v6  ;;  %v28377_v11 = vand.u32 4294901760, %v19827_v8  ;;  %v28378_v1 = vand.u32 4294901760, %v19829_v9 }
  0x46   :  { %v419_v61 = vand.u32 4294901760, %v418_v49  ;;  %v16705_v53 = vpack.c.bf16 %v279_v5, %v272_v45  ;;  %v16707_v12 = vpack.c.bf16 %v405_v21, %v398_v2  ;;  %v27559_v28 = vand.u32 4294901760, %v19839_v14 }
  0x47   :  { %16698 = vmatpush3.bf16.msra.mxu1 %v19905_v54  ;;  %v299_v27 = vsub.f32 %v19827_v8, %v28377_v11  ;;  %v306_v43 = vsub.f32 %v19829_v9, %v28378_v1  ;;  %v27557_v18 = vand.u32 4294901760, %v19841_v16  ;;  %v425_v35 = vsub.f32 %v19831_v10, %v27556_v47 }
  0x48   :  { %16700 = vmatprep.subr.bf16.mxu1 %v19916_v63  ;;  %v28379_v49 = vand.u32 4294901760, %v19837_v13  ;;  %v28380_v45 = vand.u32 4294901760, %v19853_v24  ;;  %v28381_v5 = vand.u32 4294901760, %v19862_v29  ;;  %v27560_v11 = vand.u32 4294901760, %v19866_v31 }
  0x49   :  { %v28382_v1 = vmov 0.0   ;;  %v16711_v47 = vpack.c.bf16 %v419_v61, %v412_v22  ;;  %v300_v62 = vand.u32 4294901760, %v299_v27  ;;  %v307_v6 = vand.u32 4294901760, %v306_v43 }
  0x4a   :  { %v432_v4 = vsub.f32 %v19837_v13, %v28379_v49  ;;  %v19986_v2 = vsub.f32 %v19853_v24, %v28380_v45  ;;  %v19991_v21 = vsub.f32 %v19862_v29, %v28381_v5  ;;  %v16709_v49 = vpack.c.bf16 %v293_v44, %v286_v40 }
  0x4b   :  { %16702 = vmatpush3.bf16.msra.mxu1 %v19937_v3  ;;  %v313_v24 = vsub.f32 %v19839_v14, %v27559_v28  ;;  %v320_v29 = vsub.f32 %v19841_v16, %v27557_v18  ;;  %v27563_v45 = vand.u32 4294901760, %v19868_v32  ;;  %v27564_v5 = vand.u32 4294901760, %v19874_v39 }
  0x4c   :  { %16704 = vmatprep.subr.bf16.mxu1 %v16703_v37  ;;  %v27558_v37 = vand.u32 4294901760, %v19856_v25  ;;  %v426_v40 = vand.u32 4294901760, %v425_v35  ;;  %v433_v61 = vand.u32 4294901760, %v432_v4  ;;  %v28383_v44 = vand.u32 4294901760, %v19843_v17 }
  0x4d   :  { %v28384_v22 = vand.u32 4294901760, %v19848_v20  ;;  %v334_v18 = vsub.f32 %v19866_v31, %v27560_v11  ;;  %v28385_v4 = vand.u32 4294901760, %v19864_v30  ;;  %v16713_v11 = vpack.c.bf16 %v307_v6, %v300_v62 }
  0x4e   :  { %257 = vmatmul.mubr.f32.vlgmr.msra.gmra.mrb[0].mxu1 %v28382_v1  ;;  %v327_v43 = vsub.f32 %v19856_v25, %v27558_v37  ;;  %v460_v37 = vsub.f32 %v19874_v39, %v27564_v5  ;;  %v314_v35 = vand.u32 4294901760, %v313_v24  ;;  %v28388_v6 = vand.u32 4294901760, %v19931_v46 }
  0x4f   :  { %16706 = vmatpush3.bf16.msra.mxu1 %v16705_v53  ;;  %261 = vmatprep.mubr.f32.mxu1 %v28382_v1  ;;  %v439_v53 = vsub.f32 %v19843_v17, %v28383_v44  ;;  %v446_v27 = vsub.f32 %v19848_v20, %v28384_v22  ;;  %v20022_v44 = vsub.f32 %v19864_v30, %v28385_v4  ;;  %v28386_v30 = vand.u32 4294901760, %v19871_v36 }
  0x50   :  { %16708 = vmatprep.subr.bf16.mxu1 %v16707_v12  ;;  %v453_v22 = vsub.f32 %v19868_v32, %v27563_v45  ;;  %v321_v12 = vand.u32 4294901760, %v320_v29  ;;  %v16715_v45 = vpack.c.bf16 %v433_v61, %v426_v40  ;;  %v328_v28 = vand.u32 4294901760, %v327_v43 }
  0x51   :  { %v20037_v4 = vsub.f32 %v19871_v36, %v28386_v30  ;;  %v440_v5 = vand.u32 4294901760, %v439_v53  ;;  %v447_v63 = vand.u32 4294901760, %v446_v27  ;;  %v335_v54 = vand.u32 4294901760, %v334_v18 }
  0x52   :  { %262 = vmatmul.mubr.f32.gmra.mrb[2].mxu1 %v28382_v1  ;;  %v348_v24 = vsub.f32 %v19931_v46, %v28388_v6  ;;  %v454_v29 = vand.u32 4294901760, %v453_v22  ;;  %v461_v3 = vand.u32 4294901760, %v460_v37  ;;  %v28389_v42 = vand.u32 4294901760, %v19955_v55 }
  0x53   :  { %16710 = vmatpush3.bf16.msra.mxu1 %v16709_v49  ;;  %491 = vmatprep.mubr.f32.mxu1 %v28382_v1  ;;  %v28387_v49 = vand.u32 4294901760, %v19901_v48  ;;  %v28390_v40 = vand.u32 4294901760, %v19877_v41  ;;  %v16717_v61 = vpack.c.bf16 %v321_v12, %v314_v35  ;;  %v28391_v53 = vand.u32 4294901760, %v19961_v23 }
  0x54   :  { %16712 = vmatprep.subr.bf16.mxu1 %v16711_v47  ;;  %v467_v36 = vsub.f32 %v19955_v55, %v28389_v42  ;;  %v361_v43 = vand.u32 4294901760, %v19986_v2  ;;  %v16719_v37 = vpack.c.bf16 %v447_v63, %v440_v5  ;;  %v27572_v22 = vand.u32 4294901760, %v19991_v21 }
  0x55   :  { %v341_v62 = vsub.f32 %v19901_v48, %v28387_v49  ;;  %v20052_v18 = vsub.f32 %v19877_v41, %v28390_v40  ;;  %v474_v27 = vsub.f32 %v19961_v23, %v28391_v53  ;;  %v27571_v42 = vand.u32 4294901760, %v20022_v44 }
  0x56   :  { %v16721_v30 = vpack.c.bf16 %v335_v54, %v328_v28  ;;  %v16723_v6 = vpack.c.bf16 %v461_v3, %v454_v29  ;;  %v349_v47 = vand.u32 4294901760, %v348_v24  ;;  %v468_v41 = vand.u32 4294901760, %v467_v36 }
  0x57   :  { %16714 = vmatpush3.bf16.msra.mxu1 %v16713_v11  ;;  %v342_v49 = vand.u32 4294901760, %v341_v62  ;;  %v28392_v11 = vand.u32 4294901760, %v19964_v26  ;;  %v475_v35 = vand.u32 4294901760, %v474_v27  ;;  %v27574_v63 = vand.u32 4294901760, %v20037_v4 }
  0x58   :  { %16716 = vmatprep.subr.bf16.mxu1 %v16715_v45  ;;  %v362_v45 = vsub.f32 %v19986_v2, %v361_v43  ;;  %v27573_v5 = vand.u32 4294901760, %v20052_v18  ;;  %v481_v54 = vsub.f32 %v19991_v21, %v27572_v22  ;;  %v488_v3 = vsub.f32 %v20022_v44, %v27571_v42 }
  0x59   :  { %v355_v12 = vsub.f32 %v19964_v26, %v28392_v11  ;;  %v28393_v28 = vand.u32 4294901760, %v19797_v50  ;;  %v28394_v62 = vand.u32 4294901760, %v19799_v51  ;;  %v28395_v29 = vand.u32 4294901760, %v19801_v52 }
  0x5a   :  { %v28396_v36 = vand.u32 4294901760, %v19805_v56  ;;  %v28398_v53 = vand.u32 4294901760, %v19809_v58  ;;  %v363_v42 = vand.u32 4294901760, %v362_v45  ;;  %v369_v22 = vsub.f32 %v20037_v4, %v27574_v63 }
  0x5b   :  { %16718 = vmatpush3.bf16.msra.mxu1 %v16717_v61  ;;  %v16799_v24 = vpack.c.bf16 %v28394_v62, %v28393_v28  ;;  %v28397_v61 = vand.u32 4294901760, %v19807_v57  ;;  %v356_v11 = vand.u32 4294901760, %v355_v12  ;;  %v376_v28 = vsub.f32 %v20052_v18, %v27573_v5 }
  0x5c   :  { %16720 = vmatprep.subr.bf16.mxu1 %v16719_v37  ;;  %v16801_v40 = vpack.c.bf16 %v28396_v36, %v28395_v29  ;;  %v16725_v37 = vpack.c.bf16 %v349_v47, %v342_v49  ;;  %v28399_v62 = vand.u32 4294901760, %v19811_v59  ;;  %v28400_v29 = vand.u32 4294901760, %v19813_v60 }
  0x5d   :  { %v16803_v27 = vpack.c.bf16 %v28398_v53, %v28397_v61  ;;  %16800 = vmatprep.subr.bf16.mxu0 %v16799_v24  ;;  %v16727_v47 = vpack.c.bf16 %v475_v35, %v468_v41  ;;  %v482_v49 = vand.u32 4294901760, %v481_v54  ;;  %v489_v12 = vand.u32 4294901760, %v488_v3 }
  0x5e   :  { %16802 = vmatpush3.bf16.msra.mxu0 %v16801_v40  ;;  %v16805_v36 = vpack.c.bf16 %v28400_v29, %v28399_v62  ;;  %v28402_v45 = vand.u32 4294901760, %v19825_v7  ;;  %v16729_v61 = vpack.c.bf16 %v363_v42, %v356_v11  ;;  %v370_v53 = vand.u32 4294901760, %v369_v22 }
  0x5f   :  { %16722 = vmatpush3.bf16.msra.mxu1 %v16721_v30  ;;  %16804 = vmatprep.subr.bf16.mxu0 %v16803_v27  ;;  %v28401_v30 = vand.u32 4294901760, %v19818_v0  ;;  %v377_v5 = vand.u32 4294901760, %v376_v28  ;;  %v28403_v40 = vand.u32 4294901760, %v19827_v8  ;;  %v28404_v63 = vand.u32 4294901760, %v19829_v9 }
  0x60   :  { %16724 = vmatprep.subr.bf16.mxu1 %v16723_v6  ;;  %v16731_v6 = vpack.c.bf16 %v489_v12, %v482_v49  ;;  %v28405_v41 = vand.u32 4294901760, %v19831_v10  ;;  %v28406_v35 = vand.u32 4294901760, %v19837_v13  ;;  %v28407_v22 = vand.u32 4294901760, %v19839_v14 }
  0x61   :  { %v16807_v24 = vpack.c.bf16 %v28402_v45, %v28401_v30  ;;  %v16809_v62 = vpack.c.bf16 %v28404_v63, %v28403_v40  ;;  %v16733_v3 = vpack.c.bf16 %v377_v5, %v370_v53  ;;  %v28408_v42 = vand.u32 4294901760, %v19841_v16  ;;  %v20144_v53 = vld [vmem:[#allocation2 + $0x180] sm:$0xff] }
  0x62   :  { %16806 = vmatpush3.bf16.msra.mxu0 %v16805_v36  ;;  %v16811_v54 = vpack.c.bf16 %v28406_v35, %v28405_v41  ;;  %v16735_v63 = vpack.c.bf16 %v19799_v51, %v19797_v50  ;;  %v28410_v11 = vand.u32 4294901760, %v19848_v20  ;;  %v16737_v5 = vpack.c.bf16 %v19805_v56, %v19801_v52 }
  0x63   :  { %16726 = vmatpush3.bf16.msra.mxu1 %v16725_v37  ;;  %16808 = vmatprep.subr.bf16.mxu0 %v16807_v24  ;;  %v16813_v27 = vpack.c.bf16 %v28408_v42, %v28407_v22  ;;  %v28409_v37 = vand.u32 4294901760, %v19843_v17  ;;  %v28411_v29 = vand.u32 4294901760, %v19856_v25  ;;  %v28412_v36 = vand.u32 4294901760, %v19866_v31 }
  0x64   :  { %16728 = vmatprep.subr.bf16.mxu1 %v16727_v47  ;;  %v16739_v50 = vpack.c.bf16 %v19809_v58, %v19807_v57  ;;  %v28413_v51 = vand.u32 4294901760, %v19868_v32  ;;  %v28414_v49 = vand.u32 4294901760, %v19874_v39  ;;  %v16741_v52 = vpack.c.bf16 %v19813_v60, %v19811_v59  ;;  %v20146_v59 = vld [vmem:[#allocation2 + $0x188] sm:$0xff] }
  0x65   :  { %v16815_v28 = vpack.c.bf16 %v28410_v11, %v28409_v37  ;;  %v16817_v47 = vpack.c.bf16 %v28412_v36, %v28411_v29  ;;  %v28415_v56 = vand.u32 4294901760, %v19901_v48  ;;  %v28416_v30 = vand.u32 4294901760, %v19931_v46  ;;  %v20194_v29 = vld [vmem:[#allocation2 + $0x1a0] sm:$0xff]  ;;  %v20196_v36 = vld [vmem:[#allocation2 + $0x1a8] sm:$0xff] }
  0x66   :  { %16810 = vmatpush3.bf16.msra.mxu0 %v16809_v62  ;;  %v16819_v12 = vpack.c.bf16 %v28414_v49, %v28413_v51  ;;  %v16743_v57 = vpack.c.bf16 %v19825_v7, %v19818_v0  ;;  %v28417_v58 = vand.u32 4294901760, %v19955_v55  ;;  %v28418_v24 = vand.u32 4294901760, %v19961_v23 }
  0x67   :  { %16730 = vmatpush3.bf16.msra.mxu1 %v16729_v61  ;;  %16812 = vmatprep.subr.bf16.mxu0 %v16811_v54  ;;  %v16821_v45 = vpack.c.bf16 %v28416_v30, %v28415_v56  ;;  %v16745_v60 = vpack.c.bf16 %v19829_v9, %v19827_v8  ;;  %v28419_v0 = vand.u32 4294901760, %v19964_v26  ;;  %v16747_v40 = vpack.c.bf16 %v19837_v13, %v19831_v10  ;;  %v20164_v9 = vld [vmem:[#allocation2 + $0x100] sm:$0xff]  ;;  %v20166_v54 = vld [vmem:[#allocation2 + $0x108] sm:$0xff]  ;;  %v20223_v56 = vld [vmem:[#allocation2 + $0x1b0] sm:$0xff] }
  0x68   :  { %16732 = vmatprep.subr.bf16.mxu1 %v16731_v6  ;;  %v16823_v61 = vpack.c.bf16 %v28418_v24, %v28417_v58  ;;  %v28420_v62 = vand.u32 4294901760, %v19991_v21  ;;  %v28421_v6 = vand.u32 4294901760, %v20022_v44  ;;  %v1075_v35 = vand.u32 4294901760, %v20144_v53  ;;  %v20225_v30 = vld [vmem:[#allocation2 + $0x1b8] sm:$0xff] }
  0x69   :  { %v16825_v7 = vpack.c.bf16 %v361_v43, %v28419_v0  ;;  %v1078_v8 = vand.u32 4294901760, %v20146_v59  ;;  %v20168_v43 = vld [vmem:[#allocation2 + $0x190] sm:$0xff]  ;;  %v16749_v10 = vpack.c.bf16 %v19841_v16, %v19839_v14  ;;  %v28422_v13 = vand.u32 4294901760, %v20037_v4  ;;  %v20254_v0 = vld [vmem:[#allocation2 + $0x1c0] sm:$0xff] }
  0x6a   :  { %16814 = vmatpush3.bf16.msra.mxu0 %v16813_v27  ;;  %v16827_v41 = vpack.c.bf16 %v28421_v6, %v28420_v62  ;;  %v28423_v22 = vand.u32 4294901760, %v20052_v18  ;;  %v27602_v27 = vand.u32 4294901760, %v20164_v9  ;;  %v16751_v37 = vpack.c.bf16 %v19848_v20, %v19843_v17 }
  0x6b   :  { %16734 = vmatpush3.bf16.msra.mxu1 %v16733_v3  ;;  %16816 = vmatprep.subr.bf16.mxu0 %v16815_v28  ;;  %v20170_v3 = vld [vmem:[#allocation2 + $0x198] sm:$0xff]  ;;  %v20186_v14 = vpack.c.bf16 %v1078_v8, %v1075_v35  ;;  %v27596_v16 = vand.u32 4294901760, %v20168_v43  ;;  %v20190_v28 = vld [vmem:[#allocation2 + $0x110] sm:$0xff]  ;;  %v16753_v17 = vpack.c.bf16 %v19866_v31, %v19856_v25  ;;  %v16755_v51 = vpack.c.bf16 %v19874_v39, %v19868_v32 }
  0x6c   :  { %16736 = vmatprep.subr.bf16.mxu1 %v16735_v63  ;;  %v16829_v42 = vpack.c.bf16 %v28423_v22, %v28422_v13  ;;  %v27599_v63 = vand.u32 4294901760, %v20166_v54  ;;  %v27595_v11 = vand.u32 4294901760, %v20170_v3  ;;  %v27588_v31 = vand.u32 4294901760, %v20194_v29  ;;  %v20284_v13 = vld [vmem:[#allocation2 + $0x148] sm:$0xff]  ;;  %v20286_v22 = vld [vmem:[#allocation2 + $0x1d0] sm:$0xff] }
  0x6d   :  { %28424 = vst [vmem:[#allocation22_spill] sm:$0xff] %v20186_v14  ;;  %v27587_v49 = vand.u32 4294901760, %v20196_v36  ;;  %v16757_v32 = vpack.c.bf16 %v19931_v46, %v19901_v48  ;;  %v16759_v58 = vpack.c.bf16 %v19961_v23, %v19955_v55  ;;  %v27580_v48 = vand.u32 4294901760, %v20223_v56 }
  0x6e   :  { %492 = vmatmul.mubr.f32.vlgmr.msra.gmra.mrb[4].mxu1 %v28382_v1  ;;  %16818 = vmatpush3.bf16.msra.mxu0 %v16817_v47  ;;  %v20204_v20 = vpack.c.bf16 %v27599_v63, %v27602_v27  ;;  %v27590_v47 = vand.u32 4294901760, %v20190_v28  ;;  %v20215_v25 = vpack.c.bf16 %v27595_v11, %v27596_v16  ;;  %v27579_v24 = vand.u32 4294901760, %v20225_v30  ;;  %v28440_v63 = vld [vmem:[#allocation12_spill] sm:$0xff]  ;;  %v28446_v27 = vld [vmem:[#allocation17_spill] sm:$0xff] }
  0x6f   :  { %16738 = vmatpush3.bf16.msra.mxu1 %v16737_v5  ;;  %496 = vmatprep.mubr.f32.mxu1 %v28382_v1  ;;  %v20192_v5 = vld [vmem:[#allocation2 + $0x118] sm:$0xff]  ;;  %v20246_v46 = vpack.c.bf16 %v27587_v49, %v27588_v31  ;;  %v16761_v55 = vpack.c.bf16 %v19986_v2, %v19964_v26  ;;  %v16763_v6 = vpack.c.bf16 %v20022_v44, %v19991_v21  ;;  %v27576_v2 = vand.u32 4294901760, %v20254_v0 }
  0x70   :  { %16740 = vmatprep.subr.bf16.mxu1 %v16739_v50  ;;  %16820 = vmatprep.subr.bf16.mxu0 %v16819_v12  ;;  %28425 = vst [vmem:[#allocation23_spill] sm:$0xff] %v20204_v20  ;;  %v27589_v50 = vand.u32 4294901760, %v20192_v5  ;;  %28426 = vst [vmem:[#allocation24_spill] sm:$0xff] %v20215_v25  ;;  %v20219_v12 = vld [vmem:[#allocation2 + $0x120] sm:$0xff]  ;;  %v20278_v26 = vpack.c.bf16 %v27579_v24, %v27580_v48  ;;  %v16765_v21 = vpack.c.bf16 %v20052_v18, %v20037_v4 }
  0x71   :  { %28428 = vst [vmem:[#allocation26_spill] sm:$0xff] %v20246_v46  ;;  %v27582_v4 = vand.u32 4294901760, %v20284_v13  ;;  %v27585_v18 = vand.u32 4294901760, %v20286_v22  ;;  %v20337_v48 = vld [vmem:[#allocation2 + $0x160] sm:$0xff]  ;;  %v20387_v11 = vsub.f32 %v20144_v53, %v1075_v35  ;;  %v20392_v16 = vsub.f32 %v20146_v59, %v1078_v8  ;;  %v28443_v8 = vld [vmem:[#allocation14_spill] sm:$0xff] }
  0x72   :  { %497 = vmatmul.mubr.f32.gmra.mrb[6].mxu1 %v28382_v1  ;;  %16822 = vmatpush3.bf16.msra.mxu0 %v16821_v45  ;;  %v20235_v39 = vpack.c.bf16 %v27589_v50, %v27590_v47  ;;  %v27586_v45 = vand.u32 4294901760, %v20219_v12  ;;  %28430 = vst [vmem:[#allocation28_spill] sm:$0xff] %v20278_v26  ;;  %v20367_v47 = vld [vmem:[#allocation2 + $0x170] sm:$0xff]  ;;  %v28442_v35 = vld [vmem:[#allocation13_spill] sm:$0xff] }
  0x73   :  { %16742 = vmatpush3.bf16.msra.mxu1 %v16741_v52  ;;  %630 = vmatprep.mubr.f32.mxu1 %v28382_v1  ;;  %v20221_v52 = vld [vmem:[#allocation2 + $0x128] sm:$0xff]  ;;  %v16927_v59 = vpack.c.bf16 %v20392_v16, %v20387_v11 }
  0x74   :  { %16744 = vmatprep.subr.bf16.mxu1 %v16743_v57  ;;  %16824 = vmatprep.subr.bf16.mxu0 %v16823_v61  ;;  %28427 = vst [vmem:[#allocation25_spill] sm:$0xff] %v20235_v39  ;;  %v27581_v57 = vand.u32 4294901760, %v20221_v52  ;;  %v20250_v61 = vld [vmem:[#allocation2 + $0x130] sm:$0xff] }
  0x76   :  { %16826 = vmatpush3.bf16.msra.mxu0 %v16825_v7  ;;  %v20256_v7 = vld [vmem:[#allocation2 + $0x1c8] sm:$0xff]  ;;  %v20267_v23 = vpack.c.bf16 %v27581_v57, %v27586_v45 }
  0x77   :  { %16746 = vmatpush3.bf16.msra.mxu1 %v16745_v60  ;;  %16828 = vmatprep.subr.bf16.mxu0 %v16827_v41  ;;  %v20252_v60 = vld [vmem:[#allocation2 + $0x138] sm:$0xff]  ;;  %v27575_v41 = vand.u32 4294901760, %v20256_v7  ;;  %v20339_v57 = vld [vmem:[#allocation2 + $0x168] sm:$0xff] }
  0x78   :  { %16748 = vmatprep.subr.bf16.mxu1 %v16747_v40  ;;  %28429 = vst [vmem:[#allocation27_spill] sm:$0xff] %v20267_v23  ;;  %v27578_v40 = vand.u32 4294901760, %v20250_v61  ;;  %v27577_v62 = vand.u32 4294901760, %v20252_v60  ;;  %v27597_v45 = vand.u32 4294901760, %v20339_v57 }
  0x7a   :  { %16830 = vmatpush3.bf16.msra.mxu0 %v16829_v42  ;;  %v20288_v42 = vld [vmem:[#allocation2 + $0x1d8] sm:$0xff]  ;;  %v20297_v44 = vpack.c.bf16 %v27577_v62, %v27578_v40 }
  0x7b   :  { %16750 = vmatpush3.bf16.msra.mxu1 %v16749_v10  ;;  %16864 = vmatprep.subr.bf16.mxu0 %v20186_v14  ;;  %v20282_v10 = vld [vmem:[#allocation2 + $0x140] sm:$0xff] }
  0x7c   :  { %16752 = vmatprep.subr.bf16.mxu1 %v16751_v37  ;;  %28431 = vst [vmem:[#allocation29_spill] sm:$0xff] %v20297_v44  ;;  %v20304_v37 = vpack.c.bf16 %v27575_v41, %v27576_v2 }
  0x7d   :  { %909 = vmatmul.mubr.f32.vlgmr.msra.gmra.mrb[0].mxu0 %v28382_v1 }
  0x7e   :  { %16866 = vmatpush3.bf16.msra.mxu0 %v20204_v20  ;;  %913 = vmatprep.mubr.f32.mxu0 %v28382_v1  ;;  %28432 = vst [vmem:[#allocation30_spill] sm:$0xff] %v20304_v37 }
  0x7f   :  { %16754 = vmatpush3.bf16.msra.mxu1 %v16753_v17  ;;  %16868 = vmatprep.subr.bf16.mxu0 %v20215_v25  ;;  %v27583_v17 = vand.u32 4294901760, %v20282_v10 }
  0x80   :  { %16756 = vmatprep.subr.bf16.mxu1 %v16755_v51  ;;  %v27584_v51 = vand.u32 4294901760, %v20288_v42 }
  0x81   :  { %914 = vmatmul.mubr.f32.gmra.mrb[2].mxu0 %v28382_v1  ;;  %v20325_v41 = vpack.c.bf16 %v27582_v4, %v27583_v17  ;;  %v20342_v4 = vld [vmem:[#allocation2 + $0x1f0] sm:$0xff]  ;;  %v20344_v17 = vld [vmem:[#allocation2 + $0x1f8] sm:$0xff] }
  0x82   :  { %16870 = vmatpush3.bf16.msra.mxu0 %v20235_v39  ;;  %v27601_v31 = vand.u32 4294901760, %v20342_v4  ;;  %v27600_v50 = vand.u32 4294901760, %v20344_v17 }
  0x83   :  { %16758 = vmatpush3.bf16.msra.mxu1 %v16757_v32  ;;  %16872 = vmatprep.subr.bf16.mxu0 %v20246_v46  ;;  %v20310_v32 = vld [vmem:[#allocation2 + $0x150] sm:$0xff]  ;;  %28433 = vst [vmem:[#allocation31_spill] sm:$0xff] %v20325_v41  ;;  %v28464_v46 = vand.u32 4294901760, %v20196_v36 }
  0x84   :  { %16760 = vmatprep.subr.bf16.mxu1 %v16759_v58  ;;  %v20312_v58 = vld [vmem:[#allocation2 + $0x158] sm:$0xff]  ;;  %v27594_v2 = vand.u32 4294901760, %v20310_v32 }
  0x85   :  { %v27591_v62 = vand.u32 4294901760, %v20312_v58 }
  0x86   :  { %16874 = vmatpush3.bf16.msra.mxu0 %v20267_v23 }
  0x87   :  { %16762 = vmatpush3.bf16.msra.mxu1 %v16761_v55  ;;  %16876 = vmatprep.subr.bf16.mxu0 %v20278_v26  ;;  %v20314_v55 = vld [vmem:[#allocation2 + $0x1e0] sm:$0xff] }
  0x88   :  { %16764 = vmatprep.subr.bf16.mxu1 %v16763_v6  ;;  %v20316_v6 = vld [vmem:[#allocation2 + $0x1e8] sm:$0xff]  ;;  %v27593_v40 = vand.u32 4294901760, %v20314_v55 }
  0x89   :  { %v27592_v24 = vand.u32 4294901760, %v20316_v6 }
  0x8a   :  { %16878 = vmatpush3.bf16.msra.mxu0 %v20297_v44 }
  0x8b   :  { %16766 = vmatpush3.bf16.msra.mxu1 %v16765_v21  ;;  %16880 = vmatprep.subr.bf16.mxu0 %v20304_v37  ;;  %v20333_v21 = vpack.c.bf16 %v27584_v51, %v27585_v18  ;;  %v20354_v51 = vpack.c.bf16 %v27591_v62, %v27594_v2  ;;  %v27598_v18 = vand.u32 4294901760, %v20337_v48  ;;  %v20363_v49 = vpack.c.bf16 %v27592_v24, %v27593_v40  ;;  %v20369_v62 = vld [vmem:[#allocation2 + $0x178] sm:$0xff] }
  0x8c   :  { %16768 = vmatprep.subr.bf16.mxu1 %v19780_v15  ;;  %v27604_v40 = vand.u32 4294901760, %v20367_v47  ;;  %v27603_v2 = vand.u32 4294901760, %v20369_v62 }
  0x8d   :  { %28434 = vst [vmem:[#allocation32_spill] sm:$0xff] %v20333_v21  ;;  %28435 = vst [vmem:[#allocation33_spill] sm:$0xff] %v20354_v51  ;;  %v20380_v24 = vpack.c.bf16 %v27597_v45, %v27598_v18  ;;  %v20399_v45 = vpack.c.bf16 %v27600_v50, %v27601_v31  ;;  %v28439_v18 = vld [vmem:[#allocation11_spill] sm:$0xff]  ;;  %v28445_v31 = vld [vmem:[#allocation16_spill] sm:$0xff] }
  0x8e   :  { %631 = vmatmul.mubr.f32.vlgmr.msra.gmra.mrb[8].mxu1 %v28382_v1  ;;  %16882 = vmatpush3.bf16.msra.mxu0 %v20325_v41  ;;  %28436 = vst [vmem:[#allocation34_spill] sm:$0xff] %v20363_v49  ;;  %v20408_v53 = vpack.c.bf16 %v27603_v2, %v27604_v40  ;;  %v28444_v50 = vld [vmem:[#allocation15_spill] sm:$0xff]  ;;  %v20422_v2 = vld [vmem:[%s27527_s0] sm:$0xff]  ;;  %v28448_v40 = vld [vmem:[#allocation18_spill] sm:$0xff] }
  0x8f   :  { %16770 = vmatpush3.bf16.msra.mxu1 %v19782_v19  ;;  %635 = vmatprep.mubr.f32.mxu1 %v28382_v1  ;;  %28437 = vst [vmem:[#allocation35_spill] sm:$0xff] %v20380_v24  ;;  %28438 = vst [vmem:[#allocation36_spill] sm:$0xff] %v20399_v45 }
  0x90   :  { %16772 = vmatprep.subr.bf16.mxu1 %v19786_v33  ;;  %16884 = vmatprep.subr.bf16.mxu0 %v20333_v21  ;;  %28441 = vst [vmem:[#allocation11_spill] sm:$0xff] %v20408_v53  ;;  %28447 = vst [vmem:[#allocation12_spill] sm:$0xff] %v20422_v2  ;;  %v28452_v21 = vld [vmem:[#allocation21_spill] sm:$0xff] }
  0x92   :  { %636 = vmatmul.mubr.f32.gmra.mrb[10].mxu1 %v28382_v1  ;;  %16886 = vmatpush3.bf16.msra.mxu0 %v20354_v51 }
  0x93   :  { %16774 = vmatpush3.bf16.msra.mxu1 %v19788_v34  ;;  %737 = vmatprep.mubr.f32.mxu1 %v28382_v1 }
  0x94   :  { %16776 = vmatprep.subr.bf16.mxu1 %v19790_v38  ;;  %16888 = vmatprep.subr.bf16.mxu0 %v20363_v49 }
  0x96   :  { %16890 = vmatpush3.bf16.msra.mxu0 %v20380_v24  ;;  %v28449_v24 = vld [vmem:[#allocation19_spill] sm:$0xff] }
  0x97   :  { %16778 = vmatpush3.bf16.msra.mxu1 %v28439_v18  ;;  %16892 = vmatprep.subr.bf16.mxu0 %v20399_v45  ;;  %v53_v45 = vrot.slane %v20422_v2, 7 }
  0x98   :  { %16780 = vmatprep.subr.bf16.mxu1 %v28440_v63 }
  0x99   :  { %v58_v49 = vsel %vm52_vm2, 0.0, %v53_v45 }
  0x9a   :  { %16894 = vmatpush3.bf16.msra.mxu0 %v20408_v53  ;;  %v28451_v53 = vld [vmem:[#allocation20_spill] sm:$0xff] }
  0x9b   :  { %16782 = vmatpush3.bf16.msra.mxu1 %v28442_v35  ;;  %16928 = vmatprep.subr.bf16.mxu0 %v16927_v59  ;;  %v20430_v59 = vld [vmem:[%s27527_s0 + $0x8] sm:$0xff] }
  0x9c   :  { %16784 = vmatprep.subr.bf16.mxu1 %v28443_v8  ;;  %28450 = vst [vmem:[#allocation13_spill] sm:$0xff] %v20430_v59  ;;  %v54_v51 = vrot.slane %v20430_v59, 7 }
  0x9e   :  { %v55_v26 = vsel %vm52_vm2, %v53_v45, %v54_v51 }
  0x9f   :  { %16786 = vmatpush3.bf16.msra.mxu1 %v28444_v50 }
  0xa0   :  { %16788 = vmatprep.subr.bf16.mxu1 %v28445_v31 }
  0xa3   :  { %16790 = vmatpush3.bf16.msra.mxu1 %v28446_v27 }
  0xa4   :  { %16792 = vmatprep.subr.bf16.mxu1 %v28448_v40 }
  0xa7   :  { %16794 = vmatpush3.bf16.msra.mxu1 %v28449_v24 }
  0xa8   :  { %16796 = vmatprep.subr.bf16.mxu1 %v28451_v53 }
  0xaa   :  { %v20436_v41 = vpop.permute.xlu0 %64 }
  0xab   :  { %16798 = vmatpush3.bf16.msra.mxu1 %v28452_v21  ;;  %28453 = vst [vmem:[#allocation14_spill] sm:$0xff] %v20436_v41  ;;  %vm69_vm3 = vcmp.eq.s32.totalorder %v20436_v41, 1 }
  0xac   :  { %16832 = vmatprep.subr.bf16.mxu1 %v19780_v15  ;;  %v71_v37 = vsel %vm69_vm3, %v58_v49, 0.0  ;;  %v28456_v49 = vand.u32 4294901760, %v20164_v9 }
  0xad   :  { %v20442_v44 = vand.u32 4294901760, %v71_v37 }
  0xae   :  { %738 = vmatmul.mubr.f32.vlgmr.msra.gmra.mrb[12].mxu1 %v28382_v1  ;;  %v20447_v59 = vpop.permute.xlu0 %67  ;;  %v20460_v45 = vsub.f32 %v20164_v9, %v28456_v49 }
  0xaf   :  { %16834 = vmatpush3.bf16.msra.mxu1 %v19782_v19  ;;  %28454 = vst [vmem:[#allocation15_spill] sm:$0xff] %v20447_v59  ;;  %742 = vmatprep.mubr.f32.mxu1 %v28382_v1  ;;  %v20451_v23 = vsub.f32 %v71_v37, %v20442_v44  ;;  %vm70_vm4 = vcmp.eq.s32.totalorder %v20447_v59, 1  ;;  %v28457_v19 = vand.u32 4294901760, %v20166_v54  ;;  %v28460_v59 = vand.u32 4294901760, %v20170_v3 }
  0xb0   :  { %16836 = vmatprep.subr.bf16.mxu1 %v19786_v33  ;;  %v72_v15 = vsel %vm70_vm4, %v55_v26, 0.0  ;;  %v28459_v33 = vand.u32 4294901760, %v20168_v43 }
  0xb1   :  { %28455 = vst [vmem:[#allocation16_spill] sm:$0xff] %v20451_v23  ;;  %v20465_v51 = vsub.f32 %v20166_v54, %v28457_v19  ;;  %v20467_v41 = vand.u32 4294901760, %v72_v15  ;;  %v27633_v37 = vand.u32 4294901760, %v20451_v23  ;;  %v20479_v9 = vsub.f32 %v20170_v3, %v28460_v59 }
  0xb2   :  { %743 = vmatmul.mubr.f32.gmra.mrb[14].mxu1 %v28382_v1  ;;  %v20474_v26 = vsub.f32 %v20168_v43, %v28459_v33  ;;  %v28461_v43 = vand.u32 4294901760, %v20190_v28  ;;  %v28462_v3 = vand.u32 4294901760, %v20192_v5  ;;  %v28463_v33 = vand.u32 4294901760, %v20194_v29 }
  0xb3   :  { %28458 = vst [vmem:[#allocation17_spill] sm:$0xff] %v20467_v41  ;;  %16838 = vmatpush3.bf16.msra.mxu1 %v19788_v34  ;;  %1015 = vmatprep.mubr.f32.mxu1 %v28382_v1  ;;  %v20484_v54 = vsub.f32 %v72_v15, %v20467_v41  ;;  %v1125_v49 = vsub.f32 %v20451_v23, %v27633_v37 }
  0xb4   :  { %16840 = vmatprep.subr.bf16.mxu1 %v19790_v38  ;;  %v20493_v19 = vsub.f32 %v20190_v28, %v28461_v43  ;;  %v20498_v34 = vsub.f32 %v20192_v5, %v28462_v3  ;;  %v16929_v15 = vpack.c.bf16 %v20465_v51, %v20460_v45  ;;  %v20506_v37 = vsub.f32 %v20194_v29, %v28463_v33 }
  0xb5   :  { %v1126_v59 = vand.u32 4294901760, %v1125_v49  ;;  %v27636_v38 = vand.u32 4294901760, %v20484_v54  ;;  %v20511_v28 = vsub.f32 %v20196_v36, %v28464_v46  ;;  %v16931_v5 = vpack.c.bf16 %v20479_v9, %v20474_v26 }
  0xb6   :  { %v28465_v49 = vand.u32 4294901760, %v20219_v12  ;;  %v28466_v36 = vand.u32 4294901760, %v20221_v52 }
  0xb7   :  { %16842 = vmatpush3.bf16.msra.mxu1 %v28439_v18  ;;  %1127 = vmatprep.mubr.f32.mxu0 %v1126_v59  ;;  %v1135_v29 = vsub.f32 %v20484_v54, %v27636_v38  ;;  %v28467_v18 = vand.u32 4294901760, %v20223_v56 }
  0xb8   :  { %v20519_v43 = vsub.f32 %v20219_v12, %v28465_v49  ;;  %16844 = vmatprep.subr.bf16.mxu1 %v28440_v63  ;;  %v20528_v46 = vsub.f32 %v20221_v52, %v28466_v36  ;;  %v28468_v12 = vand.u32 4294901760, %v20225_v30  ;;  %v28469_v63 = vand.u32 4294901760, %v20250_v61  ;;  %1128 = vmatmul.mubr.f32.vlgmr.msra.gmra.mrb[4].mxu0 %v28382_v1 }
  0xb9   :  { %v20533_v3 = vsub.f32 %v20223_v56, %v28467_v18  ;;  %v28470_v52 = vand.u32 4294901760, %v20252_v60  ;;  %v28471_v56 = vand.u32 4294901760, %v20254_v0  ;;  %16930 = vmatpush3.bf16.msra.mxu0 %v16929_v15  ;;  %v16933_v18 = vpack.c.bf16 %v20498_v34, %v20493_v19 }
  0xba   :  { %v20538_v59 = vsub.f32 %v20225_v30, %v28468_v12  ;;  %v20543_v33 = vsub.f32 %v20250_v61, %v28469_v63  ;;  %v1136_v30 = vand.u32 4294901760, %v1135_v29  ;;  %v28472_v61 = vand.u32 4294901760, %v20256_v7  ;;  %16932 = vmatprep.subr.bf16.mxu0 %v16931_v5 }
  0xbb   :  { %v20549_v49 = vsub.f32 %v20252_v60, %v28470_v52  ;;  %v20554_v36 = vsub.f32 %v20254_v0, %v28471_v56  ;;  %16846 = vmatpush3.bf16.msra.mxu1 %v28442_v35  ;;  %v16935_v60 = vpack.c.bf16 %v20511_v28, %v20506_v37  ;;  %v27638_v63 = vand.u32 4294901760, %v20387_v11 }
  0xbc   :  { %v20561_v12 = vsub.f32 %v20256_v7, %v28472_v61  ;;  %v27637_v0 = vand.u32 4294901760, %v20392_v16  ;;  %v28473_v15 = vand.u32 4294901760, %v20282_v10  ;;  %v28474_v52 = vand.u32 4294901760, %v20284_v13  ;;  %1137 = vmatprep.mubr.f32.mxu0 %v1136_v30  ;;  %16848 = vmatprep.subr.bf16.mxu1 %v28443_v8 }
  0xbd   :  { %v28475_v35 = vand.u32 4294901760, %v20286_v22  ;;  %v28476_v56 = vand.u32 4294901760, %v20288_v42  ;;  %1138 = vmatmul.mubr.f32.gmra.mrb[6].mxu0 %v28382_v1  ;;  %v27639_v8 = vand.u32 4294901760, %v20460_v45  ;;  %v27657_v20 = vand.u32 4294901760, %v20549_v49 }
  0xbe   :  { %v20571_v29 = vsub.f32 %v20282_v10, %v28473_v15  ;;  %v20576_v7 = vsub.f32 %v20284_v13, %v28474_v52  ;;  %v28477_v10 = vand.u32 4294901760, %v20310_v32  ;;  %v28478_v13 = vand.u32 4294901760, %v20312_v58  ;;  %16934 = vmatpush3.bf16.msra.mxu0 %v16933_v18  ;;  %1510 = vmatprep.mubr.f32.mxu0 %v20451_v23 }
  0xbf   :  { %v20581_v5 = vsub.f32 %v20286_v22, %v28475_v35  ;;  %v20587_v61 = vsub.f32 %v20288_v42, %v28476_v56  ;;  %v28479_v22 = vand.u32 4294901760, %v20314_v55  ;;  %v16937_v42 = vpack.c.bf16 %v20528_v46, %v20519_v43  ;;  %16850 = vmatpush3.bf16.msra.mxu1 %v28444_v50  ;;  %16936 = vmatprep.subr.bf16.mxu0 %v16935_v60 }
  0xc0   :  { %v20592_v15 = vsub.f32 %v20310_v32, %v28477_v10  ;;  %v20597_v52 = vsub.f32 %v20312_v58, %v28478_v13  ;;  %v16939_v32 = vpack.c.bf16 %v20538_v59, %v20533_v3  ;;  %v27640_v58 = vand.u32 4294901760, %v20465_v51  ;;  %16852 = vmatprep.subr.bf16.mxu1 %v28445_v31 }
  0xc1   :  { %v20602_v30 = vsub.f32 %v20314_v55, %v28479_v22  ;;  %v1259_v55 = vsub.f32 %v20387_v11, %v27638_v63  ;;  %v1266_v18 = vsub.f32 %v20392_v16, %v27637_v0  ;;  %v27642_v35 = vand.u32 4294901760, %v20474_v26 }
  0xc2   :  { %v27641_v56 = vand.u32 4294901760, %v20479_v9  ;;  %v28480_v10 = vand.u32 4294901760, %v20316_v6  ;;  %v28481_v50 = vand.u32 4294901760, %v20337_v48  ;;  %v28482_v22 = vand.u32 4294901760, %v20339_v57  ;;  %16938 = vmatpush3.bf16.msra.mxu0 %v16937_v42 }
  0xc3   :  { %v28483_v0 = vand.u32 4294901760, %v20342_v4  ;;  %v1147_v31 = vsub.f32 %v20460_v45, %v27639_v8  ;;  %16854 = vmatpush3.bf16.msra.mxu1 %v28446_v27  ;;  %16940 = vmatprep.subr.bf16.mxu0 %v16939_v32  ;;  %v1273_v42 = vsub.f32 %v20474_v26, %v27642_v35  ;;  %v28486_v8 = vand.u32 4294901760, %v20369_v62 }
  0xc4   :  { %v20624_v13 = vsub.f32 %v20316_v6, %v28480_v10  ;;  %v20629_v60 = vsub.f32 %v20337_v48, %v28481_v50  ;;  %v20634_v38 = vsub.f32 %v20339_v57, %v28482_v22  ;;  %v28484_v6 = vand.u32 4294901760, %v20344_v17  ;;  %16856 = vmatprep.subr.bf16.mxu1 %v28448_v40 }
  0xc5   :  { %v20639_v63 = vsub.f32 %v20342_v4, %v28483_v0  ;;  %v28485_v48 = vand.u32 4294901760, %v20367_v47  ;;  %v16941_v57 = vpack.c.bf16 %v20549_v49, %v20543_v33  ;;  %v16943_v22 = vpack.c.bf16 %v20561_v12, %v20554_v36 }
  0xc6   :  { %v20645_v10 = vsub.f32 %v20344_v17, %v28484_v6  ;;  %v1154_v17 = vsub.f32 %v20465_v51, %v27640_v58  ;;  %v27646_v4 = vand.u32 4294901760, %v20493_v19  ;;  %v1260_v0 = vand.u32 4294901760, %v1259_v55 }
  0xc7   :  { %v20650_v50 = vsub.f32 %v20367_v47, %v28485_v48  ;;  %v1267_v6 = vand.u32 4294901760, %v1266_v18  ;;  %v1280_v48 = vsub.f32 %v20479_v9, %v27641_v56  ;;  %v20674_v58 = vsub.f32 %v20369_v62, %v28486_v8  ;;  %16942 = vmatpush3.bf16.msra.mxu0 %v16941_v57  ;;  %16858 = vmatpush3.bf16.msra.mxu1 %v28449_v24 }
  0xc8   :  { %v16945_v27 = vpack.c.bf16 %v20576_v7, %v20571_v29  ;;  %v16947_v18 = vpack.c.bf16 %v20587_v61, %v20581_v5  ;;  %v16949_v56 = vpack.c.bf16 %v20597_v52, %v20592_v15  ;;  %v1148_v8 = vand.u32 4294901760, %v1147_v31  ;;  %16944 = vmatprep.subr.bf16.mxu0 %v16943_v22  ;;  %16860 = vmatprep.subr.bf16.mxu1 %v28451_v53 }
  0xc9   :  { %v1155_v40 = vand.u32 4294901760, %v1154_v17  ;;  %v1161_v47 = vsub.f32 %v20493_v19, %v27646_v4  ;;  %v28487_v32 = vand.u32 4294901760, %v20498_v34  ;;  %v16895_v23 = vpack.c.bf16 %v1267_v6, %v1260_v0 }
  0xca   :  { %v16951_v35 = vpack.c.bf16 %v20624_v13, %v20602_v30  ;;  %v1274_v39 = vand.u32 4294901760, %v1273_v42  ;;  %v1281_v62 = vand.u32 4294901760, %v1280_v48  ;;  %v28488_v57 = vand.u32 4294901760, %v20506_v37 }
  0xcb   :  { %v1168_v55 = vsub.f32 %v20498_v34, %v28487_v32  ;;  %v28489_v17 = vand.u32 4294901760, %v20511_v28  ;;  %v16953_v22 = vpack.c.bf16 %v20634_v38, %v20629_v60  ;;  %v16955_v0 = vpack.c.bf16 %v20645_v10, %v20639_v63  ;;  %16946 = vmatpush3.bf16.msra.mxu0 %v16945_v27  ;;  %16862 = vmatpush3.bf16.msra.mxu1 %v28452_v21 }
  0xcc   :  { %v1287_v31 = vsub.f32 %v20506_v37, %v28488_v57  ;;  %v28490_v53 = vand.u32 4294901760, %v20519_v43  ;;  %v28491_v42 = vand.u32 4294901760, %v20528_v46  ;;  %v16897_v57 = vpack.c.bf16 %v1155_v40, %v1148_v8  ;;  %16948 = vmatprep.subr.bf16.mxu0 %v16947_v18  ;;  %16896 = vmatprep.subr.bf16.mxu1 %v16895_v23 }
  0xcd   :  { %v1294_v4 = vsub.f32 %v20511_v28, %v28489_v17  ;;  %v1162_v17 = vand.u32 4294901760, %v1161_v47  ;;  %v1169_v32 = vand.u32 4294901760, %v1168_v55  ;;  %v1188_v24 = vand.u32 4294901760, %v20543_v33 }
  0xce   :  { %v1175_v6 = vsub.f32 %v20519_v43, %v28490_v53  ;;  %v1182_v48 = vsub.f32 %v20528_v46, %v28491_v42  ;;  %v16899_v25 = vpack.c.bf16 %v1281_v62, %v1274_v39  ;;  %v27658_v41 = vand.u32 4294901760, %v20554_v36  ;;  %1016 = vmatmul.mubr.f32.vlgmr.msra.gmra.mrb[16].mxu1 %v28382_v1 }
  0xcf   :  { %v1321_v53 = vand.u32 4294901760, %v20561_v12  ;;  %v1288_v14 = vand.u32 4294901760, %v1287_v31  ;;  %v1295_v2 = vand.u32 4294901760, %v1294_v4  ;;  %v28492_v27 = vand.u32 4294901760, %v20533_v3  ;;  %16950 = vmatpush3.bf16.msra.mxu0 %v16949_v56  ;;  %16898 = vmatpush3.bf16.msra.mxu1 %v16897_v57 }
  0xd0   :  { %v28493_v55 = vand.u32 4294901760, %v20538_v59  ;;  %v1176_v21 = vand.u32 4294901760, %v1175_v6  ;;  %v1183_v18 = vand.u32 4294901760, %v1182_v48  ;;  %v27662_v39 = vand.u32 4294901760, %v20571_v29  ;;  %16952 = vmatprep.subr.bf16.mxu0 %v16951_v35  ;;  %1020 = vmatprep.mubr.f32.mxu1 %v28382_v1 }
  0xd1   :  { %v1301_v47 = vsub.f32 %v20533_v3, %v28492_v27  ;;  %v27661_v62 = vand.u32 4294901760, %v20576_v7  ;;  %v16901_v23 = vpack.c.bf16 %v1169_v32, %v1162_v17  ;;  %v1189_v4 = vsub.f32 %v20543_v33, %v1188_v24  ;;  %16900 = vmatprep.subr.bf16.mxu1 %v16899_v25 }
  0xd2   :  { %v1308_v8 = vsub.f32 %v20538_v59, %v28493_v55  ;;  %v27660_v40 = vand.u32 4294901760, %v20581_v5  ;;  %v27659_v31 = vand.u32 4294901760, %v20587_v61  ;;  %v1196_v6 = vsub.f32 %v20549_v49, %v27657_v20  ;;  %1021 = vmatmul.mubr.f32.gmra.mrb[18].mxu1 %v28382_v1 }
  0xd3   :  { %v1315_v56 = vsub.f32 %v20554_v36, %v27658_v41  ;;  %v1322_v32 = vsub.f32 %v20561_v12, %v1321_v53  ;;  %v16957_v42 = vpack.c.bf16 %v20674_v58, %v20650_v50  ;;  %v16903_v48 = vpack.c.bf16 %v1295_v2, %v1288_v14  ;;  %16954 = vmatpush3.bf16.msra.mxu0 %v16953_v22 }
  0xd4   :  { %v1302_v35 = vand.u32 4294901760, %v1301_v47  ;;  %v1309_v57 = vand.u32 4294901760, %v1308_v8  ;;  %v16905_v17 = vpack.c.bf16 %v1183_v18, %v1176_v21  ;;  %v28494_v27 = vand.u32 4294901760, %v20387_v11  ;;  %16902 = vmatpush3.bf16.msra.mxu1 %v16901_v23  ;;  %1368 = vmatprep.mubr.f32.mxu1 %v20442_v44 }
  0xd5   :  { %v28495_v55 = vand.u32 4294901760, %v20392_v16  ;;  %v1203_v41 = vsub.f32 %v20571_v29, %v27662_v39  ;;  %v1210_v25 = vsub.f32 %v20576_v7, %v27661_v62  ;;  %v1329_v14 = vsub.f32 %v20581_v5, %v27660_v40  ;;  %16956 = vmatprep.subr.bf16.mxu0 %v16955_v0  ;;  %16904 = vmatprep.subr.bf16.mxu1 %v16903_v48 }
  0xd6   :  { %v1336_v16 = vsub.f32 %v20587_v61, %v27659_v31  ;;  %v1216_v11 = vand.u32 4294901760, %v20592_v15  ;;  %v1223_v2 = vand.u32 4294901760, %v20597_v52  ;;  %v1190_v47 = vand.u32 4294901760, %v1189_v4 }
  0xd7   :  { %v16991_v20 = vpack.c.bf16 %v28495_v55, %v28494_v27  ;;  %v1197_v8 = vand.u32 4294901760, %v1196_v6  ;;  %v1316_v22 = vand.u32 4294901760, %v1315_v56  ;;  %v1323_v21 = vand.u32 4294901760, %v1322_v32  ;;  %16958 = vmatpush3.bf16.msra.mxu0 %v16957_v42 }
  0xd8   :  { %v16907_v18 = vpack.c.bf16 %v1309_v57, %v1302_v35  ;;  %v1342_v27 = vand.u32 4294901760, %v20602_v30  ;;  %v1349_v55 = vand.u32 4294901760, %v20624_v13  ;;  %v28496_v31 = vand.u32 4294901760, %v20460_v45  ;;  %16906 = vmatpush3.bf16.msra.mxu1 %v16905_v17 }
  0xd9   :  { %v28497_v40 = vand.u32 4294901760, %v20465_v51  ;;  %v28498_v23 = vand.u32 4294901760, %v20474_v26  ;;  %v28499_v39 = vand.u32 4294901760, %v20479_v9  ;;  %v1204_v6 = vand.u32 4294901760, %v1203_v41  ;;  %16992 = vmatprep.subr.bf16.mxu0 %v16991_v20 }
  0xda   :  { %v1211_v56 = vand.u32 4294901760, %v1210_v25  ;;  %v1330_v0 = vand.u32 4294901760, %v1329_v14  ;;  %v1337_v32 = vand.u32 4294901760, %v1336_v16  ;;  %v1217_v48 = vsub.f32 %v20592_v15, %v1216_v11  ;;  %16908 = vmatprep.subr.bf16.mxu1 %v16907_v18  ;;  %1511 = vmatmul.mubr.f32.vlgmr.msra.gmra.mrb[8].mxu0 %v28382_v1 }
  0xdb   :  { %v16993_v62 = vpack.c.bf16 %v28497_v40, %v28496_v31  ;;  %v16995_v4 = vpack.c.bf16 %v28499_v39, %v28498_v23  ;;  %v1224_v45 = vsub.f32 %v20597_v52, %v1223_v2  ;;  %v16909_v51 = vpack.c.bf16 %v1197_v8, %v1190_v47  ;;  %1517 = vmatprep.mubr.f32.mxu0 %v20484_v54 }
  0xdc   :  { %v16911_v26 = vpack.c.bf16 %v1323_v21, %v1316_v22  ;;  %v1230_v9 = vand.u32 4294901760, %v20629_v60  ;;  %v1237_v41 = vand.u32 4294901760, %v20634_v38  ;;  %v1343_v39 = vsub.f32 %v20602_v30, %v1342_v27  ;;  %v28518_v30 = vld [vmem:[#allocation23_spill] sm:$0xff] }
  0xdd   :  { %v1350_v40 = vsub.f32 %v20624_v13, %v1349_v55  ;;  %v1356_v31 = vand.u32 4294901760, %v20639_v63  ;;  %v1363_v42 = vand.u32 4294901760, %v20645_v10  ;;  %v28500_v20 = vand.u32 4294901760, %v20493_v19  ;;  %16994 = vmatpush3.bf16.msra.mxu0 %v16993_v62  ;;  %16910 = vmatpush3.bf16.msra.mxu1 %v16909_v51 }
  0xde   :  { %v28501_v35 = vand.u32 4294901760, %v20498_v34  ;;  %v28502_v17 = vand.u32 4294901760, %v20506_v37  ;;  %v28503_v25 = vand.u32 4294901760, %v20511_v28  ;;  %v16913_v16 = vpack.c.bf16 %v1211_v56, %v1204_v6  ;;  %16996 = vmatprep.subr.bf16.mxu0 %v16995_v4  ;;  %16912 = vmatprep.subr.bf16.mxu1 %v16911_v26 }
  0xdf   :  { %v16915_v47 = vpack.c.bf16 %v1337_v32, %v1330_v0  ;;  %v1218_v8 = vand.u32 4294901760, %v1217_v48  ;;  %v1225_v22 = vand.u32 4294901760, %v1224_v45  ;;  %v1231_v19 = vsub.f32 %v20629_v60, %v1230_v9  ;;  %1518 = vmatmul.mubr.f32.gmra.mrb[10].mxu0 %v28382_v1  ;;  %v139_v60 = vld [vmem:[#allocation2 + $0x210] sm:$0xff] }
  0xe0   :  { %v16997_v57 = vpack.c.bf16 %v28501_v35, %v28500_v20  ;;  %v16999_v14 = vpack.c.bf16 %v28503_v25, %v28502_v17  ;;  %v1238_v37 = vsub.f32 %v20634_v38, %v1237_v41  ;;  %v1244_v34 = vand.u32 4294901760, %v20650_v50  ;;  %1797 = vmatprep.mubr.f32.mxu0 %v20442_v44 }
  0xe1   :  { %v1251_v28 = vand.u32 4294901760, %v20674_v58  ;;  %v1344_v62 = vand.u32 4294901760, %v1343_v39  ;;  %v1351_v21 = vand.u32 4294901760, %v1350_v40  ;;  %v1357_v18 = vsub.f32 %v20639_v63, %v1356_v31  ;;  %16914 = vmatpush3.bf16.msra.mxu1 %v16913_v16 }
  0xe2   :  { %v1364_v23 = vsub.f32 %v20645_v10, %v1363_v42  ;;  %16998 = vmatpush3.bf16.msra.mxu0 %v16997_v57  ;;  %v28504_v4 = vand.u32 4294901760, %v20519_v43  ;;  %v28505_v6 = vand.u32 4294901760, %v20528_v46  ;;  %v16917_v0 = vpack.c.bf16 %v1225_v22, %v1218_v8  ;;  %16916 = vmatprep.subr.bf16.mxu1 %v16915_v47 }
  0xe3   :  { %v28506_v32 = vand.u32 4294901760, %v20533_v3  ;;  %v28507_v48 = vand.u32 4294901760, %v20538_v59  ;;  %17000 = vmatprep.subr.bf16.mxu0 %v16999_v14  ;;  %v1232_v51 = vand.u32 4294901760, %v1231_v19  ;;  %v1239_v26 = vand.u32 4294901760, %v1238_v37  ;;  %v20860_v19 = vld [vmem:[#allocation2 + $0x208] sm:$0xff] }
  0xe4   :  { %v17001_v56 = vpack.c.bf16 %v28505_v6, %v28504_v4  ;;  %v1245_v39 = vsub.f32 %v20650_v50, %v1244_v34  ;;  %v1252_v43 = vsub.f32 %v20674_v58, %v1251_v28  ;;  %v16919_v46 = vpack.c.bf16 %v1351_v21, %v1344_v62  ;;  %v28520_v37 = vld [vmem:[#allocation25_spill] sm:$0xff]  ;;  %v28521_v62 = vld [vmem:[#allocation16_spill] sm:$0xff]  ;;  %v28523_v21 = vld [vmem:[#allocation26_spill] sm:$0xff] }
  0xe5   :  { %v17003_v45 = vpack.c.bf16 %v28507_v48, %v28506_v32  ;;  %v1358_v40 = vand.u32 4294901760, %v1357_v18  ;;  %v1365_v20 = vand.u32 4294901760, %v1364_v23  ;;  %v28508_v3 = vand.u32 4294901760, %v20549_v49  ;;  %16918 = vmatpush3.bf16.msra.mxu1 %v16917_v0  ;;  %v20894_v18 = vld [vmem:[#allocation2 + $0x220] sm:$0xff]  ;;  %v20896_v50 = vld [vmem:[#allocation2 + $0x228] sm:$0xff]  ;;  %v20910_v0 = vld [vmem:[#allocation2 + $0x238] sm:$0xff] }
  0xe6   :  { %17002 = vmatpush3.bf16.msra.mxu0 %v17001_v56  ;;  %v16921_v35 = vpack.c.bf16 %v1239_v26, %v1232_v51  ;;  %v28509_v57 = vand.u32 4294901760, %v20554_v36  ;;  %v1246_v25 = vand.u32 4294901760, %v1245_v39  ;;  %v1253_v14 = vand.u32 4294901760, %v1252_v43  ;;  %16920 = vmatprep.subr.bf16.mxu1 %v16919_v46  ;;  %v28525_v6 = vld [vmem:[#allocation28_spill] sm:$0xff]  ;;  %v20908_v56 = vld [vmem:[#allocation2 + $0x230] sm:$0xff]  ;;  %v28526_v48 = vld [vmem:[#allocation29_spill] sm:$0xff] }
  0xe7   :  { %v17005_v59 = vpack.c.bf16 %v28508_v3, %v1188_v24  ;;  %17004 = vmatprep.subr.bf16.mxu0 %v17003_v45  ;;  %v16923_v16 = vpack.c.bf16 %v1365_v20, %v1358_v40  ;;  %v28510_v47 = vand.u32 4294901760, %v20571_v29  ;;  %v28511_v33 = vand.u32 4294901760, %v20576_v7  ;;  %v28516_v7 = vld [vmem:[#allocation22_spill] sm:$0xff]  ;;  %v20922_v43 = vld [vmem:[#allocation2 + $0x240] sm:$0xff]  ;;  %v28528_v40 = vld [vmem:[#allocation31_spill] sm:$0xff] }
  0xe8   :  { %v17007_v17 = vpack.c.bf16 %v1321_v53, %v28509_v57  ;;  %v16925_v49 = vpack.c.bf16 %v1253_v14, %v1246_v25  ;;  %v28512_v24 = vand.u32 4294901760, %v20581_v5  ;;  %v28513_v36 = vand.u32 4294901760, %v20587_v61  ;;  %v28514_v53 = vld [vmem:[#allocation12_spill] sm:$0xff]  ;;  %v28527_v39 = vld [vmem:[#allocation30_spill] sm:$0xff]  ;;  %v28530_v14 = vld [vmem:[#allocation33_spill] sm:$0xff] }
  0xe9   :  { %v17009_v8 = vpack.c.bf16 %v28511_v33, %v28510_v47  ;;  %16922 = vmatpush3.bf16.msra.mxu1 %v16921_v35  ;;  %v17013_v12 = vpack.c.bf16 %v1223_v2, %v1216_v11  ;;  %v20853_v29 = vand.u32 4294901760, %v28514_v53  ;;  %v17015_v5 = vpack.c.bf16 %v1349_v55, %v1342_v27  ;;  %v137_v61 = vld [vmem:[#allocation2 + $0x200] sm:$0xff]  ;;  %v20879_v55 = vld [vmem:[#allocation2 + $0x218] sm:$0xff]  ;;  %v20924_v46 = vld [vmem:[#allocation2 + $0x248] sm:$0xff] }
  0xea   :  { %17006 = vmatpush3.bf16.msra.mxu0 %v17005_v59  ;;  %v17011_v22 = vpack.c.bf16 %v28513_v36, %v28512_v24  ;;  %16924 = vmatprep.subr.bf16.mxu1 %v16923_v16  ;;  %v17017_v15 = vpack.c.bf16 %v1237_v41, %v1230_v9  ;;  %v28517_v11 = vld [vmem:[#allocation17_spill] sm:$0xff]  ;;  %v1919_v13 = vand.u32 4294901760, %v137_v61  ;;  %v1922_v2 = vand.u32 4294901760, %v20860_v19  ;;  %v28519_v27 = vld [vmem:[#allocation24_spill] sm:$0xff]  ;;  %v20939_v57 = vld [vmem:[#allocation2 + $0x250] sm:$0xff] }
  0xeb   :  { %17008 = vmatprep.subr.bf16.mxu0 %v17007_v17  ;;  %28515 = vst [vmem:[#allocation18_spill] sm:$0xff] %v20853_v29  ;;  %v20869_v52 = vsub.f32 %v28514_v53, %v20853_v29  ;;  %v17019_v38 = vpack.c.bf16 %v1363_v42, %v1356_v31  ;;  %v17021_v9 = vpack.c.bf16 %v1251_v28, %v1244_v34  ;;  %v28522_v63 = vand.u32 4294901760, %v28521_v62  ;;  %v28524_v34 = vld [vmem:[#allocation27_spill] sm:$0xff]  ;;  %v28529_v35 = vld [vmem:[#allocation32_spill] sm:$0xff]  ;;  %v28533_v24 = vld [vmem:[#allocation13_spill] sm:$0xff] }
  0xec   :  { %v20890_v10 = vpack.c.bf16 %v1922_v2, %v1919_v13  ;;  %v1925_v31 = vand.u32 4294901760, %v139_v60  ;;  %v1928_v42 = vand.u32 4294901760, %v20879_v55  ;;  %v1931_v23 = vand.u32 4294901760, %v20894_v18  ;;  %v20941_v17 = vld [vmem:[#allocation2 + $0x258] sm:$0xff] }
  0xed   :  { %16926 = vmatpush3.bf16.msra.mxu1 %v16925_v49  ;;  %v27663_v41 = vand.u32 4294901760, %v20869_v52  ;;  %v1934_v4 = vand.u32 4294901760, %v20896_v50  ;;  %v1937_v51 = vand.u32 4294901760, %v20908_v56  ;;  %v1940_v26 = vand.u32 4294901760, %v20910_v0  ;;  %v28532_v49 = vld [vmem:[#allocation34_spill] sm:$0xff]  ;;  %v20986_v62 = vld [vmem:[#allocation2 + $0x278] sm:$0xff] }
  0xee   :  { %17010 = vmatpush3.bf16.msra.mxu0 %v17009_v8  ;;  %16960 = vmatprep.subr.bf16.mxu1 %v28516_v7  ;;  %v20903_v28 = vpack.c.bf16 %v1928_v42, %v1925_v31  ;;  %v1943_v3 = vand.u32 4294901760, %v20922_v43  ;;  %v1946_v59 = vand.u32 4294901760, %v20924_v46  ;;  %v20944_v25 = vsub.f32 %v137_v61, %v1919_v13  ;;  %v28536_v61 = vld [vmem:[#allocation35_spill] sm:$0xff] }
  0xef   :  { %17012 = vmatprep.subr.bf16.mxu0 %v17011_v22  ;;  %v2002_v58 = vsub.f32 %v20869_v52, %v27663_v41  ;;  %v20917_v45 = vpack.c.bf16 %v1934_v4, %v1931_v23  ;;  %v20934_v20 = vpack.c.bf16 %v1940_v26, %v1937_v51  ;;  %v27669_v47 = vand.u32 4294901760, %v20939_v57  ;;  %v20961_v22 = vld [vmem:[#allocation2 + $0x260] sm:$0xff] }
  0xf0   :  { %1369 = vmatmul.mubr.f32.vlgmr.msra.gmra.mrb[20].mxu1 %v28382_v1  ;;  %v20950_v16 = vpack.c.bf16 %v1946_v59, %v1943_v3  ;;  %v27668_v33 = vand.u32 4294901760, %v20941_v17  ;;  %v20955_v8 = vsub.f32 %v20860_v19, %v1922_v2  ;;  %v20959_v36 = vand.u32 4294901760, %v28533_v24  ;;  %v28539_v2 = vld [vmem:[#allocation36_spill] sm:$0xff] }
  0xf1   :  { %1374 = vmatprep.mubr.f32.mxu1 %v28517_v11  ;;  %16962 = vmatpush3.bf16.msra.mxu1 %v28518_v30  ;;  %v2003_v32 = vand.u32 4294901760, %v2002_v58  ;;  %v27665_v53 = vand.u32 4294901760, %v20944_v25  ;;  %v20979_v13 = vsub.f32 %v20879_v55, %v1928_v42  ;;  %v20998_v42 = vsub.f32 %v20894_v18, %v1931_v23 }
  0xf2   :  { %17014 = vmatpush3.bf16.msra.mxu0 %v17013_v12  ;;  %16964 = vmatprep.subr.bf16.mxu1 %v28519_v27  ;;  %28531 = vst [vmem:[#allocation19_spill] sm:$0xff] %v20950_v16  ;;  %28534 = vst [vmem:[#allocation20_spill] sm:$0xff] %v20959_v36  ;;  %v20963_v12 = vld [vmem:[#allocation2 + $0x268] sm:$0xff]  ;;  %v20975_v19 = vpack.c.bf16 %v27668_v33, %v27669_v47  ;;  %v21001_v58 = vsub.f32 %v20896_v50, %v1934_v4  ;;  %v1964_v23 = vand.u32 4294901760, %v20986_v62 }
  0xf3   :  { %17016 = vmatprep.subr.bf16.mxu0 %v17015_v5  ;;  %v20967_v5 = vsub.f32 %v139_v60, %v1925_v31  ;;  %28538 = vst [vmem:[#allocation22_spill] sm:$0xff] %v20979_v13  ;;  %v27666_v60 = vand.u32 4294901760, %v20963_v12  ;;  %v2023_v55 = vsub.f32 %v20944_v25, %v27665_v53  ;;  %28540 = vst [vmem:[#allocation17_spill] sm:$0xff] %v20998_v42  ;;  %v27684_v41 = vand.u32 4294901760, %v20979_v13 }
  0xf4   :  { %1375 = vmatmul.mubr.f32.gmra.mrb[22].mxu1 %v28382_v1  ;;  %28537 = vst [vmem:[#allocation12_spill] sm:$0xff] %v20975_v19  ;;  %28541 = vst [vmem:[#allocation23_spill] sm:$0xff] %v21001_v58  ;;  %v27682_v53 = vand.u32 4294901760, %v20998_v42 }
  0xf5   :  { %16966 = vmatpush3.bf16.msra.mxu1 %v28520_v37  ;;  %1622 = vmatprep.mubr.f32.mxu1 %v28522_v63  ;;  %28535 = vst [vmem:[#allocation21_spill] sm:$0xff] %v20967_v5  ;;  %v20990_v63 = vsub.f32 %v28533_v24, %v20959_v36  ;;  %v27670_v31 = vand.u32 4294901760, %v20967_v5  ;;  %v2044_v47 = vsub.f32 %v20979_v13, %v27684_v41 }
  0xf6   :  { %17018 = vmatpush3.bf16.msra.mxu0 %v17017_v15  ;;  %16968 = vmatprep.subr.bf16.mxu1 %v28523_v21  ;;  %v27664_v15 = vand.u32 4294901760, %v20955_v8 }
  0xf7   :  { %17020 = vmatprep.subr.bf16.mxu0 %v17019_v38  ;;  %v27667_v38 = vand.u32 4294901760, %v20961_v22  ;;  %v27683_v4 = vand.u32 4294901760, %v20990_v63 }
  0xf8   :  { %v2030_v24 = vsub.f32 %v20955_v8, %v27664_v15  ;;  %v2024_v15 = vand.u32 4294901760, %v2023_v55  ;;  %v21035_v55 = vsub.f32 %v20908_v56, %v1937_v51  ;;  %v21054_v56 = vsub.f32 %v20922_v43, %v1943_v3 }
  0xf9   :  { %16970 = vmatpush3.bf16.msra.mxu1 %v28524_v34  ;;  %v21014_v18 = vpack.c.bf16 %v27666_v60, %v27667_v38  ;;  %v27671_v60 = vand.u32 4294901760, %v21001_v58  ;;  %v28544_v38 = vand.u32 4294901760, %v20484_v54  ;;  %v2045_v3 = vand.u32 4294901760, %v2044_v47 }
  0xfa   :  { %17022 = vmatpush3.bf16.msra.mxu0 %v17021_v9  ;;  %16972 = vmatprep.subr.bf16.mxu1 %v28525_v6  ;;  %v20984_v9 = vld [vmem:[#allocation2 + $0x270] sm:$0xff]  ;;  %v2031_v33 = vand.u32 4294901760, %v2030_v24  ;;  %28545 = vst [vmem:[#allocation25_spill] sm:$0xff] %v21035_v55  ;;  %28548 = vst [vmem:[#allocation27_spill] sm:$0xff] %v21054_v56  ;;  %v28552_v47 = vand.u32 4294901760, %v20941_v17 }
  0xfb   :  { %17056 = vmatprep.subr.bf16.mxu0 %v20890_v10  ;;  %28543 = vst [vmem:[#allocation24_spill] sm:$0xff] %v21014_v18  ;;  %v1961_v50 = vand.u32 4294901760, %v20984_v9  ;;  %v2058_v51 = vsub.f32 %v21001_v58, %v27671_v60  ;;  %v27673_v60 = vand.u32 4294901760, %v21054_v56 }
  0xfc   :  { %v17087_v43 = vpack.c.bf16 %v2031_v33, %v2024_v15  ;;  %v21086_v33 = vsub.f32 %v20941_v17, %v28552_v47 }
  0xfd   :  { %1798 = vmatmul.mubr.f32.vlgmr.msra.gmra.mrb[12].mxu0 %v28382_v1  ;;  %16974 = vmatpush3.bf16.msra.mxu1 %v28526_v48  ;;  %v21048_v54 = vpack.c.bf16 %v1964_v23, %v1961_v50  ;;  %v2059_v15 = vand.u32 4294901760, %v2058_v51  ;;  %v28554_v51 = vand.u32 4294901760, %v20961_v22 }
  0xfe   :  { %1803 = vmatprep.mubr.f32.mxu0 %v28517_v11  ;;  %17058 = vmatpush3.bf16.msra.mxu0 %v20890_v10  ;;  %28553 = vst [vmem:[#allocation30_spill] sm:$0xff] %v21086_v33 }
  0xff   :  { %17060 = vmatprep.subr.bf16.mxu0 %v20903_v28  ;;  %16976 = vmatprep.subr.bf16.mxu1 %v28527_v39  ;;  %28547 = vst [vmem:[#allocation26_spill] sm:$0xff] %v21048_v54 }
 0x101   :  { %1804 = vmatmul.mubr.f32.gmra.mrb[14].mxu0 %v28382_v1  ;;  %16978 = vmatpush3.bf16.msra.mxu1 %v28528_v40 }
 0x102   :  { %17062 = vmatpush3.bf16.msra.mxu0 %v20903_v28  ;;  %15653 = vmatprep.mubr.f32.mxu0 %v2003_v32  ;;  %v28542_v32 = vld [vmem:[#allocation11_spill] sm:$0xff] }
 0x103   :  { %17064 = vmatprep.subr.bf16.mxu0 %v20917_v45  ;;  %16980 = vmatprep.subr.bf16.mxu1 %v28529_v35 }
 0x105   :  { %16982 = vmatpush3.bf16.msra.mxu1 %v28530_v14 }
 0x106   :  { %17066 = vmatpush3.bf16.msra.mxu0 %v20917_v45  ;;  %16984 = vmatprep.subr.bf16.mxu1 %v28532_v49 }
 0x107   :  { %17068 = vmatprep.subr.bf16.mxu0 %v20934_v20 }
 0x109   :  { %16986 = vmatpush3.bf16.msra.mxu1 %v28536_v61 }
 0x10a   :  { %17070 = vmatpush3.bf16.msra.mxu0 %v20934_v20  ;;  %16988 = vmatprep.subr.bf16.mxu1 %v28539_v2 }
 0x10b   :  { %17072 = vmatprep.subr.bf16.mxu0 %v20950_v16 }
 0x10d   :  { %16990 = vmatpush3.bf16.msra.mxu1 %v28542_v32 }
 0x10e   :  { %17074 = vmatpush3.bf16.msra.mxu0 %v20950_v16  ;;  %17024 = vmatprep.subr.bf16.mxu1 %v28516_v7  ;;  %v2037_v7 = vsub.f32 %v20967_v5, %v27670_v31  ;;  %v21040_v31 = vsub.f32 %v20910_v0, %v1940_v26  ;;  %v21067_v26 = vsub.f32 %v20924_v46, %v1946_v59 }
 0x10f   :  { %17076 = vmatprep.subr.bf16.mxu0 %v20975_v19 }
 0x110   :  { %1623 = vmatmul.mubr.f32.vlgmr.msra.gmra.mrb[24].mxu1 %v28382_v1  ;;  %28546 = vst [vmem:[#allocation16_spill] sm:$0xff] %v21040_v31  ;;  %v2038_v0 = vand.u32 4294901760, %v2037_v7  ;;  %28549 = vst [vmem:[#allocation28_spill] sm:$0xff] %v21067_v26  ;;  %v27680_v24 = vand.u32 4294901760, %v21040_v31 }
 0x111   :  { %1630 = vmatprep.mubr.f32.mxu1 %v28544_v38  ;;  %17026 = vmatpush3.bf16.msra.mxu1 %v28518_v30  ;;  %v2012_v30 = vsub.f32 %v20990_v63, %v27683_v4  ;;  %v27681_v38 = vand.u32 4294901760, %v21035_v55 }
 0x112   :  { %17078 = vmatpush3.bf16.msra.mxu0 %v20975_v19  ;;  %17028 = vmatprep.subr.bf16.mxu1 %v28519_v27  ;;  %v2051_v27 = vsub.f32 %v20998_v42, %v27682_v53  ;;  %v21231_v53 = vld [vmem:[#allocation2 + $0x2a8] sm:$0xff] }
 0x113   :  { %17080 = vmatprep.subr.bf16.mxu0 %v21014_v18  ;;  %v2013_v7 = vand.u32 4294901760, %v2012_v30  ;;  %v2065_v30 = vsub.f32 %v21035_v55, %v27681_v38 }
 0x114   :  { %1631 = vmatmul.mubr.f32.gmra.mrb[26].mxu1 %v28382_v1  ;;  %v2052_v46 = vand.u32 4294901760, %v2051_v27  ;;  %v2072_v27 = vsub.f32 %v21040_v31, %v27680_v24 }
 0x115   :  { %17030 = vmatpush3.bf16.msra.mxu1 %v28520_v37  ;;  %1906 = vmatprep.mubr.f32.mxu1 %v20442_v44  ;;  %v27672_v37 = vand.u32 4294901760, %v21067_v26  ;;  %v28550_v44 = vand.u32 4294901760, %v20939_v57 }
 0x116   :  { %17082 = vmatpush3.bf16.msra.mxu0 %v21014_v18  ;;  %17032 = vmatprep.subr.bf16.mxu1 %v28523_v21  ;;  %v17091_v21 = vpack.c.bf16 %v2045_v3, %v2038_v0  ;;  %v27678_v0 = vand.u32 4294901760, %v21086_v33  ;;  %v21107_v3 = vsub.f32 %v20961_v22, %v28554_v51 }
 0x117   :  { %17084 = vmatprep.subr.bf16.mxu0 %v21048_v54  ;;  %v21081_v59 = vsub.f32 %v20939_v57, %v28550_v44  ;;  %v2079_v57 = vsub.f32 %v21054_v56, %v27673_v60  ;;  %v28556_v44 = vand.u32 4294901760, %v20963_v12 }
 0x118   :  { %28555 = vst [vmem:[#allocation31_spill] sm:$0xff] %v21107_v3 }
 0x119   :  { %28551 = vst [vmem:[#allocation29_spill] sm:$0xff] %v21081_v59  ;;  %17034 = vmatpush3.bf16.msra.mxu1 %v28524_v34  ;;  %v2086_v34 = vsub.f32 %v21067_v26, %v27672_v37  ;;  %v27679_v17 = vand.u32 4294901760, %v21081_v59  ;;  %v21114_v47 = vsub.f32 %v20963_v12, %v28556_v44  ;;  %v2080_v37 = vand.u32 4294901760, %v2079_v57 }
 0x11a   :  { %17086 = vmatpush3.bf16.msra.mxu0 %v21048_v54  ;;  %17036 = vmatprep.subr.bf16.mxu1 %v28525_v6  ;;  %v17095_v6 = vpack.c.bf16 %v2059_v15, %v2052_v46  ;;  %v27677_v46 = vand.u32 4294901760, %v21107_v3 }
 0x11b   :  { %17088 = vmatprep.subr.bf16.mxu0 %v17087_v43  ;;  %28557 = vst [vmem:[#allocation32_spill] sm:$0xff] %v21114_v47  ;;  %v2087_v60 = vand.u32 4294901760, %v2086_v34  ;;  %v2093_v22 = vsub.f32 %v21081_v59, %v27679_v17  ;;  %v27676_v15 = vand.u32 4294901760, %v21114_v47  ;;  %v21224_v17 = vld [vmem:[#allocation2 + $0x328] sm:$0xff] }
 0x11c   :  { %v2107_v34 = vsub.f32 %v21107_v3, %v27677_v46 }
 0x11d   :  { %15654 = vmatmul.mubr.f32.vlgmr.msra.gmra.mrb[16].mxu0 %v2013_v7  ;;  %17038 = vmatpush3.bf16.msra.mxu1 %v28526_v48  ;;  %v2073_v7 = vand.u32 4294901760, %v2072_v27  ;;  %v2100_v48 = vsub.f32 %v21086_v33, %v27678_v0  ;;  %v17103_v27 = vpack.c.bf16 %v2087_v60, %v2080_v37  ;;  %v21222_v0 = vld [vmem:[#allocation2 + $0x320] sm:$0xff] }
 0x11e   :  { %17090 = vmatpush3.bf16.msra.mxu0 %v17087_v43  ;;  %15688 = vmatprep.mubr.f32.mxu0 %v20853_v29  ;;  %v2066_v43 = vand.u32 4294901760, %v2065_v30  ;;  %v2108_v37 = vand.u32 4294901760, %v2107_v34  ;;  %v21180_v34 = vld [vmem:[#allocation2 + $0x280] sm:$0xff]  ;;  %v27694_v41 = vand.u32 4294901760, %v21222_v0 }
 0x11f   :  { %17092 = vmatprep.subr.bf16.mxu0 %v17091_v21  ;;  %17040 = vmatprep.subr.bf16.mxu1 %v28527_v39  ;;  %v21129_v39 = vsub.f32 %v20984_v9, %v1961_v50  ;;  %v2101_v57 = vand.u32 4294901760, %v2100_v48  ;;  %v2114_v9 = vsub.f32 %v21114_v47, %v27676_v15 }
 0x120   :  { %v17099_v12 = vpack.c.bf16 %v2073_v7, %v2066_v43 }
 0x121   :  { %17042 = vmatpush3.bf16.msra.mxu1 %v28528_v40  ;;  %28558 = vst [vmem:[#allocation33_spill] sm:$0xff] %v21129_v39  ;;  %v12833_v30 = vpop.f32.mrb[0].mxu1  ;;  %v2094_v40 = vand.u32 4294901760, %v2093_v22 }
 0x122   :  { %17094 = vmatpush3.bf16.msra.mxu0 %v17091_v21  ;;  %v21134_v21 = vsub.f32 %v20986_v62, %v1964_v23  ;;  %17044 = vmatprep.subr.bf16.mxu1 %v28529_v35  ;;  %v12834_v51 = vpop.f32.mrb[1].mxu1  ;;  %v27675_v62 = vand.u32 4294901760, %v21129_v39 }
 0x123   :  { %17096 = vmatprep.subr.bf16.mxu0 %v17095_v6  ;;  %v12835_v50 = vadd.f32 %v12834_v51, %v12833_v30  ;;  %v17107_v23 = vpack.c.bf16 %v2101_v57, %v2094_v40  ;;  %v17127_v40 = vpack.c.bf16 %v21001_v58, %v20998_v42  ;;  %v21182_v51 = vld [vmem:[#allocation2 + $0x288] sm:$0xff]  ;;  %v21390_v58 = vld [vmem:[#allocation2 + $0x378] sm:$0xff] }
 0x124   :  { %28559 = vst [vmem:[#allocation34_spill] sm:$0xff] %v21134_v21  ;;  %v27674_v35 = vand.u32 4294901760, %v21134_v21  ;;  %v2121_v43 = vsub.f32 %v21129_v39, %v27675_v62 }
 0x125   :  { %17046 = vmatpush3.bf16.msra.mxu1 %v28530_v14  ;;  %v12836_v60 = vpop.f32.mrb[2].mxu1  ;;  %v2115_v14 = vand.u32 4294901760, %v2114_v9  ;;  %v12796_v9 = vld [vmem:[#allocation5] ss:$0 sm:$0xff] }
 0x126   :  { %17098 = vmatpush3.bf16.msra.mxu0 %v17095_v6  ;;  %17048 = vmatprep.subr.bf16.mxu1 %v28532_v49  ;;  %v12837_v6 = vpop.f32.mrb[3].mxu1  ;;  %v2128_v7 = vsub.f32 %v21134_v21, %v27674_v35  ;;  %v2122_v22 = vand.u32 4294901760, %v2121_v43  ;;  %v21197_v43 = vld [vmem:[#allocation2 + $0x318] sm:$0xff] }
 0x127   :  { %17100 = vmatprep.subr.bf16.mxu0 %v17099_v12  ;;  %v12838_v44 = vadd.f32 %v12837_v6, %v12836_v60  ;;  %v17111_v49 = vpack.c.bf16 %v2115_v14, %v2108_v37  ;;  %v27690_v60 = vand.u32 4294901760, %v21180_v34  ;;  %v17131_v37 = vpack.c.bf16 %v21040_v31, %v21035_v55  ;;  %v21195_v14 = vld [vmem:[#allocation2 + $0x310] sm:$0xff] }
 0x128   :  { %v21388_v55 = vld [vmem:[#allocation2 + $0x370] sm:$0xff] }
 0x129   :  { %17050 = vmatpush3.bf16.msra.mxu1 %v28536_v61  ;;  %v2129_v61 = vand.u32 4294901760, %v2128_v7  ;;  %v259_v7 = vadd.f32 %v12835_v50, %v12796_v9  ;;  %v17135_v50 = vpack.c.bf16 %v21067_v26, %v21054_v56  ;;  %v264_v24 = vadd.f32 %v12838_v44, %v12796_v9 }
 0x12a   :  { %17102 = vmatpush3.bf16.msra.mxu0 %v17099_v12  ;;  %17052 = vmatprep.subr.bf16.mxu1 %v28539_v2  ;;  %v17119_v2 = vpack.c.bf16 %v20955_v8, %v20944_v25  ;;  %v21165_v12 = vld [vmem:[#allocation2 + $0x300] sm:$0xff]  ;;  %v27692_v9 = vand.u32 4294901760, %v21231_v53  ;;  %v28585_v56 = vand.u32 4294901760, %v21222_v0 }
 0x12b   :  { %17104 = vmatprep.subr.bf16.mxu0 %v17103_v27  ;;  %v17115_v48 = vpack.c.bf16 %v2129_v61, %v2122_v22  ;;  %v27696_v30 = vand.u32 4294901760, %v21165_v12  ;;  %v27688_v22 = vand.u32 4294901760, %v21195_v14  ;;  %v27687_v61 = vand.u32 4294901760, %v21197_v43 }
 0x12d   :  { %17054 = vmatpush3.bf16.msra.mxu1 %v28542_v32  ;;  %v17123_v32 = vpack.c.bf16 %v20979_v13, %v20967_v5  ;;  %v21214_v46 = vpack.c.bf16 %v27687_v61, %v27688_v22  ;;  %v21248_v61 = vld [vmem:[#allocation2 + $0x338] sm:$0xff] }
 0x12e   :  { %17106 = vmatpush3.bf16.msra.mxu0 %v17103_v27  ;;  %v28593_v5 = vand.u32 4294901760, %v21248_v61 }
 0x12f   :  { %17108 = vmatprep.subr.bf16.mxu0 %v17107_v23  ;;  %28562 = vst [vmem:[#allocation36_spill] sm:$0xff] %v21214_v46 }
 0x130   :  { %1907 = vmatmul.mubr.f32.vlgmr.msra.gmra.mrb[28].mxu1 %v28382_v1 }
 0x131   :  { %1912 = vmatprep.mubr.f32.mxu1 %v28517_v11  ;;  %v21167_v11 = vld [vmem:[#allocation2 + $0x308] sm:$0xff] }
 0x132   :  { %17110 = vmatpush3.bf16.msra.mxu0 %v17107_v23  ;;  %v27695_v27 = vand.u32 4294901760, %v21167_v11  ;;  %v27689_v23 = vand.u32 4294901760, %v21182_v51 }
 0x133   :  { %17112 = vmatprep.subr.bf16.mxu0 %v17111_v49 }
 0x134   :  { %1913 = vmatmul.mubr.f32.gmra.mrb[30].mxu1 %v28382_v1  ;;  %v21178_v57 = vpack.c.bf16 %v27695_v27, %v27696_v30  ;;  %v21193_v6 = vpack.c.bf16 %v27689_v23, %v27690_v60  ;;  %v21260_v60 = vld [vmem:[#allocation2 + $0x2b0] sm:$0xff]  ;;  %v21284_v27 = vld [vmem:[#allocation2 + $0x348] sm:$0xff]  ;;  %v17147_v30 = vpack.c.bf16 %v21134_v21, %v21129_v39  ;;  %v21343_v21 = vld [vmem:[#allocation2 + $0x360] sm:$0xff] }
 0x135   :  { %2799 = vmatprep.mubr.f32.mxu1 %v28382_v1  ;;  %v2788_v31 = vand.u32 4294901760, %v21343_v21 }
 0x136   :  { %17114 = vmatpush3.bf16.msra.mxu0 %v17111_v49  ;;  %28560 = vst [vmem:[#allocation13_spill] sm:$0xff] %v21178_v57  ;;  %17248 = vmatprep.subr.bf16.mxu1 %v21178_v57  ;;  %28561 = vst [vmem:[#allocation35_spill] sm:$0xff] %v21193_v6 }
 0x137   :  { %17116 = vmatprep.subr.bf16.mxu0 %v17115_v48  ;;  %17250 = vmatpush3.bf16.msra.mxu1 %v21193_v6 }
 0x138   :  { %17252 = vmatprep.subr.bf16.mxu1 %v21214_v46  ;;  %v21296_v46 = vld [vmem:[#allocation2 + $0x2c0] sm:$0xff] }
 0x13a   :  { %17118 = vmatpush3.bf16.msra.mxu0 %v17115_v48  ;;  %v21201_v48 = vld [vmem:[#allocation2 + $0x290] sm:$0xff] }
 0x13b   :  { %17120 = vmatprep.subr.bf16.mxu0 %v17119_v2  ;;  %v27686_v35 = vand.u32 4294901760, %v21201_v48 }
 0x13d   :  { %15689 = vmatmul.mubr.f32.vlgmr.msra.gmra.mrb[16].mxu0 %v20959_v36  ;;  %v21341_v36 = vld [vmem:[#allocation2 + $0x2d8] sm:$0xff] }
 0x13e   :  { %17122 = vmatpush3.bf16.msra.mxu0 %v17119_v2  ;;  %15723 = vmatprep.mubr.f32.mxu0 %v20869_v52  ;;  %v21203_v2 = vld [vmem:[#allocation2 + $0x298] sm:$0xff] }
 0x13f   :  { %17124 = vmatprep.subr.bf16.mxu0 %v17123_v32  ;;  %v27685_v62 = vand.u32 4294901760, %v21203_v2 }
 0x141   :  { %v12871_v49 = vpop.f32.mrb[4].mxu1 }
 0x142   :  { %17126 = vmatpush3.bf16.msra.mxu0 %v17123_v32  ;;  %v12872_v32 = vpop.f32.mrb[5].mxu1 }
 0x143   :  { %17128 = vmatprep.subr.bf16.mxu0 %v17127_v40  ;;  %v12873_v15 = vadd.f32 %v12872_v32, %v12871_v49  ;;  %v21229_v32 = vld [vmem:[#allocation2 + $0x2a0] sm:$0xff] }
 0x144   :  { %v28589_v42 = vand.u32 4294901760, %v21229_v32 }
 0x145   :  { %v21226_v38 = vadd.f32 %v12873_v15, %v259_v7  ;;  %v12874_v49 = vpop.f32.mrb[6].mxu1  ;;  %v17139_v15 = vpack.c.bf16 %v21086_v33, %v21081_v59  ;;  %v21246_v7 = vld [vmem:[#allocation2 + $0x330] sm:$0xff]  ;;  %v21371_v33 = vld [vmem:[#allocation2 + $0x2e0] sm:$0xff]  ;;  %v21373_v59 = vld [vmem:[#allocation2 + $0x2e8] sm:$0xff] }
 0x146   :  { %17130 = vmatpush3.bf16.msra.mxu0 %v17127_v40  ;;  %v21220_v40 = vpack.c.bf16 %v27685_v62, %v27686_v35  ;;  %v12875_v4 = vpop.f32.mrb[7].mxu1  ;;  %v27691_v62 = vand.u32 4294901760, %v21224_v17  ;;  %v27693_v35 = vand.u32 4294901760, %v21229_v32  ;;  %v28592_v13 = vand.u32 4294901760, %v21246_v7 }
 0x147   :  { %17132 = vmatprep.subr.bf16.mxu0 %v17131_v37  ;;  %v12876_v44 = vadd.f32 %v12875_v4, %v12874_v49  ;;  %v27704_v4 = vand.u32 4294901760, %v21246_v7  ;;  %v27703_v49 = vand.u32 4294901760, %v21248_v61 }
 0x148   :  { %28563 = vst [vmem:[#allocation11_spill] sm:$0xff] %v21220_v40  ;;  %17254 = vmatpush3.bf16.msra.mxu1 %v21220_v40  ;;  %v21256_v23 = vpack.c.bf16 %v27692_v9, %v27693_v35  ;;  %v17143_v9 = vpack.c.bf16 %v21114_v47, %v21107_v3  ;;  %v28582_v47 = vand.u32 4294901760, %v21203_v2 }
 0x149   :  { %v21250_v22 = vadd.f32 %v12876_v44, %v264_v24  ;;  %v27708_v24 = vand.u32 4294901760, %v21260_v60  ;;  %v21274_v35 = vpack.c.bf16 %v27703_v49, %v27704_v4  ;;  %v21319_v49 = vld [vmem:[#allocation2 + $0x358] sm:$0xff]  ;;  %v28578_v4 = vand.u32 4294901760, %v21284_v27 }
 0x14a   :  { %17134 = vmatpush3.bf16.msra.mxu0 %v17131_v37  ;;  %v21244_v37 = vpack.c.bf16 %v27691_v62, %v27694_v41  ;;  %28566 = vst [vmem:[#allocation39_spill] sm:$0xff] %v21256_v23  ;;  %v21262_v62 = vld [vmem:[#allocation2 + $0x2b8] sm:$0xff]  ;;  %v21282_v41 = vld [vmem:[#allocation2 + $0x340] sm:$0xff]  ;;  %v21362_v3 = vsub.f32 %v21203_v2, %v28582_v47  ;;  %v21378_v47 = vsub.f32 %v21222_v0, %v28585_v56  ;;  %v28586_v2 = vand.u32 4294901760, %v21224_v17 }
 0x14b   :  { %17136 = vmatprep.subr.bf16.mxu0 %v17135_v50  ;;  %28565 = vst [vmem:[#allocation38_spill] sm:$0xff] %v21250_v22  ;;  %v27707_v44 = vand.u32 4294901760, %v21262_v62  ;;  %28567 = vst [vmem:[#allocation40_spill] sm:$0xff] %v21274_v35  ;;  %v21397_v56 = vsub.f32 %v21229_v32, %v28589_v42  ;;  %v2740_v42 = vand.u32 4294901760, %v21371_v33  ;;  %v21416_v32 = vld [vmem:[#allocation2 + $0x2f0] sm:$0xff]  ;;  %v28596_v18 = vand.u32 4294901760, %v21262_v62 }
 0x14c   :  { %28564 = vst [vmem:[#allocation37_spill] sm:$0xff] %v21244_v37  ;;  %17256 = vmatprep.subr.bf16.mxu1 %v21244_v37  ;;  %v28570_v37 = vand.u32 4294901760, %v20955_v8  ;;  %v28598_v22 = vand.u32 4294901760, %v21284_v27 }
 0x14d   :  { %17258 = vmatpush3.bf16.msra.mxu1 %v21256_v23  ;;  %v28569_v23 = vand.u32 4294901760, %v20944_v25  ;;  %v28573_v25 = vand.u32 4294901760, %v21167_v11  ;;  %v21437_v19 = vsub.f32 %v21262_v62, %v28596_v18 }
 0x14e   :  { %17138 = vmatpush3.bf16.msra.mxu0 %v17135_v50  ;;  %v21280_v50 = vpack.c.bf16 %v27707_v44, %v27708_v24  ;;  %v21298_v44 = vld [vmem:[#allocation2 + $0x2c8] sm:$0xff]  ;;  %v28572_v24 = vand.u32 4294901760, %v21165_v12  ;;  %17260 = vmatprep.subr.bf16.mxu1 %v21274_v35 }
 0x14f   :  { %17140 = vmatprep.subr.bf16.mxu0 %v17139_v15  ;;  %v21292_v40 = vpack.c.bf16 %v28570_v37, %v28569_v23  ;;  %v21308_v8 = vsub.f32 %v21167_v11, %v28573_v25  ;;  %v28574_v23 = vand.u32 4294901760, %v21180_v34  ;;  %v28576_v25 = vand.u32 4294901760, %v21195_v14 }
 0x150   :  { %28568 = vst [vmem:[#allocation41_spill] sm:$0xff] %v21280_v50  ;;  %v21303_v6 = vsub.f32 %v21165_v12, %v28572_v24  ;;  %v21321_v12 = vld [vmem:[#allocation2 + $0x2d0] sm:$0xff]  ;;  %v28575_v24 = vand.u32 4294901760, %v21182_v51  ;;  %v2731_v57 = vand.u32 4294901760, %v21298_v44  ;;  %v12985_v39 = vpop.f32.mrb[0].mxu0 }
 0x151   :  { %28571 = vst [vmem:[#allocation42_spill] sm:$0xff] %v21292_v40  ;;  %v21313_v37 = vsub.f32 %v21180_v34, %v28574_v23  ;;  %v21331_v34 = vsub.f32 %v21195_v14, %v28576_v25  ;;  %17262 = vmatpush3.bf16.msra.mxu1 %v21280_v50  ;;  %v28577_v23 = vand.u32 4294901760, %v21282_v41  ;;  %v28581_v14 = vand.u32 4294901760, %v21201_v48  ;;  %v12986_v26 = vpop.f32.mrb[1].mxu0 }
 0x152   :  { %17142 = vmatpush3.bf16.msra.mxu0 %v17139_v15  ;;  %v21317_v15 = vld [vmem:[#allocation2 + $0x350] sm:$0xff]  ;;  %v21326_v11 = vsub.f32 %v21182_v51, %v28575_v24  ;;  %v28580_v51 = vand.u32 4294901760, %v21197_v43  ;;  %v28595_v40 = vand.u32 4294901760, %v21260_v60 }
 0x153   :  { %17144 = vmatprep.subr.bf16.mxu0 %v17143_v9  ;;  %v21338_v35 = vpack.c.bf16 %v28578_v4, %v28577_v23  ;;  %v21353_v25 = vsub.f32 %v21201_v48, %v28581_v14  ;;  %v2782_v50 = vand.u32 4294901760, %v21317_v15  ;;  %v2785_v4 = vand.u32 4294901760, %v21319_v49  ;;  %v21357_v23 = vld [vmem:[#allocation2 + $0x368] sm:$0xff] }
 0x154   :  { %v21348_v24 = vsub.f32 %v21197_v43, %v28580_v51  ;;  %v28583_v43 = vand.u32 4294901760, %v21296_v46  ;;  %v2734_v48 = vand.u32 4294901760, %v21321_v12  ;;  %v2737_v14 = vand.u32 4294901760, %v21341_v36 }
 0x155   :  { %28579 = vst [vmem:[#allocation43_spill] sm:$0xff] %v21338_v35  ;;  %17264 = vmatprep.subr.bf16.mxu1 %v21338_v35  ;;  %v21385_v35 = vpack.c.bf16 %v2785_v4, %v2782_v50  ;;  %v2791_v0 = vand.u32 4294901760, %v21357_v23  ;;  %v21432_v54 = vsub.f32 %v21260_v60, %v28595_v40  ;;  %v21475_v62 = vsub.f32 %v21319_v49, %v2785_v4 }
 0x156   :  { %v21367_v51 = vpack.c.bf16 %v2731_v57, %v28583_v43  ;;  %17146 = vmatpush3.bf16.msra.mxu0 %v17143_v9  ;;  %v21383_v43 = vsub.f32 %v21224_v17, %v28586_v2  ;;  %v21392_v9 = vadd.f32 %v12986_v26, %v12985_v39  ;;  %v21400_v17 = vpack.c.bf16 %v2737_v14, %v2734_v48 }
 0x157   :  { %28587 = vst [vmem:[#allocation45_spill] sm:$0xff] %v21385_v35  ;;  %17148 = vmatprep.subr.bf16.mxu0 %v17147_v30  ;;  %v28591_v2 = vand.u32 4294901760, %v21231_v53  ;;  %v21411_v26 = vsub.f32 %v21246_v7, %v28592_v13  ;;  %v2743_v39 = vand.u32 4294901760, %v21373_v59  ;;  %v2794_v13 = vand.u32 4294901760, %v21388_v55 }
 0x158   :  { %28584 = vst [vmem:[#allocation44_spill] sm:$0xff] %v21367_v51  ;;  %28588 = vst [vmem:[#allocation46_spill] sm:$0xff] %v21392_v9  ;;  %17266 = vmatpush3.bf16.msra.mxu1 %v21367_v51  ;;  %v21418_v51 = vld [vmem:[#allocation2 + $0x2f8] sm:$0xff]  ;;  %v12988_v9 = vpop.f32.mrb[2].mxu0  ;;  %v2797_v7 = vand.u32 4294901760, %v21390_v58  ;;  %v27752_v49 = vand.u32 4294901760, %v21326_v11 }
 0x159   :  { %28590 = vst [vmem:[#allocation47_spill] sm:$0xff] %v21400_v17  ;;  %v21406_v29 = vsub.f32 %v21231_v53, %v28591_v2  ;;  %17268 = vmatprep.subr.bf16.mxu1 %v21385_v35  ;;  %v21423_v53 = vsub.f32 %v21248_v61, %v28593_v5  ;;  %v21425_v2 = vpack.c.bf16 %v2791_v0, %v2788_v31  ;;  %v12989_v35 = vpop.f32.mrb[3].mxu0  ;;  %v28597_v5 = vand.u32 4294901760, %v21282_v41 }
 0x15a   :  { %17150 = vmatpush3.bf16.msra.mxu0 %v17147_v30  ;;  %v21447_v30 = vsub.f32 %v21284_v27, %v28598_v22  ;;  %v21450_v16 = vadd.f32 %v12989_v35, %v12988_v9  ;;  %v21453_v60 = vpack.c.bf16 %v2743_v39, %v2740_v42  ;;  %v21463_v27 = vpack.c.bf16 %v2797_v7, %v2794_v13 }
 0x15b   :  { %28594 = vst [vmem:[#allocation48_spill] sm:$0xff] %v21425_v2  ;;  %v21442_v61 = vsub.f32 %v21282_v41, %v28597_v5  ;;  %17152 = vmatprep.subr.bf16.mxu0 %v20890_v10  ;;  %v28600_v41 = vand.u32 4294901760, %v21296_v46  ;;  %v27760_v35 = vand.u32 4294901760, %v21303_v6  ;;  %v27750_v22 = vand.u32 4294901760, %v21308_v8 }
 0x15c   :  { %17270 = vmatpush3.bf16.msra.mxu1 %v21400_v17  ;;  %28599 = vst [vmem:[#allocation49_spill] sm:$0xff] %v21453_v60  ;;  %28601 = vst [vmem:[#allocation50_spill] sm:$0xff] %v21463_v27  ;;  %v21469_v9 = vsub.f32 %v21298_v44, %v2731_v57  ;;  %v21472_v5 = vsub.f32 %v21317_v15, %v2782_v50  ;;  %v27751_v44 = vand.u32 4294901760, %v21313_v37  ;;  %v28603_v15 = vand.u32 4294901760, %v21416_v32 }
 0x15d   :  { %v21460_v40 = vsub.f32 %v21296_v46, %v28600_v41  ;;  %17272 = vmatprep.subr.bf16.mxu1 %v21425_v2  ;;  %15724 = vmatmul.mubr.f32.vlgmr.msra.gmra.mrb[16].mxu0 %v20990_v63  ;;  %v21478_v46 = vsub.f32 %v21321_v12, %v2734_v48  ;;  %v28602_v41 = vand.u32 4294901760, %v20869_v52  ;;  %v2926_v18 = vsub.f32 %v21303_v6, %v27760_v35 }
 0x15e   :  { %17154 = vmatpush3.bf16.msra.mxu0 %v20890_v10  ;;  %v2933_v57 = vsub.f32 %v21308_v8, %v27750_v22  ;;  %v21493_v50 = vsub.f32 %v21341_v36, %v2737_v14  ;;  %v21496_v52 = vsub.f32 %v21343_v21, %v2788_v31  ;;  %v28604_v12 = vand.u32 4294901760, %v21418_v51 }
 0x15f   :  { %15758 = vmatprep.mubr.f32.mxu0 %v28602_v41  ;;  %17156 = vmatprep.subr.bf16.mxu0 %v20903_v28  ;;  %v2927_v48 = vand.u32 4294901760, %v2926_v18  ;;  %v2814_v36 = vsub.f32 %v21313_v37, %v27751_v44  ;;  %v2821_v31 = vsub.f32 %v21326_v11, %v27752_v49  ;;  %v21513_v21 = vsub.f32 %v21357_v23, %v2791_v0 }
 0x160   :  { %17274 = vmatpush3.bf16.msra.mxu1 %v21453_v60  ;;  %v21503_v4 = vpack.c.bf16 %v28604_v12, %v28603_v15  ;;  %v2934_v41 = vand.u32 4294901760, %v2933_v57  ;;  %v21516_v14 = vsub.f32 %v21371_v33, %v2740_v42  ;;  %v27754_v15 = vand.u32 4294901760, %v21331_v34 }
 0x161   :  { %17276 = vmatprep.subr.bf16.mxu1 %v21463_v27  ;;  %v27753_v12 = vand.u32 4294901760, %v21348_v24  ;;  %v2815_v57 = vand.u32 4294901760, %v2814_v36  ;;  %v2822_v22 = vand.u32 4294901760, %v2821_v31  ;;  %v27756_v44 = vand.u32 4294901760, %v21353_v25 }
 0x162   :  { %28605 = vst [vmem:[#allocation51_spill] sm:$0xff] %v21503_v4  ;;  %17158 = vmatpush3.bf16.msra.mxu0 %v20903_v28  ;;  %v17279_v18 = vpack.c.bf16 %v2934_v41, %v2927_v48  ;;  %v21524_v49 = vsub.f32 %v21373_v59, %v2743_v39  ;;  %v2940_v33 = vsub.f32 %v21331_v34, %v27754_v15  ;;  %v27755_v0 = vand.u32 4294901760, %v21362_v3  ;;  %v12909_v41 = vpop.f32.mrb[8].mxu1 }
 0x163   :  { %17160 = vmatprep.subr.bf16.mxu0 %v20917_v45  ;;  %v2947_v23 = vsub.f32 %v21348_v24, %v27753_v12  ;;  %v21535_v42 = vsub.f32 %v21388_v55, %v2794_v13  ;;  %v21538_v48 = vsub.f32 %v21390_v58, %v2797_v7  ;;  %v17281_v59 = vpack.c.bf16 %v2822_v22, %v2815_v57  ;;  %v12910_v55 = vpop.f32.mrb[9].mxu1 }
 0x164   :  { %17278 = vmatpush3.bf16.msra.mxu1 %v21503_v4  ;;  %v2828_v39 = vsub.f32 %v21353_v25, %v27756_v44  ;;  %v2941_v36 = vand.u32 4294901760, %v2940_v33  ;;  %v2835_v12 = vsub.f32 %v21362_v3, %v27755_v0  ;;  %v27759_v15 = vand.u32 4294901760, %v21378_v47 }
 0x165   :  { %17280 = vmatprep.subr.bf16.mxu1 %v17279_v18  ;;  %v2948_v31 = vand.u32 4294901760, %v2947_v23  ;;  %v27757_v13 = vand.u32 4294901760, %v21383_v43  ;;  %v27758_v7 = vand.u32 4294901760, %v21397_v56  ;;  %v27761_v22 = vand.u32 4294901760, %v21406_v29 }
 0x166   :  { %17162 = vmatpush3.bf16.msra.mxu0 %v20917_v45  ;;  %v2829_v58 = vand.u32 4294901760, %v2828_v39  ;;  %v12911_v18 = vadd.f32 %v12910_v55, %v12909_v41  ;;  %v2836_v33 = vand.u32 4294901760, %v2835_v12  ;;  %v2954_v23 = vsub.f32 %v21378_v47, %v27759_v15 }
 0x167   :  { %2800 = vmatmul.mubr.f32.vlgmr.msra.gmra.mrb[32].mxu1 %v28382_v1  ;;  %17164 = vmatprep.subr.bf16.mxu0 %v20934_v20  ;;  %v17283_v57 = vpack.c.bf16 %v2948_v31, %v2941_v36  ;;  %v28606_v0 = vand.u32 4294901760, %v21416_v32  ;;  %v2961_v44 = vsub.f32 %v21383_v43, %v27757_v13  ;;  %v2842_v41 = vsub.f32 %v21397_v56, %v27758_v7  ;;  %v12912_v36 = vpop.f32.mrb[10].mxu1 }
 0x168   :  { %17282 = vmatpush3.bf16.msra.mxu1 %v17281_v59  ;;  %v2849_v12 = vsub.f32 %v21406_v29, %v27761_v22  ;;  %2804 = vmatprep.mubr.f32.mxu1 %v28382_v1  ;;  %v21572_v59 = vadd.f32 %v12911_v18, %v21226_v38  ;;  %v27762_v31 = vand.u32 4294901760, %v21411_v26  ;;  %v12913_v55 = vpop.f32.mrb[11].mxu1  ;;  %v27765_v35 = vand.u32 4294901760, %v21423_v53  ;;  %v28607_v22 = vld [vmem:[#allocation19_spill] sm:$0xff] }
 0x169   :  { %v21559_v39 = vsub.f32 %v21416_v32, %v28606_v0  ;;  %17284 = vmatprep.subr.bf16.mxu1 %v17283_v57  ;;  %v17285_v32 = vpack.c.bf16 %v2836_v33, %v2829_v58  ;;  %v2955_v0 = vand.u32 4294901760, %v2954_v23  ;;  %v2962_v13 = vand.u32 4294901760, %v2961_v44 }
 0x16a   :  { %17166 = vmatpush3.bf16.msra.mxu0 %v20934_v20  ;;  %v2843_v7 = vand.u32 4294901760, %v2842_v41  ;;  %v2850_v15 = vand.u32 4294901760, %v2849_v12  ;;  %v12914_v38 = vadd.f32 %v12913_v55, %v12912_v36  ;;  %v2968_v58 = vsub.f32 %v21411_v26, %v27762_v31  ;;  %v28609_v36 = vld [vmem:[#allocation38_spill] sm:$0xff] }
 0x16b   :  { %2805 = vmatmul.mubr.f32.gmra.mrb[34].mxu1 %v28382_v1  ;;  %17168 = vmatprep.subr.bf16.mxu0 %v28607_v22  ;;  %v27763_v18 = vand.u32 4294901760, %v21432_v54  ;;  %v27764_v57 = vand.u32 4294901760, %v21437_v19  ;;  %v28608_v44 = vand.u32 4294901760, %v21418_v51  ;;  %v17287_v23 = vpack.c.bf16 %v2962_v13, %v2955_v0 }
 0x16c   :  { %17286 = vmatpush3.bf16.msra.mxu1 %v17285_v32  ;;  %v17289_v41 = vpack.c.bf16 %v2850_v15, %v2843_v7  ;;  %v2975_v12 = vsub.f32 %v21423_v53, %v27765_v35  ;;  %3034 = vmatprep.mubr.f32.mxu1 %v28382_v1  ;;  %v21594_v32 = vadd.f32 %v12914_v38, %v28609_v36  ;;  %v2969_v55 = vand.u32 4294901760, %v2968_v58  ;;  %v28610_v38 = vld [vmem:[#allocation12_spill] sm:$0xff] }
 0x16d   :  { %v21587_v33 = vsub.f32 %v21418_v51, %v28608_v44  ;;  %v2856_v31 = vsub.f32 %v21432_v54, %v27763_v18  ;;  %v2863_v51 = vsub.f32 %v21437_v19, %v27764_v57  ;;  %17288 = vmatprep.subr.bf16.mxu1 %v17287_v23  ;;  %v27767_v13 = vand.u32 4294901760, %v21442_v61 }
 0x16e   :  { %17170 = vmatpush3.bf16.msra.mxu0 %v28607_v22  ;;  %v2976_v15 = vand.u32 4294901760, %v2975_v12  ;;  %v27766_v7 = vand.u32 4294901760, %v21447_v30  ;;  %v27770_v0 = vand.u32 4294901760, %v21460_v40  ;;  %v27771_v36 = vand.u32 4294901760, %v21469_v9 }
 0x16f   :  { %17172 = vmatprep.subr.bf16.mxu0 %v28610_v38  ;;  %v2857_v58 = vand.u32 4294901760, %v2856_v31  ;;  %v2864_v44 = vand.u32 4294901760, %v2863_v51  ;;  %v27772_v18 = vand.u32 4294901760, %v21472_v5  ;;  %v2982_v23 = vsub.f32 %v21442_v61, %v27767_v13 }
 0x170   :  { %17290 = vmatpush3.bf16.msra.mxu1 %v17289_v41  ;;  %v17291_v57 = vpack.c.bf16 %v2976_v15, %v2969_v55  ;;  %v2989_v12 = vsub.f32 %v21447_v30, %v27766_v7  ;;  %v2870_v35 = vsub.f32 %v21460_v40, %v27770_v0  ;;  %v2877_v31 = vsub.f32 %v21469_v9, %v27771_v36  ;;  %v28611_v0 = vld [vmem:[#allocation24_spill] sm:$0xff] }
 0x171   :  { %v17293_v41 = vpack.c.bf16 %v2864_v44, %v2857_v58  ;;  %v2996_v55 = vsub.f32 %v21472_v5, %v27772_v18  ;;  %v27779_v51 = vand.u32 4294901760, %v21475_v62  ;;  %v2983_v15 = vand.u32 4294901760, %v2982_v23 }
 0x172   :  { %17174 = vmatpush3.bf16.msra.mxu0 %v28610_v38  ;;  %17292 = vmatprep.subr.bf16.mxu1 %v17291_v57  ;;  %v2990_v7 = vand.u32 4294901760, %v2989_v12  ;;  %v2871_v13 = vand.u32 4294901760, %v2870_v35  ;;  %v27778_v4 = vand.u32 4294901760, %v21478_v46  ;;  %v2878_v58 = vand.u32 4294901760, %v2877_v31 }
 0x173   :  { %17176 = vmatprep.subr.bf16.mxu0 %v28611_v0  ;;  %v2997_v44 = vand.u32 4294901760, %v2996_v55  ;;  %v3003_v36 = vsub.f32 %v21475_v62, %v27779_v51  ;;  %v27777_v18 = vand.u32 4294901760, %v21493_v50  ;;  %v27780_v35 = vand.u32 4294901760, %v21496_v52 }
 0x174   :  { %17294 = vmatpush3.bf16.msra.mxu1 %v17293_v41  ;;  %v17295_v27 = vpack.c.bf16 %v2990_v7, %v2983_v15  ;;  %v2884_v57 = vsub.f32 %v21478_v46, %v27778_v4  ;;  %v27781_v23 = vand.u32 4294901760, %v21513_v21  ;;  %v17297_v12 = vpack.c.bf16 %v2878_v58, %v2871_v13 }
 0x175   :  { %v3004_v60 = vand.u32 4294901760, %v3003_v36  ;;  %v2891_v41 = vsub.f32 %v21493_v50, %v27777_v18  ;;  %v27787_v31 = vand.u32 4294901760, %v21516_v14  ;;  %v3010_v55 = vsub.f32 %v21496_v52, %v27780_v35  ;;  %v28612_v36 = vld [vmem:[#allocation26_spill] sm:$0xff] }
 0x176   :  { %17178 = vmatpush3.bf16.msra.mxu0 %v28611_v0  ;;  %17296 = vmatprep.subr.bf16.mxu1 %v17295_v27  ;;  %v2885_v7 = vand.u32 4294901760, %v2884_v57  ;;  %v3017_v15 = vsub.f32 %v21513_v21, %v27781_v23  ;;  %v27786_v13 = vand.u32 4294901760, %v21524_v49  ;;  %v27788_v57 = vand.u32 4294901760, %v21535_v42 }
 0x177   :  { %17180 = vmatprep.subr.bf16.mxu0 %v28612_v36  ;;  %v17299_v58 = vpack.c.bf16 %v3004_v60, %v2997_v44  ;;  %v2892_v18 = vand.u32 4294901760, %v2891_v41  ;;  %v2898_v27 = vsub.f32 %v21516_v14, %v27787_v31  ;;  %v3011_v4 = vand.u32 4294901760, %v3010_v55 }
 0x178   :  { %17298 = vmatpush3.bf16.msra.mxu1 %v17297_v12  ;;  %v3018_v51 = vand.u32 4294901760, %v3017_v15  ;;  %v2905_v35 = vsub.f32 %v21524_v49, %v27786_v13  ;;  %v27789_v23 = vand.u32 4294901760, %v21538_v48  ;;  %v3024_v60 = vsub.f32 %v21535_v42, %v27788_v57  ;;  %v28613_v13 = vld [vmem:[#allocation42_spill] sm:$0xff] }
 0x179   :  { %17300 = vmatprep.subr.bf16.mxu1 %v17299_v58  ;;  %v17301_v2 = vpack.c.bf16 %v2892_v18, %v2885_v7  ;;  %v2899_v17 = vand.u32 4294901760, %v2898_v27  ;;  %v27792_v44 = vand.u32 4294901760, %v21559_v39  ;;  %v27791_v15 = vand.u32 4294901760, %v21587_v33  ;;  %v28614_v18 = vld [vmem:[#allocation21_spill] sm:$0xff]  ;;  %v28616_v58 = vld [vmem:[#allocation22_spill] sm:$0xff] }
 0x17a   :  { %17182 = vmatpush3.bf16.msra.mxu0 %v28612_v36  ;;  %v17303_v12 = vpack.c.bf16 %v3018_v51, %v3011_v4  ;;  %v2906_v41 = vand.u32 4294901760, %v2905_v35  ;;  %v3031_v55 = vsub.f32 %v21538_v48, %v27789_v23  ;;  %v28615_v7 = vand.u32 4294901760, %v28614_v18 }
 0x17b   :  { %17184 = vmatprep.subr.bf16.mxu0 %v28613_v13  ;;  %v28617_v27 = vand.u32 4294901760, %v28616_v58  ;;  %v3025_v57 = vand.u32 4294901760, %v3024_v60  ;;  %v2912_v4 = vsub.f32 %v21559_v39, %v27792_v44  ;;  %v2919_v23 = vsub.f32 %v21587_v33, %v27791_v15  ;;  %v28620_v58 = vld [vmem:[#allocation17_spill] sm:$0xff] }
 0x17c   :  { %17302 = vmatpush3.bf16.msra.mxu1 %v17301_v2  ;;  %v17305_v51 = vpack.c.bf16 %v2906_v41, %v2899_v17  ;;  %v3032_v35 = vand.u32 4294901760, %v3031_v55  ;;  %v28618_v36 = vand.u32 4294901760, %v20990_v63  ;;  %v17311_v63 = vpack.c.bf16 %v21308_v8, %v21303_v6 }
 0x17d   :  { %v17187_v31 = vpack.c.bf16 %v28617_v27, %v28615_v7  ;;  %17304 = vmatprep.subr.bf16.mxu1 %v17303_v12  ;;  %v2913_v18 = vand.u32 4294901760, %v2912_v4  ;;  %v28619_v7 = vld [vmem:[#allocation18_spill] sm:$0xff]  ;;  %v2920_v60 = vand.u32 4294901760, %v2919_v23  ;;  %v28621_v27 = vand.u32 4294901760, %v28620_v58  ;;  %v28622_v12 = vld [vmem:[#allocation23_spill] sm:$0xff]  ;;  %v28626_v4 = vld [vmem:[#allocation16_spill] sm:$0xff] }
 0x17e   :  { %15759 = vmatmul.mubr.f32.vlgmr.msra.gmra.mrb[16].mxu0 %v28618_v36  ;;  %v17307_v2 = vpack.c.bf16 %v3032_v35, %v3025_v57  ;;  %v28623_v17 = vand.u32 4294901760, %v28622_v12  ;;  %v28624_v36 = vld [vmem:[#allocation25_spill] sm:$0xff]  ;;  %v28627_v15 = vand.u32 4294901760, %v28626_v4  ;;  %v17313_v23 = vpack.c.bf16 %v21326_v11, %v21313_v37 }
 0x17f   :  { %17186 = vmatpush3.bf16.msra.mxu0 %v28613_v13  ;;  %15793 = vmatprep.mubr.f32.mxu0 %v28619_v7  ;;  %v17309_v55 = vpack.c.bf16 %v2920_v60, %v2913_v18  ;;  %v28625_v13 = vand.u32 4294901760, %v28624_v36  ;;  %v28630_v60 = vld [vmem:[#allocation28_spill] sm:$0xff]  ;;  %v17317_v12 = vpack.c.bf16 %v21362_v3, %v21353_v25  ;;  %v17327_v44 = vpack.c.bf16 %v21447_v30, %v21442_v61 }
 0x180   :  { %17188 = vmatprep.subr.bf16.mxu0 %v17187_v31  ;;  %v17191_v41 = vpack.c.bf16 %v28623_v17, %v28621_v27  ;;  %17306 = vmatpush3.bf16.msra.mxu1 %v17305_v51  ;;  %v28631_v58 = vand.u32 4294901760, %v28630_v60 }
 0x181   :  { %17308 = vmatprep.subr.bf16.mxu1 %v17307_v2  ;;  %v17195_v57 = vpack.c.bf16 %v28627_v15, %v28625_v13  ;;  %v12947_v35 = vpop.f32.mrb[12].mxu1  ;;  %v28628_v2 = vld [vmem:[#allocation27_spill] sm:$0xff]  ;;  %v17315_v15 = vpack.c.bf16 %v21348_v24, %v21331_v34  ;;  %v28634_v13 = vld [vmem:[#allocation30_spill] sm:$0xff] }
 0x182   :  { %v12948_v51 = vpop.f32.mrb[13].mxu1  ;;  %v28635_v4 = vand.u32 4294901760, %v28634_v13 }
 0x183   :  { %17190 = vmatpush3.bf16.msra.mxu0 %v17187_v31  ;;  %v12949_v18 = vadd.f32 %v12948_v51, %v12947_v35  ;;  %v28629_v31 = vand.u32 4294901760, %v28628_v2  ;;  %v28636_v51 = vld [vmem:[#allocation46_spill] sm:$0xff] }
 0x184   :  { %17192 = vmatprep.subr.bf16.mxu0 %v17191_v41  ;;  %17310 = vmatpush3.bf16.msra.mxu1 %v17309_v55 }
 0x185   :  { %17312 = vmatprep.subr.bf16.mxu1 %v17311_v63  ;;  %v17199_v27 = vpack.c.bf16 %v28631_v58, %v28629_v31  ;;  %v740_v17 = vadd.f32 %v12949_v18, %v21572_v59  ;;  %v28632_v63 = vld [vmem:[#allocation29_spill] sm:$0xff]  ;;  %v17319_v59 = vpack.c.bf16 %v21383_v43, %v21378_v47  ;;  %v17323_v18 = vpack.c.bf16 %v21423_v53, %v21411_v26  ;;  %v28637_v58 = vld [vmem:[#allocation31_spill] sm:$0xff] }
 0x186   :  { %v28633_v36 = vand.u32 4294901760, %v28632_v63  ;;  %v21720_v31 = vld [vmem:[#allocation2 + $0x400] sm:$0xff] }
 0x187   :  { %17194 = vmatpush3.bf16.msra.mxu0 %v17191_v41  ;;  %3035 = vmatmul.mubr.f32.vlgmr.msra.gmra.mrb[36].mxu1 %v28382_v1  ;;  %v12950_v41 = vpop.f32.mrb[14].mxu1  ;;  %v21711_v2 = vadd.f32 %v28636_v51, %v740_v17  ;;  %v28639_v17 = vld [vmem:[#allocation32_spill] sm:$0xff]  ;;  %v17325_v51 = vpack.c.bf16 %v21437_v19, %v21432_v54 }
 0x188   :  { %17196 = vmatprep.subr.bf16.mxu0 %v17195_v57  ;;  %17314 = vmatpush3.bf16.msra.mxu1 %v17313_v23  ;;  %v12951_v55 = vpop.f32.mrb[15].mxu1  ;;  %v17203_v35 = vpack.c.bf16 %v28635_v4, %v28633_v36  ;;  %v28643_v36 = vld [vmem:[#allocation34_spill] sm:$0xff] }
 0x189   :  { %3039 = vmatprep.mubr.f32.mxu1 %v28382_v1  ;;  %17316 = vmatprep.subr.bf16.mxu1 %v17315_v15  ;;  %v12952_v23 = vadd.f32 %v12951_v55, %v12950_v41  ;;  %v28638_v15 = vand.u32 4294901760, %v28637_v58  ;;  %v28640_v41 = vand.u32 4294901760, %v28639_v17  ;;  %v28641_v55 = vld [vmem:[#allocation33_spill] sm:$0xff]  ;;  %v28644_v13 = vand.u32 4294901760, %v28643_v36 }
 0x18a   :  { %v28642_v63 = vand.u32 4294901760, %v28641_v55  ;;  %v28648_v17 = vand.u32 4294901760, %v21326_v11  ;;  %v3618_v55 = vand.u32 4294901760, %v21720_v31  ;;  %v28654_v11 = vand.u32 4294901760, %v21383_v43 }
 0x18b   :  { %17198 = vmatpush3.bf16.msra.mxu0 %v17195_v57  ;;  %3040 = vmatmul.mubr.f32.gmra.mrb[38].mxu1 %v28382_v1  ;;  %v17321_v57 = vpack.c.bf16 %v21406_v29, %v21397_v56  ;;  %v745_v60 = vadd.f32 %v12952_v23, %v21594_v32  ;;  %v17329_v32 = vpack.c.bf16 %v21469_v9, %v21460_v40  ;;  %v28660_v43 = vand.u32 4294901760, %v21437_v19 }
 0x18c   :  { %17200 = vmatprep.subr.bf16.mxu0 %v17199_v27  ;;  %17318 = vmatpush3.bf16.msra.mxu1 %v17317_v12  ;;  %v17207_v12 = vpack.c.bf16 %v28640_v41, %v28638_v15  ;;  %v17211_v4 = vpack.c.bf16 %v28644_v13, %v28642_v63  ;;  %v28647_v15 = vand.u32 4294901760, %v21313_v37  ;;  %v13061_v63 = vpop.f32.mrb[4].mxu0  ;;  %v28653_v37 = vand.u32 4294901760, %v21378_v47 }
 0x18d   :  { %3173 = vmatprep.mubr.f32.mxu1 %v28382_v1  ;;  %17320 = vmatprep.subr.bf16.mxu1 %v17319_v59  ;;  %v21738_v23 = vadd.f32 %v21450_v16, %v745_v60  ;;  %v28646_v59 = vand.u32 4294901760, %v21308_v8  ;;  %v28649_v16 = vand.u32 4294901760, %v21331_v34  ;;  %v28652_v8 = vand.u32 4294901760, %v21362_v3 }
 0x18e   :  { %v21750_v41 = vpack.c.bf16 %v28648_v17, %v28647_v15  ;;  %v21769_v13 = vpack.c.bf16 %v28654_v11, %v28653_v37  ;;  %v28656_v34 = vand.u32 4294901760, %v21406_v29  ;;  %v28658_v3 = vand.u32 4294901760, %v21423_v53  ;;  %v21803_v53 = vld [vmem:[#allocation2 + $0x380] sm:$0xff] }
 0x18f   :  { %17202 = vmatpush3.bf16.msra.mxu0 %v17199_v27  ;;  %v28645_v27 = vand.u32 4294901760, %v21303_v6  ;;  %v28651_v6 = vand.u32 4294901760, %v21353_v25  ;;  %v28657_v25 = vand.u32 4294901760, %v21411_v26  ;;  %v28659_v47 = vand.u32 4294901760, %v21432_v54 }
 0x190   :  { %17204 = vmatprep.subr.bf16.mxu0 %v17203_v35  ;;  %17322 = vmatpush3.bf16.msra.mxu1 %v17321_v57  ;;  %v28650_v57 = vand.u32 4294901760, %v21348_v24  ;;  %v21777_v24 = vld [vmem:[#allocation2 + $0x408] sm:$0xff]  ;;  %v28662_v29 = vand.u32 4294901760, %v21447_v30  ;;  %v28664_v26 = vand.u32 4294901760, %v21469_v9  ;;  %v28665_v19 = vand.u32 4294901760, %v21472_v5 }
 0x191   :  { %v21744_v58 = vpack.c.bf16 %v28646_v59, %v28645_v27  ;;  %17324 = vmatprep.subr.bf16.mxu1 %v17323_v18  ;;  %v21763_v36 = vpack.c.bf16 %v28652_v8, %v28651_v6  ;;  %v28655_v18 = vand.u32 4294901760, %v21397_v56  ;;  %v13062_v59 = vpop.f32.mrb[5].mxu0  ;;  %v21783_v15 = vpack.c.bf16 %v28658_v3, %v28657_v25  ;;  %v21805_v8 = vld [vmem:[#allocation2 + $0x388] sm:$0xff] }
 0x192   :  { %v21757_v60 = vpack.c.bf16 %v28650_v57, %v28649_v16  ;;  %v21789_v17 = vpack.c.bf16 %v28660_v43, %v28659_v47  ;;  %v28661_v56 = vand.u32 4294901760, %v21442_v61  ;;  %v28663_v57 = vand.u32 4294901760, %v21460_v40 }
 0x193   :  { %v21775_v27 = vpack.c.bf16 %v28656_v34, %v28655_v18  ;;  %v21807_v54 = vadd.f32 %v13062_v59, %v13061_v63  ;;  %17206 = vmatpush3.bf16.msra.mxu0 %v17203_v35  ;;  %v28666_v61 = vand.u32 4294901760, %v21475_v62  ;;  %v28667_v37 = vand.u32 4294901760, %v21478_v46 }
 0x194   :  { %v21795_v16 = vpack.c.bf16 %v28662_v29, %v28661_v56  ;;  %v21801_v6 = vpack.c.bf16 %v28664_v26, %v28663_v57  ;;  %v28668_v40 = vand.u32 4294901760, %v21493_v50  ;;  %v28669_v11 = vand.u32 4294901760, %v21496_v52  ;;  %17208 = vmatprep.subr.bf16.mxu0 %v17207_v12  ;;  %17326 = vmatpush3.bf16.msra.mxu1 %v17325_v51  ;;  %v13064_v57 = vpop.f32.mrb[6].mxu0 }
 0x195   :  { %v21813_v30 = vpack.c.bf16 %v28666_v61, %v28665_v19  ;;  %v28670_v18 = vand.u32 4294901760, %v21513_v21  ;;  %v28671_v35 = vand.u32 4294901760, %v21516_v14  ;;  %v28672_v63 = vand.u32 4294901760, %v21524_v49  ;;  %17328 = vmatprep.subr.bf16.mxu1 %v17327_v44 }
 0x196   :  { %v21819_v9 = vpack.c.bf16 %v28668_v40, %v28667_v37  ;;  %v28673_v25 = vand.u32 4294901760, %v21535_v42  ;;  %v28674_v3 = vand.u32 4294901760, %v21538_v48  ;;  %v28675_v43 = vand.u32 4294901760, %v21559_v39  ;;  %v13065_v40 = vpop.f32.mrb[7].mxu0 }
 0x197   :  { %v21825_v34 = vpack.c.bf16 %v28670_v18, %v28669_v11  ;;  %v21831_v59 = vpack.c.bf16 %v28672_v63, %v28671_v35  ;;  %v28676_v56 = vand.u32 4294901760, %v21587_v33  ;;  %v3621_v51 = vand.u32 4294901760, %v21777_v24  ;;  %17210 = vmatpush3.bf16.msra.mxu0 %v17207_v12 }
 0x198   :  { %v21837_v47 = vpack.c.bf16 %v28674_v3, %v28673_v25  ;;  %v17331_v26 = vpack.c.bf16 %v21475_v62, %v21472_v5  ;;  %v21851_v19 = vsub.f32 %v21720_v31, %v3618_v55  ;;  %v3570_v61 = vand.u32 4294901760, %v21803_v53  ;;  %17212 = vmatprep.subr.bf16.mxu0 %v17211_v4  ;;  %17330 = vmatpush3.bf16.msra.mxu1 %v17329_v32  ;;  %v28692_v31 = vld [vmem:[#allocation49_spill] sm:$0xff] }
 0x199   :  { %v21843_v29 = vpack.c.bf16 %v28676_v56, %v28675_v43  ;;  %v3573_v37 = vand.u32 4294901760, %v21805_v8  ;;  %v21858_v11 = vsub.f32 %v21777_v24, %v3621_v51  ;;  %v13066_v44 = vadd.f32 %v13065_v40, %v13064_v57  ;;  %v28681_v57 = vld [vmem:[#allocation11_spill] sm:$0xff] }
 0x19a   :  { %v27804_v18 = vand.u32 4294901760, %v21851_v19  ;;  %v21864_v62 = vsub.f32 %v21803_v53, %v3570_v61  ;;  %v17333_v35 = vpack.c.bf16 %v21493_v50, %v21478_v46  ;;  %17332 = vmatprep.subr.bf16.mxu1 %v17331_v26  ;;  %v17335_v63 = vpack.c.bf16 %v21513_v21, %v21496_v52  ;;  %v28677_v21 = vld [vmem:[#allocation20_spill] sm:$0xff]  ;;  %v28682_v26 = vld [vmem:[#allocation37_spill] sm:$0xff]  ;;  %v28694_v24 = vld [vmem:[#allocation51_spill] sm:$0xff] }
 0x19b   :  { %v21869_v5 = vsub.f32 %v21805_v8, %v3573_v37  ;;  %v27803_v12 = vand.u32 4294901760, %v21858_v11  ;;  %17214 = vmatpush3.bf16.msra.mxu0 %v17211_v4  ;;  %v17337_v46 = vpack.c.bf16 %v21524_v49, %v21516_v14  ;;  %v17339_v52 = vpack.c.bf16 %v21538_v48, %v21535_v42  ;;  %v28678_v49 = vld [vmem:[#allocation13_spill] sm:$0xff]  ;;  %v28679_v48 = vld [vmem:[#allocation35_spill] sm:$0xff] }
 0x19c   :  { %v3802_v25 = vsub.f32 %v21851_v19, %v27804_v18  ;;  %17216 = vmatprep.subr.bf16.mxu0 %v20890_v10  ;;  %17334 = vmatpush3.bf16.msra.mxu1 %v17333_v35  ;;  %v17341_v4 = vpack.c.bf16 %v21587_v33, %v21559_v39  ;;  %v28680_v39 = vld [vmem:[#allocation36_spill] sm:$0xff] }
 0x19d   :  { %v3809_v3 = vsub.f32 %v21858_v11, %v27803_v12  ;;  %17336 = vmatprep.subr.bf16.mxu1 %v17335_v63  ;;  %v28684_v63 = vld [vmem:[#allocation40_spill] sm:$0xff] }
 0x19e   :  { %v3803_v43 = vand.u32 4294901760, %v3802_v25  ;;  %15794 = vmatmul.mubr.f32.vlgmr.msra.gmra.mrb[16].mxu0 %v28677_v21 }
 0x19f   :  { %v3810_v50 = vand.u32 4294901760, %v3809_v3  ;;  %17218 = vmatpush3.bf16.msra.mxu0 %v20890_v10  ;;  %15828 = vmatprep.mubr.f32.mxu0 %v28619_v7  ;;  %v28685_v3 = vld [vmem:[#allocation41_spill] sm:$0xff] }
 0x1a0   :  { %17220 = vmatprep.subr.bf16.mxu0 %v20903_v28  ;;  %17338 = vmatpush3.bf16.msra.mxu1 %v17337_v46  ;;  %v28687_v46 = vld [vmem:[#allocation26_spill] sm:$0xff] }
 0x1a1   :  { %v21888_v32 = vpack.c.bf16 %v3810_v50, %v3803_v43  ;;  %17340 = vmatprep.subr.bf16.mxu1 %v17339_v52  ;;  %v13023_v14 = vpop.f32.mrb[16].mxu1  ;;  %v28688_v50 = vld [vmem:[#allocation44_spill] sm:$0xff]  ;;  %v28689_v52 = vld [vmem:[#allocation45_spill] sm:$0xff] }
 0x1a2   :  { %v13024_v10 = vpop.f32.mrb[17].mxu1 }
 0x1a3   :  { %17222 = vmatpush3.bf16.msra.mxu0 %v20903_v28  ;;  %v13025_v42 = vadd.f32 %v13024_v10, %v13023_v14  ;;  %v28691_v14 = vld [vmem:[#allocation48_spill] sm:$0xff] }
 0x1a4   :  { %17224 = vmatprep.subr.bf16.mxu0 %v20917_v45  ;;  %17342 = vmatpush3.bf16.msra.mxu1 %v17341_v4  ;;  %v28690_v4 = vld [vmem:[#allocation47_spill] sm:$0xff] }
 0x1a5   :  { %17344 = vmatprep.subr.bf16.mxu1 %v28678_v49  ;;  %v1018_v28 = vadd.f32 %v13025_v42, %v21711_v2  ;;  %v13026_v33 = vpop.f32.mrb[18].mxu1 }
 0x1a6   :  { %v13027_v7 = vpop.f32.mrb[19].mxu1 }
 0x1a7   :  { %17226 = vmatpush3.bf16.msra.mxu0 %v20917_v45  ;;  %3174 = vmatmul.mubr.f32.vlgmr.msra.gmra.mrb[40].mxu1 %v28382_v1  ;;  %v13028_v45 = vadd.f32 %v13027_v7, %v13026_v33  ;;  %v1130_v56 = vadd.f32 %v21807_v54, %v1018_v28 }
 0x1a8   :  { %17228 = vmatprep.subr.bf16.mxu0 %v20934_v20  ;;  %17346 = vmatpush3.bf16.msra.mxu1 %v28679_v48 }
 0x1a9   :  { %17348 = vmatprep.subr.bf16.mxu1 %v28680_v39  ;;  %3178 = vmatprep.mubr.f32.mxu1 %v28382_v1  ;;  %v1023_v40 = vadd.f32 %v13028_v45, %v21738_v23  ;;  %v28686_v23 = vld [vmem:[#allocation43_spill] sm:$0xff] }
 0x1ab   :  { %17230 = vmatpush3.bf16.msra.mxu0 %v20934_v20  ;;  %3179 = vmatmul.mubr.f32.gmra.mrb[42].mxu1 %v28382_v1  ;;  %v1140_v2 = vadd.f32 %v13066_v44, %v1023_v40  ;;  %v28683_v20 = vld [vmem:[#allocation39_spill] sm:$0xff]  ;;  %v21995_v40 = vld [vmem:[#allocation2 + $0x3a0] sm:$0xff] }
 0x1ac   :  { %17232 = vmatprep.subr.bf16.mxu0 %v28607_v22  ;;  %17350 = vmatpush3.bf16.msra.mxu1 %v28681_v57 }
 0x1ad   :  { %17352 = vmatprep.subr.bf16.mxu1 %v28682_v26  ;;  %3280 = vmatprep.mubr.f32.mxu1 %v28382_v1  ;;  %v13137_v35 = vpop.f32.mrb[8].mxu0 }
 0x1ae   :  { %v13138_v25 = vpop.f32.mrb[9].mxu0 }
 0x1af   :  { %17234 = vmatpush3.bf16.msra.mxu0 %v28607_v22  ;;  %v13139_v54 = vadd.f32 %v13138_v25, %v13137_v35 }
 0x1b0   :  { %17236 = vmatprep.subr.bf16.mxu0 %v28610_v38  ;;  %17354 = vmatpush3.bf16.msra.mxu1 %v28683_v20 }
 0x1b1   :  { %17356 = vmatprep.subr.bf16.mxu1 %v28684_v63 }
 0x1b2   :  { %v13140_v43 = vpop.f32.mrb[10].mxu0 }
 0x1b3   :  { %17238 = vmatpush3.bf16.msra.mxu0 %v28610_v38  ;;  %v13141_v22 = vpop.f32.mrb[11].mxu0  ;;  %v21928_v38 = vpack.c.bf16 %v3621_v51, %v3618_v55  ;;  %v28693_v55 = vld [vmem:[#allocation50_spill] sm:$0xff] }
 0x1b4   :  { %17240 = vmatprep.subr.bf16.mxu0 %v28611_v0  ;;  %17358 = vmatpush3.bf16.msra.mxu1 %v28685_v3  ;;  %v13142_v44 = vadd.f32 %v13141_v22, %v13140_v43  ;;  %v3582_v22 = vand.u32 4294901760, %v21995_v40 }
 0x1b5   :  { %17360 = vmatprep.subr.bf16.mxu1 %v28686_v23 }
 0x1b7   :  { %17242 = vmatpush3.bf16.msra.mxu0 %v28611_v0  ;;  %v21936_v0 = vpack.c.bf16 %v3573_v37, %v3570_v61 }
 0x1b8   :  { %17244 = vmatprep.subr.bf16.mxu0 %v28687_v46  ;;  %17362 = vmatpush3.bf16.msra.mxu1 %v28688_v50 }
 0x1b9   :  { %17364 = vmatprep.subr.bf16.mxu1 %v28689_v52 }
 0x1bb   :  { %17246 = vmatpush3.bf16.msra.mxu0 %v28687_v46 }
 0x1bc   :  { %17366 = vmatpush3.bf16.msra.mxu1 %v28690_v4  ;;  %17440 = vmatprep.subr.bf16.mxu0 %v21928_v38 }
 0x1bd   :  { %17368 = vmatprep.subr.bf16.mxu1 %v28691_v14 }
 0x1be   :  { %15829 = vmatmul.mubr.f32.vlgmr.msra.gmra.mrb[16].mxu0 %v28677_v21 }
 0x1bf   :  { %17442 = vmatpush3.bf16.msra.mxu0 %v21936_v0 }
 0x1c0   :  { %17370 = vmatpush3.bf16.msra.mxu1 %v28692_v31 }
 0x1c1   :  { %17372 = vmatprep.subr.bf16.mxu1 %v28693_v55 }
 0x1c3   :  { %v13099_v53 = vpop.f32.mrb[20].mxu1 }
 0x1c4   :  { %17374 = vmatpush3.bf16.msra.mxu1 %v28694_v24  ;;  %v13100_v8 = vpop.f32.mrb[21].mxu1 }
 0x1c5   :  { %17376 = vmatprep.subr.bf16.mxu1 %v21744_v58  ;;  %v13101_v51 = vadd.f32 %v13100_v8, %v13099_v53  ;;  %v27801_v53 = vand.u32 4294901760, %v21869_v5 }
 0x1c7   :  { %3281 = vmatmul.mubr.f32.vlgmr.msra.gmra.mrb[44].mxu1 %v28382_v1  ;;  %v1371_v61 = vadd.f32 %v13101_v51, %v1130_v56  ;;  %v13102_v37 = vpop.f32.mrb[22].mxu1  ;;  %v21988_v56 = vld [vmem:[#allocation2 + $0x398] sm:$0xff] }
 0x1c8   :  { %17378 = vmatpush3.bf16.msra.mxu1 %v21750_v41  ;;  %3285 = vmatprep.mubr.f32.mxu1 %v28382_v1  ;;  %v13103_v21 = vpop.f32.mrb[23].mxu1  ;;  %v3579_v35 = vand.u32 4294901760, %v21988_v56 }
 0x1c9   :  { %17380 = vmatprep.subr.bf16.mxu1 %v21757_v60  ;;  %v13104_v10 = vadd.f32 %v13103_v21, %v13102_v37  ;;  %v1513_v42 = vadd.f32 %v13139_v54, %v1371_v61 }
 0x1ca   :  { %v22025_v46 = vsub.f32 %v21988_v56, %v3579_v35 }
 0x1cb   :  { %3286 = vmatmul.mubr.f32.gmra.mrb[46].mxu1 %v28382_v1  ;;  %v1377_v58 = vadd.f32 %v13104_v10, %v1140_v2  ;;  %v21997_v2 = vld [vmem:[#allocation2 + $0x3a8] sm:$0xff] }
 0x1cc   :  { %17382 = vmatpush3.bf16.msra.mxu1 %v21763_v36  ;;  %3451 = vmatprep.mubr.f32.mxu1 %v28382_v1  ;;  %v27795_v10 = vand.u32 4294901760, %v22025_v46 }
 0x1cd   :  { %17384 = vmatprep.subr.bf16.mxu1 %v21769_v13  ;;  %v1520_v28 = vadd.f32 %v13142_v44, %v1377_v58  ;;  %v3697_v58 = vsub.f32 %v21869_v5, %v27801_v53 }
 0x1d0   :  { %17386 = vmatpush3.bf16.msra.mxu1 %v21775_v27  ;;  %v13213_v41 = vpop.f32.mrb[12].mxu0 }
 0x1d1   :  { %17388 = vmatprep.subr.bf16.mxu1 %v21783_v15  ;;  %v13214_v60 = vpop.f32.mrb[13].mxu0 }
 0x1d2   :  { %v13215_v33 = vadd.f32 %v13214_v60, %v13213_v41 }
 0x1d4   :  { %17390 = vmatpush3.bf16.msra.mxu1 %v21789_v17  ;;  %v13216_v7 = vpop.f32.mrb[14].mxu0 }
 0x1d5   :  { %17392 = vmatprep.subr.bf16.mxu1 %v21795_v16  ;;  %v13217_v45 = vpop.f32.mrb[15].mxu0 }
 0x1d6   :  { %v13218_v36 = vadd.f32 %v13217_v45, %v13216_v7 }
 0x1d8   :  { %17394 = vmatpush3.bf16.msra.mxu1 %v21801_v6 }
 0x1d9   :  { %17396 = vmatprep.subr.bf16.mxu1 %v21813_v30 }
 0x1dc   :  { %17398 = vmatpush3.bf16.msra.mxu1 %v21819_v9 }
 0x1dd   :  { %17400 = vmatprep.subr.bf16.mxu1 %v21825_v34  ;;  %v21977_v34 = vld [vmem:[#allocation2 + $0x410] sm:$0xff] }
 0x1e0   :  { %17402 = vmatpush3.bf16.msra.mxu1 %v21831_v59  ;;  %v21979_v59 = vld [vmem:[#allocation2 + $0x418] sm:$0xff] }
 0x1e1   :  { %17404 = vmatprep.subr.bf16.mxu1 %v21837_v47 }
 0x1e3   :  { %v13175_v13 = vpop.f32.mrb[24].mxu1 }
 0x1e4   :  { %17406 = vmatpush3.bf16.msra.mxu1 %v21843_v29  ;;  %v13176_v27 = vpop.f32.mrb[25].mxu1 }
 0x1e5   :  { %17408 = vmatprep.subr.bf16.mxu1 %v28678_v49  ;;  %v13177_v15 = vadd.f32 %v13176_v27, %v13175_v13  ;;  %v3624_v49 = vand.u32 4294901760, %v21977_v34 }
 0x1e7   :  { %3452 = vmatmul.mubr.f32.vlgmr.msra.gmra.mrb[48].mxu1 %v28382_v1  ;;  %v1625_v17 = vadd.f32 %v13177_v15, %v1513_v42  ;;  %v13178_v16 = vpop.f32.mrb[26].mxu1  ;;  %v22005_v25 = vsub.f32 %v21977_v34, %v3624_v49 }
 0x1e8   :  { %17410 = vmatpush3.bf16.msra.mxu1 %v28679_v48  ;;  %3456 = vmatprep.mubr.f32.mxu1 %v28382_v1  ;;  %v13179_v6 = vpop.f32.mrb[27].mxu1  ;;  %v3627_v48 = vand.u32 4294901760, %v21979_v59 }
 0x1e9   :  { %17412 = vmatprep.subr.bf16.mxu1 %v28680_v39  ;;  %v13180_v30 = vadd.f32 %v13179_v6, %v13178_v16  ;;  %v21974_v9 = vadd.f32 %v13215_v33, %v1625_v17  ;;  %v21986_v39 = vld [vmem:[#allocation2 + $0x390] sm:$0xff]  ;;  %v27800_v8 = vand.u32 4294901760, %v22005_v25 }
 0x1eb   :  { %3457 = vmatmul.mubr.f32.gmra.mrb[50].mxu1 %v28382_v1  ;;  %v1633_v47 = vadd.f32 %v13180_v30, %v1520_v28  ;;  %v3816_v28 = vsub.f32 %v22005_v25, %v27800_v8 }
 0x1ec   :  { %17414 = vmatpush3.bf16.msra.mxu1 %v28681_v57  ;;  %3558 = vmatprep.mubr.f32.mxu1 %v28382_v1  ;;  %v21991_v57 = vld [vmem:[#allocation2 + $0x420] sm:$0xff] }
 0x1ed   :  { %17416 = vmatprep.subr.bf16.mxu1 %v28682_v26  ;;  %v21981_v29 = vadd.f32 %v13218_v36, %v1633_v47  ;;  %v21993_v26 = vld [vmem:[#allocation2 + $0x428] sm:$0xff]  ;;  %v3630_v54 = vand.u32 4294901760, %v21991_v57  ;;  %v3711_v36 = vsub.f32 %v22025_v46, %v27795_v10  ;;  %v3817_v27 = vand.u32 4294901760, %v3816_v28  ;;  %v22097_v10 = vld [vmem:[#allocation2 + $0x438] sm:$0xff] }
 0x1ee   :  { %v3633_v43 = vand.u32 4294901760, %v21993_v26 }
 0x1ef   :  { %v22036_v61 = vsub.f32 %v21991_v57, %v3630_v54  ;;  %v3712_v47 = vand.u32 4294901760, %v3711_v36  ;;  %v22101_v36 = vld [vmem:[#allocation2 + $0x3b0] sm:$0xff]  ;;  %v28697_v57 = vand.u32 4294901760, %v21997_v2 }
 0x1f0   :  { %17418 = vmatpush3.bf16.msra.mxu1 %v28683_v20  ;;  %v3576_v20 = vand.u32 4294901760, %v21986_v39  ;;  %v22041_v37 = vsub.f32 %v21993_v26, %v3633_v43 }
 0x1f1   :  { %17420 = vmatprep.subr.bf16.mxu1 %v28684_v63  ;;  %v22010_v63 = vsub.f32 %v21979_v59, %v3627_v48  ;;  %v22244_v26 = vpack.c.bf16 %v28697_v57, %v3582_v22 }
 0x1f2   :  { %v22020_v44 = vsub.f32 %v21986_v39, %v3576_v20  ;;  %v27793_v60 = vand.u32 4294901760, %v22041_v37  ;;  %v22207_v34 = vpack.c.bf16 %v3579_v35, %v3576_v20 }
 0x1f3   :  { %v27799_v51 = vand.u32 4294901760, %v22010_v63 }
 0x1f4   :  { %17422 = vmatpush3.bf16.msra.mxu1 %v28685_v3  ;;  %v27815_v3 = vand.u32 4294901760, %v21997_v2  ;;  %v3837_v16 = vsub.f32 %v22041_v37, %v27793_v60 }
 0x1f5   :  { %17424 = vmatprep.subr.bf16.mxu1 %v28686_v23  ;;  %v27802_v23 = vand.u32 4294901760, %v21864_v62  ;;  %v3823_v41 = vsub.f32 %v22010_v63, %v27799_v51 }
 0x1f6   :  { %v22051_v21 = vsub.f32 %v21997_v2, %v27815_v3  ;;  %v3838_v28 = vand.u32 4294901760, %v3837_v16  ;;  %v22183_v3 = vld [vmem:[#allocation2 + $0x458] sm:$0xff]  ;;  %v28700_v2 = vand.u32 4294901760, %v22101_v36 }
 0x1f7   :  { %v3690_v42 = vsub.f32 %v21864_v62, %v27802_v23  ;;  %v3824_v15 = vand.u32 4294901760, %v3823_v41  ;;  %v3651_v39 = vand.u32 4294901760, %v22183_v3 }
 0x1f8   :  { %17426 = vmatpush3.bf16.msra.mxu1 %v28688_v50  ;;  %v22046_v50 = vsub.f32 %v21995_v40, %v3582_v22  ;;  %28696 = vst [vmem:[#allocation38_spill] sm:$0xff] %v22051_v21  ;;  %v27798_v7 = vand.u32 4294901760, %v22051_v21 }
 0x1f9   :  { %17428 = vmatprep.subr.bf16.mxu1 %v28689_v52  ;;  %v27797_v52 = vand.u32 4294901760, %v22020_v44  ;;  %v3691_v13 = vand.u32 4294901760, %v3690_v42  ;;  %v17475_v42 = vpack.c.bf16 %v3824_v15, %v3817_v27 }
 0x1fa   :  { %28695 = vst [vmem:[#allocation19_spill] sm:$0xff] %v22046_v50  ;;  %v27796_v33 = vand.u32 4294901760, %v22046_v50 }
 0x1fb   :  { %v3704_v45 = vsub.f32 %v22020_v44, %v27797_v52 }
 0x1fc   :  { %17430 = vmatpush3.bf16.msra.mxu1 %v28690_v4  ;;  %v27794_v4 = vand.u32 4294901760, %v22036_v61  ;;  %v3718_v6 = vsub.f32 %v22046_v50, %v27796_v33 }
 0x1fd   :  { %17432 = vmatprep.subr.bf16.mxu1 %v28691_v14  ;;  %v3698_v14 = vand.u32 4294901760, %v3697_v58  ;;  %v3705_v30 = vand.u32 4294901760, %v3704_v45  ;;  %v27810_v45 = vand.u32 4294901760, %v22097_v10 }
 0x1fe   :  { %v3830_v17 = vsub.f32 %v22036_v61, %v27794_v4  ;;  %v3719_v41 = vand.u32 4294901760, %v3718_v6  ;;  %v22095_v4 = vld [vmem:[#allocation2 + $0x430] sm:$0xff] }
 0x1ff   :  { %v27812_v52 = vand.u32 4294901760, %v22095_v4  ;;  %v22116_v16 = vsub.f32 %v22097_v10, %v27810_v45 }
 0x200   :  { %17434 = vmatpush3.bf16.msra.mxu1 %v28692_v31  ;;  %v3725_v31 = vsub.f32 %v22051_v21, %v27798_v7  ;;  %v3831_v58 = vand.u32 4294901760, %v3830_v17 }
 0x201   :  { %17436 = vmatprep.subr.bf16.mxu1 %v28693_v55  ;;  %v17473_v55 = vpack.c.bf16 %v3698_v14, %v3691_v13  ;;  %v27806_v14 = vand.u32 4294901760, %v22101_v36  ;;  %v22111_v17 = vsub.f32 %v22095_v4, %v27812_v52 }
 0x202   :  { %v3726_v60 = vand.u32 4294901760, %v3725_v31  ;;  %v17479_v6 = vpack.c.bf16 %v3838_v28, %v3831_v58  ;;  %v22139_v28 = vld [vmem:[#allocation2 + $0x3c0] sm:$0xff] }
 0x203   :  { %v13251_v33 = vpop.f32.mrb[28].mxu1 }
 0x204   :  { %17438 = vmatpush3.bf16.msra.mxu1 %v28694_v24  ;;  %v22103_v24 = vld [vmem:[#allocation2 + $0x3b8] sm:$0xff]  ;;  %v13252_v13 = vpop.f32.mrb[29].mxu1  ;;  %v17481_v31 = vpack.c.bf16 %v3726_v60, %v3719_v41  ;;  %v27808_v60 = vand.u32 4294901760, %v22111_v17  ;;  %v22141_v41 = vld [vmem:[#allocation2 + $0x3c8] sm:$0xff] }
 0x205   :  { %17472 = vmatprep.subr.bf16.mxu1 %v21888_v32  ;;  %v17477_v32 = vpack.c.bf16 %v3712_v47, %v3705_v30  ;;  %v27805_v27 = vand.u32 4294901760, %v22103_v24  ;;  %v13253_v15 = vadd.f32 %v13252_v13, %v13251_v33  ;;  %v22122_v33 = vsub.f32 %v22101_v36, %v27806_v14  ;;  %v22129_v47 = vld [vmem:[#allocation2 + $0x440] sm:$0xff] }
 0x206   :  { %v27809_v58 = vand.u32 4294901760, %v22129_v47  ;;  %v3844_v12 = vsub.f32 %v22111_v17, %v27808_v60  ;;  %v28701_v22 = vand.u32 4294901760, %v22103_v24 }
 0x207   :  { %3559 = vmatmul.mubr.f32.vlgmr.msra.gmra.mrb[52].mxu1 %v28382_v1  ;;  %v22127_v30 = vsub.f32 %v22103_v24, %v27805_v27  ;;  %v13254_v13 = vpop.f32.mrb[30].mxu1  ;;  %v22134_v7 = vadd.f32 %v13253_v15, %v21974_v9  ;;  %v27811_v8 = vand.u32 4294901760, %v22122_v33  ;;  %v3594_v9 = vand.u32 4294901760, %v22139_v28 }
 0x208   :  { %17474 = vmatpush3.bf16.msra.mxu1 %v17473_v55  ;;  %3563 = vmatprep.mubr.f32.mxu1 %v28382_v1  ;;  %v22131_v55 = vld [vmem:[#allocation2 + $0x448] sm:$0xff]  ;;  %v13255_v51 = vpop.f32.mrb[31].mxu1  ;;  %v22157_v27 = vsub.f32 %v22129_v47, %v27809_v58  ;;  %v3845_v60 = vand.u32 4294901760, %v3844_v12 }
 0x209   :  { %17476 = vmatprep.subr.bf16.mxu1 %v17475_v42  ;;  %v27807_v42 = vand.u32 4294901760, %v22116_v16  ;;  %v27813_v53 = vand.u32 4294901760, %v22127_v30  ;;  %v27814_v23 = vand.u32 4294901760, %v22131_v55  ;;  %v13256_v15 = vadd.f32 %v13255_v51, %v13254_v13 }
 0x20a   :  { %v3732_v14 = vsub.f32 %v22122_v33, %v27811_v8  ;;  %v3597_v13 = vand.u32 4294901760, %v22141_v41  ;;  %v27821_v58 = vand.u32 4294901760, %v22157_v27  ;;  %v28704_v36 = vand.u32 4294901760, %v22131_v55 }
 0x20b   :  { %3564 = vmatmul.mubr.f32.gmra.mrb[54].mxu1 %v28382_v1  ;;  %v3851_v18 = vsub.f32 %v22116_v16, %v27807_v42  ;;  %v3739_v51 = vsub.f32 %v22127_v30, %v27813_v53  ;;  %v22172_v42 = vadd.f32 %v13256_v15, %v21981_v29  ;;  %v22179_v53 = vsub.f32 %v22139_v28, %v3594_v9  ;;  %v22199_v15 = vld [vmem:[#allocation2 + $0x3d0] sm:$0xff] }
 0x20c   :  { %17478 = vmatpush3.bf16.msra.mxu1 %v17477_v32  ;;  %v22168_v32 = vsub.f32 %v22131_v55, %v27814_v23  ;;  %v3733_v45 = vand.u32 4294901760, %v3732_v14  ;;  %v22181_v23 = vld [vmem:[#allocation2 + $0x450] sm:$0xff]  ;;  %v3858_v29 = vsub.f32 %v22157_v27, %v27821_v58  ;;  %v22197_v14 = vsub.f32 %v22141_v41, %v3597_v13  ;;  %v22291_v55 = vld [vmem:[#allocation2 + $0x3e8] sm:$0xff] }
 0x20d   :  { %17480 = vmatprep.subr.bf16.mxu1 %v17479_v6  ;;  %v3852_v6 = vand.u32 4294901760, %v3851_v18  ;;  %v3740_v8 = vand.u32 4294901760, %v3739_v51  ;;  %v22189_v18 = vpack.c.bf16 %v3627_v48, %v3624_v49  ;;  %v22201_v51 = vld [vmem:[#allocation2 + $0x3d8] sm:$0xff]  ;;  %v27816_v48 = vand.u32 4294901760, %v22179_v53 }
 0x20e   :  { %v27817_v52 = vand.u32 4294901760, %v22168_v32  ;;  %v27825_v35 = vand.u32 4294901760, %v22199_v15 }
 0x20f   :  { %v17483_v12 = vpack.c.bf16 %v3852_v6, %v3845_v60  ;;  %v17485_v59 = vpack.c.bf16 %v3740_v8, %v3733_v45  ;;  %17444 = vmatprep.subr.bf16.mxu0 %v22189_v18  ;;  %v27818_v60 = vand.u32 4294901760, %v22197_v14  ;;  %v3648_v6 = vand.u32 4294901760, %v22181_v23 }
 0x210   :  { %17482 = vmatpush3.bf16.msra.mxu1 %v17481_v31  ;;  %v3865_v49 = vsub.f32 %v22168_v32, %v27817_v52  ;;  %v3859_v31 = vand.u32 4294901760, %v3858_v29  ;;  %17446 = vmatpush3.bf16.msra.mxu0 %v22207_v34  ;;  %v3746_v20 = vsub.f32 %v22179_v53, %v27816_v48  ;;  %v27823_v8 = vand.u32 4294901760, %v22201_v51  ;;  %v22238_v48 = vld [vmem:[#allocation2 + $0x460] sm:$0xff] }
 0x211   :  { %17484 = vmatprep.subr.bf16.mxu1 %v17483_v12  ;;  %v22227_v45 = vpack.c.bf16 %v3633_v43, %v3630_v54  ;;  %v3753_v12 = vsub.f32 %v22197_v14, %v27818_v60  ;;  %v22233_v29 = vsub.f32 %v22181_v23, %v3648_v6  ;;  %v28698_v43 = vand.u32 4294901760, %v22095_v4  ;;  %v22252_v23 = vld [vmem:[#allocation2 + $0x468] sm:$0xff] }
 0x212   :  { %v3866_v56 = vand.u32 4294901760, %v3865_v49  ;;  %v22236_v49 = vsub.f32 %v22183_v3, %v3651_v39  ;;  %v3747_v54 = vand.u32 4294901760, %v3746_v20  ;;  %v22272_v4 = vsub.f32 %v22201_v51, %v27823_v8 }
 0x213   :  { %17448 = vmatprep.subr.bf16.mxu0 %v22227_v45  ;;  %v3754_v3 = vand.u32 4294901760, %v3753_v12  ;;  %v28703_v20 = vand.u32 4294901760, %v22129_v47  ;;  %v22281_v12 = vld [vmem:[#allocation2 + $0x3e0] sm:$0xff]  ;;  %v3657_v47 = vand.u32 4294901760, %v22252_v23  ;;  %v22322_v58 = vpack.c.bf16 %v3651_v39, %v3648_v6  ;;  %v2661_v6 = vld [vmem:[#allocation2 + $0x3f0] sm:$0xff]  ;;  %v2662_v39 = vld [vmem:[#allocation2 + $0x3f8] sm:$0xff] }
 0x214   :  { %17486 = vmatpush3.bf16.msra.mxu1 %v17485_v59  ;;  %v17487_v52 = vpack.c.bf16 %v3866_v56, %v3859_v31  ;;  %v28699_v59 = vand.u32 4294901760, %v22097_v10  ;;  %v27820_v31 = vand.u32 4294901760, %v22233_v29  ;;  %v27819_v40 = vand.u32 4294901760, %v22236_v49  ;;  %17450 = vmatpush3.bf16.msra.mxu0 %v22244_v26 }
 0x215   :  { %v22261_v56 = vpack.c.bf16 %v28701_v22, %v28700_v2  ;;  %v22267_v10 = vsub.f32 %v22199_v15, %v27825_v35  ;;  %v22278_v24 = vpack.c.bf16 %v28704_v36, %v28703_v20  ;;  %v17489_v57 = vpack.c.bf16 %v3754_v3, %v3747_v54  ;;  %28706 = vst [vmem:[#allocation42_spill] sm:$0xff] %v22322_v58 }
 0x216   :  { %v22250_v60 = vpack.c.bf16 %v28699_v59, %v28698_v43  ;;  %17488 = vmatprep.subr.bf16.mxu1 %v17487_v52  ;;  %v3654_v52 = vand.u32 4294901760, %v22238_v48  ;;  %v3872_v43 = vsub.f32 %v22233_v29, %v27820_v31  ;;  %v3879_v59 = vsub.f32 %v22236_v49, %v27819_v40 }
 0x217   :  { %28702 = vst [vmem:[#allocation12_spill] sm:$0xff] %v22261_v56  ;;  %28705 = vst [vmem:[#allocation24_spill] sm:$0xff] %v22278_v24  ;;  %v27822_v2 = vand.u32 4294901760, %v22267_v10  ;;  %v27824_v22 = vand.u32 4294901760, %v22272_v4  ;;  %v22302_v3 = vpack.c.bf16 %v3597_v13, %v3594_v9  ;;  %v22305_v40 = vsub.f32 %v22252_v23, %v3657_v47  ;;  %v2677_v13 = vld [vmem:[#allocation2 + $0x470] sm:$0xff] }
 0x218   :  { %17452 = vmatprep.subr.bf16.mxu0 %v22250_v60  ;;  %v22296_v54 = vsub.f32 %v22238_v48, %v3654_v52  ;;  %17490 = vmatpush3.bf16.msra.mxu1 %v17489_v57  ;;  %v3873_v20 = vand.u32 4294901760, %v3872_v43  ;;  %v3880_v36 = vand.u32 4294901760, %v3879_v59  ;;  %v3606_v31 = vand.u32 4294901760, %v22281_v12  ;;  %v2678_v57 = vld [vmem:[#allocation2 + $0x478] sm:$0xff] }
 0x219   :  { %17454 = vmatpush3.bf16.msra.mxu0 %v22261_v56  ;;  %v3760_v48 = vsub.f32 %v22267_v10, %v27822_v2  ;;  %v3767_v28 = vsub.f32 %v22272_v4, %v27824_v22  ;;  %v3609_v9 = vand.u32 4294901760, %v22291_v55  ;;  %v27833_v43 = vand.u32 4294901760, %v22305_v40 }
 0x21a   :  { %v27828_v41 = vand.u32 4294901760, %v22296_v54  ;;  %v17491_v23 = vpack.c.bf16 %v3880_v36, %v3873_v20  ;;  %17456 = vmatprep.subr.bf16.mxu0 %v22278_v24  ;;  %v22320_v59 = vsub.f32 %v22281_v12, %v3606_v31  ;;  %v3660_v12 = vand.u32 4294901760, %v2677_v13 }
 0x21b   :  { %v3761_v2 = vand.u32 4294901760, %v3760_v48  ;;  %v3768_v8 = vand.u32 4294901760, %v3767_v28  ;;  %v22328_v35 = vsub.f32 %v22291_v55, %v3609_v9  ;;  %v3893_v20 = vsub.f32 %v22305_v40, %v27833_v43 }
 0x21c   :  { %v3886_v22 = vsub.f32 %v22296_v54, %v27828_v41  ;;  %17492 = vmatprep.subr.bf16.mxu1 %v17491_v23  ;;  %v27836_v36 = vand.u32 4294901760, %v22320_v59  ;;  %v3663_v24 = vand.u32 4294901760, %v2678_v57  ;;  %v28707_v55 = vand.u32 4294901760, %v22199_v15 }
 0x21d   :  { %v17493_v48 = vpack.c.bf16 %v3768_v8, %v3761_v2  ;;  %17458 = vmatpush3.bf16.msra.mxu0 %v22302_v3  ;;  %v27843_v41 = vand.u32 4294901760, %v22328_v35  ;;  %v28708_v23 = vand.u32 4294901760, %v22201_v51  ;;  %v3894_v50 = vand.u32 4294901760, %v3893_v20 }
 0x21e   :  { %v3887_v28 = vand.u32 4294901760, %v3886_v22  ;;  %v3774_v43 = vsub.f32 %v22320_v59, %v27836_v36  ;;  %17460 = vmatprep.subr.bf16.mxu0 %v22322_v58  ;;  %v22346_v56 = vsub.f32 %v2677_v13, %v3660_v12  ;;  %v22348_v8 = vsub.f32 %v2678_v57, %v3663_v24 }
 0x21f   :  { %v22340_v21 = vpack.c.bf16 %v28708_v23, %v28707_v55  ;;  %17494 = vmatpush3.bf16.msra.mxu1 %v17493_v48  ;;  %v3781_v15 = vsub.f32 %v22328_v35, %v27843_v41  ;;  %v3612_v2 = vand.u32 4294901760, %v2661_v6  ;;  %v3615_v51 = vand.u32 4294901760, %v2662_v39 }
 0x220   :  { %v22353_v22 = vpack.c.bf16 %v3657_v47, %v3654_v52  ;;  %v17495_v20 = vpack.c.bf16 %v3894_v50, %v3887_v28  ;;  %v3775_v55 = vand.u32 4294901760, %v3774_v43  ;;  %v27840_v23 = vand.u32 4294901760, %v22346_v56 }
 0x221   :  { %v27839_v36 = vand.u32 4294901760, %v22348_v8  ;;  %v3782_v58 = vand.u32 4294901760, %v3781_v15  ;;  %17462 = vmatpush3.bf16.msra.mxu0 %v22340_v21  ;;  %v22358_v13 = vsub.f32 %v2661_v6, %v3612_v2  ;;  %v22360_v57 = vsub.f32 %v2662_v39, %v3615_v51 }
 0x222   :  { %17496 = vmatprep.subr.bf16.mxu1 %v17495_v20  ;;  %v3900_v48 = vsub.f32 %v22346_v56, %v27840_v23  ;;  %17464 = vmatprep.subr.bf16.mxu0 %v22353_v22  ;;  %v22371_v6 = vpack.c.bf16 %v3609_v9, %v3606_v31  ;;  %v22382_v31 = vpack.c.bf16 %v3615_v51, %v3612_v2  ;;  %v28714_v2 = vld [vmem:[#allocation24_spill] sm:$0xff] }
 0x223   :  { %v3907_v50 = vsub.f32 %v22348_v8, %v27839_v36  ;;  %v17497_v52 = vpack.c.bf16 %v3782_v58, %v3775_v55  ;;  %v27842_v47 = vand.u32 4294901760, %v22358_v13  ;;  %v27841_v43 = vand.u32 4294901760, %v22360_v57 }
 0x224   :  { %v3901_v39 = vand.u32 4294901760, %v3900_v48  ;;  %v22380_v55 = vpack.c.bf16 %v3663_v24, %v3660_v12  ;;  %v17503_v48 = vpack.c.bf16 %v21858_v11, %v21851_v19  ;;  %v17515_v24 = vpack.c.bf16 %v22116_v16, %v22111_v17 }
 0x225   :  { %v3908_v28 = vand.u32 4294901760, %v3907_v50  ;;  %17498 = vmatpush3.bf16.msra.mxu1 %v17497_v52  ;;  %v3788_v15 = vsub.f32 %v22358_v13, %v27842_v47  ;;  %v3795_v20 = vsub.f32 %v22360_v57, %v27841_v43  ;;  %17466 = vmatpush3.bf16.msra.mxu0 %v22371_v6  ;;  %v17517_v12 = vpack.c.bf16 %v22127_v30, %v22122_v33  ;;  %v5181_v52 = vld [vmem:[#allocation2 + $0x5b8] sm:$0xff] }
 0x226   :  { %17468 = vmatprep.subr.bf16.mxu0 %v22380_v55 }
 0x227   :  { %v17499_v58 = vpack.c.bf16 %v3908_v28, %v3901_v39  ;;  %v3789_v36 = vand.u32 4294901760, %v3788_v15  ;;  %v3796_v23 = vand.u32 4294901760, %v3795_v20 }
 0x229   :  { %17500 = vmatprep.subr.bf16.mxu1 %v17499_v58  ;;  %v17501_v9 = vpack.c.bf16 %v3796_v23, %v3789_v36  ;;  %17470 = vmatpush3.bf16.msra.mxu0 %v22382_v31  ;;  %v17507_v23 = vpack.c.bf16 %v22010_v63, %v22005_v25  ;;  %v17509_v36 = vpack.c.bf16 %v22025_v46, %v22020_v44 }
 0x22a   :  { %17504 = vmatprep.subr.bf16.mxu0 %v17503_v48 }
 0x22b   :  { %17502 = vmatpush3.bf16.msra.mxu1 %v17501_v9 }
 0x22c   :  { %17536 = vmatprep.subr.bf16.mxu1 %v21928_v38 }
 0x291   :  { %v15830_v15 = vpop.f32.mrb[16].mxu0 }
 0x292   :  { %v19551_v20 = vadd.f32 %v15830_v15, %v22172_v42  ;;  %v2592_v58 = vpop.f32.mrb[17].mxu0  ;;  %v5180_v15 = vld [vmem:[#allocation2 + $0x5b0] sm:$0xff] }
 0x293   :  { %v19552_v9 = vadd.f32 %v2592_v58, %v22134_v7 }
 0x294   :  { %19621 = vtanh.f32 %v19551_v20 }
 0x295   :  { %19623 = vtanh.f32 %v19552_v9 }
 0x29e   :  { %v22411_v48 = vpop.eup %19621 }
 0x29f   :  { %v22413_v43 = vpop.eup %19623  ;;  %v2607_v47 = vrot.slane %v22411_v48, 7 }
 0x2a0   :  { %v2606_v41 = vrot.slane %v22413_v43, 7 }
 0x2a2   :  { %v2611_v39 = vsel %vm52_vm2, 0.0, %v2606_v41  ;;  %v2608_v28 = vsel %vm52_vm2, %v2606_v41, %v2607_v47 }
 0x2a3   :  { %v2612_v42 = vsel %vm69_vm3, %v2611_v39, 0.0  ;;  %v2613_v7 = vsel %vm70_vm4, %v2608_v28, 0.0 }
 0x2a4   :  { %v22423_v20 = vand.u32 4294901760, %v2612_v42  ;;  %v22425_v58 = vand.u32 4294901760, %v2613_v7 }
 0x2a6   :  { %3911 = vmatprep.mubr.f32.mxu1 %v22423_v20  ;;  %v3666_v9 = vsub.f32 %v2612_v42, %v22423_v20  ;;  %v22430_v50 = vsub.f32 %v2613_v7, %v22425_v58  ;;  %v17505_v7 = vpack.c.bf16 %v21869_v5, %v21864_v62 }
 0x2a7   :  { %3912 = vmatmul.mubr.f32.vlgmr.msra.gmra.mrb[56].mxu1 %v28382_v1 }
 0x2a8   :  { %17538 = vmatpush3.bf16.msra.mxu1 %v21936_v0  ;;  %3917 = vmatprep.mubr.f32.mxu1 %v22425_v58  ;;  %v3667_v41 = vand.u32 4294901760, %v3666_v9  ;;  %v3677_v47 = vand.u32 4294901760, %v22430_v50 }
 0x2a9   :  { %17540 = vmatprep.subr.bf16.mxu1 %v22189_v18 }
 0x2aa   :  { %v3668_v39 = vsub.f32 %v3666_v9, %v3667_v41  ;;  %v3678_v28 = vsub.f32 %v22430_v50, %v3677_v47 }
 0x2ab   :  { %3918 = vmatmul.mubr.f32.gmra.mrb[58].mxu1 %v28382_v1 }
 0x2ac   :  { %17542 = vmatpush3.bf16.msra.mxu1 %v22207_v34  ;;  %4165 = vmatprep.mubr.f32.mxu1 %v3667_v41  ;;  %v3669_v42 = vand.u32 4294901760, %v3668_v39  ;;  %v3679_v51 = vand.u32 4294901760, %v3678_v28  ;;  %v17511_v41 = vpack.c.bf16 %v22041_v37, %v22036_v61  ;;  %v28711_v39 = vld [vmem:[#allocation12_spill] sm:$0xff]  ;;  %v28713_v28 = vld [vmem:[#allocation38_spill] sm:$0xff] }
 0x2ad   :  { %17544 = vmatprep.subr.bf16.mxu1 %v22227_v45 }
 0x2ae   :  { %3670 = vmatprep.mubr.f32.mxu0 %v3669_v42  ;;  %v28712_v42 = vld [vmem:[#allocation19_spill] sm:$0xff] }
 0x2af   :  { %3671 = vmatmul.mubr.f32.vlgmr.msra.gmra.mrb[18].mxu0 %v28382_v1 }
 0x2b0   :  { %17506 = vmatpush3.bf16.msra.mxu0 %v17505_v7  ;;  %17546 = vmatpush3.bf16.msra.mxu1 %v22244_v26  ;;  %v17513_v7 = vpack.c.bf16 %v28713_v28, %v28712_v42 }
 0x2b1   :  { %3680 = vmatprep.mubr.f32.mxu0 %v3679_v51  ;;  %17508 = vmatprep.subr.bf16.mxu0 %v17507_v23  ;;  %v28715_v51 = vld [vmem:[#allocation42_spill] sm:$0xff]  ;;  %v28717_v23 = vpack.c.bf16 %v22197_v14, %v22179_v53 }
 0x2b2   :  { %17548 = vmatprep.subr.bf16.mxu1 %v22250_v60 }
 0x2b3   :  { %3681 = vmatmul.mubr.f32.gmra.mrb[20].mxu0 %v28382_v1 }
 0x2b4   :  { %17510 = vmatpush3.bf16.msra.mxu0 %v17509_v36  ;;  %17550 = vmatpush3.bf16.msra.mxu1 %v28711_v39  ;;  %v28716_v36 = vpack.c.bf16 %v22168_v32, %v22157_v27 }
 0x2b5   :  { %4053 = vmatprep.mubr.f32.mxu0 %v3666_v9  ;;  %17512 = vmatprep.subr.bf16.mxu0 %v17511_v41  ;;  %v28720_v9 = vpack.c.bf16 %v22305_v40, %v22296_v54  ;;  %v28721_v41 = vpack.c.bf16 %v22328_v35, %v22320_v59 }
 0x2b6   :  { %17552 = vmatprep.subr.bf16.mxu1 %v28714_v2 }
 0x2b8   :  { %17514 = vmatpush3.bf16.msra.mxu0 %v17513_v7  ;;  %17554 = vmatpush3.bf16.msra.mxu1 %v22302_v3  ;;  %v28722_v7 = vpack.c.bf16 %v22348_v8, %v22346_v56 }
 0x2b9   :  { %17516 = vmatprep.subr.bf16.mxu0 %v17515_v24  ;;  %17556 = vmatprep.subr.bf16.mxu1 %v28715_v51  ;;  %v28718_v24 = vpack.c.bf16 %v22236_v49, %v22233_v29 }
 0x2bc   :  { %17518 = vmatpush3.bf16.msra.mxu0 %v17517_v12  ;;  %17558 = vmatpush3.bf16.msra.mxu1 %v22340_v21  ;;  %v28719_v12 = vpack.c.bf16 %v22272_v4, %v22267_v10 }
 0x2bd   :  { %17520 = vmatprep.subr.bf16.mxu0 %v28716_v36  ;;  %17560 = vmatprep.subr.bf16.mxu1 %v22353_v22  ;;  %v28723_v36 = vand.u32 4294901760, %v21851_v19  ;;  %v28728_v19 = vand.u32 4294901760, %v22005_v25  ;;  %v28732_v25 = vand.u32 4294901760, %v22036_v61  ;;  %v28736_v61 = vand.u32 4294901760, %v22111_v17 }
 0x2be   :  { %v28742_v17 = vand.u32 4294901760, %v22179_v53  ;;  %v28748_v53 = vand.u32 4294901760, %v22296_v54  ;;  %v28753_v54 = vand.u32 4294901760, %v22348_v8 }
 0x2c0   :  { %17522 = vmatpush3.bf16.msra.mxu0 %v28717_v23  ;;  %17562 = vmatpush3.bf16.msra.mxu1 %v22371_v6  ;;  %v28724_v23 = vand.u32 4294901760, %v21858_v11  ;;  %v28729_v11 = vand.u32 4294901760, %v22010_v63  ;;  %v28733_v63 = vand.u32 4294901760, %v22041_v37  ;;  %v28737_v37 = vand.u32 4294901760, %v22116_v16 }
 0x2c1   :  { %17524 = vmatprep.subr.bf16.mxu0 %v28718_v24  ;;  %17564 = vmatprep.subr.bf16.mxu1 %v22380_v55  ;;  %v28743_v16 = vand.u32 4294901760, %v22197_v14 }
 0x2c2   :  { %v17567_v24 = vpack.c.bf16 %v28724_v23, %v28723_v36  ;;  %v22583_v36 = vld [vmem:[#allocation2 + $0x490] sm:$0xff]  ;;  %v22585_v23 = vld [vmem:[#allocation2 + $0x498] sm:$0xff] }
 0x2c4   :  { %17526 = vmatpush3.bf16.msra.mxu0 %v28719_v12  ;;  %17566 = vmatpush3.bf16.msra.mxu1 %v22382_v31 }
 0x2c5   :  { %17528 = vmatprep.subr.bf16.mxu0 %v28720_v9  ;;  %17600 = vmatprep.subr.bf16.mxu1 %v21928_v38  ;;  %v28725_v38 = vpack.c.bf16 %v22360_v57, %v22358_v13 }
 0x2c7   :  { %4166 = vmatmul.mubr.f32.vlgmr.msra.gmra.mrb[60].mxu1 %v28382_v1 }
 0x2c8   :  { %17530 = vmatpush3.bf16.msra.mxu0 %v28721_v41  ;;  %4173 = vmatprep.mubr.f32.mxu1 %v3677_v47  ;;  %v28727_v47 = vand.u32 4294901760, %v21869_v5  ;;  %v28731_v5 = vand.u32 4294901760, %v22025_v46  ;;  %v28735_v46 = vand.u32 4294901760, %v28713_v28 }
 0x2c9   :  { %17602 = vmatpush3.bf16.msra.mxu1 %v21936_v0  ;;  %17532 = vmatprep.subr.bf16.mxu0 %v28722_v7  ;;  %v28726_v0 = vand.u32 4294901760, %v21864_v62  ;;  %v28730_v62 = vand.u32 4294901760, %v22020_v44  ;;  %v28734_v44 = vand.u32 4294901760, %v28712_v42  ;;  %v28740_v42 = vand.u32 4294901760, %v22157_v27 }
 0x2ca   :  { %17604 = vmatprep.subr.bf16.mxu1 %v22189_v18  ;;  %v17571_v18 = vpack.c.bf16 %v28729_v11, %v28728_v19  ;;  %v28746_v27 = vand.u32 4294901760, %v22267_v10  ;;  %v28750_v10 = vand.u32 4294901760, %v22320_v59  ;;  %v28755_v59 = vand.u32 4294901760, %v22360_v57  ;;  %v13397_v57 = vpop.f32.mrb[32].mxu1  ;;  %v12797_v11 = vld [vmem:[#allocation5 + $0x1] ss:$0 sm:$0xff] }
 0x2cb   :  { %4174 = vmatmul.mubr.f32.gmra.mrb[62].mxu1 %v28382_v1  ;;  %v17569_v12 = vpack.c.bf16 %v28727_v47, %v28726_v0  ;;  %v17573_v9 = vpack.c.bf16 %v28731_v5, %v28730_v62  ;;  %v22606_v0 = vld [vmem:[#allocation2 + $0x4a0] sm:$0xff]  ;;  %v22624_v5 = vld [vmem:[#allocation2 + $0x4b0] sm:$0xff] }
 0x2cc   :  { %17534 = vmatpush3.bf16.msra.mxu0 %v28725_v38  ;;  %4449 = vmatprep.mubr.f32.mxu1 %v22423_v20 }
 0x2cd   :  { %17606 = vmatpush3.bf16.msra.mxu1 %v22207_v34  ;;  %17568 = vmatprep.subr.bf16.mxu0 %v17567_v24  ;;  %v17575_v34 = vpack.c.bf16 %v28733_v63, %v28732_v25  ;;  %v4471_v24 = vand.u32 4294901760, %v22585_v23 }
 0x2ce   :  { %17608 = vmatprep.subr.bf16.mxu1 %v22227_v45  ;;  %v17577_v45 = vpack.c.bf16 %v28735_v46, %v28734_v44 }
 0x2cf   :  { %4054 = vmatmul.mubr.f32.vlgmr.msra.gmra.mrb[22].mxu0 %v28382_v1 }
 0x2d0   :  { %4060 = vmatprep.mubr.f32.mxu0 %v22430_v50  ;;  %17570 = vmatpush3.bf16.msra.mxu0 %v17569_v12  ;;  %v28739_v50 = vand.u32 4294901760, %v22127_v30  ;;  %v28745_v30 = vand.u32 4294901760, %v22236_v49  ;;  %v22567_v49 = vld [vmem:[#allocation2 + $0x488] sm:$0xff]  ;;  %v4474_v12 = vand.u32 4294901760, %v22606_v0 }
 0x2d1   :  { %17610 = vmatpush3.bf16.msra.mxu1 %v22244_v26  ;;  %17572 = vmatprep.subr.bf16.mxu0 %v17571_v18  ;;  %v17579_v26 = vpack.c.bf16 %v28737_v37, %v28736_v61  ;;  %v4465_v7 = vand.u32 4294901760, %v22567_v49  ;;  %v13398_v18 = vpop.f32.mrb[33].mxu1  ;;  %v4480_v37 = vand.u32 4294901760, %v22624_v5 }
 0x2d2   :  { %17612 = vmatprep.subr.bf16.mxu1 %v22250_v60  ;;  %v28738_v60 = vand.u32 4294901760, %v22122_v33  ;;  %v28744_v33 = vand.u32 4294901760, %v22233_v29  ;;  %v22565_v29 = vld [vmem:[#allocation2 + $0x480] sm:$0xff]  ;;  %v13399_v25 = vadd.f32 %v13398_v18, %v13397_v57  ;;  %v13400_v63 = vpop.f32.mrb[34].mxu1 }
 0x2d3   :  { %4061 = vmatmul.mubr.f32.gmra.mrb[24].mxu0 %v28382_v1  ;;  %v4462_v41 = vand.u32 4294901760, %v22565_v29 }
 0x2d4   :  { %17574 = vmatpush3.bf16.msra.mxu0 %v17573_v9  ;;  %4340 = vmatprep.mubr.f32.mxu0 %v22423_v20  ;;  %v17581_v20 = vpack.c.bf16 %v28739_v50, %v28738_v60  ;;  %v22626_v9 = vld [vmem:[#allocation2 + $0x4b8] sm:$0xff]  ;;  %v2802_v44 = vadd.f32 %v13399_v25, %v12797_v11 }
 0x2d5   :  { %17614 = vmatpush3.bf16.msra.mxu1 %v28711_v39  ;;  %17576 = vmatprep.subr.bf16.mxu0 %v17575_v34  ;;  %v28741_v39 = vand.u32 4294901760, %v22168_v32  ;;  %v28747_v32 = vand.u32 4294901760, %v22272_v4  ;;  %v28751_v4 = vand.u32 4294901760, %v22328_v35  ;;  %v13401_v34 = vpop.f32.mrb[35].mxu1 }
 0x2d6   :  { %17616 = vmatprep.subr.bf16.mxu1 %v28714_v2  ;;  %v17585_v2 = vpack.c.bf16 %v28743_v16, %v28742_v17  ;;  %v13402_v46 = vadd.f32 %v13401_v34, %v13400_v63 }
 0x2d7   :  { %v17583_v28 = vpack.c.bf16 %v28741_v39, %v28740_v42 }
 0x2d8   :  { %17578 = vmatpush3.bf16.msra.mxu0 %v17577_v45  ;;  %v13435_v45 = vpop.f32.mrb[36].mxu1  ;;  %v2807_v42 = vadd.f32 %v13402_v46, %v12797_v11  ;;  %v22689_v46 = vld [vmem:[#allocation2 + $0x4f8] sm:$0xff] }
 0x2d9   :  { %17618 = vmatpush3.bf16.msra.mxu1 %v22302_v3  ;;  %17580 = vmatprep.subr.bf16.mxu0 %v17579_v26  ;;  %v17587_v3 = vpack.c.bf16 %v28745_v30, %v28744_v33  ;;  %v4483_v26 = vand.u32 4294901760, %v22626_v9  ;;  %v13436_v60 = vpop.f32.mrb[37].mxu1 }
 0x2da   :  { %17620 = vmatprep.subr.bf16.mxu1 %v28715_v51  ;;  %v17589_v51 = vpack.c.bf16 %v28747_v32, %v28746_v27  ;;  %v13437_v39 = vadd.f32 %v13436_v60, %v13435_v45 }
 0x2db   :  { %v22651_v30 = vpack.c.bf16 %v4483_v26, %v4480_v37 }
 0x2dc   :  { %17582 = vmatpush3.bf16.msra.mxu0 %v17581_v20  ;;  %v22642_v20 = vld [vmem:[#allocation2 + $0x4c8] sm:$0xff]  ;;  %v3037_v16 = vadd.f32 %v13437_v39, %v2802_v44  ;;  %v22687_v44 = vld [vmem:[#allocation2 + $0x4f0] sm:$0xff] }
 0x2dd   :  { %17622 = vmatpush3.bf16.msra.mxu1 %v22340_v21  ;;  %17584 = vmatprep.subr.bf16.mxu0 %v17583_v28  ;;  %v28749_v21 = vand.u32 4294901760, %v22305_v40  ;;  %v28752_v40 = vand.u32 4294901760, %v22346_v56  ;;  %v28754_v56 = vand.u32 4294901760, %v22358_v13  ;;  %v22608_v13 = vld [vmem:[#allocation2 + $0x4a8] sm:$0xff]  ;;  %v13438_v28 = vpop.f32.mrb[38].mxu1  ;;  %28758 = vst [vmem:[#allocation18_spill] sm:$0xff] %v22651_v30 }
 0x2de   :  { %17624 = vmatprep.subr.bf16.mxu1 %v22353_v22  ;;  %v22570_v22 = vand.u32 4294901760, %v22413_v43  ;;  %v4477_v19 = vand.u32 4294901760, %v22608_v13  ;;  %v13439_v17 = vpop.f32.mrb[39].mxu1  ;;  %v4489_v27 = vand.u32 4294901760, %v22642_v20 }
 0x2df   :  { %v17591_v14 = vpack.c.bf16 %v28749_v21, %v28748_v53  ;;  %v17597_v8 = vpack.c.bf16 %v28755_v59, %v28754_v56  ;;  %v13473_v33 = vpop.f32.mrb[40].mxu1  ;;  %v22657_v53 = vld [vmem:[#allocation2 + $0x4d8] sm:$0xff] }
 0x2e0   :  { %17586 = vmatpush3.bf16.msra.mxu0 %v17585_v2  ;;  %v22589_v35 = vsub.f32 %v22413_v43, %v22570_v22  ;;  %v4468_v43 = vand.u32 4294901760, %v22583_v36  ;;  %v22636_v61 = vpack.c.bf16 %v4477_v19, %v4474_v12  ;;  %v13440_v2 = vadd.f32 %v13439_v17, %v13438_v28  ;;  %v13474_v32 = vpop.f32.mrb[41].mxu1 }
 0x2e1   :  { %17626 = vmatpush3.bf16.msra.mxu1 %v22371_v6  ;;  %17588 = vmatprep.subr.bf16.mxu0 %v17587_v3  ;;  %v17593_v6 = vpack.c.bf16 %v28751_v4, %v28750_v10  ;;  %v13476_v10 = vpop.f32.mrb[42].mxu1  ;;  %v22662_v4 = vsub.f32 %v22565_v29, %v4462_v41  ;;  %v4495_v57 = vand.u32 4294901760, %v22657_v53  ;;  %v22705_v17 = vand.u32 4294901760, %v22411_v48 }
 0x2e2   :  { %17628 = vmatprep.subr.bf16.mxu1 %v22380_v55  ;;  %v17595_v55 = vpack.c.bf16 %v28753_v54, %v28752_v40  ;;  %v27859_v38 = vand.u32 4294901760, %v22589_v35  ;;  %v22616_v47 = vpack.c.bf16 %v4471_v24, %v4468_v43  ;;  %v3042_v21 = vadd.f32 %v13440_v2, %v2807_v42  ;;  %v22665_v40 = vld [vmem:[#allocation2 + $0x4e0] sm:$0xff]  ;;  %v22667_v54 = vld [vmem:[#allocation2 + $0x4e8] sm:$0xff] }
 0x2e3   :  { %v4501_v25 = vand.u32 4294901760, %v22667_v54  ;;  %v27864_v63 = vand.u32 4294901760, %v22662_v4  ;;  %v22695_v60 = vsub.f32 %v22583_v36, %v4468_v43  ;;  %28761 = vst [vmem:[#allocation25_spill] sm:$0xff] %v22705_v17 }
 0x2e4   :  { %17590 = vmatpush3.bf16.msra.mxu0 %v17589_v51  ;;  %28757 = vst [vmem:[#allocation22_spill] sm:$0xff] %v22616_v47  ;;  %v4545_v62 = vsub.f32 %v22589_v35, %v27859_v38  ;;  %v22655_v51 = vld [vmem:[#allocation2 + $0x4d0] sm:$0xff] }
 0x2e5   :  { %17630 = vmatpush3.bf16.msra.mxu1 %v22382_v31  ;;  %17592 = vmatprep.subr.bf16.mxu0 %v17591_v14  ;;  %v22601_v31 = vpack.c.bf16 %v4465_v7, %v4462_v41  ;;  %v13475_v14 = vadd.f32 %v13474_v32, %v13473_v33  ;;  %v4492_v41 = vand.u32 4294901760, %v22655_v51 }
 0x2e6   :  { %v4546_v50 = vand.u32 4294901760, %v4545_v62 }
 0x2e7   :  { %28756 = vst [vmem:[#allocation21_spill] sm:$0xff] %v22601_v31  ;;  %v3176_v56 = vadd.f32 %v13475_v14, %v3037_v16  ;;  %v22702_v28 = vpack.c.bf16 %v4495_v57, %v4492_v41  ;;  %v22710_v16 = vsub.f32 %v22585_v23, %v4471_v24  ;;  %v4507_v14 = vand.u32 4294901760, %v22689_v46 }
 0x2e8   :  { %4450 = vmatmul.mubr.f32.vlgmr.msra.gmra.mrb[64].mxu1 %v28382_v1  ;;  %17594 = vmatpush3.bf16.msra.mxu0 %v17593_v6  ;;  %v13477_v6 = vpop.f32.mrb[43].mxu1 }
 0x2e9   :  { %4455 = vmatprep.mubr.f32.mxu1 %v22425_v58  ;;  %17596 = vmatprep.subr.bf16.mxu0 %v17595_v55  ;;  %v22672_v55 = vsub.f32 %v22567_v49, %v4465_v7  ;;  %v13478_v59 = vadd.f32 %v13477_v6, %v13476_v10  ;;  %v4498_v7 = vand.u32 4294901760, %v22665_v40  ;;  %28760 = vst [vmem:[#allocation23_spill] sm:$0xff] %v22702_v28  ;;  %v27858_v6 = vand.u32 4294901760, %v22695_v60 }
 0x2ea   :  { %v4566_v10 = vsub.f32 %v22662_v4, %v27864_v63 }
 0x2eb   :  { %v3181_v18 = vadd.f32 %v13478_v59, %v3042_v21  ;;  %v27863_v45 = vand.u32 4294901760, %v22672_v55  ;;  %v22716_v32 = vpack.c.bf16 %v4501_v25, %v4498_v7  ;;  %v4504_v21 = vand.u32 4294901760, %v22687_v44 }
 0x2ec   :  { %17598 = vmatpush3.bf16.msra.mxu0 %v17597_v8  ;;  %4456 = vmatmul.mubr.f32.gmra.mrb[66].mxu1 %v28382_v1  ;;  %v13511_v8 = vpop.f32.mrb[44].mxu1 }
 0x2ed   :  { %17632 = vmatprep.subr.bf16.mxu0 %v22601_v31  ;;  %5342 = vmatprep.mubr.f32.mxu1 %v28382_v1  ;;  %v13512_v11 = vpop.f32.mrb[45].mxu1  ;;  %28762 = vst [vmem:[#allocation16_spill] sm:$0xff] %v22716_v32  ;;  %v4573_v24 = vsub.f32 %v22672_v55, %v27863_v45 }
 0x2ee   :  { %v13513_v62 = vadd.f32 %v13512_v11, %v13511_v8  ;;  %v13514_v49 = vpop.f32.mrb[46].mxu1  ;;  %v22731_v11 = vsub.f32 %v22411_v48, %v22705_v17  ;;  %v22748_v48 = vpack.c.bf16 %v4507_v14, %v4504_v21 }
 0x2ef   :  { %4341 = vmatmul.mubr.f32.vlgmr.msra.gmra.mrb[26].mxu0 %v28382_v1  ;;  %v13515_v34 = vpop.f32.mrb[47].mxu1 }
 0x2f0   :  { %4346 = vmatprep.mubr.f32.mxu0 %v22425_v58  ;;  %17634 = vmatpush3.bf16.msra.mxu0 %v22601_v31  ;;  %v22640_v58 = vld [vmem:[#allocation2 + $0x4c0] sm:$0xff]  ;;  %v13516_v42 = vadd.f32 %v13515_v34, %v13514_v49  ;;  %v13549_v39 = vpop.f32.mrb[48].mxu1  ;;  %v22742_v49 = vsub.f32 %v22608_v13, %v4477_v19  ;;  %v22758_v13 = vsub.f32 %v22626_v9, %v4483_v26  ;;  %v4574_v19 = vand.u32 4294901760, %v4573_v24 }
 0x2f1   :  { %17636 = vmatprep.subr.bf16.mxu0 %v22616_v47  ;;  %v4486_v3 = vand.u32 4294901760, %v22640_v58  ;;  %v13550_v36 = vpop.f32.mrb[49].mxu1 }
 0x2f2   :  { %v3288_v43 = vadd.f32 %v13516_v42, %v3181_v18  ;;  %v13551_v2 = vadd.f32 %v13550_v36, %v13549_v39  ;;  %v13552_v33 = vpop.f32.mrb[50].mxu1  ;;  %v27857_v18 = vand.u32 4294901760, %v22710_v16  ;;  %28763 = vst [vmem:[#allocation27_spill] sm:$0xff] %v22742_v49  ;;  %v4567_v36 = vand.u32 4294901760, %v4566_v10  ;;  %28765 = vst [vmem:[#allocation29_spill] sm:$0xff] %v22758_v13 }
 0x2f3   :  { %4347 = vmatmul.mubr.f32.gmra.mrb[28].mxu0 %v28382_v1  ;;  %v22679_v29 = vpack.c.bf16 %v4489_v27, %v4486_v3  ;;  %v13553_v23 = vpop.f32.mrb[51].mxu1  ;;  %v27846_v26 = vand.u32 4294901760, %v22742_v49  ;;  %v27844_v24 = vand.u32 4294901760, %v22758_v13 }
 0x2f4   :  { %17638 = vmatpush3.bf16.msra.mxu0 %v22616_v47  ;;  %15863 = vmatprep.mubr.f32.mxu0 %v4546_v50  ;;  %v3283_v50 = vadd.f32 %v13513_v62, %v3176_v56  ;;  %v13554_v59 = vadd.f32 %v13553_v23, %v13552_v33  ;;  %v13587_v8 = vpop.f32.mrb[52].mxu1  ;;  %v22737_v62 = vsub.f32 %v22606_v0, %v4474_v12 }
 0x2f5   :  { %17640 = vmatprep.subr.bf16.mxu0 %v22636_v61  ;;  %28759 = vst [vmem:[#allocation17_spill] sm:$0xff] %v22679_v29  ;;  %v13588_v34 = vpop.f32.mrb[53].mxu1  ;;  %v22753_v0 = vsub.f32 %v22624_v5, %v4480_v37  ;;  %v27856_v5 = vand.u32 4294901760, %v22731_v11  ;;  %v4587_v9 = vsub.f32 %v22710_v16, %v27857_v18 }
 0x2f6   :  { %v3454_v56 = vadd.f32 %v13551_v2, %v3283_v50  ;;  %v3459_v50 = vadd.f32 %v13554_v59, %v3288_v43  ;;  %v13589_v42 = vadd.f32 %v13588_v34, %v13587_v8  ;;  %v13590_v39 = vpop.f32.mrb[54].mxu1  ;;  %v4580_v43 = vsub.f32 %v22695_v60, %v27858_v6 }
 0x2f7   :  { %28764 = vst [vmem:[#allocation28_spill] sm:$0xff] %v22753_v0  ;;  %v13591_v12 = vpop.f32.mrb[55].mxu1  ;;  %v27855_v37 = vand.u32 4294901760, %v22737_v62  ;;  %v27845_v23 = vand.u32 4294901760, %v22753_v0  ;;  %v22781_v8 = vsub.f32 %v22640_v58, %v4486_v3  ;;  %v22786_v34 = vsub.f32 %v22642_v20, %v4489_v27 }
 0x2f8   :  { %17642 = vmatpush3.bf16.msra.mxu0 %v22636_v61  ;;  %v22764_v2 = vadd.f32 %v13589_v42, %v3454_v56  ;;  %v13592_v33 = vadd.f32 %v13591_v12, %v13590_v39  ;;  %v17663_v56 = vpack.c.bf16 %v4574_v19, %v4567_v36  ;;  %v4581_v59 = vand.u32 4294901760, %v4580_v43 }
 0x2f9   :  { %17644 = vmatprep.subr.bf16.mxu0 %v22651_v30  ;;  %28768 = vst [vmem:[#allocation31_spill] sm:$0xff] %v22781_v8  ;;  %28769 = vst [vmem:[#allocation32_spill] sm:$0xff] %v22786_v34  ;;  %v4588_v42 = vand.u32 4294901760, %v4587_v9  ;;  %v4594_v39 = vsub.f32 %v22737_v62, %v27855_v37  ;;  %v4601_v58 = vsub.f32 %v22742_v49, %v27846_v26  ;;  %v27854_v27 = vand.u32 4294901760, %v22781_v8 }
 0x2fa   :  { %28766 = vst [vmem:[#allocation30_spill] sm:$0xff] %v22764_v2  ;;  %v22773_v10 = vadd.f32 %v13592_v33, %v3459_v50  ;;  %v4555_v50 = vsub.f32 %v22731_v11, %v27856_v5  ;;  %v4608_v20 = vsub.f32 %v22753_v0, %v27845_v23  ;;  %v4615_v3 = vsub.f32 %v22758_v13, %v27844_v24 }
 0x2fb   :  { %v27853_v36 = vand.u32 4294901760, %v22786_v34  ;;  %v22810_v12 = vsub.f32 %v22655_v51, %v4492_v41  ;;  %v22815_v19 = vsub.f32 %v22657_v53, %v4495_v57  ;;  %v17667_v33 = vpack.c.bf16 %v4588_v42, %v4581_v59 }
 0x2fc   :  { %17646 = vmatpush3.bf16.msra.mxu0 %v22651_v30  ;;  %28767 = vst [vmem:[#allocation46_spill] sm:$0xff] %v22773_v10  ;;  %v4556_v43 = vand.u32 4294901760, %v4555_v50  ;;  %v4595_v9 = vand.u32 4294901760, %v4594_v39  ;;  %v4602_v24 = vand.u32 4294901760, %v4601_v58  ;;  %v4609_v23 = vand.u32 4294901760, %v4608_v20 }
 0x2fd   :  { %17648 = vmatprep.subr.bf16.mxu0 %v22679_v29  ;;  %28770 = vst [vmem:[#allocation33_spill] sm:$0xff] %v22810_v12  ;;  %28771 = vst [vmem:[#allocation34_spill] sm:$0xff] %v22815_v19  ;;  %v4616_v26 = vand.u32 4294901760, %v4615_v3  ;;  %v4622_v51 = vsub.f32 %v22781_v8, %v27854_v27  ;;  %v4629_v53 = vsub.f32 %v22786_v34, %v27853_v36  ;;  %v27852_v41 = vand.u32 4294901760, %v22810_v12 }
 0x2fe   :  { %v27851_v57 = vand.u32 4294901760, %v22815_v19  ;;  %v17671_v59 = vpack.c.bf16 %v4602_v24, %v4595_v9  ;;  %v22834_v50 = vsub.f32 %v22667_v54, %v4501_v25  ;;  %v22847_v54 = vsub.f32 %v22687_v44, %v4504_v21 }
 0x2ff   :  { %v17675_v42 = vpack.c.bf16 %v4616_v26, %v4609_v23  ;;  %v4623_v39 = vand.u32 4294901760, %v4622_v51  ;;  %v4630_v58 = vand.u32 4294901760, %v4629_v53  ;;  %v4636_v20 = vsub.f32 %v22810_v12, %v27852_v41 }
 0x300   :  { %17650 = vmatpush3.bf16.msra.mxu0 %v22679_v29  ;;  %28773 = vst [vmem:[#allocation13_spill] sm:$0xff] %v22834_v50  ;;  %v4643_v24 = vsub.f32 %v22815_v19, %v27851_v57  ;;  %28774 = vst [vmem:[#allocation35_spill] sm:$0xff] %v22847_v54  ;;  %v22852_v25 = vsub.f32 %v22689_v46, %v4507_v14  ;;  %v27848_v44 = vand.u32 4294901760, %v22847_v54  ;;  %v22906_v57 = vld [vmem:[#allocation2 + $0x528] sm:$0xff]  ;;  %v28784_v2 = vand.u32 4294901760, %v22672_v55 }
 0x301   :  { %17652 = vmatprep.subr.bf16.mxu0 %v22702_v28  ;;  %v17679_v26 = vpack.c.bf16 %v4630_v58, %v4623_v39  ;;  %v4637_v23 = vand.u32 4294901760, %v4636_v20  ;;  %v17695_v20 = vpack.c.bf16 %v22672_v55, %v22662_v4  ;;  %v17707_v18 = vpack.c.bf16 %v22758_v13, %v22753_v0 }
 0x302   :  { %28775 = vst [vmem:[#allocation36_spill] sm:$0xff] %v22852_v25  ;;  %v4644_v3 = vand.u32 4294901760, %v4643_v24  ;;  %v27847_v21 = vand.u32 4294901760, %v22852_v25  ;;  %v4664_v51 = vsub.f32 %v22847_v54, %v27848_v44  ;;  %v17699_v24 = vpack.c.bf16 %v22710_v16, %v22695_v60 }
 0x303   :  { %v17715_v63 = vpack.c.bf16 %v22815_v19, %v22810_v12  ;;  %v17723_v10 = vpack.c.bf16 %v22852_v25, %v22847_v54 }
 0x304   :  { %17654 = vmatpush3.bf16.msra.mxu0 %v22702_v28  ;;  %v17683_v46 = vpack.c.bf16 %v4644_v3, %v4637_v23  ;;  %v4671_v53 = vsub.f32 %v22852_v25, %v27847_v21  ;;  %v4665_v39 = vand.u32 4294901760, %v4664_v51  ;;  %v22875_v23 = vld [vmem:[#allocation2 + $0x588] sm:$0xff]  ;;  %v22877_v3 = vld [vmem:[#allocation2 + $0x500] sm:$0xff]  ;;  %v22887_v51 = vld [vmem:[#allocation2 + $0x598] sm:$0xff] }
 0x305   :  { %17656 = vmatprep.subr.bf16.mxu0 %v22716_v32  ;;  %v22898_v21 = vld [vmem:[#allocation2 + $0x5a0] sm:$0xff] }
 0x306   :  { %v4672_v58 = vand.u32 4294901760, %v4671_v53  ;;  %v17703_v53 = vpack.c.bf16 %v22742_v49, %v22737_v62  ;;  %v5307_v5 = vand.u32 4294901760, %v22898_v21 }
 0x308   :  { %17658 = vmatpush3.bf16.msra.mxu0 %v22716_v32 }
 0x309   :  { %17660 = vmatprep.subr.bf16.mxu0 %v22748_v48 }
 0x30c   :  { %17662 = vmatpush3.bf16.msra.mxu0 %v22748_v48 }
 0x30d   :  { %17664 = vmatprep.subr.bf16.mxu0 %v17663_v56 }
 0x30f   :  { %15864 = vmatmul.mubr.f32.vlgmr.msra.gmra.mrb[30].mxu0 %v4556_v43 }
 0x310   :  { %17666 = vmatpush3.bf16.msra.mxu0 %v17663_v56  ;;  %15898 = vmatprep.mubr.f32.mxu0 %v22570_v22  ;;  %v22829_v56 = vsub.f32 %v22665_v40, %v4498_v7  ;;  %v27849_v7 = vand.u32 4294901760, %v22834_v50 }
 0x311   :  { %17668 = vmatprep.subr.bf16.mxu0 %v17667_v33 }
 0x312   :  { %28772 = vst [vmem:[#allocation20_spill] sm:$0xff] %v22829_v56  ;;  %v27850_v40 = vand.u32 4294901760, %v22829_v56 }
 0x314   :  { %17670 = vmatpush3.bf16.msra.mxu0 %v17667_v33  ;;  %v4650_v43 = vsub.f32 %v22829_v56, %v27850_v40  ;;  %v4657_v33 = vsub.f32 %v22834_v50, %v27849_v7  ;;  %v22902_v7 = vld [vmem:[#allocation2 + $0x5a8] sm:$0xff]  ;;  %v22904_v40 = vld [vmem:[#allocation2 + $0x520] sm:$0xff] }
 0x315   :  { %17672 = vmatprep.subr.bf16.mxu0 %v17671_v59  ;;  %v5310_v6 = vand.u32 4294901760, %v22902_v7  ;;  %v5259_v38 = vand.u32 4294901760, %v22904_v40 }
 0x316   :  { %v4651_v14 = vand.u32 4294901760, %v4650_v43  ;;  %v4658_v9 = vand.u32 4294901760, %v4657_v33  ;;  %v5298_v33 = vand.u32 4294901760, %v22875_v23 }
 0x318   :  { %17674 = vmatpush3.bf16.msra.mxu0 %v17671_v59  ;;  %v17687_v59 = vpack.c.bf16 %v4658_v9, %v4651_v14  ;;  %v5247_v14 = vand.u32 4294901760, %v22877_v3  ;;  %v22885_v9 = vld [vmem:[#allocation2 + $0x590] sm:$0xff] }
 0x319   :  { %17676 = vmatprep.subr.bf16.mxu0 %v17675_v42 }
 0x31c   :  { %17678 = vmatpush3.bf16.msra.mxu0 %v17675_v42  ;;  %v17691_v42 = vpack.c.bf16 %v4672_v58, %v4665_v39  ;;  %v27861_v39 = vand.u32 4294901760, %v22885_v9  ;;  %v27860_v58 = vand.u32 4294901760, %v22887_v51 }
 0x31d   :  { %17680 = vmatprep.subr.bf16.mxu0 %v17679_v26 }
 0x31e   :  { %v22916_v36 = vpack.c.bf16 %v27860_v58, %v27861_v39  ;;  %v22931_v39 = vpack.c.bf16 %v5310_v6, %v5307_v5 }
 0x320   :  { %17682 = vmatpush3.bf16.msra.mxu0 %v17679_v26  ;;  %v22873_v26 = vld [vmem:[#allocation2 + $0x580] sm:$0xff]  ;;  %28778 = vst [vmem:[#allocation39_spill] sm:$0xff] %v22916_v36  ;;  %28780 = vst [vmem:[#allocation41_spill] sm:$0xff] %v22931_v39 }
 0x321   :  { %17684 = vmatprep.subr.bf16.mxu0 %v17683_v46  ;;  %v5295_v43 = vand.u32 4294901760, %v22873_v26 }
 0x323   :  { %v22900_v44 = vpack.c.bf16 %v5298_v33, %v5295_v43  ;;  %v22955_v19 = vsub.f32 %v22873_v26, %v5295_v43 }
 0x324   :  { %17686 = vmatpush3.bf16.msra.mxu0 %v17683_v46  ;;  %v22882_v46 = vld [vmem:[#allocation2 + $0x508] sm:$0xff] }
 0x325   :  { %17688 = vmatprep.subr.bf16.mxu0 %v17687_v59  ;;  %28776 = vst [vmem:[#allocation11_spill] sm:$0xff] %v22900_v44  ;;  %17824 = vmatprep.subr.bf16.mxu1 %v22900_v44  ;;  %v5165_v44 = vld [vmem:[#allocation2 + $0x538] sm:$0xff]  ;;  %v28786_v26 = vand.u32 4294901760, %v22882_v46 }
 0x327   :  { %v22969_v43 = vsub.f32 %v22882_v46, %v28786_v26  ;;  %v22989_v26 = vsub.f32 %v22898_v21, %v5307_v5 }
 0x328   :  { %17690 = vmatpush3.bf16.msra.mxu0 %v17687_v59  ;;  %v27862_v59 = vand.u32 4294901760, %v22882_v46 }
 0x329   :  { %17692 = vmatprep.subr.bf16.mxu0 %v17691_v42 }
 0x32a   :  { %v22910_v41 = vpack.c.bf16 %v27862_v59, %v5247_v14  ;;  %v17711_v59 = vpack.c.bf16 %v22786_v34, %v22781_v8  ;;  %v5182_v34 = vld [vmem:[#allocation2 + $0x5c0] sm:$0xff]  ;;  %v22963_v8 = vsub.f32 %v22877_v3, %v5247_v14  ;;  %v28788_v14 = vand.u32 4294901760, %v22887_v51 }
 0x32c   :  { %17694 = vmatpush3.bf16.msra.mxu0 %v17691_v42  ;;  %v22894_v42 = vld [vmem:[#allocation2 + $0x510] sm:$0xff]  ;;  %28777 = vst [vmem:[#allocation37_spill] sm:$0xff] %v22910_v41  ;;  %17826 = vmatpush3.bf16.msra.mxu1 %v22910_v41 }
 0x32d   :  { %17696 = vmatprep.subr.bf16.mxu0 %v17695_v20  ;;  %v5253_v27 = vand.u32 4294901760, %v22894_v42  ;;  %17828 = vmatprep.subr.bf16.mxu1 %v22916_v36  ;;  %v5316_v36 = vand.u32 4294901760, %v5181_v52  ;;  %v5164_v41 = vld [vmem:[#allocation2 + $0x530] sm:$0xff] }
 0x32f   :  { %15899 = vmatmul.mubr.f32.vlgmr.msra.gmra.mrb[30].mxu0 %v22705_v17  ;;  %v5265_v17 = vand.u32 4294901760, %v5164_v41  ;;  %v22983_v25 = vsub.f32 %v22894_v42, %v5253_v27  ;;  %v5168_v42 = vld [vmem:[#allocation2 + $0x550] sm:$0xff] }
 0x330   :  { %17698 = vmatpush3.bf16.msra.mxu0 %v17695_v20  ;;  %15933 = vmatprep.mubr.f32.mxu0 %v22589_v35  ;;  %v22896_v20 = vld [vmem:[#allocation2 + $0x518] sm:$0xff] }
 0x331   :  { %17700 = vmatprep.subr.bf16.mxu0 %v17699_v24  ;;  %v5256_v37 = vand.u32 4294901760, %v22896_v20 }
 0x333   :  { %v22929_v58 = vpack.c.bf16 %v5256_v37, %v5253_v27  ;;  %v22986_v46 = vsub.f32 %v22896_v20, %v5256_v37 }
 0x334   :  { %17702 = vmatpush3.bf16.msra.mxu0 %v17699_v24  ;;  %v5262_v24 = vand.u32 4294901760, %v22906_v57 }
 0x335   :  { %17704 = vmatprep.subr.bf16.mxu0 %v17703_v53  ;;  %28779 = vst [vmem:[#allocation40_spill] sm:$0xff] %v22929_v58  ;;  %17830 = vmatpush3.bf16.msra.mxu1 %v22929_v58  ;;  %v17719_v58 = vpack.c.bf16 %v22834_v50, %v22829_v56  ;;  %v5183_v50 = vld [vmem:[#allocation2 + $0x5c8] sm:$0xff]  ;;  %v22960_v56 = vsub.f32 %v22875_v23, %v5298_v33 }
 0x336   :  { %v22936_v45 = vpack.c.bf16 %v5262_v24, %v5259_v38  ;;  %17832 = vmatprep.subr.bf16.mxu1 %v22931_v39  ;;  %v5268_v39 = vand.u32 4294901760, %v5165_v44  ;;  %v5322_v55 = vand.u32 4294901760, %v5183_v50  ;;  %v23002_v27 = vsub.f32 %v22906_v57, %v5262_v24  ;;  %v5186_v24 = vld [vmem:[#allocation2 + $0x5e0] sm:$0xff] }
 0x338   :  { %17706 = vmatpush3.bf16.msra.mxu0 %v17703_v53  ;;  %28781 = vst [vmem:[#allocation43_spill] sm:$0xff] %v22936_v45  ;;  %v5313_v53 = vand.u32 4294901760, %v5180_v15  ;;  %v22957_v12 = vpack.c.bf16 %v5268_v39, %v5265_v17  ;;  %v23011_v13 = vsub.f32 %v5165_v44, %v5268_v39  ;;  %v23015_v57 = vsub.f32 %v5183_v50, %v5322_v55  ;;  %v5171_v44 = vld [vmem:[#allocation2 + $0x568] sm:$0xff]  ;;  %v5189_v39 = vld [vmem:[#allocation2 + $0x5f8] sm:$0xff] }
 0x339   :  { %17708 = vmatprep.subr.bf16.mxu0 %v17707_v18  ;;  %17834 = vmatpush3.bf16.msra.mxu1 %v22936_v45  ;;  %v28783_v45 = vand.u32 4294901760, %v22662_v4  ;;  %v5319_v4 = vand.u32 4294901760, %v5182_v34 }
 0x33a   :  { %28785 = vst [vmem:[#allocation44_spill] sm:$0xff] %v22957_v12  ;;  %v23004_v37 = vsub.f32 %v5180_v15, %v5313_v53 }
 0x33c   :  { %17710 = vmatpush3.bf16.msra.mxu0 %v17707_v18  ;;  %v22944_v18 = vpack.c.bf16 %v5316_v36, %v5313_v53  ;;  %v5187_v53 = vld [vmem:[#allocation2 + $0x5e8] sm:$0xff] }
 0x33d   :  { %17712 = vmatprep.subr.bf16.mxu0 %v17711_v59 }
 0x33e   :  { %28782 = vst [vmem:[#allocation26_spill] sm:$0xff] %v22944_v18  ;;  %17836 = vmatprep.subr.bf16.mxu1 %v22944_v18  ;;  %v22980_v18 = vsub.f32 %v22887_v51, %v28788_v14  ;;  %v5184_v51 = vld [vmem:[#allocation2 + $0x5d0] sm:$0xff]  ;;  %v5185_v14 = vld [vmem:[#allocation2 + $0x5d8] sm:$0xff] }
 0x33f   :  { %17838 = vmatpush3.bf16.msra.mxu1 %v22957_v12  ;;  %v22997_v12 = vpack.c.bf16 %v5322_v55, %v5319_v4  ;;  %v5325_v5 = vand.u32 4294901760, %v5184_v51  ;;  %v5328_v21 = vand.u32 4294901760, %v5185_v14  ;;  %v5331_v55 = vand.u32 4294901760, %v5186_v24 }
 0x340   :  { %17714 = vmatpush3.bf16.msra.mxu0 %v17711_v59  ;;  %v22952_v59 = vpack.c.bf16 %v28784_v2, %v28783_v45  ;;  %v5166_v45 = vld [vmem:[#allocation2 + $0x540] sm:$0xff]  ;;  %v5167_v2 = vld [vmem:[#allocation2 + $0x548] sm:$0xff]  ;;  %28789 = vst [vmem:[#allocation45_spill] sm:$0xff] %v22980_v18 }
 0x341   :  { %17716 = vmatprep.subr.bf16.mxu0 %v17715_v63  ;;  %v5271_v3 = vand.u32 4294901760, %v5166_v45  ;;  %v5274_v33 = vand.u32 4294901760, %v5167_v2  ;;  %28790 = vst [vmem:[#allocation47_spill] sm:$0xff] %v22997_v12  ;;  %17840 = vmatprep.subr.bf16.mxu1 %v22997_v12  ;;  %v23028_v50 = vsub.f32 %v5185_v14, %v5328_v21 }
 0x343   :  { %v22999_v54 = vpack.c.bf16 %v5274_v33, %v5271_v3  ;;  %v23018_v15 = vsub.f32 %v5166_v45, %v5271_v3  ;;  %v5334_v45 = vand.u32 4294901760, %v5187_v53  ;;  %v5172_v3 = vld [vmem:[#allocation2 + $0x570] sm:$0xff] }
 0x344   :  { %17718 = vmatpush3.bf16.msra.mxu0 %v17715_v63  ;;  %v28787_v63 = vand.u32 4294901760, %v22885_v9 }
 0x345   :  { %17720 = vmatprep.subr.bf16.mxu0 %v17719_v58  ;;  %28791 = vst [vmem:[#allocation48_spill] sm:$0xff] %v22999_v54  ;;  %17842 = vmatpush3.bf16.msra.mxu1 %v22999_v54  ;;  %v23034_v54 = vld [vmem:[#allocation2 + $0x578] sm:$0xff]  ;;  %v23039_v14 = vpack.c.bf16 %v5334_v45, %v5331_v55 }
 0x346   :  { %v22974_v23 = vsub.f32 %v22885_v9, %v28787_v63  ;;  %v22992_v9 = vsub.f32 %v22902_v7, %v5310_v6  ;;  %v22995_v63 = vsub.f32 %v22904_v40, %v5259_v38  ;;  %v5169_v6 = vld [vmem:[#allocation2 + $0x558] sm:$0xff]  ;;  %v23006_v7 = vsub.f32 %v5181_v52, %v5316_v36  ;;  %v5170_v52 = vld [vmem:[#allocation2 + $0x560] sm:$0xff] }
 0x347   :  { %v23008_v38 = vsub.f32 %v5164_v41, %v5265_v17  ;;  %v5277_v40 = vand.u32 4294901760, %v5168_v42  ;;  %v5280_v20 = vand.u32 4294901760, %v5169_v6  ;;  %v23020_v36 = vsub.f32 %v5167_v2, %v5274_v33  ;;  %28794 = vst [vmem:[#allocation51_spill] sm:$0xff] %v23039_v14 }
 0x348   :  { %17722 = vmatpush3.bf16.msra.mxu0 %v17719_v58  ;;  %v23013_v58 = vsub.f32 %v5182_v34, %v5319_v4  ;;  %v23022_v17 = vpack.c.bf16 %v5328_v21, %v5325_v5  ;;  %v23024_v41 = vsub.f32 %v5184_v51, %v5325_v5  ;;  %v5188_v34 = vld [vmem:[#allocation2 + $0x5f0] sm:$0xff]  ;;  %v5283_v2 = vand.u32 4294901760, %v5170_v52 }
 0x349   :  { %17724 = vmatprep.subr.bf16.mxu0 %v17723_v10  ;;  %v23026_v12 = vpack.c.bf16 %v5280_v20, %v5277_v40  ;;  %v23030_v4 = vsub.f32 %v5168_v42, %v5277_v40  ;;  %v5286_v33 = vand.u32 4294901760, %v5171_v44  ;;  %v5337_v51 = vand.u32 4294901760, %v5188_v34 }
 0x34a   :  { %28792 = vst [vmem:[#allocation49_spill] sm:$0xff] %v23022_v17  ;;  %17844 = vmatprep.subr.bf16.mxu1 %v23022_v17  ;;  %v5340_v5 = vand.u32 4294901760, %v5189_v39  ;;  %v23041_v21 = vsub.f32 %v5186_v24, %v5331_v55  ;;  %v5289_v42 = vand.u32 4294901760, %v5172_v3  ;;  %v23044_v40 = vsub.f32 %v5187_v53, %v5334_v45 }
 0x34b   :  { %28793 = vst [vmem:[#allocation50_spill] sm:$0xff] %v23026_v12  ;;  %17846 = vmatpush3.bf16.msra.mxu1 %v23026_v12  ;;  %v23046_v17 = vpack.c.bf16 %v5286_v33, %v5283_v2  ;;  %v23048_v0 = vsub.f32 %v5170_v52, %v5283_v2  ;;  %v23057_v24 = vsub.f32 %v5188_v34, %v5337_v51  ;;  %v27902_v53 = vand.u32 4294901760, %v23034_v54 }
 0x34c   :  { %17726 = vmatpush3.bf16.msra.mxu0 %v17723_v10  ;;  %v23037_v10 = vsub.f32 %v5169_v6, %v5280_v20  ;;  %v23050_v49 = vpack.c.bf16 %v5340_v5, %v5337_v51  ;;  %v28797_v6 = vand.u32 4294901760, %v22589_v35  ;;  %v23055_v20 = vsub.f32 %v5171_v44, %v5286_v33  ;;  %17848 = vmatprep.subr.bf16.mxu1 %v23039_v14 }
 0x34d   :  { %17728 = vmatprep.subr.bf16.mxu0 %v22601_v31  ;;  %28795 = vst [vmem:[#allocation12_spill] sm:$0xff] %v23046_v17  ;;  %v23059_v55 = vsub.f32 %v5189_v39, %v5340_v5  ;;  %v27900_v52 = vand.u32 4294901760, %v22955_v19  ;;  %v27901_v45 = vand.u32 4294901760, %v22960_v56  ;;  %v27903_v2 = vand.u32 4294901760, %v22963_v8 }
 0x34e   :  { %28796 = vst [vmem:[#allocation19_spill] sm:$0xff] %v23050_v49  ;;  %v27908_v35 = vand.u32 4294901760, %v22969_v43  ;;  %v23071_v44 = vpack.c.bf16 %v27902_v53, %v5289_v42  ;;  %v23073_v34 = vsub.f32 %v5172_v3, %v5289_v42  ;;  %v27913_v39 = vand.u32 4294901760, %v22974_v23 }
 0x34f   :  { %15934 = vmatmul.mubr.f32.vlgmr.msra.gmra.mrb[30].mxu0 %v22731_v11  ;;  %17850 = vmatpush3.bf16.msra.mxu1 %v23046_v17  ;;  %v27914_v33 = vand.u32 4294901760, %v22980_v18  ;;  %v5469_v51 = vsub.f32 %v22955_v19, %v27900_v52  ;;  %v5476_v5 = vsub.f32 %v22960_v56, %v27901_v45  ;;  %v27933_v45 = vand.u32 4294901760, %v22983_v25 }
 0x350   :  { %17730 = vmatpush3.bf16.msra.mxu0 %v22601_v31  ;;  %15968 = vmatprep.mubr.f32.mxu0 %v28797_v6  ;;  %28798 = vst [vmem:[#allocation38_spill] sm:$0xff] %v23071_v44  ;;  %v5357_v6 = vsub.f32 %v22963_v8, %v27903_v2  ;;  %v5364_v3 = vsub.f32 %v22969_v43, %v27908_v35  ;;  %v27926_v53 = vand.u32 4294901760, %v22986_v46 }
 0x351   :  { %17732 = vmatprep.subr.bf16.mxu0 %v22616_v47  ;;  %17852 = vmatprep.subr.bf16.mxu1 %v23050_v49  ;;  %v5483_v42 = vsub.f32 %v22974_v23, %v27913_v39  ;;  %v5490_v52 = vsub.f32 %v22980_v18, %v27914_v33  ;;  %v5470_v2 = vand.u32 4294901760, %v5469_v51  ;;  %v5477_v49 = vand.u32 4294901760, %v5476_v5 }
 0x352   :  { %v5358_v17 = vand.u32 4294901760, %v5357_v6  ;;  %v5365_v35 = vand.u32 4294901760, %v5364_v3  ;;  %v5371_v39 = vsub.f32 %v22983_v25, %v27933_v45  ;;  %v5378_v33 = vsub.f32 %v22986_v46, %v27926_v53 }
 0x353   :  { %17854 = vmatpush3.bf16.msra.mxu1 %v23071_v44  ;;  %v5484_v14 = vand.u32 4294901760, %v5483_v42  ;;  %v5491_v12 = vand.u32 4294901760, %v5490_v52  ;;  %v27922_v18 = vand.u32 4294901760, %v22989_v26  ;;  %v27921_v51 = vand.u32 4294901760, %v22992_v9 }
 0x354   :  { %17734 = vmatpush3.bf16.msra.mxu0 %v22616_v47  ;;  %v17855_v47 = vpack.c.bf16 %v5477_v49, %v5470_v2  ;;  %v17857_v31 = vpack.c.bf16 %v5365_v35, %v5358_v17  ;;  %v5372_v6 = vand.u32 4294901760, %v5371_v39  ;;  %v5379_v3 = vand.u32 4294901760, %v5378_v33 }
 0x355   :  { %17736 = vmatprep.subr.bf16.mxu0 %v22636_v61  ;;  %v17859_v5 = vpack.c.bf16 %v5491_v12, %v5484_v14  ;;  %v27925_v52 = vand.u32 4294901760, %v22995_v63  ;;  %v5497_v42 = vsub.f32 %v22989_v26, %v27922_v18  ;;  %v5504_v49 = vsub.f32 %v22992_v9, %v27921_v51 }
 0x356   :  { %17856 = vmatprep.subr.bf16.mxu1 %v17855_v47  ;;  %v27924_v17 = vand.u32 4294901760, %v23002_v27  ;;  %v27923_v2 = vand.u32 4294901760, %v23004_v37  ;;  %5343 = vmatmul.mubr.f32.vlgmr.msra.gmra.mrb[68].mxu1 %v28382_v1  ;;  %v17861_v12 = vpack.c.bf16 %v5379_v3, %v5372_v6  ;;  %v27927_v47 = vand.u32 4294901760, %v23006_v7 }
 0x357   :  { %v5385_v14 = vsub.f32 %v22995_v63, %v27925_v52  ;;  %v27928_v35 = vand.u32 4294901760, %v23008_v38  ;;  %17858 = vmatpush3.bf16.msra.mxu1 %v17857_v31  ;;  %v5498_v39 = vand.u32 4294901760, %v5497_v42  ;;  %v5505_v33 = vand.u32 4294901760, %v5504_v49  ;;  %5347 = vmatprep.mubr.f32.mxu1 %v28382_v1 }
 0x358   :  { %17738 = vmatpush3.bf16.msra.mxu0 %v22636_v61  ;;  %v5392_v51 = vsub.f32 %v23002_v27, %v27924_v17  ;;  %v5511_v18 = vsub.f32 %v23004_v37, %v27923_v2  ;;  %17860 = vmatprep.subr.bf16.mxu1 %v17859_v5  ;;  %v5518_v31 = vsub.f32 %v23006_v7, %v27927_v47  ;;  %v27931_v42 = vand.u32 4294901760, %v23011_v13 }
 0x359   :  { %17740 = vmatprep.subr.bf16.mxu0 %v22651_v30  ;;  %v5386_v6 = vand.u32 4294901760, %v5385_v14  ;;  %v5399_v3 = vsub.f32 %v23008_v38, %v27928_v35  ;;  %v17863_v49 = vpack.c.bf16 %v5505_v33, %v5498_v39  ;;  %v27929_v52 = vand.u32 4294901760, %v23013_v58 }
 0x35a   :  { %v5393_v2 = vand.u32 4294901760, %v5392_v51  ;;  %v5512_v17 = vand.u32 4294901760, %v5511_v18  ;;  %v5519_v53 = vand.u32 4294901760, %v5518_v31  ;;  %v5406_v14 = vsub.f32 %v23011_v13, %v27931_v42  ;;  %5348 = vmatmul.mubr.f32.gmra.mrb[70].mxu1 %v28382_v1 }
 0x35b   :  { %v5400_v5 = vand.u32 4294901760, %v5399_v3  ;;  %v27930_v47 = vand.u32 4294901760, %v23015_v57  ;;  %17862 = vmatpush3.bf16.msra.mxu1 %v17861_v12  ;;  %v5525_v39 = vsub.f32 %v23013_v58, %v27929_v52  ;;  %v27932_v18 = vand.u32 4294901760, %v23018_v15  ;;  %5577 = vmatprep.mubr.f32.mxu1 %v28382_v1 }
 0x35c   :  { %17742 = vmatpush3.bf16.msra.mxu0 %v22651_v30  ;;  %v17865_v35 = vpack.c.bf16 %v5393_v2, %v5386_v6  ;;  %v27937_v51 = vand.u32 4294901760, %v23020_v36  ;;  %17864 = vmatprep.subr.bf16.mxu1 %v17863_v49  ;;  %v17867_v33 = vpack.c.bf16 %v5519_v53, %v5512_v17  ;;  %v5407_v31 = vand.u32 4294901760, %v5406_v14 }
 0x35d   :  { %17744 = vmatprep.subr.bf16.mxu0 %v22679_v29  ;;  %v5532_v12 = vsub.f32 %v23015_v57, %v27930_v47  ;;  %v27934_v2 = vand.u32 4294901760, %v23024_v41  ;;  %v5526_v6 = vand.u32 4294901760, %v5525_v39  ;;  %v5413_v3 = vsub.f32 %v23018_v15, %v27932_v18 }
 0x35e   :  { %v5420_v52 = vsub.f32 %v23020_v36, %v27937_v51  ;;  %v27936_v53 = vand.u32 4294901760, %v23028_v50  ;;  %v17869_v17 = vpack.c.bf16 %v5407_v31, %v5400_v5  ;;  %v27935_v47 = vand.u32 4294901760, %v23030_v4 }
 0x35f   :  { %v5533_v49 = vand.u32 4294901760, %v5532_v12  ;;  %v5539_v14 = vsub.f32 %v23024_v41, %v27934_v2  ;;  %17866 = vmatpush3.bf16.msra.mxu1 %v17865_v35  ;;  %v5414_v39 = vand.u32 4294901760, %v5413_v3  ;;  %v27940_v45 = vand.u32 4294901760, %v23037_v10 }
 0x360   :  { %17746 = vmatpush3.bf16.msra.mxu0 %v22679_v29  ;;  %v5421_v42 = vand.u32 4294901760, %v5420_v52  ;;  %v5546_v18 = vsub.f32 %v23028_v50, %v27936_v53  ;;  %17868 = vmatprep.subr.bf16.mxu1 %v17867_v33  ;;  %v5427_v12 = vsub.f32 %v23030_v4, %v27935_v47  ;;  %v27939_v2 = vand.u32 4294901760, %v23041_v21 }
 0x361   :  { %17748 = vmatprep.subr.bf16.mxu0 %v22702_v28  ;;  %v17871_v5 = vpack.c.bf16 %v5533_v49, %v5526_v6  ;;  %v5540_v31 = vand.u32 4294901760, %v5539_v14  ;;  %v28799_v52 = vand.u32 4294901760, %v23034_v54  ;;  %v5434_v33 = vsub.f32 %v23037_v10, %v27940_v45 }
 0x362   :  { %v5547_v3 = vand.u32 4294901760, %v5546_v18  ;;  %v27938_v6 = vand.u32 4294901760, %v23044_v40  ;;  %v17873_v49 = vpack.c.bf16 %v5421_v42, %v5414_v39  ;;  %v5553_v14 = vsub.f32 %v23041_v21, %v27939_v2 }
 0x363   :  { %v23184_v35 = vsub.f32 %v23034_v54, %v28799_v52  ;;  %v27941_v47 = vand.u32 4294901760, %v23048_v0  ;;  %v27944_v53 = vand.u32 4294901760, %v23055_v20  ;;  %17870 = vmatpush3.bf16.msra.mxu1 %v17869_v17  ;;  %v5428_v51 = vand.u32 4294901760, %v5427_v12 }
 0x364   :  { %17750 = vmatpush3.bf16.msra.mxu0 %v22702_v28  ;;  %v5435_v54 = vand.u32 4294901760, %v5434_v33  ;;  %v5560_v18 = vsub.f32 %v23044_v40, %v27938_v6  ;;  %v5566_v52 = vand.u32 4294901760, %v23057_v24  ;;  %17872 = vmatprep.subr.bf16.mxu1 %v17871_v5  ;;  %v17875_v42 = vpack.c.bf16 %v5547_v3, %v5540_v31 }
 0x365   :  { %17752 = vmatprep.subr.bf16.mxu0 %v22716_v32  ;;  %v5441_v39 = vsub.f32 %v23048_v0, %v27941_v47  ;;  %v5448_v17 = vsub.f32 %v23055_v20, %v27944_v53  ;;  %v5573_v12 = vand.u32 4294901760, %v23059_v55  ;;  %v5554_v33 = vand.u32 4294901760, %v5553_v14 }
 0x366   :  { %v5561_v6 = vand.u32 4294901760, %v5560_v18  ;;  %v5567_v2 = vsub.f32 %v23057_v24, %v5566_v52  ;;  %v5454_v45 = vand.u32 4294901760, %v23073_v34  ;;  %v5461_v31 = vand.u32 4294901760, %v23184_v35 }
 0x367   :  { %v5574_v5 = vsub.f32 %v23059_v55, %v5573_v12  ;;  %17874 = vmatpush3.bf16.msra.mxu1 %v17873_v49  ;;  %v17877_v3 = vpack.c.bf16 %v5435_v54, %v5428_v51  ;;  %v5442_v47 = vand.u32 4294901760, %v5441_v39  ;;  %v5449_v44 = vand.u32 4294901760, %v5448_v17 }
 0x368   :  { %17754 = vmatpush3.bf16.msra.mxu0 %v22716_v32  ;;  %v5455_v53 = vsub.f32 %v23073_v34, %v5454_v45  ;;  %17876 = vmatprep.subr.bf16.mxu1 %v17875_v42  ;;  %v5568_v32 = vand.u32 4294901760, %v5567_v2  ;;  %v5462_v18 = vsub.f32 %v23184_v35, %v5461_v31  ;;  %v28800_v28 = vand.u32 4294901760, %v22695_v60  ;;  %v28804_v60 = vld [vmem:[#allocation27_spill] sm:$0xff] }
 0x369   :  { %17756 = vmatprep.subr.bf16.mxu0 %v22748_v48  ;;  %v5575_v14 = vand.u32 4294901760, %v5574_v5  ;;  %v28801_v29 = vand.u32 4294901760, %v22710_v16  ;;  %v17879_v49 = vpack.c.bf16 %v5561_v6, %v5554_v33  ;;  %v28802_v39 = vand.u32 4294901760, %v22731_v11 }
 0x36a   :  { %v5456_v51 = vand.u32 4294901760, %v5455_v53  ;;  %v5463_v54 = vand.u32 4294901760, %v5462_v18  ;;  %v17881_v17 = vpack.c.bf16 %v5449_v44, %v5442_v47  ;;  %v28803_v42 = vand.u32 4294901760, %v22737_v62  ;;  %v28808_v53 = vld [vmem:[#allocation29_spill] sm:$0xff] }
 0x36b   :  { %v17763_v30 = vpack.c.bf16 %v28801_v29, %v28800_v28  ;;  %17878 = vmatpush3.bf16.msra.mxu1 %v17877_v3  ;;  %v17883_v2 = vpack.c.bf16 %v5575_v14, %v5568_v32  ;;  %v28805_v5 = vand.u32 4294901760, %v28804_v60  ;;  %v28806_v29 = vld [vmem:[#allocation28_spill] sm:$0xff]  ;;  %v28809_v6 = vand.u32 4294901760, %v28808_v53 }
 0x36c   :  { %17758 = vmatpush3.bf16.msra.mxu0 %v22748_v48  ;;  %v28807_v28 = vand.u32 4294901760, %v28806_v29  ;;  %17880 = vmatprep.subr.bf16.mxu1 %v17879_v49  ;;  %v17887_v11 = vpack.c.bf16 %v22960_v56, %v22955_v19  ;;  %v17885_v44 = vpack.c.bf16 %v5463_v54, %v5456_v51  ;;  %v28811_v32 = vand.u32 4294901760, %v22960_v56 }
 0x36d   :  { %17760 = vmatprep.subr.bf16.mxu0 %v22952_v59  ;;  %v17767_v16 = vpack.c.bf16 %v28805_v5, %v28803_v42  ;;  %v28812_v62 = vand.u32 4294901760, %v22963_v8  ;;  %v28813_v3 = vand.u32 4294901760, %v22969_v43  ;;  %v28814_v18 = vand.u32 4294901760, %v22974_v23 }
 0x36e   :  { %v17771_v33 = vpack.c.bf16 %v28809_v6, %v28807_v28  ;;  %v28817_v51 = vand.u32 4294901760, %v22983_v25  ;;  %v28819_v54 = vand.u32 4294901760, %v22989_v26  ;;  %v28820_v60 = vand.u32 4294901760, %v22992_v9 }
 0x36f   :  { %15969 = vmatmul.mubr.f32.vlgmr.msra.gmra.mrb[30].mxu0 %v28802_v39  ;;  %v23244_v14 = vpack.c.bf16 %v28813_v3, %v28812_v62  ;;  %v28815_v39 = vld [vmem:[#allocation45_spill] sm:$0xff]  ;;  %17882 = vmatpush3.bf16.msra.mxu1 %v17881_v17  ;;  %v28821_v29 = vand.u32 4294901760, %v22995_v63  ;;  %v28822_v28 = vand.u32 4294901760, %v23002_v27  ;;  %v28823_v17 = vand.u32 4294901760, %v23004_v37 }
 0x370   :  { %17762 = vmatpush3.bf16.msra.mxu0 %v22952_v59  ;;  %16003 = vmatprep.mubr.f32.mxu0 %v22570_v22  ;;  %v28810_v59 = vand.u32 4294901760, %v22955_v19  ;;  %v28816_v49 = vand.u32 4294901760, %v28815_v39  ;;  %v28818_v19 = vand.u32 4294901760, %v22986_v46  ;;  %v23262_v5 = vpack.c.bf16 %v28820_v60, %v28819_v54 }
 0x371   :  { %17764 = vmatprep.subr.bf16.mxu0 %v17763_v30  ;;  %v23268_v53 = vpack.c.bf16 %v28822_v28, %v28821_v29  ;;  %v28824_v6 = vand.u32 4294901760, %v23006_v7  ;;  %17884 = vmatprep.subr.bf16.mxu1 %v17883_v2  ;;  %v28826_v62 = vand.u32 4294901760, %v23011_v13  ;;  %v28830_v54 = vand.u32 4294901760, %v23020_v36 }
 0x372   :  { %v23238_v47 = vpack.c.bf16 %v28811_v32, %v28810_v59  ;;  %v23250_v42 = vpack.c.bf16 %v28816_v49, %v28814_v18  ;;  %v23256_v56 = vpack.c.bf16 %v28818_v19, %v28817_v51  ;;  %v28825_v32 = vand.u32 4294901760, %v23008_v38 }
 0x373   :  { %v23274_v59 = vpack.c.bf16 %v28824_v6, %v28823_v17  ;;  %v28827_v18 = vand.u32 4294901760, %v23013_v58  ;;  %v28828_v49 = vand.u32 4294901760, %v23015_v57  ;;  %v28829_v19 = vand.u32 4294901760, %v23018_v15  ;;  %17886 = vmatpush3.bf16.msra.mxu1 %v17885_v44 }
 0x374   :  { %17766 = vmatpush3.bf16.msra.mxu0 %v17763_v30  ;;  %v23280_v3 = vpack.c.bf16 %v28826_v62, %v28825_v32  ;;  %v28831_v30 = vand.u32 4294901760, %v23024_v41  ;;  %v28832_v2 = vand.u32 4294901760, %v23028_v50  ;;  %v28833_v28 = vand.u32 4294901760, %v23030_v4  ;;  %17888 = vmatprep.subr.bf16.mxu1 %v17887_v11  ;;  %v23349_v11 = vld [vmem:[#allocation2 + $0x608] sm:$0xff] }
 0x375   :  { %v23286_v51 = vpack.c.bf16 %v28828_v49, %v28827_v18  ;;  %v23292_v60 = vpack.c.bf16 %v28830_v54, %v28829_v19  ;;  %17768 = vmatprep.subr.bf16.mxu0 %v17767_v16  ;;  %v28834_v17 = vand.u32 4294901760, %v23037_v10  ;;  %v28836_v32 = vand.u32 4294901760, %v23041_v21 }
 0x376   :  { %v23298_v29 = vpack.c.bf16 %v28832_v2, %v28831_v30  ;;  %v28837_v62 = vand.u32 4294901760, %v23044_v40  ;;  %v28838_v49 = vand.u32 4294901760, %v23048_v0  ;;  %v28839_v19 = vand.u32 4294901760, %v23055_v20  ;;  %5578 = vmatmul.mubr.f32.vlgmr.msra.gmra.mrb[72].mxu1 %v28382_v1 }
 0x377   :  { %v23304_v6 = vpack.c.bf16 %v28834_v17, %v28833_v28  ;;  %v23318_v30 = vpack.c.bf16 %v5573_v12, %v5566_v52  ;;  %v23320_v2 = vpack.c.bf16 %v5461_v31, %v5454_v45  ;;  %v17889_v28 = vpack.c.bf16 %v22969_v43, %v22963_v8  ;;  %v23324_v17 = vld [vmem:[#allocation2 + $0x680] sm:$0xff]  ;;  %v28842_v45 = vld [vmem:[#allocation31_spill] sm:$0xff]  ;;  %5582 = vmatprep.mubr.f32.mxu1 %v28382_v1 }
 0x378   :  { %v23310_v18 = vpack.c.bf16 %v28837_v62, %v28836_v32  ;;  %v23316_v54 = vpack.c.bf16 %v28839_v19, %v28838_v49  ;;  %17770 = vmatpush3.bf16.msra.mxu0 %v17767_v16  ;;  %v17891_v32 = vpack.c.bf16 %v28815_v39, %v22974_v23  ;;  %v27954_v62 = vand.u32 4294901760, %v23324_v17  ;;  %v28844_v31 = vld [vmem:[#allocation32_spill] sm:$0xff] }
 0x379   :  { %28835 = vst [vmem:[#allocation24_spill] sm:$0xff] %v23304_v6  ;;  %28840 = vst [vmem:[#allocation42_spill] sm:$0xff] %v23318_v30  ;;  %v23326_v6 = vld [vmem:[#allocation2 + $0x688] sm:$0xff]  ;;  %17772 = vmatprep.subr.bf16.mxu0 %v17771_v33  ;;  %v28843_v12 = vand.u32 4294901760, %v28842_v45  ;;  %v28845_v44 = vand.u32 4294901760, %v28844_v31  ;;  %v23347_v16 = vld [vmem:[#allocation2 + $0x600] sm:$0xff]  ;;  %17890 = vmatpush3.bf16.msra.mxu1 %v17889_v28  ;;  %v17893_v19 = vpack.c.bf16 %v22986_v46, %v22983_v25 }
 0x37a   :  { %28841 = vst [vmem:[#allocation27_spill] sm:$0xff] %v23320_v2  ;;  %v27953_v52 = vand.u32 4294901760, %v23326_v6  ;;  %v13663_v8 = vpop.f32.mrb[56].mxu1  ;;  %v23340_v43 = vsub.f32 %v23324_v17, %v27954_v62  ;;  %v27956_v45 = vand.u32 4294901760, %v23347_v16  ;;  %17892 = vmatprep.subr.bf16.mxu1 %v17891_v32  ;;  %v28848_v28 = vld [vmem:[#allocation33_spill] sm:$0xff]  ;;  %v28850_v25 = vld [vmem:[#allocation34_spill] sm:$0xff]  ;;  %5583 = vmatmul.mubr.f32.gmra.mrb[74].mxu1 %v28382_v1 }
 0x37b   :  { %v17775_v49 = vpack.c.bf16 %v28845_v44, %v28843_v12  ;;  %v13664_v39 = vpop.f32.mrb[57].mxu1  ;;  %v17895_v44 = vpack.c.bf16 %v22992_v9, %v22989_v26  ;;  %v28849_v2 = vand.u32 4294901760, %v28848_v28  ;;  %v28851_v46 = vand.u32 4294901760, %v28850_v25  ;;  %5716 = vmatprep.mubr.f32.mxu1 %v28382_v1 }
 0x37c   :  { %28846 = vst [vmem:[#allocation28_spill] sm:$0xff] %v23340_v43  ;;  %v23345_v23 = vsub.f32 %v23326_v6, %v27953_v52  ;;  %17774 = vmatpush3.bf16.msra.mxu0 %v17771_v33  ;;  %v13665_v31 = vadd.f32 %v13664_v39, %v13663_v8  ;;  %v27955_v52 = vand.u32 4294901760, %v23340_v43  ;;  %v23367_v12 = vsub.f32 %v23347_v16, %v27956_v45 }
 0x37d   :  { %17776 = vmatprep.subr.bf16.mxu0 %v17775_v49  ;;  %v17779_v30 = vpack.c.bf16 %v28851_v46, %v28849_v2  ;;  %v28852_v33 = vand.u32 4294901760, %v23349_v11  ;;  %17894 = vmatpush3.bf16.msra.mxu1 %v17893_v19  ;;  %v17897_v39 = vpack.c.bf16 %v23002_v27, %v22995_v63  ;;  %v17899_v25 = vpack.c.bf16 %v23006_v7, %v23004_v37  ;;  %v28858_v7 = vld [vmem:[#allocation35_spill] sm:$0xff] }
 0x37e   :  { %28847 = vst [vmem:[#allocation29_spill] sm:$0xff] %v23345_v23  ;;  %v27959_v62 = vand.u32 4294901760, %v23345_v23  ;;  %v13666_v26 = vpop.f32.mrb[58].mxu1  ;;  %v6345_v9 = vsub.f32 %v23340_v43, %v27955_v52  ;;  %17896 = vmatprep.subr.bf16.mxu1 %v17895_v44  ;;  %v28854_v52 = vld [vmem:[#allocation20_spill] sm:$0xff]  ;;  %v28856_v43 = vld [vmem:[#allocation13_spill] sm:$0xff]  ;;  %v17901_v27 = vpack.c.bf16 %v23011_v13, %v23008_v38  ;;  %v17903_v37 = vpack.c.bf16 %v23015_v57, %v23013_v58  ;;  %v28863_v57 = vld [vmem:[#allocation46_spill] sm:$0xff] }
 0x37f   :  { %v23372_v32 = vsub.f32 %v23349_v11, %v28852_v33  ;;  %v13667_v8 = vpop.f32.mrb[59].mxu1  ;;  %v28855_v45 = vand.u32 4294901760, %v28854_v52  ;;  %v28859_v52 = vand.u32 4294901760, %v28858_v7  ;;  %v28860_v44 = vld [vmem:[#allocation36_spill] sm:$0xff]  ;;  %v17905_v13 = vpack.c.bf16 %v23020_v36, %v23018_v15  ;;  %v28865_v36 = vld [vmem:[#allocation25_spill] sm:$0xff] }
 0x380   :  { %v6352_v2 = vsub.f32 %v23345_v23, %v27959_v62  ;;  %17778 = vmatpush3.bf16.msra.mxu0 %v17775_v49  ;;  %v13668_v28 = vadd.f32 %v13667_v8, %v13666_v26  ;;  %v6346_v46 = vand.u32 4294901760, %v6345_v9  ;;  %v28857_v62 = vand.u32 4294901760, %v28856_v43  ;;  %v28877_v7 = vld [vmem:[#allocation16_spill] sm:$0xff] }
 0x381   :  { %28853 = vst [vmem:[#allocation45_spill] sm:$0xff] %v23372_v32  ;;  %17780 = vmatprep.subr.bf16.mxu0 %v17779_v30  ;;  %17898 = vmatpush3.bf16.msra.mxu1 %v17897_v39  ;;  %v28861_v43 = vand.u32 4294901760, %v28860_v44  ;;  %v17907_v58 = vpack.c.bf16 %v23028_v50, %v23024_v41  ;;  %v17909_v39 = vpack.c.bf16 %v23037_v10, %v23030_v4  ;;  %v28866_v4 = vld [vmem:[#allocation22_spill] sm:$0xff] }
 0x382   :  { %v6353_v33 = vand.u32 4294901760, %v6352_v2  ;;  %v17783_v23 = vpack.c.bf16 %v28857_v62, %v28855_v45  ;;  %v13625_v19 = vpop.f32.mrb[18].mxu0  ;;  %17900 = vmatprep.subr.bf16.mxu1 %v17899_v25  ;;  %v28862_v45 = vld [vmem:[#allocation30_spill] sm:$0xff]  ;;  %v17911_v15 = vpack.c.bf16 %v23044_v40, %v23041_v21  ;;  %v17913_v41 = vpack.c.bf16 %v23055_v20, %v23048_v0  ;;  %v28867_v0 = vld [vmem:[#allocation11_spill] sm:$0xff]  ;;  %v28869_v20 = vld [vmem:[#allocation37_spill] sm:$0xff] }
 0x383   :  { %v13626_v63 = vpop.f32.mrb[19].mxu0  ;;  %v17787_v62 = vpack.c.bf16 %v28861_v43, %v28859_v52  ;;  %v17915_v50 = vpack.c.bf16 %v23059_v55, %v23057_v24  ;;  %v17917_v10 = vpack.c.bf16 %v23184_v35, %v23073_v34  ;;  %v28870_v55 = vld [vmem:[#allocation39_spill] sm:$0xff]  ;;  %v28871_v34 = vld [vmem:[#allocation17_spill] sm:$0xff] }
 0x384   :  { %v23390_v32 = vpack.c.bf16 %v6353_v33, %v6346_v46  ;;  %v13627_v49 = vadd.f32 %v13626_v63, %v13625_v19  ;;  %17782 = vmatpush3.bf16.msra.mxu0 %v17779_v30  ;;  %v28864_v46 = vld [vmem:[#allocation21_spill] sm:$0xff]  ;;  %v28874_v33 = vld [vmem:[#allocation23_spill] sm:$0xff] }
 0x385   :  { %17784 = vmatprep.subr.bf16.mxu0 %v17783_v23  ;;  %17902 = vmatpush3.bf16.msra.mxu1 %v17901_v27  ;;  %v28875_v27 = vld [vmem:[#allocation43_spill] sm:$0xff] }
 0x386   :  { %v3673_v26 = vadd.f32 %v13627_v49, %v28862_v45  ;;  %v13628_v9 = vpop.f32.mrb[20].mxu0  ;;  %17904 = vmatprep.subr.bf16.mxu1 %v17903_v37  ;;  %v28876_v37 = vld [vmem:[#allocation26_spill] sm:$0xff] }
 0x387   :  { %v13629_v2 = vpop.f32.mrb[21].mxu0 }
 0x388   :  { %v3914_v38 = vadd.f32 %v13665_v31, %v3673_v26  ;;  %17786 = vmatpush3.bf16.msra.mxu0 %v17783_v23  ;;  %v13630_v30 = vadd.f32 %v13629_v2, %v13628_v9  ;;  %v28872_v23 = vld [vmem:[#allocation40_spill] sm:$0xff]  ;;  %v28879_v9 = vld [vmem:[#allocation47_spill] sm:$0xff]  ;;  %v28880_v2 = vand.u32 4294901760, %v23324_v17 }
 0x389   :  { %17788 = vmatprep.subr.bf16.mxu0 %v17787_v62  ;;  %17906 = vmatpush3.bf16.msra.mxu1 %v17905_v13  ;;  %v28881_v13 = vand.u32 4294901760, %v23326_v6  ;;  %v28886_v6 = vld [vmem:[#allocation50_spill] sm:$0xff]  ;;  %v28887_v17 = vld [vmem:[#allocation51_spill] sm:$0xff] }
 0x38a   :  { %v3683_v8 = vadd.f32 %v13630_v30, %v28863_v57  ;;  %17908 = vmatprep.subr.bf16.mxu1 %v17907_v58 }
 0x38b   :  { %v23450_v30 = vpack.c.bf16 %v28881_v13, %v28880_v2 }
 0x38c   :  { %17790 = vmatpush3.bf16.msra.mxu0 %v17787_v62  ;;  %v3920_v25 = vadd.f32 %v13668_v28, %v3683_v8  ;;  %v28873_v28 = vld [vmem:[#allocation41_spill] sm:$0xff]  ;;  %v28878_v62 = vld [vmem:[#allocation44_spill] sm:$0xff] }
 0x38d   :  { %17792 = vmatprep.subr.bf16.mxu0 %v28864_v46  ;;  %17910 = vmatpush3.bf16.msra.mxu1 %v17909_v39  ;;  %v28883_v8 = vld [vmem:[#allocation49_spill] sm:$0xff]  ;;  %v28884_v39 = vand.u32 4294901760, %v23347_v16 }
 0x38e   :  { %17912 = vmatprep.subr.bf16.mxu1 %v17911_v15 }
 0x38f   :  { %16004 = vmatmul.mubr.f32.vlgmr.msra.gmra.mrb[30].mxu0 %v28865_v36 }
 0x390   :  { %17794 = vmatpush3.bf16.msra.mxu0 %v28864_v46  ;;  %16038 = vmatprep.mubr.f32.mxu0 %v22570_v22  ;;  %v28868_v22 = vld [vmem:[#allocation18_spill] sm:$0xff]  ;;  %v28885_v46 = vand.u32 4294901760, %v23349_v11 }
 0x391   :  { %17796 = vmatprep.subr.bf16.mxu0 %v28866_v4  ;;  %17914 = vmatpush3.bf16.msra.mxu1 %v17913_v41  ;;  %v28890_v41 = vld [vmem:[#allocation38_spill] sm:$0xff] }
 0x392   :  { %17916 = vmatprep.subr.bf16.mxu1 %v17915_v50  ;;  %v23459_v15 = vpack.c.bf16 %v28885_v46, %v28884_v39 }
 0x394   :  { %17798 = vmatpush3.bf16.msra.mxu0 %v28866_v4 }
 0x395   :  { %17800 = vmatprep.subr.bf16.mxu0 %v22636_v61  ;;  %17918 = vmatpush3.bf16.msra.mxu1 %v17917_v10 }
 0x396   :  { %17920 = vmatprep.subr.bf16.mxu1 %v28867_v0 }
 0x398   :  { %17802 = vmatpush3.bf16.msra.mxu0 %v22636_v61  ;;  %5717 = vmatmul.mubr.f32.vlgmr.msra.gmra.mrb[76].mxu1 %v28382_v1 }
 0x399   :  { %17804 = vmatprep.subr.bf16.mxu0 %v28868_v22  ;;  %17922 = vmatpush3.bf16.msra.mxu1 %v28869_v20 }
 0x39a   :  { %v13739_v21 = vpop.f32.mrb[60].mxu1  ;;  %5721 = vmatprep.mubr.f32.mxu1 %v28382_v1  ;;  %17924 = vmatprep.subr.bf16.mxu1 %v28870_v55 }
 0x39b   :  { %v13740_v40 = vpop.f32.mrb[61].mxu1 }
 0x39c   :  { %17806 = vmatpush3.bf16.msra.mxu0 %v28868_v22  ;;  %v13741_v24 = vadd.f32 %v13740_v40, %v13739_v21  ;;  %5722 = vmatmul.mubr.f32.gmra.mrb[78].mxu1 %v28382_v1 }
 0x39d   :  { %17808 = vmatprep.subr.bf16.mxu0 %v28871_v34  ;;  %17926 = vmatpush3.bf16.msra.mxu1 %v28872_v23 }
 0x39e   :  { %v13742_v61 = vpop.f32.mrb[62].mxu1  ;;  %5823 = vmatprep.mubr.f32.mxu1 %v28382_v1  ;;  %17928 = vmatprep.subr.bf16.mxu1 %v28873_v28 }
 0x39f   :  { %v13743_v35 = vpop.f32.mrb[63].mxu1 }
 0x3a0   :  { %17810 = vmatpush3.bf16.msra.mxu0 %v28871_v34  ;;  %v13744_v31 = vadd.f32 %v13743_v35, %v13742_v61  ;;  %v23518_v61 = vld [vmem:[#allocation2 + $0x620] sm:$0xff]  ;;  %v23520_v35 = vld [vmem:[#allocation2 + $0x628] sm:$0xff] }
 0x3a1   :  { %17812 = vmatprep.subr.bf16.mxu0 %v28874_v33  ;;  %17930 = vmatpush3.bf16.msra.mxu1 %v28875_v27 }
 0x3a2   :  { %v13701_v19 = vpop.f32.mrb[22].mxu0  ;;  %17932 = vmatprep.subr.bf16.mxu1 %v28876_v37 }
 0x3a3   :  { %v13702_v63 = vpop.f32.mrb[23].mxu0 }
 0x3a4   :  { %v13703_v49 = vadd.f32 %v13702_v63, %v13701_v19  ;;  %17814 = vmatpush3.bf16.msra.mxu0 %v28874_v33  ;;  %v6125_v19 = vand.u32 4294901760, %v23518_v61  ;;  %v6128_v63 = vand.u32 4294901760, %v23520_v35 }
 0x3a5   :  { %17816 = vmatprep.subr.bf16.mxu0 %v28877_v7  ;;  %17934 = vmatpush3.bf16.msra.mxu1 %v28878_v62 }
 0x3a6   :  { %v4056_v52 = vadd.f32 %v13703_v49, %v3914_v38  ;;  %v13704_v44 = vpop.f32.mrb[24].mxu0  ;;  %17936 = vmatprep.subr.bf16.mxu1 %v28879_v9  ;;  %v28882_v38 = vld [vmem:[#allocation48_spill] sm:$0xff] }
 0x3a7   :  { %v13705_v43 = vpop.f32.mrb[25].mxu0 }
 0x3a8   :  { %v4168_v45 = vadd.f32 %v13741_v24, %v4056_v52  ;;  %v13706_v26 = vadd.f32 %v13705_v43, %v13704_v44  ;;  %17818 = vmatpush3.bf16.msra.mxu0 %v28877_v7  ;;  %v27974_v43 = vand.u32 4294901760, %v23367_v12 }
 0x3a9   :  { %17820 = vmatprep.subr.bf16.mxu0 %v22748_v48  ;;  %17938 = vmatpush3.bf16.msra.mxu1 %v28882_v38 }
 0x3aa   :  { %v4063_v58 = vadd.f32 %v13706_v26, %v3920_v25  ;;  %17940 = vmatprep.subr.bf16.mxu1 %v28883_v8  ;;  %v28888_v25 = vld [vmem:[#allocation12_spill] sm:$0xff]  ;;  %v23566_v26 = vsub.f32 %v23518_v61, %v6125_v19  ;;  %v6233_v46 = vsub.f32 %v23367_v12, %v27974_v43 }
 0x3ac   :  { %v4176_v57 = vadd.f32 %v13744_v31, %v4063_v58  ;;  %17822 = vmatpush3.bf16.msra.mxu0 %v22748_v48  ;;  %v28889_v48 = vld [vmem:[#allocation19_spill] sm:$0xff]  ;;  %28895 = vst [vmem:[#allocation31_spill] sm:$0xff] %v23566_v26 }
 0x3ad   :  { %18016 = vmatprep.subr.bf16.mxu0 %v23450_v30  ;;  %17942 = vmatpush3.bf16.msra.mxu1 %v28886_v6 }
 0x3ae   :  { %17944 = vmatprep.subr.bf16.mxu1 %v28887_v17 }
 0x3af   :  { %16039 = vmatmul.mubr.f32.vlgmr.msra.gmra.mrb[30].mxu0 %v28865_v36 }
 0x3b0   :  { %18018 = vmatpush3.bf16.msra.mxu0 %v23459_v15 }
 0x3b1   :  { %17946 = vmatpush3.bf16.msra.mxu1 %v28888_v25 }
 0x3b2   :  { %17948 = vmatprep.subr.bf16.mxu1 %v28889_v48 }
 0x3b5   :  { %17950 = vmatpush3.bf16.msra.mxu1 %v28890_v41 }
 0x3b6   :  { %17952 = vmatprep.subr.bf16.mxu1 %v23238_v47 }
 0x3b8   :  { %5824 = vmatmul.mubr.f32.vlgmr.msra.gmra.mrb[80].mxu1 %v28382_v1 }
 0x3b9   :  { %17954 = vmatpush3.bf16.msra.mxu1 %v23244_v14  ;;  %5828 = vmatprep.mubr.f32.mxu1 %v28382_v1 }
 0x3ba   :  { %17956 = vmatprep.subr.bf16.mxu1 %v23250_v42 }
 0x3bb   :  { %v13815_v16 = vpop.f32.mrb[64].mxu1 }
 0x3bc   :  { %v13816_v11 = vpop.f32.mrb[65].mxu1  ;;  %5829 = vmatmul.mubr.f32.gmra.mrb[82].mxu1 %v28382_v1 }
 0x3bd   :  { %v13817_v36 = vadd.f32 %v13816_v11, %v13815_v16  ;;  %17958 = vmatpush3.bf16.msra.mxu1 %v23256_v56  ;;  %5994 = vmatprep.mubr.f32.mxu1 %v28382_v1  ;;  %v27963_v16 = vand.u32 4294901760, %v23566_v26 }
 0x3be   :  { %17960 = vmatprep.subr.bf16.mxu1 %v23262_v5 }
 0x3bf   :  { %v13818_v50 = vpop.f32.mrb[66].mxu1 }
 0x3c0   :  { %v13819_v4 = vpop.f32.mrb[67].mxu1 }
 0x3c1   :  { %v13820_v47 = vadd.f32 %v13819_v4, %v13818_v50  ;;  %17962 = vmatpush3.bf16.msra.mxu1 %v23268_v53  ;;  %v28891_v53 = vld [vmem:[#allocation24_spill] sm:$0xff] }
 0x3c2   :  { %v13777_v10 = vpop.f32.mrb[26].mxu0  ;;  %17964 = vmatprep.subr.bf16.mxu1 %v23274_v59  ;;  %v28892_v59 = vld [vmem:[#allocation42_spill] sm:$0xff] }
 0x3c3   :  { %v13778_v22 = vpop.f32.mrb[27].mxu0 }
 0x3c4   :  { %v13779_v14 = vadd.f32 %v13778_v22, %v13777_v10  ;;  %v6234_v10 = vand.u32 4294901760, %v6233_v46 }
 0x3c5   :  { %17966 = vmatpush3.bf16.msra.mxu1 %v23280_v3  ;;  %v28893_v3 = vld [vmem:[#allocation27_spill] sm:$0xff] }
 0x3c6   :  { %v4343_v42 = vadd.f32 %v13779_v14, %v4168_v45  ;;  %v13780_v21 = vpop.f32.mrb[28].mxu0  ;;  %17968 = vmatprep.subr.bf16.mxu1 %v23286_v51  ;;  %v23502_v51 = vld [vmem:[#allocation2 + $0x690] sm:$0xff]  ;;  %v6261_v14 = vsub.f32 %v23566_v26, %v27963_v16  ;;  %v23619_v16 = vld [vmem:[#allocation2 + $0x6b8] sm:$0xff] }
 0x3c7   :  { %v13781_v40 = vpop.f32.mrb[29].mxu0 }
 0x3c8   :  { %v13782_v24 = vadd.f32 %v13781_v40, %v13780_v21  ;;  %v23482_v56 = vadd.f32 %v13817_v36, %v4343_v42 }
 0x3c9   :  { %17970 = vmatpush3.bf16.msra.mxu1 %v23292_v60  ;;  %v23504_v60 = vld [vmem:[#allocation2 + $0x698] sm:$0xff] }
 0x3ca   :  { %v4349_v34 = vadd.f32 %v13782_v24, %v4176_v57  ;;  %17972 = vmatprep.subr.bf16.mxu1 %v23298_v29  ;;  %v23506_v29 = vld [vmem:[#allocation2 + $0x610] sm:$0xff] }
 0x3cc   :  { %v23486_v5 = vadd.f32 %v13820_v47, %v4349_v34 }
 0x3cd   :  { %17974 = vmatpush3.bf16.msra.mxu1 %v28891_v53 }
 0x3ce   :  { %17976 = vmatprep.subr.bf16.mxu1 %v23310_v18  ;;  %v23509_v18 = vld [vmem:[#allocation2 + $0x618] sm:$0xff] }
 0x3cf   :  { %v6122_v31 = vand.u32 4294901760, %v23509_v18 }
 0x3d1   :  { %17978 = vmatpush3.bf16.msra.mxu1 %v23316_v54  ;;  %v23511_v54 = vld [vmem:[#allocation2 + $0x6a0] sm:$0xff]  ;;  %v23548_v7 = vsub.f32 %v23509_v18, %v6122_v31 }
 0x3d2   :  { %17980 = vmatprep.subr.bf16.mxu1 %v28892_v59 }
 0x3d5   :  { %17982 = vmatpush3.bf16.msra.mxu1 %v28893_v3  ;;  %v6262_v3 = vand.u32 4294901760, %v6261_v14 }
 0x3d6   :  { %17984 = vmatprep.subr.bf16.mxu1 %v28867_v0  ;;  %v23513_v0 = vld [vmem:[#allocation2 + $0x6a8] sm:$0xff] }
 0x3d7   :  { %v6176_v33 = vand.u32 4294901760, %v23513_v0 }
 0x3d8   :  { %5995 = vmatmul.mubr.f32.vlgmr.msra.gmra.mrb[84].mxu1 %v28382_v1 }
 0x3d9   :  { %17986 = vmatpush3.bf16.msra.mxu1 %v28869_v20  ;;  %5999 = vmatprep.mubr.f32.mxu1 %v28382_v1  ;;  %v6167_v20 = vand.u32 4294901760, %v23502_v51  ;;  %v23558_v44 = vsub.f32 %v23513_v0, %v6176_v33 }
 0x3da   :  { %17988 = vmatprep.subr.bf16.mxu1 %v28870_v55  ;;  %v6170_v55 = vand.u32 4294901760, %v23504_v60 }
 0x3db   :  { %v27965_v39 = vand.u32 4294901760, %v23558_v44 }
 0x3dc   :  { %6000 = vmatmul.mubr.f32.gmra.mrb[86].mxu1 %v28382_v1  ;;  %v23538_v49 = vsub.f32 %v23504_v60, %v6170_v55 }
 0x3dd   :  { %17990 = vmatpush3.bf16.msra.mxu1 %v28872_v23  ;;  %6101 = vmatprep.mubr.f32.mxu1 %v28382_v1  ;;  %v6119_v23 = vand.u32 4294901760, %v23506_v29  ;;  %v6380_v47 = vsub.f32 %v23558_v44, %v27965_v39 }
 0x3de   :  { %17992 = vmatprep.subr.bf16.mxu1 %v28873_v28  ;;  %v6173_v28 = vand.u32 4294901760, %v23511_v54  ;;  %v27969_v13 = vand.u32 4294901760, %v23538_v49 }
 0x3df   :  { %v6381_v59 = vand.u32 4294901760, %v6380_v47 }
 0x3e0   :  { %v23553_v52 = vsub.f32 %v23511_v54, %v6173_v28 }
 0x3e1   :  { %17994 = vmatpush3.bf16.msra.mxu1 %v28875_v27  ;;  %v23533_v27 = vsub.f32 %v23502_v51, %v6167_v20  ;;  %v23729_v51 = vpack.c.bf16 %v6122_v31, %v6119_v23 }
 0x3e2   :  { %17996 = vmatprep.subr.bf16.mxu1 %v28876_v37  ;;  %v23543_v37 = vsub.f32 %v23506_v29, %v6119_v23  ;;  %v27966_v57 = vand.u32 4294901760, %v23553_v52 }
 0x3e3   :  { %v27970_v2 = vand.u32 4294901760, %v23533_v27 }
 0x3e4   :  { %v27968_v58 = vand.u32 4294901760, %v23543_v37 }
 0x3e5   :  { %17998 = vmatpush3.bf16.msra.mxu1 %v28878_v62  ;;  %v28894_v62 = vld [vmem:[#allocation45_spill] sm:$0xff]  ;;  %v6359_v36 = vsub.f32 %v23533_v27, %v27970_v2 }
 0x3e6   :  { %18000 = vmatprep.subr.bf16.mxu1 %v28879_v9  ;;  %v27973_v45 = vand.u32 4294901760, %v28894_v62  ;;  %v23571_v9 = vsub.f32 %v23520_v35, %v6128_v63  ;;  %v6247_v50 = vsub.f32 %v23543_v37, %v27968_v58 }
 0x3e7   :  { %v6360_v21 = vand.u32 4294901760, %v6359_v36  ;;  %v27981_v36 = vand.u32 4294901760, %v23619_v16 }
 0x3e8   :  { %28896 = vst [vmem:[#allocation32_spill] sm:$0xff] %v23571_v9  ;;  %v27964_v11 = vand.u32 4294901760, %v23571_v9  ;;  %v6248_v24 = vand.u32 4294901760, %v6247_v50  ;;  %v23626_v50 = vld [vmem:[#allocation2 + $0x638] sm:$0xff] }
 0x3e9   :  { %18002 = vmatpush3.bf16.msra.mxu1 %v28882_v38  ;;  %v27967_v38 = vand.u32 4294901760, %v23548_v7  ;;  %v28900_v35 = vand.u32 4294901760, %v23626_v50 }
 0x3ea   :  { %18004 = vmatprep.subr.bf16.mxu1 %v28883_v8  ;;  %v6240_v8 = vsub.f32 %v28894_v62, %v27973_v45  ;;  %v6268_v42 = vsub.f32 %v23571_v9, %v27964_v11 }
 0x3eb   :  { %v6254_v4 = vsub.f32 %v23548_v7, %v27967_v38 }
 0x3ec   :  { %v6241_v22 = vand.u32 4294901760, %v6240_v8  ;;  %v6269_v46 = vand.u32 4294901760, %v6268_v42  ;;  %v23617_v8 = vld [vmem:[#allocation2 + $0x6b0] sm:$0xff] }
 0x3ed   :  { %18006 = vmatpush3.bf16.msra.mxu1 %v28886_v6  ;;  %v6366_v6 = vsub.f32 %v23538_v49, %v27969_v13  ;;  %v6255_v34 = vand.u32 4294901760, %v6254_v4  ;;  %v27978_v4 = vand.u32 4294901760, %v23626_v50 }
 0x3ee   :  { %18008 = vmatprep.subr.bf16.mxu1 %v28887_v17  ;;  %v6373_v17 = vsub.f32 %v23553_v52, %v27966_v57 }
 0x3ef   :  { %v6367_v40 = vand.u32 4294901760, %v6366_v6  ;;  %v23624_v6 = vld [vmem:[#allocation2 + $0x630] sm:$0xff]  ;;  %v23649_v42 = vsub.f32 %v23626_v50, %v27978_v4  ;;  %v23797_v50 = vld [vmem:[#allocation2 + $0x668] sm:$0xff] }
 0x3f0   :  { %v6374_v53 = vand.u32 4294901760, %v6373_v17  ;;  %v18053_v17 = vpack.c.bf16 %v6255_v34, %v6248_v24  ;;  %v28899_v61 = vand.u32 4294901760, %v23624_v6 }
 0x3f1   :  { %18010 = vmatpush3.bf16.msra.mxu1 %v28888_v25  ;;  %v18049_v25 = vpack.c.bf16 %v6241_v22, %v6234_v10  ;;  %v18051_v11 = vpack.c.bf16 %v6367_v40, %v6360_v21  ;;  %v23639_v10 = vsub.f32 %v23619_v16, %v27981_v36  ;;  %v18057_v22 = vpack.c.bf16 %v6269_v46, %v6262_v3  ;;  %v23651_v21 = vld [vmem:[#allocation2 + $0x6c0] sm:$0xff]  ;;  %v23653_v40 = vld [vmem:[#allocation2 + $0x6c8] sm:$0xff] }
 0x3f2   :  { %18012 = vmatprep.subr.bf16.mxu1 %v28889_v48  ;;  %v27983_v48 = vand.u32 4294901760, %v23617_v8  ;;  %v18055_v47 = vpack.c.bf16 %v6381_v59, %v6374_v53  ;;  %v27976_v53 = vand.u32 4294901760, %v23651_v21  ;;  %v27975_v59 = vand.u32 4294901760, %v23653_v40  ;;  %v23662_v3 = vld [vmem:[#allocation2 + $0x648] sm:$0xff] }
 0x3f3   :  { %v27972_v34 = vand.u32 4294901760, %v23639_v10  ;;  %v27980_v39 = vand.u32 4294901760, %v23649_v42 }
 0x3f4   :  { %v23677_v13 = vsub.f32 %v23651_v21, %v27976_v53  ;;  %v23682_v2 = vsub.f32 %v23653_v40, %v27975_v59 }
 0x3f5   :  { %18014 = vmatpush3.bf16.msra.mxu1 %v28890_v41  ;;  %v27979_v41 = vand.u32 4294901760, %v23624_v6  ;;  %v6394_v58 = vsub.f32 %v23639_v10, %v27972_v34  ;;  %v6282_v34 = vsub.f32 %v23649_v42, %v27980_v39 }
 0x3f6   :  { %18048 = vmatprep.subr.bf16.mxu1 %v23390_v32  ;;  %v23634_v32 = vsub.f32 %v23617_v8, %v27983_v48  ;;  %v27992_v53 = vand.u32 4294901760, %v23677_v13  ;;  %v23707_v48 = vld [vmem:[#allocation2 + $0x6d8] sm:$0xff] }
 0x3f7   :  { %v23644_v14 = vsub.f32 %v23624_v6, %v27979_v41  ;;  %v6395_v59 = vand.u32 4294901760, %v6394_v58  ;;  %v6283_v41 = vand.u32 4294901760, %v6282_v34  ;;  %v23721_v34 = vld [vmem:[#allocation2 + $0x650] sm:$0xff]  ;;  %v6194_v18 = vand.u32 4294901760, %v23707_v48 }
 0x3f8   :  { %6102 = vmatmul.mubr.f32.vlgmr.msra.gmra.mrb[88].mxu1 %v28382_v1  ;;  %v27971_v24 = vand.u32 4294901760, %v23634_v32 }
 0x3f9   :  { %18050 = vmatpush3.bf16.msra.mxu1 %v18049_v25  ;;  %6106 = vmatprep.mubr.f32.mxu1 %v28382_v1  ;;  %v23660_v25 = vld [vmem:[#allocation2 + $0x640] sm:$0xff]  ;;  %v27977_v46 = vand.u32 4294901760, %v23644_v14 }
 0x3fa   :  { %18052 = vmatprep.subr.bf16.mxu1 %v18051_v11  ;;  %v27982_v57 = vand.u32 4294901760, %v23660_v25  ;;  %v27984_v11 = vand.u32 4294901760, %v23662_v3  ;;  %v6387_v38 = vsub.f32 %v23634_v32, %v27971_v24 }
 0x3fb   :  { %v6275_v24 = vsub.f32 %v23644_v14, %v27977_v46  ;;  %v27990_v46 = vand.u32 4294901760, %v23682_v2 }
 0x3fc   :  { %6107 = vmatmul.mubr.f32.gmra.mrb[90].mxu1 %v28382_v1  ;;  %v23694_v45 = vsub.f32 %v23660_v25, %v27982_v57  ;;  %v23699_v43 = vsub.f32 %v23662_v3, %v27984_v11  ;;  %v23705_v57 = vld [vmem:[#allocation2 + $0x6d0] sm:$0xff]  ;;  %v23723_v11 = vld [vmem:[#allocation2 + $0x658] sm:$0xff] }
 0x3fd   :  { %18054 = vmatpush3.bf16.msra.mxu1 %v18053_v17  ;;  %v6388_v17 = vand.u32 4294901760, %v6387_v38  ;;  %v6276_v4 = vand.u32 4294901760, %v6275_v24  ;;  %v23713_v38 = vpack.c.bf16 %v6170_v55, %v6167_v20  ;;  %v6408_v24 = vsub.f32 %v23682_v2, %v27990_v46 }
 0x3fe   :  { %18056 = vmatprep.subr.bf16.mxu1 %v18055_v47  ;;  %v27986_v39 = vand.u32 4294901760, %v23694_v45  ;;  %v27985_v36 = vand.u32 4294901760, %v23699_v43  ;;  %v6401_v47 = vsub.f32 %v23677_v13, %v27992_v53  ;;  %v6191_v29 = vand.u32 4294901760, %v23705_v57 }
 0x3ff   :  { %v18059_v58 = vpack.c.bf16 %v6395_v59, %v6388_v17  ;;  %v18061_v60 = vpack.c.bf16 %v6283_v41, %v6276_v4  ;;  %18020 = vmatprep.subr.bf16.mxu0 %v23713_v38  ;;  %v27994_v41 = vand.u32 4294901760, %v23721_v34  ;;  %v27993_v4 = vand.u32 4294901760, %v23723_v11  ;;  %v23743_v17 = vld [vmem:[#allocation2 + $0x6e0] sm:$0xff] }
 0x400   :  { %v6289_v20 = vsub.f32 %v23694_v45, %v27986_v39  ;;  %v6296_v55 = vsub.f32 %v23699_v43, %v27985_v36  ;;  %v6402_v59 = vand.u32 4294901760, %v6401_v47  ;;  %18022 = vmatpush3.bf16.msra.mxu0 %v23729_v51  ;;  %v23763_v39 = vld [vmem:[#allocation2 + $0x6e8] sm:$0xff]  ;;  %v23766_v0 = vsub.f32 %v23705_v57, %v6191_v29 }
 0x401   :  { %18058 = vmatpush3.bf16.msra.mxu1 %v18057_v22  ;;  %v6409_v22 = vand.u32 4294901760, %v6408_v24  ;;  %v23755_v24 = vpack.c.bf16 %v6128_v63, %v6125_v19  ;;  %v23777_v19 = vld [vmem:[#allocation2 + $0x660] sm:$0xff]  ;;  %v23783_v63 = vsub.f32 %v23721_v34, %v27994_v41  ;;  %v23788_v57 = vsub.f32 %v23723_v11, %v27993_v4 }
 0x402   :  { %18060 = vmatprep.subr.bf16.mxu1 %v18059_v58  ;;  %v6290_v23 = vand.u32 4294901760, %v6289_v20  ;;  %v6297_v31 = vand.u32 4294901760, %v6296_v55  ;;  %v23749_v58 = vpack.c.bf16 %v6176_v33, %v6173_v28  ;;  %v28897_v20 = vand.u32 4294901760, %v23617_v8 }
 0x403   :  { %v18063_v47 = vpack.c.bf16 %v6409_v22, %v6402_v59  ;;  %v28898_v55 = vand.u32 4294901760, %v23619_v16  ;;  %v23769_v28 = vsub.f32 %v23707_v48, %v6194_v18  ;;  %v23775_v33 = vpack.c.bf16 %v28900_v35, %v28899_v61 }
 0x404   :  { %v18065_v54 = vpack.c.bf16 %v6297_v31, %v6290_v23  ;;  %18024 = vmatprep.subr.bf16.mxu0 %v23749_v58  ;;  %v28902_v16 = vand.u32 4294901760, %v23651_v21  ;;  %v28903_v8 = vand.u32 4294901760, %v23653_v40  ;;  %v6197_v6 = vand.u32 4294901760, %v23743_v17 }
 0x405   :  { %v23761_v36 = vpack.c.bf16 %v28898_v55, %v28897_v20  ;;  %18062 = vmatpush3.bf16.msra.mxu1 %v18061_v60  ;;  %28901 = vst [vmem:[#allocation33_spill] sm:$0xff] %v23775_v33  ;;  %18026 = vmatpush3.bf16.msra.mxu0 %v23755_v24  ;;  %v27988_v60 = vand.u32 4294901760, %v23766_v0  ;;  %v27987_v59 = vand.u32 4294901760, %v23769_v28  ;;  %v6200_v22 = vand.u32 4294901760, %v23763_v39 }
 0x406   :  { %18064 = vmatprep.subr.bf16.mxu1 %v18063_v47  ;;  %v23794_v48 = vpack.c.bf16 %v28903_v8, %v28902_v16  ;;  %v28905_v23 = vand.u32 4294901760, %v23660_v25  ;;  %v28906_v21 = vand.u32 4294901760, %v23662_v3  ;;  %v27989_v40 = vand.u32 4294901760, %v23783_v63 }
 0x407   :  { %18028 = vmatprep.subr.bf16.mxu0 %v23761_v36  ;;  %v27991_v47 = vand.u32 4294901760, %v23788_v57  ;;  %v23813_v20 = vsub.f32 %v23743_v17, %v6197_v6  ;;  %v6149_v55 = vand.u32 4294901760, %v23777_v19  ;;  %v6415_v25 = vsub.f32 %v23766_v0, %v27988_v60  ;;  %v5220_v60 = vld [vmem:[#allocation2 + $0x6f0] sm:$0xff] }
 0x408   :  { %28904 = vst [vmem:[#allocation34_spill] sm:$0xff] %v23794_v48  ;;  %v23807_v31 = vpack.c.bf16 %v28906_v21, %v28905_v23  ;;  %v6422_v3 = vsub.f32 %v23769_v28, %v27987_v59  ;;  %v23823_v61 = vsub.f32 %v23763_v39, %v6200_v22  ;;  %v6152_v35 = vand.u32 4294901760, %v23797_v50 }
 0x409   :  { %18066 = vmatpush3.bf16.msra.mxu1 %v18065_v54  ;;  %v6303_v17 = vsub.f32 %v23783_v63, %v27989_v40  ;;  %v6310_v54 = vsub.f32 %v23788_v57, %v27991_v47  ;;  %v27997_v16 = vand.u32 4294901760, %v23813_v20  ;;  %v23834_v8 = vsub.f32 %v23777_v19, %v6149_v55  ;;  %18030 = vmatpush3.bf16.msra.mxu0 %v23775_v33 }
 0x40a   :  { %28907 = vst [vmem:[#allocation20_spill] sm:$0xff] %v23807_v31  ;;  %v6416_v23 = vand.u32 4294901760, %v6415_v25  ;;  %v6423_v21 = vand.u32 4294901760, %v6422_v3  ;;  %v28003_v39 = vand.u32 4294901760, %v23823_v61  ;;  %v23839_v59 = vsub.f32 %v23797_v50, %v6152_v35  ;;  %18032 = vmatprep.subr.bf16.mxu0 %v23794_v48  ;;  %v5221_v25 = vld [vmem:[#allocation2 + $0x6f8] sm:$0xff] }
 0x40b   :  { %v6304_v40 = vand.u32 4294901760, %v6303_v17  ;;  %v6311_v46 = vand.u32 4294901760, %v6310_v54  ;;  %v6429_v47 = vsub.f32 %v23813_v20, %v27997_v16  ;;  %v28002_v19 = vand.u32 4294901760, %v23834_v8  ;;  %v5204_v17 = vld [vmem:[#allocation2 + $0x670] sm:$0xff]  ;;  %v5205_v54 = vld [vmem:[#allocation2 + $0x678] sm:$0xff] }
 0x40c   :  { %v18067_v3 = vpack.c.bf16 %v6423_v21, %v6416_v23  ;;  %v6436_v53 = vsub.f32 %v23823_v61, %v28003_v39  ;;  %v28006_v50 = vand.u32 4294901760, %v23839_v59  ;;  %v23850_v4 = vpack.c.bf16 %v6194_v18, %v6191_v29 }
 0x40d   :  { %v18069_v41 = vpack.c.bf16 %v6311_v46, %v6304_v40  ;;  %v6430_v48 = vand.u32 4294901760, %v6429_v47  ;;  %v6317_v16 = vsub.f32 %v23834_v8, %v28002_v19  ;;  %v6203_v9 = vand.u32 4294901760, %v5220_v60  ;;  %18034 = vmatpush3.bf16.msra.mxu0 %v23807_v31 }
 0x40e   :  { %18068 = vmatprep.subr.bf16.mxu1 %v18067_v3  ;;  %v6437_v26 = vand.u32 4294901760, %v6436_v53  ;;  %v6324_v23 = vsub.f32 %v23839_v59, %v28006_v50  ;;  %v6206_v21 = vand.u32 4294901760, %v5221_v25  ;;  %v28908_v29 = vand.u32 4294901760, %v23721_v34  ;;  %18036 = vmatprep.subr.bf16.mxu0 %v23850_v4 }
 0x40f   :  { %v28909_v18 = vand.u32 4294901760, %v23723_v11  ;;  %18070 = vmatpush3.bf16.msra.mxu1 %v18069_v41  ;;  %v6318_v40 = vand.u32 4294901760, %v6317_v16  ;;  %v23866_v47 = vsub.f32 %v5220_v60, %v6203_v9  ;;  %v6155_v53 = vand.u32 4294901760, %v5204_v17 }
 0x410   :  { %v6158_v3 = vand.u32 4294901760, %v5205_v54  ;;  %v18071_v19 = vpack.c.bf16 %v6437_v26, %v6430_v48  ;;  %v6325_v39 = vand.u32 4294901760, %v6324_v23  ;;  %v23868_v31 = vsub.f32 %v5221_v25, %v6206_v21 }
 0x411   :  { %v23863_v46 = vpack.c.bf16 %v28909_v18, %v28908_v29  ;;  %v23870_v50 = vpack.c.bf16 %v6200_v22, %v6197_v6  ;;  %v28012_v34 = vand.u32 4294901760, %v23866_v47  ;;  %v23873_v33 = vsub.f32 %v5204_v17, %v6155_v53 }
 0x412   :  { %v23875_v11 = vsub.f32 %v5205_v54, %v6158_v3  ;;  %18072 = vmatprep.subr.bf16.mxu1 %v18071_v19  ;;  %v18073_v41 = vpack.c.bf16 %v6325_v39, %v6318_v40  ;;  %v28011_v16 = vand.u32 4294901760, %v23868_v31  ;;  %v23888_v22 = vpack.c.bf16 %v6152_v35, %v6149_v55  ;;  %v28910_v40 = vld [vmem:[#allocation28_spill] sm:$0xff] }
 0x413   :  { %18038 = vmatpush3.bf16.msra.mxu0 %v23863_v46  ;;  %v6443_v26 = vsub.f32 %v23866_v47, %v28012_v34  ;;  %v28010_v48 = vand.u32 4294901760, %v23873_v33  ;;  %v23897_v54 = vpack.c.bf16 %v6206_v21, %v6203_v9  ;;  %v23899_v18 = vpack.c.bf16 %v6158_v3, %v6155_v53  ;;  %v28917_v53 = vld [vmem:[#allocation34_spill] sm:$0xff] }
 0x414   :  { %v28009_v6 = vand.u32 4294901760, %v23875_v11  ;;  %18040 = vmatprep.subr.bf16.mxu0 %v23870_v50  ;;  %18074 = vmatpush3.bf16.msra.mxu1 %v18073_v41  ;;  %v6450_v60 = vsub.f32 %v23868_v31, %v28011_v16  ;;  %v28911_v41 = vld [vmem:[#allocation29_spill] sm:$0xff]  ;;  %v18091_v9 = vpack.c.bf16 %v23639_v10, %v23634_v32  ;;  %v18093_v21 = vpack.c.bf16 %v23649_v42, %v23644_v14 }
 0x415   :  { %v6444_v39 = vand.u32 4294901760, %v6443_v26  ;;  %v6331_v19 = vsub.f32 %v23873_v33, %v28010_v48  ;;  %v18079_v26 = vpack.c.bf16 %v28911_v41, %v28910_v40  ;;  %v18085_v3 = vpack.c.bf16 %v23548_v7, %v23543_v37 }
 0x416   :  { %v6338_v25 = vsub.f32 %v23875_v11, %v28009_v6  ;;  %v6451_v17 = vand.u32 4294901760, %v6450_v60 }
 0x417   :  { %18042 = vmatpush3.bf16.msra.mxu0 %v23888_v22  ;;  %v6332_v23 = vand.u32 4294901760, %v6331_v19 }
 0x418   :  { %v6339_v29 = vand.u32 4294901760, %v6338_v25  ;;  %v18075_v55 = vpack.c.bf16 %v6451_v17, %v6444_v39  ;;  %18044 = vmatprep.subr.bf16.mxu0 %v23897_v54  ;;  %v18083_v39 = vpack.c.bf16 %v23538_v49, %v23533_v27  ;;  %v7724_v25 = vld [vmem:[#allocation2 + $0x838] sm:$0xff] }
 0x41a   :  { %v18077_v35 = vpack.c.bf16 %v6339_v29, %v6332_v23  ;;  %18076 = vmatprep.subr.bf16.mxu1 %v18075_v55 }
 0x41b   :  { %18046 = vmatpush3.bf16.msra.mxu0 %v23899_v18 }
 0x41c   :  { %18078 = vmatpush3.bf16.msra.mxu1 %v18077_v35  ;;  %18080 = vmatprep.subr.bf16.mxu0 %v18079_v26 }
 0x41d   :  { %18112 = vmatprep.subr.bf16.mxu1 %v23450_v30 }
 0x482   :  { %v16040_v29 = vpop.f32.mrb[30].mxu0 }
 0x483   :  { %v19553_v55 = vadd.f32 %v16040_v29, %v23486_v5  ;;  %v5135_v35 = vpop.f32.mrb[31].mxu0  ;;  %v7723_v29 = vld [vmem:[#allocation2 + $0x830] sm:$0xff] }
 0x484   :  { %v19554_v26 = vadd.f32 %v5135_v35, %v23482_v56 }
 0x485   :  { %19625 = vtanh.f32 %v19553_v55 }
 0x486   :  { %19627 = vtanh.f32 %v19554_v26 }
 0x48f   :  { %v23928_v6 = vpop.eup %19625 }
 0x490   :  { %v23930_v48 = vpop.eup %19627  ;;  %v5150_v16 = vrot.slane %v23928_v6, 7 }
 0x491   :  { %v5149_v34 = vrot.slane %v23930_v48, 7 }
 0x493   :  { %v5154_v17 = vsel %vm52_vm2, 0.0, %v5149_v34  ;;  %v5151_v23 = vsel %vm52_vm2, %v5149_v34, %v5150_v16 }
 0x494   :  { %v5155_v5 = vsel %vm69_vm3, %v5154_v17, 0.0  ;;  %v5156_v56 = vsel %vm70_vm4, %v5151_v23, 0.0 }
 0x495   :  { %v23940_v55 = vand.u32 4294901760, %v5155_v5  ;;  %v23942_v35 = vand.u32 4294901760, %v5156_v56 }
 0x497   :  { %6454 = vmatprep.mubr.f32.mxu1 %v23940_v55  ;;  %v6209_v26 = vsub.f32 %v5155_v5, %v23940_v55  ;;  %v23947_v19 = vsub.f32 %v5156_v56, %v23942_v35  ;;  %v18081_v56 = vpack.c.bf16 %v28894_v62, %v23367_v12 }
 0x498   :  { %6455 = vmatmul.mubr.f32.vlgmr.msra.gmra.mrb[92].mxu1 %v28382_v1 }
 0x499   :  { %18114 = vmatpush3.bf16.msra.mxu1 %v23459_v15  ;;  %6460 = vmatprep.mubr.f32.mxu1 %v23942_v35  ;;  %v6210_v34 = vand.u32 4294901760, %v6209_v26  ;;  %v6220_v16 = vand.u32 4294901760, %v23947_v19 }
 0x49a   :  { %18116 = vmatprep.subr.bf16.mxu1 %v23713_v38 }
 0x49b   :  { %v6211_v17 = vsub.f32 %v6209_v26, %v6210_v34  ;;  %v6221_v23 = vsub.f32 %v23947_v19, %v6220_v16 }
 0x49c   :  { %6461 = vmatmul.mubr.f32.gmra.mrb[94].mxu1 %v28382_v1 }
 0x49d   :  { %18118 = vmatpush3.bf16.msra.mxu1 %v23729_v51  ;;  %6708 = vmatprep.mubr.f32.mxu1 %v6210_v34  ;;  %v6212_v5 = vand.u32 4294901760, %v6211_v17  ;;  %v6222_v60 = vand.u32 4294901760, %v6221_v23  ;;  %v18087_v34 = vpack.c.bf16 %v23558_v44, %v23553_v52  ;;  %v28914_v17 = vld [vmem:[#allocation33_spill] sm:$0xff]  ;;  %v28916_v23 = vld [vmem:[#allocation32_spill] sm:$0xff] }
 0x49e   :  { %18120 = vmatprep.subr.bf16.mxu1 %v23749_v58 }
 0x49f   :  { %6213 = vmatprep.mubr.f32.mxu0 %v6212_v5  ;;  %v28915_v5 = vld [vmem:[#allocation31_spill] sm:$0xff] }
 0x4a0   :  { %6214 = vmatmul.mubr.f32.vlgmr.msra.gmra.mrb[32].mxu0 %v28382_v1 }
 0x4a1   :  { %18082 = vmatpush3.bf16.msra.mxu0 %v18081_v56  ;;  %18122 = vmatpush3.bf16.msra.mxu1 %v23755_v24  ;;  %v18089_v56 = vpack.c.bf16 %v28916_v23, %v28915_v5 }
 0x4a2   :  { %6223 = vmatprep.mubr.f32.mxu0 %v6222_v60  ;;  %18084 = vmatprep.subr.bf16.mxu0 %v18083_v39  ;;  %v28918_v60 = vld [vmem:[#allocation20_spill] sm:$0xff]  ;;  %v28920_v39 = vpack.c.bf16 %v23699_v43, %v23694_v45 }
 0x4a3   :  { %18124 = vmatprep.subr.bf16.mxu1 %v23761_v36 }
 0x4a4   :  { %6224 = vmatmul.mubr.f32.gmra.mrb[34].mxu0 %v28382_v1 }
 0x4a5   :  { %18086 = vmatpush3.bf16.msra.mxu0 %v18085_v3  ;;  %18126 = vmatpush3.bf16.msra.mxu1 %v28914_v17  ;;  %v28919_v3 = vpack.c.bf16 %v23682_v2, %v23677_v13 }
 0x4a6   :  { %6596 = vmatprep.mubr.f32.mxu0 %v6209_v26  ;;  %18088 = vmatprep.subr.bf16.mxu0 %v18087_v34  ;;  %v28923_v26 = vpack.c.bf16 %v23823_v61, %v23813_v20  ;;  %v28924_v34 = vpack.c.bf16 %v23839_v59, %v23834_v8 }
 0x4a7   :  { %18128 = vmatprep.subr.bf16.mxu1 %v28917_v53 }
 0x4a9   :  { %18090 = vmatpush3.bf16.msra.mxu0 %v18089_v56  ;;  %18130 = vmatpush3.bf16.msra.mxu1 %v28918_v60  ;;  %v28925_v56 = vpack.c.bf16 %v23868_v31, %v23866_v47 }
 0x4aa   :  { %18092 = vmatprep.subr.bf16.mxu0 %v18091_v9  ;;  %18132 = vmatprep.subr.bf16.mxu1 %v23850_v4  ;;  %v28921_v9 = vpack.c.bf16 %v23769_v28, %v23766_v0 }
 0x4ad   :  { %18094 = vmatpush3.bf16.msra.mxu0 %v18093_v21  ;;  %18134 = vmatpush3.bf16.msra.mxu1 %v23863_v46  ;;  %v28922_v21 = vpack.c.bf16 %v23788_v57, %v23783_v63 }
 0x4ae   :  { %18096 = vmatprep.subr.bf16.mxu0 %v28919_v3  ;;  %18136 = vmatprep.subr.bf16.mxu1 %v23870_v50  ;;  %v28926_v3 = vand.u32 4294901760, %v28910_v40  ;;  %v28931_v40 = vand.u32 4294901760, %v23533_v27  ;;  %v28935_v27 = vand.u32 4294901760, %v23553_v52  ;;  %v28939_v52 = vand.u32 4294901760, %v23634_v32 }
 0x4af   :  { %v28945_v32 = vand.u32 4294901760, %v23694_v45  ;;  %v28952_v45 = vand.u32 4294901760, %v23823_v61  ;;  %v28956_v61 = vand.u32 4294901760, %v23868_v31  ;;  %v28958_v31 = vand.u32 4294901760, %v23875_v11 }
 0x4b1   :  { %18098 = vmatpush3.bf16.msra.mxu0 %v28920_v39  ;;  %18138 = vmatpush3.bf16.msra.mxu1 %v23888_v22  ;;  %v28927_v39 = vand.u32 4294901760, %v28911_v41 }
 0x4b2   :  { %18100 = vmatprep.subr.bf16.mxu0 %v28921_v9  ;;  %18140 = vmatprep.subr.bf16.mxu1 %v23897_v54 }
 0x4b3   :  { %v18143_v9 = vpack.c.bf16 %v28927_v39, %v28926_v3  ;;  %v24100_v3 = vld [vmem:[#allocation2 + $0x710] sm:$0xff]  ;;  %v24102_v39 = vld [vmem:[#allocation2 + $0x718] sm:$0xff] }
 0x4b5   :  { %18102 = vmatpush3.bf16.msra.mxu0 %v28922_v21  ;;  %18142 = vmatpush3.bf16.msra.mxu1 %v23899_v18 }
 0x4b6   :  { %18104 = vmatprep.subr.bf16.mxu0 %v28923_v26  ;;  %18176 = vmatprep.subr.bf16.mxu1 %v23450_v30  ;;  %v28928_v30 = vpack.c.bf16 %v23875_v11, %v23873_v33  ;;  %v13961_v11 = vpop.f32.mrb[68].mxu1 }
 0x4b8   :  { %6709 = vmatmul.mubr.f32.vlgmr.msra.gmra.mrb[96].mxu1 %v28382_v1 }
 0x4b9   :  { %18106 = vmatpush3.bf16.msra.mxu0 %v28924_v34  ;;  %6716 = vmatprep.mubr.f32.mxu1 %v6220_v16  ;;  %v28930_v16 = vand.u32 4294901760, %v28894_v62  ;;  %v28934_v62 = vand.u32 4294901760, %v23548_v7  ;;  %v28938_v7 = vand.u32 4294901760, %v28916_v23 }
 0x4ba   :  { %18178 = vmatpush3.bf16.msra.mxu1 %v23459_v15  ;;  %18108 = vmatprep.subr.bf16.mxu0 %v28925_v56  ;;  %v28929_v15 = vand.u32 4294901760, %v23367_v12  ;;  %v28933_v12 = vand.u32 4294901760, %v23543_v37  ;;  %v28937_v37 = vand.u32 4294901760, %v28915_v5  ;;  %v28943_v5 = vand.u32 4294901760, %v23677_v13 }
 0x4bb   :  { %18180 = vmatprep.subr.bf16.mxu1 %v23713_v38  ;;  %v28932_v38 = vand.u32 4294901760, %v23538_v49  ;;  %v28936_v49 = vand.u32 4294901760, %v23558_v44  ;;  %v28940_v44 = vand.u32 4294901760, %v23639_v10  ;;  %v28946_v10 = vand.u32 4294901760, %v23699_v43 }
 0x4bc   :  { %6717 = vmatmul.mubr.f32.gmra.mrb[98].mxu1 %v28382_v1  ;;  %v18145_v21 = vpack.c.bf16 %v28930_v16, %v28929_v15  ;;  %v18149_v26 = vpack.c.bf16 %v28934_v62, %v28933_v12  ;;  %v28950_v13 = vand.u32 4294901760, %v23788_v57  ;;  %v28951_v43 = vand.u32 4294901760, %v23813_v20  ;;  %v24123_v15 = vld [vmem:[#allocation2 + $0x720] sm:$0xff]  ;;  %v24141_v62 = vld [vmem:[#allocation2 + $0x730] sm:$0xff] }
 0x4bd   :  { %18110 = vmatpush3.bf16.msra.mxu0 %v28928_v30  ;;  %6992 = vmatprep.mubr.f32.mxu1 %v23940_v55  ;;  %v18147_v41 = vpack.c.bf16 %v28932_v38, %v28931_v40  ;;  %v28954_v57 = vand.u32 4294901760, %v23839_v59  ;;  %v28955_v20 = vand.u32 4294901760, %v23866_v47  ;;  %v12798_v38 = vld [vmem:[#allocation5 + $0x2] ss:$0 sm:$0xff] }
 0x4be   :  { %18182 = vmatpush3.bf16.msra.mxu1 %v23729_v51  ;;  %18144 = vmatprep.subr.bf16.mxu0 %v18143_v9  ;;  %v18151_v51 = vpack.c.bf16 %v28936_v49, %v28935_v27  ;;  %v7014_v9 = vand.u32 4294901760, %v24102_v39 }
 0x4bf   :  { %18184 = vmatprep.subr.bf16.mxu1 %v23749_v58  ;;  %v18153_v58 = vpack.c.bf16 %v28938_v7, %v28937_v37 }
 0x4c0   :  { %6597 = vmatmul.mubr.f32.vlgmr.msra.gmra.mrb[36].mxu0 %v28382_v1 }
 0x4c1   :  { %6603 = vmatprep.mubr.f32.mxu0 %v23947_v19  ;;  %18146 = vmatpush3.bf16.msra.mxu0 %v18145_v21  ;;  %v28942_v19 = vand.u32 4294901760, %v23649_v42  ;;  %v28948_v42 = vand.u32 4294901760, %v23769_v28  ;;  %v24084_v28 = vld [vmem:[#allocation2 + $0x708] sm:$0xff]  ;;  %v7017_v21 = vand.u32 4294901760, %v24123_v15 }
 0x4c2   :  { %18186 = vmatpush3.bf16.msra.mxu1 %v23755_v24  ;;  %18148 = vmatprep.subr.bf16.mxu0 %v18147_v41  ;;  %v18155_v24 = vpack.c.bf16 %v28940_v44, %v28939_v52  ;;  %v7008_v56 = vand.u32 4294901760, %v24084_v28  ;;  %v13962_v41 = vpop.f32.mrb[69].mxu1  ;;  %v7023_v44 = vand.u32 4294901760, %v24141_v62 }
 0x4c3   :  { %18188 = vmatprep.subr.bf16.mxu1 %v23761_v36  ;;  %v28941_v36 = vand.u32 4294901760, %v23644_v14  ;;  %v28947_v14 = vand.u32 4294901760, %v23766_v0  ;;  %v24082_v0 = vld [vmem:[#allocation2 + $0x700] sm:$0xff]  ;;  %v13963_v27 = vadd.f32 %v13962_v41, %v13961_v11  ;;  %v13964_v49 = vpop.f32.mrb[70].mxu1 }
 0x4c4   :  { %6604 = vmatmul.mubr.f32.gmra.mrb[38].mxu0 %v28382_v1  ;;  %v7005_v34 = vand.u32 4294901760, %v24082_v0 }
 0x4c5   :  { %18150 = vmatpush3.bf16.msra.mxu0 %v18149_v26  ;;  %6883 = vmatprep.mubr.f32.mxu0 %v23940_v55  ;;  %v18157_v55 = vpack.c.bf16 %v28942_v19, %v28941_v36  ;;  %v24143_v26 = vld [vmem:[#allocation2 + $0x738] sm:$0xff]  ;;  %v5345_v37 = vadd.f32 %v13963_v27, %v12798_v38 }
 0x4c6   :  { %18190 = vmatpush3.bf16.msra.mxu1 %v28914_v17  ;;  %18152 = vmatprep.subr.bf16.mxu0 %v18151_v51  ;;  %v28944_v17 = vand.u32 4294901760, %v23682_v2  ;;  %v28949_v2 = vand.u32 4294901760, %v23783_v63  ;;  %v28953_v63 = vand.u32 4294901760, %v23834_v8  ;;  %v28957_v8 = vand.u32 4294901760, %v23873_v33  ;;  %v24125_v33 = vld [vmem:[#allocation2 + $0x728] sm:$0xff]  ;;  %v13965_v51 = vpop.f32.mrb[71].mxu1 }
 0x4c7   :  { %18192 = vmatprep.subr.bf16.mxu1 %v28917_v53  ;;  %v18161_v53 = vpack.c.bf16 %v28946_v10, %v28945_v32  ;;  %v7020_v40 = vand.u32 4294901760, %v24125_v33  ;;  %v13966_v7 = vadd.f32 %v13965_v51, %v13964_v49 }
 0x4c8   :  { %v18159_v23 = vpack.c.bf16 %v28944_v17, %v28943_v5  ;;  %v18173_v47 = vpack.c.bf16 %v28958_v31, %v28957_v8 }
 0x4c9   :  { %18154 = vmatpush3.bf16.msra.mxu0 %v18153_v58  ;;  %v13999_v58 = vpop.f32.mrb[72].mxu1  ;;  %v24153_v52 = vpack.c.bf16 %v7020_v40, %v7017_v21  ;;  %v5350_v5 = vadd.f32 %v13966_v7, %v12798_v38  ;;  %v24206_v7 = vld [vmem:[#allocation2 + $0x778] sm:$0xff] }
 0x4ca   :  { %18194 = vmatpush3.bf16.msra.mxu1 %v28918_v60  ;;  %18156 = vmatprep.subr.bf16.mxu0 %v18155_v24  ;;  %v18163_v60 = vpack.c.bf16 %v28948_v42, %v28947_v14  ;;  %v7026_v24 = vand.u32 4294901760, %v24143_v26  ;;  %v14000_v36 = vpop.f32.mrb[73].mxu1 }
 0x4cb   :  { %18196 = vmatprep.subr.bf16.mxu1 %v23850_v4  ;;  %v18165_v4 = vpack.c.bf16 %v28950_v13, %v28949_v2  ;;  %v14001_v17 = vadd.f32 %v14000_v36, %v13999_v58 }
 0x4cc   :  { %v24168_v42 = vpack.c.bf16 %v7026_v24, %v7023_v44 }
 0x4cd   :  { %18158 = vmatpush3.bf16.msra.mxu0 %v18157_v55  ;;  %v24159_v55 = vld [vmem:[#allocation2 + $0x748] sm:$0xff]  ;;  %v5580_v10 = vadd.f32 %v14001_v17, %v5345_v37  ;;  %v24204_v37 = vld [vmem:[#allocation2 + $0x770] sm:$0xff] }
 0x4ce   :  { %18198 = vmatpush3.bf16.msra.mxu1 %v23863_v46  ;;  %18160 = vmatprep.subr.bf16.mxu0 %v18159_v23  ;;  %v18167_v46 = vpack.c.bf16 %v28952_v45, %v28951_v43  ;;  %v14002_v23 = vpop.f32.mrb[74].mxu1  ;;  %28961 = vst [vmem:[#allocation36_spill] sm:$0xff] %v24168_v42  ;;  %v7032_v2 = vand.u32 4294901760, %v24159_v55  ;;  %v24174_v43 = vld [vmem:[#allocation2 + $0x758] sm:$0xff] }
 0x4cf   :  { %18200 = vmatprep.subr.bf16.mxu1 %v23870_v50  ;;  %v24087_v50 = vand.u32 4294901760, %v23930_v48  ;;  %v14003_v32 = vpop.f32.mrb[75].mxu1  ;;  %v7038_v11 = vand.u32 4294901760, %v24174_v43 }
 0x4d0   :  { %v14037_v14 = vpop.f32.mrb[76].mxu1 }
 0x4d1   :  { %18162 = vmatpush3.bf16.msra.mxu0 %v18161_v53  ;;  %v24106_v59 = vsub.f32 %v23930_v48, %v24087_v50  ;;  %v7011_v48 = vand.u32 4294901760, %v24100_v3  ;;  %v14004_v53 = vadd.f32 %v14003_v32, %v14002_v23  ;;  %v14038_v13 = vpop.f32.mrb[77].mxu1  ;;  %v24222_v32 = vand.u32 4294901760, %v23928_v6 }
 0x4d2   :  { %18202 = vmatpush3.bf16.msra.mxu1 %v23888_v22  ;;  %18164 = vmatprep.subr.bf16.mxu0 %v18163_v60  ;;  %v18169_v22 = vpack.c.bf16 %v28954_v57, %v28953_v63  ;;  %v14040_v63 = vpop.f32.mrb[78].mxu1  ;;  %v24179_v57 = vsub.f32 %v24082_v0, %v7005_v34 }
 0x4d3   :  { %18204 = vmatprep.subr.bf16.mxu1 %v23897_v54  ;;  %v18171_v54 = vpack.c.bf16 %v28956_v61, %v28955_v20  ;;  %v28028_v30 = vand.u32 4294901760, %v24106_v59  ;;  %v24133_v16 = vpack.c.bf16 %v7014_v9, %v7011_v48  ;;  %v5585_v45 = vadd.f32 %v14004_v53, %v5350_v5  ;;  %v24182_v20 = vld [vmem:[#allocation2 + $0x760] sm:$0xff]  ;;  %v24184_v61 = vld [vmem:[#allocation2 + $0x768] sm:$0xff]  ;;  %28964 = vst [vmem:[#allocation21_spill] sm:$0xff] %v24222_v32 }
 0x4d4   :  { %v7044_v27 = vand.u32 4294901760, %v24184_v61  ;;  %v28033_v49 = vand.u32 4294901760, %v24179_v57  ;;  %v24212_v36 = vsub.f32 %v24100_v3, %v7011_v48 }
 0x4d5   :  { %18166 = vmatpush3.bf16.msra.mxu0 %v18165_v4  ;;  %28960 = vst [vmem:[#allocation35_spill] sm:$0xff] %v24133_v16  ;;  %v7088_v12 = vsub.f32 %v24106_v59, %v28028_v30  ;;  %v24172_v4 = vld [vmem:[#allocation2 + $0x750] sm:$0xff] }
 0x4d6   :  { %18206 = vmatpush3.bf16.msra.mxu1 %v23899_v18  ;;  %18168 = vmatprep.subr.bf16.mxu0 %v18167_v46  ;;  %v24118_v18 = vpack.c.bf16 %v7008_v56, %v7005_v34  ;;  %v14039_v46 = vadd.f32 %v14038_v13, %v14037_v14  ;;  %v7035_v34 = vand.u32 4294901760, %v24172_v4 }
 0x4d7   :  { %v7089_v19 = vand.u32 4294901760, %v7088_v12 }
 0x4d8   :  { %28959 = vst [vmem:[#allocation13_spill] sm:$0xff] %v24118_v18  ;;  %v5719_v8 = vadd.f32 %v14039_v46, %v5580_v10  ;;  %v24219_v23 = vpack.c.bf16 %v7038_v11, %v7035_v34  ;;  %v24227_v10 = vsub.f32 %v24102_v39, %v7014_v9  ;;  %v7050_v46 = vand.u32 4294901760, %v24206_v7 }
 0x4d9   :  { %6993 = vmatmul.mubr.f32.vlgmr.msra.gmra.mrb[100].mxu1 %v28382_v1  ;;  %18170 = vmatpush3.bf16.msra.mxu0 %v18169_v22  ;;  %v14041_v22 = vpop.f32.mrb[79].mxu1 }
 0x4da   :  { %6998 = vmatprep.mubr.f32.mxu1 %v23942_v35  ;;  %18172 = vmatprep.subr.bf16.mxu0 %v18171_v54  ;;  %v24189_v54 = vsub.f32 %v24084_v28, %v7008_v56  ;;  %v14042_v31 = vadd.f32 %v14041_v22, %v14040_v63  ;;  %v7041_v56 = vand.u32 4294901760, %v24182_v20  ;;  %28963 = vst [vmem:[#allocation46_spill] sm:$0xff] %v24219_v23  ;;  %v28027_v22 = vand.u32 4294901760, %v24212_v36 }
 0x4db   :  { %v7109_v63 = vsub.f32 %v24179_v57, %v28033_v49 }
 0x4dc   :  { %v5724_v41 = vadd.f32 %v14042_v31, %v5585_v45  ;;  %v28032_v58 = vand.u32 4294901760, %v24189_v54  ;;  %v24233_v13 = vpack.c.bf16 %v7044_v27, %v7041_v56  ;;  %v7047_v45 = vand.u32 4294901760, %v24204_v37 }
 0x4dd   :  { %18174 = vmatpush3.bf16.msra.mxu0 %v18173_v47  ;;  %6999 = vmatmul.mubr.f32.gmra.mrb[102].mxu1 %v28382_v1  ;;  %v14075_v47 = vpop.f32.mrb[80].mxu1 }
 0x4de   :  { %18208 = vmatprep.subr.bf16.mxu0 %v24118_v18  ;;  %7885 = vmatprep.mubr.f32.mxu1 %v28382_v1  ;;  %v14076_v38 = vpop.f32.mrb[81].mxu1  ;;  %28965 = vst [vmem:[#allocation25_spill] sm:$0xff] %v24233_v13  ;;  %v7116_v9 = vsub.f32 %v24189_v54, %v28032_v58 }
 0x4df   :  { %v14077_v12 = vadd.f32 %v14076_v38, %v14075_v47  ;;  %v14078_v28 = vpop.f32.mrb[82].mxu1  ;;  %v24248_v38 = vsub.f32 %v23928_v6, %v24222_v32  ;;  %v24265_v6 = vpack.c.bf16 %v7050_v46, %v7047_v45 }
 0x4e0   :  { %6884 = vmatmul.mubr.f32.vlgmr.msra.gmra.mrb[40].mxu0 %v28382_v1  ;;  %v14079_v51 = vpop.f32.mrb[83].mxu1 }
 0x4e1   :  { %6889 = vmatprep.mubr.f32.mxu0 %v23942_v35  ;;  %18210 = vmatpush3.bf16.msra.mxu0 %v24118_v18  ;;  %v24157_v35 = vld [vmem:[#allocation2 + $0x740] sm:$0xff]  ;;  %v14080_v5 = vadd.f32 %v14079_v51, %v14078_v28  ;;  %v14113_v17 = vpop.f32.mrb[84].mxu1  ;;  %v24259_v28 = vsub.f32 %v24125_v33, %v7020_v40  ;;  %v24275_v33 = vsub.f32 %v24143_v26, %v7026_v24  ;;  %v7117_v40 = vand.u32 4294901760, %v7116_v9 }
 0x4e2   :  { %18212 = vmatprep.subr.bf16.mxu0 %v24133_v16  ;;  %v7029_v60 = vand.u32 4294901760, %v24157_v35  ;;  %v14114_v3 = vpop.f32.mrb[85].mxu1 }
 0x4e3   :  { %v5831_v48 = vadd.f32 %v14080_v5, %v5724_v41  ;;  %v14115_v53 = vadd.f32 %v14114_v3, %v14113_v17  ;;  %v14116_v14 = vpop.f32.mrb[86].mxu1  ;;  %v28026_v41 = vand.u32 4294901760, %v24227_v10  ;;  %28966 = vst [vmem:[#allocation22_spill] sm:$0xff] %v24259_v28  ;;  %v7110_v3 = vand.u32 4294901760, %v7109_v63  ;;  %28968 = vst [vmem:[#allocation18_spill] sm:$0xff] %v24275_v33 }
 0x4e4   :  { %6890 = vmatmul.mubr.f32.gmra.mrb[42].mxu0 %v28382_v1  ;;  %v24196_v0 = vpack.c.bf16 %v7032_v2, %v7029_v60  ;;  %v14117_v39 = vpop.f32.mrb[87].mxu1  ;;  %v28015_v24 = vand.u32 4294901760, %v24259_v28  ;;  %v28013_v9 = vand.u32 4294901760, %v24275_v33 }
 0x4e5   :  { %18214 = vmatpush3.bf16.msra.mxu0 %v24133_v16  ;;  %16073 = vmatprep.mubr.f32.mxu0 %v7089_v19  ;;  %v5826_v19 = vadd.f32 %v14077_v12, %v5719_v8  ;;  %v14118_v31 = vadd.f32 %v14117_v39, %v14116_v14  ;;  %v14151_v47 = vpop.f32.mrb[88].mxu1  ;;  %v24254_v12 = vsub.f32 %v24123_v15, %v7017_v21 }
 0x4e6   :  { %18216 = vmatprep.subr.bf16.mxu0 %v24153_v52  ;;  %28962 = vst [vmem:[#allocation30_spill] sm:$0xff] %v24196_v0  ;;  %v14152_v51 = vpop.f32.mrb[89].mxu1  ;;  %v24270_v15 = vsub.f32 %v24141_v62, %v7023_v44  ;;  %v28025_v62 = vand.u32 4294901760, %v24248_v38  ;;  %v7130_v26 = vsub.f32 %v24227_v10, %v28026_v41 }
 0x4e7   :  { %v5997_v8 = vadd.f32 %v14115_v53, %v5826_v19  ;;  %v6002_v19 = vadd.f32 %v14118_v31, %v5831_v48  ;;  %v14153_v5 = vadd.f32 %v14152_v51, %v14151_v47  ;;  %v14154_v17 = vpop.f32.mrb[90].mxu1  ;;  %v7123_v48 = vsub.f32 %v24212_v36, %v28027_v22 }
 0x4e8   :  { %28967 = vst [vmem:[#allocation11_spill] sm:$0xff] %v24270_v15  ;;  %v14155_v21 = vpop.f32.mrb[91].mxu1  ;;  %v28024_v44 = vand.u32 4294901760, %v24254_v12  ;;  %v28014_v39 = vand.u32 4294901760, %v24270_v15  ;;  %v24298_v47 = vsub.f32 %v24157_v35, %v7029_v60  ;;  %v24303_v51 = vsub.f32 %v24159_v55, %v7032_v2 }
 0x4e9   :  { %18218 = vmatpush3.bf16.msra.mxu0 %v24153_v52  ;;  %v24281_v53 = vadd.f32 %v14153_v5, %v5997_v8  ;;  %v14156_v14 = vadd.f32 %v14155_v21, %v14154_v17  ;;  %v18239_v8 = vpack.c.bf16 %v7117_v40, %v7110_v3  ;;  %v7124_v31 = vand.u32 4294901760, %v7123_v48 }
 0x4ea   :  { %18220 = vmatprep.subr.bf16.mxu0 %v24168_v42  ;;  %28971 = vst [vmem:[#allocation17_spill] sm:$0xff] %v24298_v47  ;;  %28972 = vst [vmem:[#allocation40_spill] sm:$0xff] %v24303_v51  ;;  %v7131_v5 = vand.u32 4294901760, %v7130_v26  ;;  %v7137_v17 = vsub.f32 %v24254_v12, %v28024_v44  ;;  %v7144_v35 = vsub.f32 %v24259_v28, %v28015_v24  ;;  %v28023_v2 = vand.u32 4294901760, %v24298_v47 }
 0x4eb   :  { %28969 = vst [vmem:[#allocation37_spill] sm:$0xff] %v24281_v53  ;;  %v24290_v63 = vadd.f32 %v14156_v14, %v6002_v19  ;;  %v7098_v19 = vsub.f32 %v24248_v38, %v28025_v62  ;;  %v7151_v55 = vsub.f32 %v24270_v15, %v28014_v39  ;;  %v7158_v60 = vsub.f32 %v24275_v33, %v28013_v9 }
 0x4ec   :  { %v28022_v3 = vand.u32 4294901760, %v24303_v51  ;;  %v24327_v21 = vsub.f32 %v24172_v4, %v7035_v34  ;;  %v24332_v40 = vsub.f32 %v24174_v43, %v7038_v11  ;;  %v18243_v14 = vpack.c.bf16 %v7131_v5, %v7124_v31 }
 0x4ed   :  { %18222 = vmatpush3.bf16.msra.mxu0 %v24168_v42  ;;  %28970 = vst [vmem:[#allocation39_spill] sm:$0xff] %v24290_v63  ;;  %v7099_v48 = vand.u32 4294901760, %v7098_v19  ;;  %v7138_v26 = vand.u32 4294901760, %v7137_v17  ;;  %v7145_v9 = vand.u32 4294901760, %v7144_v35  ;;  %v7152_v39 = vand.u32 4294901760, %v7151_v55 }
 0x4ee   :  { %18224 = vmatprep.subr.bf16.mxu0 %v24196_v0  ;;  %28973 = vst [vmem:[#allocation41_spill] sm:$0xff] %v24327_v21  ;;  %28974 = vst [vmem:[#allocation23_spill] sm:$0xff] %v24332_v40  ;;  %v7159_v24 = vand.u32 4294901760, %v7158_v60  ;;  %v7165_v4 = vsub.f32 %v24298_v47, %v28023_v2  ;;  %v7172_v43 = vsub.f32 %v24303_v51, %v28022_v3  ;;  %v28021_v34 = vand.u32 4294901760, %v24327_v21 }
 0x4ef   :  { %v28020_v11 = vand.u32 4294901760, %v24332_v40  ;;  %v18247_v31 = vpack.c.bf16 %v7145_v9, %v7138_v26  ;;  %v24351_v19 = vsub.f32 %v24184_v61, %v7044_v27  ;;  %v24364_v61 = vsub.f32 %v24204_v37, %v7047_v45 }
 0x4f0   :  { %v18251_v5 = vpack.c.bf16 %v7159_v24, %v7152_v39  ;;  %v7166_v17 = vand.u32 4294901760, %v7165_v4  ;;  %v7173_v35 = vand.u32 4294901760, %v7172_v43  ;;  %v7179_v55 = vsub.f32 %v24327_v21, %v28021_v34 }
 0x4f1   :  { %18226 = vmatpush3.bf16.msra.mxu0 %v24196_v0  ;;  %28976 = vst [vmem:[#allocation26_spill] sm:$0xff] %v24351_v19  ;;  %v7186_v9 = vsub.f32 %v24332_v40, %v28020_v11  ;;  %28977 = vst [vmem:[#allocation16_spill] sm:$0xff] %v24364_v61  ;;  %v24369_v27 = vsub.f32 %v24206_v7, %v7050_v46  ;;  %v28017_v37 = vand.u32 4294901760, %v24364_v61  ;;  %v24423_v11 = vld [vmem:[#allocation2 + $0x7a8] sm:$0xff]  ;;  %v28987_v53 = vand.u32 4294901760, %v24189_v54 }
 0x4f2   :  { %18228 = vmatprep.subr.bf16.mxu0 %v24219_v23  ;;  %v18255_v24 = vpack.c.bf16 %v7173_v35, %v7166_v17  ;;  %v7180_v39 = vand.u32 4294901760, %v7179_v55  ;;  %v18271_v55 = vpack.c.bf16 %v24189_v54, %v24179_v57  ;;  %v18283_v41 = vpack.c.bf16 %v24275_v33, %v24270_v15 }
 0x4f3   :  { %28978 = vst [vmem:[#allocation44_spill] sm:$0xff] %v24369_v27  ;;  %v7187_v60 = vand.u32 4294901760, %v7186_v9  ;;  %v28016_v45 = vand.u32 4294901760, %v24369_v27  ;;  %v7207_v4 = vsub.f32 %v24364_v61, %v28017_v37  ;;  %v18275_v9 = vpack.c.bf16 %v24227_v10, %v24212_v36 }
 0x4f4   :  { %v18291_v49 = vpack.c.bf16 %v24332_v40, %v24327_v21  ;;  %v18299_v63 = vpack.c.bf16 %v24369_v27, %v24364_v61 }
 0x4f5   :  { %18230 = vmatpush3.bf16.msra.mxu0 %v24219_v23  ;;  %v18259_v7 = vpack.c.bf16 %v7187_v60, %v7180_v39  ;;  %v7214_v43 = vsub.f32 %v24369_v27, %v28016_v45  ;;  %v7208_v17 = vand.u32 4294901760, %v7207_v4  ;;  %v24392_v39 = vld [vmem:[#allocation2 + $0x808] sm:$0xff]  ;;  %v24394_v60 = vld [vmem:[#allocation2 + $0x780] sm:$0xff]  ;;  %v24404_v4 = vld [vmem:[#allocation2 + $0x818] sm:$0xff] }
 0x4f6   :  { %18232 = vmatprep.subr.bf16.mxu0 %v24233_v13  ;;  %v24415_v45 = vld [vmem:[#allocation2 + $0x820] sm:$0xff] }
 0x4f7   :  { %v7215_v35 = vand.u32 4294901760, %v7214_v43  ;;  %v18279_v43 = vpack.c.bf16 %v24259_v28, %v24254_v12  ;;  %v7850_v62 = vand.u32 4294901760, %v24415_v45 }
 0x4f9   :  { %18234 = vmatpush3.bf16.msra.mxu0 %v24233_v13 }
 0x4fa   :  { %18236 = vmatprep.subr.bf16.mxu0 %v24265_v6 }
 0x4fd   :  { %18238 = vmatpush3.bf16.msra.mxu0 %v24265_v6 }
 0x4fe   :  { %18240 = vmatprep.subr.bf16.mxu0 %v18239_v8 }
 0x500   :  { %16074 = vmatmul.mubr.f32.vlgmr.msra.gmra.mrb[44].mxu0 %v7099_v48 }
 0x501   :  { %18242 = vmatpush3.bf16.msra.mxu0 %v18239_v8  ;;  %16108 = vmatprep.mubr.f32.mxu0 %v24087_v50  ;;  %v24346_v8 = vsub.f32 %v24182_v20, %v7041_v56  ;;  %v28018_v56 = vand.u32 4294901760, %v24351_v19 }
 0x502   :  { %18244 = vmatprep.subr.bf16.mxu0 %v18243_v14 }
 0x503   :  { %28975 = vst [vmem:[#allocation43_spill] sm:$0xff] %v24346_v8  ;;  %v28019_v20 = vand.u32 4294901760, %v24346_v8 }
 0x505   :  { %18246 = vmatpush3.bf16.msra.mxu0 %v18243_v14  ;;  %v7193_v48 = vsub.f32 %v24346_v8, %v28019_v20  ;;  %v7200_v14 = vsub.f32 %v24351_v19, %v28018_v56  ;;  %v24419_v56 = vld [vmem:[#allocation2 + $0x828] sm:$0xff]  ;;  %v24421_v20 = vld [vmem:[#allocation2 + $0x7a0] sm:$0xff] }
 0x506   :  { %18248 = vmatprep.subr.bf16.mxu0 %v18247_v31  ;;  %v7853_v22 = vand.u32 4294901760, %v24419_v56  ;;  %v7802_v30 = vand.u32 4294901760, %v24421_v20 }
 0x507   :  { %v7194_v46 = vand.u32 4294901760, %v7193_v48  ;;  %v7201_v26 = vand.u32 4294901760, %v7200_v14  ;;  %v7841_v14 = vand.u32 4294901760, %v24392_v39 }
 0x509   :  { %18250 = vmatpush3.bf16.msra.mxu0 %v18247_v31  ;;  %v18263_v31 = vpack.c.bf16 %v7201_v26, %v7194_v46  ;;  %v7790_v46 = vand.u32 4294901760, %v24394_v60  ;;  %v24402_v26 = vld [vmem:[#allocation2 + $0x810] sm:$0xff] }
 0x50a   :  { %18252 = vmatprep.subr.bf16.mxu0 %v18251_v5 }
 0x50d   :  { %18254 = vmatpush3.bf16.msra.mxu0 %v18251_v5  ;;  %v18267_v5 = vpack.c.bf16 %v7215_v35, %v7208_v17  ;;  %v28030_v17 = vand.u32 4294901760, %v24402_v26  ;;  %v28029_v35 = vand.u32 4294901760, %v24404_v4 }
 0x50e   :  { %18256 = vmatprep.subr.bf16.mxu0 %v18255_v24 }
 0x50f   :  { %v24433_v3 = vpack.c.bf16 %v28029_v35, %v28030_v17  ;;  %v24448_v17 = vpack.c.bf16 %v7853_v22, %v7850_v62 }
 0x511   :  { %18258 = vmatpush3.bf16.msra.mxu0 %v18255_v24  ;;  %v24390_v24 = vld [vmem:[#allocation2 + $0x800] sm:$0xff]  ;;  %28981 = vst [vmem:[#allocation49_spill] sm:$0xff] %v24433_v3  ;;  %28983 = vst [vmem:[#allocation51_spill] sm:$0xff] %v24448_v17 }
 0x512   :  { %18260 = vmatprep.subr.bf16.mxu0 %v18259_v7  ;;  %v7838_v48 = vand.u32 4294901760, %v24390_v24 }
 0x514   :  { %v24417_v37 = vpack.c.bf16 %v7841_v14, %v7838_v48  ;;  %v24472_v40 = vsub.f32 %v24390_v24, %v7838_v48 }
 0x515   :  { %18262 = vmatpush3.bf16.msra.mxu0 %v18259_v7  ;;  %v24399_v7 = vld [vmem:[#allocation2 + $0x788] sm:$0xff] }
 0x516   :  { %18264 = vmatprep.subr.bf16.mxu0 %v18263_v31  ;;  %28979 = vst [vmem:[#allocation47_spill] sm:$0xff] %v24417_v37  ;;  %18400 = vmatprep.subr.bf16.mxu1 %v24417_v37  ;;  %v7708_v37 = vld [vmem:[#allocation2 + $0x7b8] sm:$0xff]  ;;  %v28989_v24 = vand.u32 4294901760, %v24399_v7 }
 0x518   :  { %v24486_v48 = vsub.f32 %v24399_v7, %v28989_v24  ;;  %v24506_v24 = vsub.f32 %v24415_v45, %v7850_v62 }
 0x519   :  { %18266 = vmatpush3.bf16.msra.mxu0 %v18263_v31  ;;  %v28031_v31 = vand.u32 4294901760, %v24399_v7 }
 0x51a   :  { %18268 = vmatprep.subr.bf16.mxu0 %v18267_v5 }
 0x51b   :  { %v24427_v34 = vpack.c.bf16 %v28031_v31, %v7790_v46  ;;  %v18287_v31 = vpack.c.bf16 %v24303_v51, %v24298_v47  ;;  %v7725_v51 = vld [vmem:[#allocation2 + $0x840] sm:$0xff]  ;;  %v24480_v47 = vsub.f32 %v24394_v60, %v7790_v46  ;;  %v28991_v46 = vand.u32 4294901760, %v24404_v4 }
 0x51d   :  { %18270 = vmatpush3.bf16.msra.mxu0 %v18267_v5  ;;  %v24411_v5 = vld [vmem:[#allocation2 + $0x790] sm:$0xff]  ;;  %28980 = vst [vmem:[#allocation48_spill] sm:$0xff] %v24427_v34  ;;  %18402 = vmatpush3.bf16.msra.mxu1 %v24427_v34 }
 0x51e   :  { %18272 = vmatprep.subr.bf16.mxu0 %v18271_v55  ;;  %v7796_v2 = vand.u32 4294901760, %v24411_v5  ;;  %18404 = vmatprep.subr.bf16.mxu1 %v24433_v3  ;;  %v7859_v3 = vand.u32 4294901760, %v7724_v25  ;;  %v7707_v34 = vld [vmem:[#allocation2 + $0x7b0] sm:$0xff] }
 0x520   :  { %16109 = vmatmul.mubr.f32.vlgmr.msra.gmra.mrb[44].mxu0 %v24222_v32  ;;  %v7808_v32 = vand.u32 4294901760, %v7707_v34  ;;  %v24500_v27 = vsub.f32 %v24411_v5, %v7796_v2  ;;  %v7711_v5 = vld [vmem:[#allocation2 + $0x7d0] sm:$0xff] }
 0x521   :  { %18274 = vmatpush3.bf16.msra.mxu0 %v18271_v55  ;;  %16143 = vmatprep.mubr.f32.mxu0 %v24106_v59  ;;  %v24413_v55 = vld [vmem:[#allocation2 + $0x798] sm:$0xff] }
 0x522   :  { %18276 = vmatprep.subr.bf16.mxu0 %v18275_v9  ;;  %v7799_v44 = vand.u32 4294901760, %v24413_v55 }
 0x524   :  { %v24446_v35 = vpack.c.bf16 %v7799_v44, %v7796_v2  ;;  %v24503_v7 = vsub.f32 %v24413_v55, %v7799_v44 }
 0x525   :  { %18278 = vmatpush3.bf16.msra.mxu0 %v18275_v9  ;;  %v7805_v9 = vand.u32 4294901760, %v24423_v11 }
 0x526   :  { %18280 = vmatprep.subr.bf16.mxu0 %v18279_v43  ;;  %28982 = vst [vmem:[#allocation50_spill] sm:$0xff] %v24446_v35  ;;  %18406 = vmatpush3.bf16.msra.mxu1 %v24446_v35  ;;  %v18295_v35 = vpack.c.bf16 %v24351_v19, %v24346_v8  ;;  %v7726_v19 = vld [vmem:[#allocation2 + $0x848] sm:$0xff]  ;;  %v24477_v8 = vsub.f32 %v24392_v39, %v7841_v14 }
 0x527   :  { %v24453_v58 = vpack.c.bf16 %v7805_v9, %v7802_v30  ;;  %18408 = vmatprep.subr.bf16.mxu1 %v24448_v17  ;;  %v7811_v17 = vand.u32 4294901760, %v7708_v37  ;;  %v7865_v54 = vand.u32 4294901760, %v7726_v19  ;;  %v24519_v2 = vsub.f32 %v24423_v11, %v7805_v9  ;;  %v7729_v9 = vld [vmem:[#allocation2 + $0x860] sm:$0xff] }
 0x529   :  { %18282 = vmatpush3.bf16.msra.mxu0 %v18279_v43  ;;  %28984 = vst [vmem:[#allocation12_spill] sm:$0xff] %v24453_v58  ;;  %v7856_v43 = vand.u32 4294901760, %v7723_v29  ;;  %v24474_v21 = vpack.c.bf16 %v7811_v17, %v7808_v32  ;;  %v24528_v33 = vsub.f32 %v7708_v37, %v7811_v17  ;;  %v24532_v11 = vsub.f32 %v7726_v19, %v7865_v54  ;;  %v7714_v37 = vld [vmem:[#allocation2 + $0x7e8] sm:$0xff]  ;;  %v7732_v17 = vld [vmem:[#allocation2 + $0x878] sm:$0xff] }
 0x52a   :  { %18284 = vmatprep.subr.bf16.mxu0 %v18283_v41  ;;  %18410 = vmatpush3.bf16.msra.mxu1 %v24453_v58  ;;  %v28986_v58 = vand.u32 4294901760, %v24179_v57  ;;  %v7862_v57 = vand.u32 4294901760, %v7725_v51 }
 0x52b   :  { %28988 = vst [vmem:[#allocation38_spill] sm:$0xff] %v24474_v21  ;;  %v24521_v44 = vsub.f32 %v7723_v29, %v7856_v43 }
 0x52d   :  { %18286 = vmatpush3.bf16.msra.mxu0 %v18283_v41  ;;  %v24461_v41 = vpack.c.bf16 %v7859_v3, %v7856_v43  ;;  %v7730_v43 = vld [vmem:[#allocation2 + $0x868] sm:$0xff] }
 0x52e   :  { %18288 = vmatprep.subr.bf16.mxu0 %v18287_v31 }
 0x52f   :  { %28985 = vst [vmem:[#allocation19_spill] sm:$0xff] %v24461_v41  ;;  %18412 = vmatprep.subr.bf16.mxu1 %v24461_v41  ;;  %v24497_v41 = vsub.f32 %v24404_v4, %v28991_v46  ;;  %v7727_v4 = vld [vmem:[#allocation2 + $0x850] sm:$0xff]  ;;  %v7728_v46 = vld [vmem:[#allocation2 + $0x858] sm:$0xff] }
 0x530   :  { %18414 = vmatpush3.bf16.msra.mxu1 %v24474_v21  ;;  %v24514_v21 = vpack.c.bf16 %v7865_v54, %v7862_v57  ;;  %v7868_v62 = vand.u32 4294901760, %v7727_v4  ;;  %v7871_v45 = vand.u32 4294901760, %v7728_v46  ;;  %v7874_v54 = vand.u32 4294901760, %v7729_v9 }
 0x531   :  { %18290 = vmatpush3.bf16.msra.mxu0 %v18287_v31  ;;  %v24469_v31 = vpack.c.bf16 %v28987_v53, %v28986_v58  ;;  %v7709_v58 = vld [vmem:[#allocation2 + $0x7c0] sm:$0xff]  ;;  %v7710_v53 = vld [vmem:[#allocation2 + $0x7c8] sm:$0xff]  ;;  %28992 = vst [vmem:[#allocation24_spill] sm:$0xff] %v24497_v41 }
 0x532   :  { %18292 = vmatprep.subr.bf16.mxu0 %v18291_v49  ;;  %v7814_v60 = vand.u32 4294901760, %v7709_v58  ;;  %v7817_v14 = vand.u32 4294901760, %v7710_v53  ;;  %28993 = vst [vmem:[#allocation42_spill] sm:$0xff] %v24514_v21  ;;  %18416 = vmatprep.subr.bf16.mxu1 %v24514_v21  ;;  %v24545_v19 = vsub.f32 %v7728_v46, %v7871_v45 }
 0x534   :  { %v24516_v61 = vpack.c.bf16 %v7817_v14, %v7814_v60  ;;  %v24535_v29 = vsub.f32 %v7709_v58, %v7814_v60  ;;  %v7877_v58 = vand.u32 4294901760, %v7730_v43  ;;  %v7715_v60 = vld [vmem:[#allocation2 + $0x7f0] sm:$0xff] }
 0x535   :  { %18294 = vmatpush3.bf16.msra.mxu0 %v18291_v49  ;;  %v28990_v49 = vand.u32 4294901760, %v24402_v26 }
 0x536   :  { %18296 = vmatprep.subr.bf16.mxu0 %v18295_v35  ;;  %28994 = vst [vmem:[#allocation27_spill] sm:$0xff] %v24516_v61  ;;  %18418 = vmatpush3.bf16.msra.mxu1 %v24516_v61  ;;  %v24551_v61 = vld [vmem:[#allocation2 + $0x7f8] sm:$0xff]  ;;  %v24556_v46 = vpack.c.bf16 %v7877_v58, %v7874_v54 }
 0x537   :  { %v24491_v39 = vsub.f32 %v24402_v26, %v28990_v49  ;;  %v24509_v26 = vsub.f32 %v24419_v56, %v7853_v22  ;;  %v24512_v49 = vsub.f32 %v24421_v20, %v7802_v30  ;;  %v7712_v22 = vld [vmem:[#allocation2 + $0x7d8] sm:$0xff]  ;;  %v24523_v56 = vsub.f32 %v7724_v25, %v7859_v3  ;;  %v7713_v25 = vld [vmem:[#allocation2 + $0x7e0] sm:$0xff] }
 0x538   :  { %v24525_v30 = vsub.f32 %v7707_v34, %v7808_v32  ;;  %v7820_v20 = vand.u32 4294901760, %v7711_v5  ;;  %v7823_v55 = vand.u32 4294901760, %v7712_v22  ;;  %v24537_v3 = vsub.f32 %v7710_v53, %v7817_v14  ;;  %28997 = vst [vmem:[#allocation29_spill] sm:$0xff] %v24556_v46 }
 0x539   :  { %18298 = vmatpush3.bf16.msra.mxu0 %v18295_v35  ;;  %v24530_v35 = vsub.f32 %v7725_v51, %v7862_v57  ;;  %v24539_v32 = vpack.c.bf16 %v7871_v45, %v7868_v62  ;;  %v24541_v34 = vsub.f32 %v7727_v4, %v7868_v62  ;;  %v7731_v51 = vld [vmem:[#allocation2 + $0x870] sm:$0xff]  ;;  %v7826_v53 = vand.u32 4294901760, %v7713_v25 }
 0x53a   :  { %18300 = vmatprep.subr.bf16.mxu0 %v18299_v63  ;;  %v24543_v21 = vpack.c.bf16 %v7823_v55, %v7820_v20  ;;  %v24547_v57 = vsub.f32 %v7711_v5, %v7820_v20  ;;  %v7829_v14 = vand.u32 4294901760, %v7714_v37  ;;  %v7880_v4 = vand.u32 4294901760, %v7731_v51 }
 0x53b   :  { %28995 = vst [vmem:[#allocation45_spill] sm:$0xff] %v24539_v32  ;;  %18420 = vmatprep.subr.bf16.mxu1 %v24539_v32  ;;  %v7883_v62 = vand.u32 4294901760, %v7732_v17  ;;  %v24558_v45 = vsub.f32 %v7729_v9, %v7874_v54  ;;  %v7832_v5 = vand.u32 4294901760, %v7715_v60  ;;  %v24561_v20 = vsub.f32 %v7730_v43, %v7877_v58 }
 0x53c   :  { %28996 = vst [vmem:[#allocation28_spill] sm:$0xff] %v24543_v21  ;;  %18422 = vmatpush3.bf16.msra.mxu1 %v24543_v21  ;;  %v24563_v32 = vpack.c.bf16 %v7829_v14, %v7826_v53  ;;  %v24565_v15 = vsub.f32 %v7713_v25, %v7826_v53  ;;  %v24574_v9 = vsub.f32 %v7731_v51, %v7880_v4  ;;  %v28071_v43 = vand.u32 4294901760, %v24551_v61 }
 0x53d   :  { %18302 = vmatpush3.bf16.msra.mxu0 %v18299_v63  ;;  %v24554_v63 = vsub.f32 %v7712_v22, %v7823_v55  ;;  %v24567_v28 = vpack.c.bf16 %v7883_v62, %v7880_v4  ;;  %v29000_v22 = vand.u32 4294901760, %v24106_v59  ;;  %v24572_v55 = vsub.f32 %v7714_v37, %v7829_v14  ;;  %18424 = vmatprep.subr.bf16.mxu1 %v24556_v46 }
 0x53e   :  { %18304 = vmatprep.subr.bf16.mxu0 %v24118_v18  ;;  %28998 = vst [vmem:[#allocation33_spill] sm:$0xff] %v24563_v32  ;;  %v24576_v54 = vsub.f32 %v7732_v17, %v7883_v62  ;;  %v28069_v25 = vand.u32 4294901760, %v24472_v40  ;;  %v28070_v58 = vand.u32 4294901760, %v24477_v8  ;;  %v28072_v53 = vand.u32 4294901760, %v24480_v47 }
 0x53f   :  { %28999 = vst [vmem:[#allocation31_spill] sm:$0xff] %v24567_v28  ;;  %v28077_v59 = vand.u32 4294901760, %v24486_v48  ;;  %v24588_v37 = vpack.c.bf16 %v28071_v43, %v7832_v5  ;;  %v24590_v51 = vsub.f32 %v7715_v60, %v7832_v5  ;;  %v28082_v17 = vand.u32 4294901760, %v24491_v39 }
 0x540   :  { %16144 = vmatmul.mubr.f32.vlgmr.msra.gmra.mrb[44].mxu0 %v24248_v38  ;;  %18426 = vmatpush3.bf16.msra.mxu1 %v24563_v32  ;;  %v28083_v14 = vand.u32 4294901760, %v24497_v41  ;;  %v8012_v4 = vsub.f32 %v24472_v40, %v28069_v25  ;;  %v8019_v62 = vsub.f32 %v24477_v8, %v28070_v58  ;;  %v28102_v58 = vand.u32 4294901760, %v24500_v27 }
 0x541   :  { %18306 = vmatpush3.bf16.msra.mxu0 %v24118_v18  ;;  %16178 = vmatprep.mubr.f32.mxu0 %v29000_v22  ;;  %29001 = vst [vmem:[#allocation32_spill] sm:$0xff] %v24588_v37  ;;  %v7900_v22 = vsub.f32 %v24480_v47, %v28072_v53  ;;  %v7907_v60 = vsub.f32 %v24486_v48, %v28077_v59  ;;  %v28095_v43 = vand.u32 4294901760, %v24503_v7 }
 0x542   :  { %18308 = vmatprep.subr.bf16.mxu0 %v24133_v16  ;;  %18428 = vmatprep.subr.bf16.mxu1 %v24567_v28  ;;  %v8026_v5 = vsub.f32 %v24491_v39, %v28082_v17  ;;  %v8033_v25 = vsub.f32 %v24497_v41, %v28083_v14  ;;  %v8013_v53 = vand.u32 4294901760, %v8012_v4  ;;  %v8020_v28 = vand.u32 4294901760, %v8019_v62 }
 0x543   :  { %v7901_v32 = vand.u32 4294901760, %v7900_v22  ;;  %v7908_v59 = vand.u32 4294901760, %v7907_v60  ;;  %v7914_v17 = vsub.f32 %v24500_v27, %v28102_v58  ;;  %v7921_v14 = vsub.f32 %v24503_v7, %v28095_v43 }
 0x544   :  { %18430 = vmatpush3.bf16.msra.mxu1 %v24588_v37  ;;  %v8027_v46 = vand.u32 4294901760, %v8026_v5  ;;  %v8034_v21 = vand.u32 4294901760, %v8033_v25  ;;  %v28091_v41 = vand.u32 4294901760, %v24506_v24  ;;  %v28090_v4 = vand.u32 4294901760, %v24509_v26 }
 0x545   :  { %18310 = vmatpush3.bf16.msra.mxu0 %v24133_v16  ;;  %v18431_v16 = vpack.c.bf16 %v8020_v28, %v8013_v53  ;;  %v18433_v18 = vpack.c.bf16 %v7908_v59, %v7901_v32  ;;  %v7915_v22 = vand.u32 4294901760, %v7914_v17  ;;  %v7922_v60 = vand.u32 4294901760, %v7921_v14 }
 0x546   :  { %18312 = vmatprep.subr.bf16.mxu0 %v24153_v52  ;;  %v18435_v62 = vpack.c.bf16 %v8034_v21, %v8027_v46  ;;  %v28094_v25 = vand.u32 4294901760, %v24512_v49  ;;  %v8040_v5 = vsub.f32 %v24506_v24, %v28091_v41  ;;  %v8047_v28 = vsub.f32 %v24509_v26, %v28090_v4 }
 0x547   :  { %18432 = vmatprep.subr.bf16.mxu1 %v18431_v16  ;;  %v28093_v32 = vand.u32 4294901760, %v24519_v2  ;;  %v28092_v53 = vand.u32 4294901760, %v24521_v44  ;;  %7886 = vmatmul.mubr.f32.vlgmr.msra.gmra.mrb[104].mxu1 %v28382_v1  ;;  %v18437_v21 = vpack.c.bf16 %v7922_v60, %v7915_v22  ;;  %v28096_v16 = vand.u32 4294901760, %v24523_v56 }
 0x548   :  { %v7928_v46 = vsub.f32 %v24512_v49, %v28094_v25  ;;  %v28097_v59 = vand.u32 4294901760, %v24525_v30  ;;  %18434 = vmatpush3.bf16.msra.mxu1 %v18433_v18  ;;  %v8041_v17 = vand.u32 4294901760, %v8040_v5  ;;  %v8048_v14 = vand.u32 4294901760, %v8047_v28  ;;  %7890 = vmatprep.mubr.f32.mxu1 %v28382_v1 }
 0x549   :  { %18314 = vmatpush3.bf16.msra.mxu0 %v24153_v52  ;;  %v7935_v4 = vsub.f32 %v24519_v2, %v28093_v32  ;;  %v8054_v41 = vsub.f32 %v24521_v44, %v28092_v53  ;;  %18436 = vmatprep.subr.bf16.mxu1 %v18435_v62  ;;  %v8061_v18 = vsub.f32 %v24523_v56, %v28096_v16  ;;  %v28100_v5 = vand.u32 4294901760, %v24528_v33 }
 0x54a   :  { %18316 = vmatprep.subr.bf16.mxu0 %v24168_v42  ;;  %v7929_v22 = vand.u32 4294901760, %v7928_v46  ;;  %v7942_v60 = vsub.f32 %v24525_v30, %v28097_v59  ;;  %v18439_v28 = vpack.c.bf16 %v8048_v14, %v8041_v17  ;;  %v28098_v25 = vand.u32 4294901760, %v24530_v35 }
 0x54b   :  { %v7936_v53 = vand.u32 4294901760, %v7935_v4  ;;  %v8055_v32 = vand.u32 4294901760, %v8054_v41  ;;  %v8062_v43 = vand.u32 4294901760, %v8061_v18  ;;  %v7949_v46 = vsub.f32 %v24528_v33, %v28100_v5  ;;  %7891 = vmatmul.mubr.f32.gmra.mrb[106].mxu1 %v28382_v1 }
 0x54c   :  { %v7943_v62 = vand.u32 4294901760, %v7942_v60  ;;  %v28099_v16 = vand.u32 4294901760, %v24532_v11  ;;  %18438 = vmatpush3.bf16.msra.mxu1 %v18437_v21  ;;  %v8068_v17 = vsub.f32 %v24530_v35, %v28098_v25  ;;  %v28101_v41 = vand.u32 4294901760, %v24535_v29  ;;  %8120 = vmatprep.mubr.f32.mxu1 %v28382_v1 }
 0x54d   :  { %18318 = vmatpush3.bf16.msra.mxu0 %v24168_v42  ;;  %v18441_v59 = vpack.c.bf16 %v7936_v53, %v7929_v22  ;;  %v28106_v4 = vand.u32 4294901760, %v24537_v3  ;;  %18440 = vmatprep.subr.bf16.mxu1 %v18439_v28  ;;  %v18443_v14 = vpack.c.bf16 %v8062_v43, %v8055_v32  ;;  %v7950_v18 = vand.u32 4294901760, %v7949_v46 }
 0x54e   :  { %18320 = vmatprep.subr.bf16.mxu0 %v24196_v0  ;;  %v8075_v21 = vsub.f32 %v24532_v11, %v28099_v16  ;;  %v28103_v53 = vand.u32 4294901760, %v24541_v34  ;;  %v8069_v22 = vand.u32 4294901760, %v8068_v17  ;;  %v7956_v60 = vsub.f32 %v24535_v29, %v28101_v41 }
 0x54f   :  { %v7963_v25 = vsub.f32 %v24537_v3, %v28106_v4  ;;  %v28105_v43 = vand.u32 4294901760, %v24545_v19  ;;  %v18445_v32 = vpack.c.bf16 %v7950_v18, %v7943_v62  ;;  %v28104_v16 = vand.u32 4294901760, %v24547_v57 }
 0x550   :  { %v8076_v28 = vand.u32 4294901760, %v8075_v21  ;;  %v8082_v46 = vsub.f32 %v24541_v34, %v28103_v53  ;;  %18442 = vmatpush3.bf16.msra.mxu1 %v18441_v59  ;;  %v7957_v17 = vand.u32 4294901760, %v7956_v60  ;;  %v28109_v58 = vand.u32 4294901760, %v24554_v63 }
 0x551   :  { %18322 = vmatpush3.bf16.msra.mxu0 %v24196_v0  ;;  %v7964_v5 = vand.u32 4294901760, %v7963_v25  ;;  %v8089_v41 = vsub.f32 %v24545_v19, %v28105_v43  ;;  %18444 = vmatprep.subr.bf16.mxu1 %v18443_v14  ;;  %v7970_v21 = vsub.f32 %v24547_v57, %v28104_v16  ;;  %v28108_v53 = vand.u32 4294901760, %v24558_v45 }
 0x552   :  { %18324 = vmatprep.subr.bf16.mxu0 %v24219_v23  ;;  %v18447_v62 = vpack.c.bf16 %v8076_v28, %v8069_v22  ;;  %v8083_v18 = vand.u32 4294901760, %v8082_v46  ;;  %v29002_v25 = vand.u32 4294901760, %v24551_v61  ;;  %v7977_v14 = vsub.f32 %v24554_v63, %v28109_v58 }
 0x553   :  { %v8090_v60 = vand.u32 4294901760, %v8089_v41  ;;  %v28107_v22 = vand.u32 4294901760, %v24561_v20  ;;  %v18449_v28 = vpack.c.bf16 %v7964_v5, %v7957_v17  ;;  %v8096_v46 = vsub.f32 %v24558_v45, %v28108_v53 }
 0x554   :  { %v24701_v59 = vsub.f32 %v24551_v61, %v29002_v25  ;;  %v28110_v16 = vand.u32 4294901760, %v24565_v15  ;;  %v28113_v43 = vand.u32 4294901760, %v24572_v55  ;;  %18446 = vmatpush3.bf16.msra.mxu1 %v18445_v32  ;;  %v7971_v4 = vand.u32 4294901760, %v7970_v21 }
 0x555   :  { %18326 = vmatpush3.bf16.msra.mxu0 %v24219_v23  ;;  %v7978_v61 = vand.u32 4294901760, %v7977_v14  ;;  %v8103_v41 = vsub.f32 %v24561_v20, %v28107_v22  ;;  %v8109_v25 = vand.u32 4294901760, %v24574_v9  ;;  %18448 = vmatprep.subr.bf16.mxu1 %v18447_v62  ;;  %v18451_v5 = vpack.c.bf16 %v8090_v60, %v8083_v18 }
 0x556   :  { %18328 = vmatprep.subr.bf16.mxu0 %v24233_v13  ;;  %v7984_v17 = vsub.f32 %v24565_v15, %v28110_v16  ;;  %v7991_v32 = vsub.f32 %v24572_v55, %v28113_v43  ;;  %v8116_v21 = vand.u32 4294901760, %v24576_v54  ;;  %v8097_v14 = vand.u32 4294901760, %v8096_v46 }
 0x557   :  { %v8104_v22 = vand.u32 4294901760, %v8103_v41  ;;  %v8110_v53 = vsub.f32 %v24574_v9, %v8109_v25  ;;  %v7997_v58 = vand.u32 4294901760, %v24590_v51  ;;  %v8004_v18 = vand.u32 4294901760, %v24701_v59 }
 0x558   :  { %v8117_v62 = vsub.f32 %v24576_v54, %v8116_v21  ;;  %18450 = vmatpush3.bf16.msra.mxu1 %v18449_v28  ;;  %v18453_v60 = vpack.c.bf16 %v7978_v61, %v7971_v4  ;;  %v7985_v16 = vand.u32 4294901760, %v7984_v17  ;;  %v7992_v37 = vand.u32 4294901760, %v7991_v32 }
 0x559   :  { %18330 = vmatpush3.bf16.msra.mxu0 %v24233_v13  ;;  %v7998_v43 = vsub.f32 %v24590_v51, %v7997_v58  ;;  %18452 = vmatprep.subr.bf16.mxu1 %v18451_v5  ;;  %v8111_v13 = vand.u32 4294901760, %v8110_v53  ;;  %v8005_v41 = vsub.f32 %v24701_v59, %v8004_v18  ;;  %v29003_v23 = vand.u32 4294901760, %v24212_v36  ;;  %v29007_v36 = vld [vmem:[#allocation22_spill] sm:$0xff] }
 0x55a   :  { %18332 = vmatprep.subr.bf16.mxu0 %v24265_v6  ;;  %v8118_v46 = vand.u32 4294901760, %v8117_v62  ;;  %v29004_v0 = vand.u32 4294901760, %v24227_v10  ;;  %v18455_v28 = vpack.c.bf16 %v8104_v22, %v8097_v14  ;;  %v29005_v17 = vand.u32 4294901760, %v24248_v38 }
 0x55b   :  { %v7999_v4 = vand.u32 4294901760, %v7998_v43  ;;  %v8006_v61 = vand.u32 4294901760, %v8005_v41  ;;  %v18457_v32 = vpack.c.bf16 %v7992_v37, %v7985_v16  ;;  %v29006_v5 = vand.u32 4294901760, %v24254_v12  ;;  %v29011_v43 = vld [vmem:[#allocation18_spill] sm:$0xff] }
 0x55c   :  { %v18339_v42 = vpack.c.bf16 %v29004_v0, %v29003_v23  ;;  %18454 = vmatpush3.bf16.msra.mxu1 %v18453_v60  ;;  %v18459_v53 = vpack.c.bf16 %v8118_v46, %v8111_v13  ;;  %v29008_v62 = vand.u32 4294901760, %v29007_v36  ;;  %v29009_v0 = vld [vmem:[#allocation11_spill] sm:$0xff]  ;;  %v29012_v22 = vand.u32 4294901760, %v29011_v43 }
 0x55d   :  { %18334 = vmatpush3.bf16.msra.mxu0 %v24265_v6  ;;  %v29010_v23 = vand.u32 4294901760, %v29009_v0  ;;  %18456 = vmatprep.subr.bf16.mxu1 %v18455_v28  ;;  %v18463_v38 = vpack.c.bf16 %v24477_v8, %v24472_v40  ;;  %v18461_v37 = vpack.c.bf16 %v8006_v61, %v7999_v4  ;;  %v29014_v13 = vand.u32 4294901760, %v24477_v8 }
 0x55e   :  { %18336 = vmatprep.subr.bf16.mxu0 %v24469_v31  ;;  %v18343_v10 = vpack.c.bf16 %v29008_v62, %v29006_v5  ;;  %v29015_v12 = vand.u32 4294901760, %v24480_v47  ;;  %v29016_v60 = vand.u32 4294901760, %v24486_v48  ;;  %v29017_v41 = vand.u32 4294901760, %v24491_v39 }
 0x55f   :  { %v18347_v14 = vpack.c.bf16 %v29012_v22, %v29010_v23  ;;  %v29020_v4 = vand.u32 4294901760, %v24500_v27  ;;  %v29022_v61 = vand.u32 4294901760, %v24506_v24  ;;  %v29023_v36 = vand.u32 4294901760, %v24509_v26 }
 0x560   :  { %16179 = vmatmul.mubr.f32.vlgmr.msra.gmra.mrb[44].mxu0 %v29005_v17  ;;  %v24761_v46 = vpack.c.bf16 %v29016_v60, %v29015_v12  ;;  %v29018_v17 = vld [vmem:[#allocation24_spill] sm:$0xff]  ;;  %18458 = vmatpush3.bf16.msra.mxu1 %v18457_v32  ;;  %v29024_v0 = vand.u32 4294901760, %v24512_v49  ;;  %v29025_v23 = vand.u32 4294901760, %v24519_v2  ;;  %v29026_v32 = vand.u32 4294901760, %v24521_v44 }
 0x561   :  { %18338 = vmatpush3.bf16.msra.mxu0 %v24469_v31  ;;  %16213 = vmatprep.mubr.f32.mxu0 %v24087_v50  ;;  %v29013_v31 = vand.u32 4294901760, %v24472_v40  ;;  %v29019_v28 = vand.u32 4294901760, %v29018_v17  ;;  %v29021_v40 = vand.u32 4294901760, %v24503_v7  ;;  %v24779_v62 = vpack.c.bf16 %v29023_v36, %v29022_v61 }
 0x562   :  { %18340 = vmatprep.subr.bf16.mxu0 %v18339_v42  ;;  %v24785_v43 = vpack.c.bf16 %v29025_v23, %v29024_v0  ;;  %v29027_v22 = vand.u32 4294901760, %v24523_v56  ;;  %18460 = vmatprep.subr.bf16.mxu1 %v18459_v53  ;;  %v29029_v12 = vand.u32 4294901760, %v24528_v33  ;;  %v29033_v61 = vand.u32 4294901760, %v24537_v3 }
 0x563   :  { %v24755_v16 = vpack.c.bf16 %v29014_v13, %v29013_v31  ;;  %v24767_v5 = vpack.c.bf16 %v29019_v28, %v29017_v41  ;;  %v24773_v8 = vpack.c.bf16 %v29021_v40, %v29020_v4  ;;  %v29028_v13 = vand.u32 4294901760, %v24525_v30 }
 0x564   :  { %v24791_v31 = vpack.c.bf16 %v29027_v22, %v29026_v32  ;;  %v29030_v41 = vand.u32 4294901760, %v24530_v35  ;;  %v29031_v28 = vand.u32 4294901760, %v24532_v11  ;;  %v29032_v40 = vand.u32 4294901760, %v24535_v29  ;;  %18462 = vmatpush3.bf16.msra.mxu1 %v18461_v37 }
 0x565   :  { %18342 = vmatpush3.bf16.msra.mxu0 %v18339_v42  ;;  %v24797_v60 = vpack.c.bf16 %v29029_v12, %v29028_v13  ;;  %v29034_v42 = vand.u32 4294901760, %v24541_v34  ;;  %v29035_v53 = vand.u32 4294901760, %v24545_v19  ;;  %v29036_v23 = vand.u32 4294901760, %v24547_v57  ;;  %18464 = vmatprep.subr.bf16.mxu1 %v18463_v38  ;;  %v24866_v38 = vld [vmem:[#allocation2 + $0x888] sm:$0xff] }
 0x566   :  { %v24803_v4 = vpack.c.bf16 %v29031_v28, %v29030_v41  ;;  %v24809_v36 = vpack.c.bf16 %v29033_v61, %v29032_v40  ;;  %18344 = vmatprep.subr.bf16.mxu0 %v18343_v10  ;;  %v29037_v32 = vand.u32 4294901760, %v24554_v63  ;;  %v29039_v13 = vand.u32 4294901760, %v24558_v45 }
 0x567   :  { %v24815_v0 = vpack.c.bf16 %v29035_v53, %v29034_v42  ;;  %v29040_v12 = vand.u32 4294901760, %v24561_v20  ;;  %v29041_v28 = vand.u32 4294901760, %v24565_v15  ;;  %v29042_v40 = vand.u32 4294901760, %v24572_v55  ;;  %8121 = vmatmul.mubr.f32.vlgmr.msra.gmra.mrb[108].mxu1 %v28382_v1 }
 0x568   :  { %v24821_v22 = vpack.c.bf16 %v29037_v32, %v29036_v23  ;;  %v24835_v42 = vpack.c.bf16 %v8116_v21, %v8109_v25  ;;  %v24837_v53 = vpack.c.bf16 %v8004_v18, %v7997_v58  ;;  %v18465_v23 = vpack.c.bf16 %v24486_v48, %v24480_v47  ;;  %v24841_v32 = vld [vmem:[#allocation2 + $0x900] sm:$0xff]  ;;  %8125 = vmatprep.mubr.f32.mxu1 %v28382_v1 }
 0x569   :  { %v24827_v41 = vpack.c.bf16 %v29040_v12, %v29039_v13  ;;  %v24833_v61 = vpack.c.bf16 %v29042_v40, %v29041_v28  ;;  %18346 = vmatpush3.bf16.msra.mxu0 %v18343_v10  ;;  %v18467_v13 = vpack.c.bf16 %v29018_v17, %v24491_v39  ;;  %v28123_v12 = vand.u32 4294901760, %v24841_v32  ;;  %v29045_v58 = vld [vmem:[#allocation17_spill] sm:$0xff]  ;;  %v29047_v18 = vld [vmem:[#allocation40_spill] sm:$0xff] }
 0x56a   :  { %29038 = vst [vmem:[#allocation34_spill] sm:$0xff] %v24821_v22  ;;  %29043 = vst [vmem:[#allocation20_spill] sm:$0xff] %v24835_v42  ;;  %v24843_v22 = vld [vmem:[#allocation2 + $0x908] sm:$0xff]  ;;  %18348 = vmatprep.subr.bf16.mxu0 %v18347_v14  ;;  %v29046_v21 = vand.u32 4294901760, %v29045_v58  ;;  %v29048_v37 = vand.u32 4294901760, %v29047_v18  ;;  %v24864_v10 = vld [vmem:[#allocation2 + $0x880] sm:$0xff]  ;;  %18466 = vmatpush3.bf16.msra.mxu1 %v18465_v23  ;;  %v18469_v40 = vpack.c.bf16 %v24503_v7, %v24500_v27 }
 0x56b   :  { %29044 = vst [vmem:[#allocation22_spill] sm:$0xff] %v24837_v53  ;;  %v28122_v25 = vand.u32 4294901760, %v24843_v22  ;;  %v14227_v47 = vpop.f32.mrb[92].mxu1  ;;  %v24857_v48 = vsub.f32 %v24841_v32, %v28123_v12  ;;  %v28125_v58 = vand.u32 4294901760, %v24864_v10  ;;  %18468 = vmatprep.subr.bf16.mxu1 %v18467_v13  ;;  %v29051_v23 = vld [vmem:[#allocation41_spill] sm:$0xff]  ;;  %v29053_v27 = vld [vmem:[#allocation23_spill] sm:$0xff]  ;;  %8126 = vmatmul.mubr.f32.gmra.mrb[110].mxu1 %v28382_v1 }
 0x56c   :  { %v18351_v28 = vpack.c.bf16 %v29048_v37, %v29046_v21  ;;  %v14228_v17 = vpop.f32.mrb[93].mxu1  ;;  %v18471_v37 = vpack.c.bf16 %v24509_v26, %v24506_v24  ;;  %v29052_v53 = vand.u32 4294901760, %v29051_v23  ;;  %v29054_v7 = vand.u32 4294901760, %v29053_v27  ;;  %8259 = vmatprep.mubr.f32.mxu1 %v28382_v1 }
 0x56d   :  { %29049 = vst [vmem:[#allocation11_spill] sm:$0xff] %v24857_v48  ;;  %v24862_v39 = vsub.f32 %v24843_v22, %v28122_v25  ;;  %18350 = vmatpush3.bf16.msra.mxu0 %v18347_v14  ;;  %v14229_v18 = vadd.f32 %v14228_v17, %v14227_v47  ;;  %v28124_v25 = vand.u32 4294901760, %v24857_v48  ;;  %v24884_v21 = vsub.f32 %v24864_v10, %v28125_v58 }
 0x56e   :  { %18352 = vmatprep.subr.bf16.mxu0 %v18351_v28  ;;  %v18355_v42 = vpack.c.bf16 %v29054_v7, %v29052_v53  ;;  %v29055_v14 = vand.u32 4294901760, %v24866_v38  ;;  %18470 = vmatpush3.bf16.msra.mxu1 %v18469_v40  ;;  %v18473_v17 = vpack.c.bf16 %v24519_v2, %v24512_v49  ;;  %v18475_v27 = vpack.c.bf16 %v24523_v56, %v24521_v44  ;;  %v29061_v56 = vld [vmem:[#allocation16_spill] sm:$0xff] }
 0x56f   :  { %29050 = vst [vmem:[#allocation18_spill] sm:$0xff] %v24862_v39  ;;  %v28128_v12 = vand.u32 4294901760, %v24862_v39  ;;  %v14230_v24 = vpop.f32.mrb[94].mxu1  ;;  %v8888_v26 = vsub.f32 %v24857_v48, %v28124_v25  ;;  %18472 = vmatprep.subr.bf16.mxu1 %v18471_v37  ;;  %v29057_v25 = vld [vmem:[#allocation43_spill] sm:$0xff]  ;;  %v29059_v48 = vld [vmem:[#allocation26_spill] sm:$0xff]  ;;  %v18477_v2 = vpack.c.bf16 %v24528_v33, %v24525_v30  ;;  %v18479_v44 = vpack.c.bf16 %v24532_v11, %v24530_v35  ;;  %v29063_v37 = vld [vmem:[#allocation44_spill] sm:$0xff] }
 0x570   :  { %v24889_v13 = vsub.f32 %v24866_v38, %v29055_v14  ;;  %v14231_v47 = vpop.f32.mrb[95].mxu1  ;;  %v29058_v58 = vand.u32 4294901760, %v29057_v25  ;;  %v29062_v25 = vand.u32 4294901760, %v29061_v56  ;;  %v18481_v33 = vpack.c.bf16 %v24537_v3, %v24535_v29  ;;  %v29066_v11 = vld [vmem:[#allocation39_spill] sm:$0xff]  ;;  %v29068_v3 = vld [vmem:[#allocation21_spill] sm:$0xff] }
 0x571   :  { %v8895_v53 = vsub.f32 %v24862_v39, %v28128_v12  ;;  %18354 = vmatpush3.bf16.msra.mxu0 %v18351_v28  ;;  %v14232_v23 = vadd.f32 %v14231_v47, %v14230_v24  ;;  %v8889_v7 = vand.u32 4294901760, %v8888_v26  ;;  %v29060_v12 = vand.u32 4294901760, %v29059_v48  ;;  %v29080_v56 = vld [vmem:[#allocation25_spill] sm:$0xff] }
 0x572   :  { %29056 = vst [vmem:[#allocation24_spill] sm:$0xff] %v24889_v13  ;;  %18356 = vmatprep.subr.bf16.mxu0 %v18355_v42  ;;  %18474 = vmatpush3.bf16.msra.mxu1 %v18473_v17  ;;  %v29064_v48 = vand.u32 4294901760, %v29063_v37  ;;  %v18483_v35 = vpack.c.bf16 %v24545_v19, %v24541_v34  ;;  %v18485_v17 = vpack.c.bf16 %v24554_v63, %v24547_v57  ;;  %v29069_v57 = vld [vmem:[#allocation35_spill] sm:$0xff] }
 0x573   :  { %v8896_v14 = vand.u32 4294901760, %v8895_v53  ;;  %v18359_v39 = vpack.c.bf16 %v29060_v12, %v29058_v58  ;;  %v14189_v40 = vpop.f32.mrb[32].mxu0  ;;  %18476 = vmatprep.subr.bf16.mxu1 %v18475_v27  ;;  %v29065_v58 = vld [vmem:[#allocation37_spill] sm:$0xff]  ;;  %v18487_v29 = vpack.c.bf16 %v24561_v20, %v24558_v45  ;;  %v18489_v34 = vpack.c.bf16 %v24572_v55, %v24565_v15  ;;  %v29070_v15 = vld [vmem:[#allocation47_spill] sm:$0xff]  ;;  %v29072_v55 = vld [vmem:[#allocation48_spill] sm:$0xff] }
 0x574   :  { %v14190_v49 = vpop.f32.mrb[33].mxu0  ;;  %v18363_v12 = vpack.c.bf16 %v29064_v48, %v29062_v25  ;;  %v18491_v19 = vpack.c.bf16 %v24576_v54, %v24574_v9  ;;  %v18493_v63 = vpack.c.bf16 %v24701_v59, %v24590_v51  ;;  %v29073_v54 = vld [vmem:[#allocation49_spill] sm:$0xff]  ;;  %v29074_v51 = vld [vmem:[#allocation30_spill] sm:$0xff] }
 0x575   :  { %v24907_v13 = vpack.c.bf16 %v8896_v14, %v8889_v7  ;;  %v14191_v28 = vadd.f32 %v14190_v49, %v14189_v40  ;;  %18358 = vmatpush3.bf16.msra.mxu0 %v18355_v42  ;;  %v29067_v7 = vld [vmem:[#allocation13_spill] sm:$0xff]  ;;  %v29077_v14 = vld [vmem:[#allocation46_spill] sm:$0xff] }
 0x576   :  { %18360 = vmatprep.subr.bf16.mxu0 %v18359_v39  ;;  %18478 = vmatpush3.bf16.msra.mxu1 %v18477_v2  ;;  %v29078_v2 = vld [vmem:[#allocation12_spill] sm:$0xff] }
 0x577   :  { %v6216_v24 = vadd.f32 %v14191_v28, %v29065_v58  ;;  %v14192_v26 = vpop.f32.mrb[34].mxu0  ;;  %18480 = vmatprep.subr.bf16.mxu1 %v18479_v44  ;;  %v29079_v44 = vld [vmem:[#allocation19_spill] sm:$0xff] }
 0x578   :  { %v14193_v53 = vpop.f32.mrb[35].mxu0 }
 0x579   :  { %v6457_v30 = vadd.f32 %v14229_v18, %v6216_v24  ;;  %18362 = vmatpush3.bf16.msra.mxu0 %v18359_v39  ;;  %v14194_v42 = vadd.f32 %v14193_v53, %v14192_v26  ;;  %v29075_v39 = vld [vmem:[#allocation50_spill] sm:$0xff]  ;;  %v29083_v53 = vand.u32 4294901760, %v24841_v32  ;;  %v29090_v32 = vld [vmem:[#allocation29_spill] sm:$0xff] }
 0x57a   :  { %18364 = vmatprep.subr.bf16.mxu0 %v18363_v12  ;;  %18482 = vmatpush3.bf16.msra.mxu1 %v18481_v33  ;;  %v29082_v26 = vld [vmem:[#allocation42_spill] sm:$0xff]  ;;  %v29084_v33 = vand.u32 4294901760, %v24843_v22  ;;  %v29089_v22 = vld [vmem:[#allocation28_spill] sm:$0xff] }
 0x57b   :  { %v6226_v47 = vadd.f32 %v14194_v42, %v29066_v11  ;;  %18484 = vmatprep.subr.bf16.mxu1 %v18483_v35 }
 0x57c   :  { %v24967_v42 = vpack.c.bf16 %v29084_v33, %v29083_v53 }
 0x57d   :  { %18366 = vmatpush3.bf16.msra.mxu0 %v18363_v12  ;;  %v6463_v27 = vadd.f32 %v14232_v23, %v6226_v47  ;;  %v29076_v23 = vld [vmem:[#allocation51_spill] sm:$0xff]  ;;  %v29081_v12 = vld [vmem:[#allocation38_spill] sm:$0xff]  ;;  %v29086_v47 = vld [vmem:[#allocation45_spill] sm:$0xff] }
 0x57e   :  { %18368 = vmatprep.subr.bf16.mxu0 %v29067_v7  ;;  %18486 = vmatpush3.bf16.msra.mxu1 %v18485_v17  ;;  %v29087_v17 = vand.u32 4294901760, %v24864_v10 }
 0x57f   :  { %18488 = vmatprep.subr.bf16.mxu1 %v18487_v29 }
 0x580   :  { %16214 = vmatmul.mubr.f32.vlgmr.msra.gmra.mrb[44].mxu0 %v29068_v3 }
 0x581   :  { %18370 = vmatpush3.bf16.msra.mxu0 %v29067_v7  ;;  %16248 = vmatprep.mubr.f32.mxu0 %v24087_v50  ;;  %v29071_v50 = vld [vmem:[#allocation36_spill] sm:$0xff]  ;;  %v29088_v7 = vand.u32 4294901760, %v24866_v38 }
 0x582   :  { %18372 = vmatprep.subr.bf16.mxu0 %v29069_v57  ;;  %18490 = vmatpush3.bf16.msra.mxu1 %v18489_v34  ;;  %v29093_v34 = vld [vmem:[#allocation32_spill] sm:$0xff] }
 0x583   :  { %18492 = vmatprep.subr.bf16.mxu1 %v18491_v19  ;;  %v24976_v29 = vpack.c.bf16 %v29088_v7, %v29087_v17 }
 0x585   :  { %18374 = vmatpush3.bf16.msra.mxu0 %v29069_v57 }
 0x586   :  { %18376 = vmatprep.subr.bf16.mxu0 %v24153_v52  ;;  %18494 = vmatpush3.bf16.msra.mxu1 %v18493_v63 }
 0x587   :  { %18496 = vmatprep.subr.bf16.mxu1 %v29070_v15 }
 0x589   :  { %18378 = vmatpush3.bf16.msra.mxu0 %v24153_v52  ;;  %8260 = vmatmul.mubr.f32.vlgmr.msra.gmra.mrb[112].mxu1 %v28382_v1 }
 0x58a   :  { %18380 = vmatprep.subr.bf16.mxu0 %v29071_v50  ;;  %18498 = vmatpush3.bf16.msra.mxu1 %v29072_v55 }
 0x58b   :  { %v14303_v45 = vpop.f32.mrb[96].mxu1  ;;  %8264 = vmatprep.mubr.f32.mxu1 %v28382_v1  ;;  %18500 = vmatprep.subr.bf16.mxu1 %v29073_v54 }
 0x58c   :  { %v14304_v20 = vpop.f32.mrb[97].mxu1 }
 0x58d   :  { %18382 = vmatpush3.bf16.msra.mxu0 %v29071_v50  ;;  %v14305_v9 = vadd.f32 %v14304_v20, %v14303_v45  ;;  %8265 = vmatmul.mubr.f32.gmra.mrb[114].mxu1 %v28382_v1 }
 0x58e   :  { %18384 = vmatprep.subr.bf16.mxu0 %v29074_v51  ;;  %18502 = vmatpush3.bf16.msra.mxu1 %v29075_v39 }
 0x58f   :  { %v14306_v52 = vpop.f32.mrb[98].mxu1  ;;  %8366 = vmatprep.mubr.f32.mxu1 %v28382_v1  ;;  %18504 = vmatprep.subr.bf16.mxu1 %v29076_v23 }
 0x590   :  { %v14307_v59 = vpop.f32.mrb[99].mxu1 }
 0x591   :  { %18386 = vmatpush3.bf16.msra.mxu0 %v29074_v51  ;;  %v14308_v18 = vadd.f32 %v14307_v59, %v14306_v52  ;;  %v25035_v52 = vld [vmem:[#allocation2 + $0x8a0] sm:$0xff]  ;;  %v25037_v59 = vld [vmem:[#allocation2 + $0x8a8] sm:$0xff] }
 0x592   :  { %18388 = vmatprep.subr.bf16.mxu0 %v29077_v14  ;;  %18506 = vmatpush3.bf16.msra.mxu1 %v29078_v2 }
 0x593   :  { %v14265_v40 = vpop.f32.mrb[36].mxu0  ;;  %18508 = vmatprep.subr.bf16.mxu1 %v29079_v44 }
 0x594   :  { %v14266_v49 = vpop.f32.mrb[37].mxu0 }
 0x595   :  { %v14267_v28 = vadd.f32 %v14266_v49, %v14265_v40  ;;  %18390 = vmatpush3.bf16.msra.mxu0 %v29077_v14  ;;  %v8668_v40 = vand.u32 4294901760, %v25035_v52  ;;  %v8671_v49 = vand.u32 4294901760, %v25037_v59 }
 0x596   :  { %18392 = vmatprep.subr.bf16.mxu0 %v29080_v56  ;;  %18510 = vmatpush3.bf16.msra.mxu1 %v29081_v12 }
 0x597   :  { %v6599_v25 = vadd.f32 %v14267_v28, %v6457_v30  ;;  %v14268_v37 = vpop.f32.mrb[38].mxu0  ;;  %18512 = vmatprep.subr.bf16.mxu1 %v29082_v26  ;;  %v29085_v30 = vld [vmem:[#allocation27_spill] sm:$0xff] }
 0x598   :  { %v14269_v48 = vpop.f32.mrb[39].mxu0 }
 0x599   :  { %v6711_v58 = vadd.f32 %v14305_v9, %v6599_v25  ;;  %v14270_v24 = vadd.f32 %v14269_v48, %v14268_v37  ;;  %18394 = vmatpush3.bf16.msra.mxu0 %v29080_v56  ;;  %v28143_v48 = vand.u32 4294901760, %v24884_v21 }
 0x59a   :  { %18396 = vmatprep.subr.bf16.mxu0 %v24265_v6  ;;  %18514 = vmatpush3.bf16.msra.mxu1 %v29085_v30 }
 0x59b   :  { %v6606_v35 = vadd.f32 %v14270_v24, %v6463_v27  ;;  %18516 = vmatprep.subr.bf16.mxu1 %v29086_v47  ;;  %v29091_v27 = vld [vmem:[#allocation33_spill] sm:$0xff]  ;;  %v25083_v24 = vsub.f32 %v25035_v52, %v8668_v40  ;;  %v8776_v7 = vsub.f32 %v24884_v21, %v28143_v48 }
 0x59d   :  { %v6719_v11 = vadd.f32 %v14308_v18, %v6606_v35  ;;  %18398 = vmatpush3.bf16.msra.mxu0 %v24265_v6  ;;  %v29092_v6 = vld [vmem:[#allocation31_spill] sm:$0xff]  ;;  %29098 = vst [vmem:[#allocation17_spill] sm:$0xff] %v25083_v24 }
 0x59e   :  { %18592 = vmatprep.subr.bf16.mxu0 %v24967_v42  ;;  %18518 = vmatpush3.bf16.msra.mxu1 %v29089_v22 }
 0x59f   :  { %18520 = vmatprep.subr.bf16.mxu1 %v29090_v32 }
 0x5a0   :  { %16249 = vmatmul.mubr.f32.vlgmr.msra.gmra.mrb[44].mxu0 %v29068_v3 }
 0x5a1   :  { %18594 = vmatpush3.bf16.msra.mxu0 %v24976_v29 }
 0x5a2   :  { %18522 = vmatpush3.bf16.msra.mxu1 %v29091_v27 }
 0x5a3   :  { %18524 = vmatprep.subr.bf16.mxu1 %v29092_v6 }
 0x5a6   :  { %18526 = vmatpush3.bf16.msra.mxu1 %v29093_v34 }
 0x5a7   :  { %18528 = vmatprep.subr.bf16.mxu1 %v24755_v16 }
 0x5a9   :  { %8367 = vmatmul.mubr.f32.vlgmr.msra.gmra.mrb[116].mxu1 %v28382_v1 }
 0x5aa   :  { %18530 = vmatpush3.bf16.msra.mxu1 %v24761_v46  ;;  %8371 = vmatprep.mubr.f32.mxu1 %v28382_v1 }
 0x5ab   :  { %18532 = vmatprep.subr.bf16.mxu1 %v24767_v5 }
 0x5ac   :  { %v14379_v10 = vpop.f32.mrb[100].mxu1 }
 0x5ad   :  { %v14380_v38 = vpop.f32.mrb[101].mxu1  ;;  %8372 = vmatmul.mubr.f32.gmra.mrb[118].mxu1 %v28382_v1 }
 0x5ae   :  { %v14381_v3 = vadd.f32 %v14380_v38, %v14379_v10  ;;  %18534 = vmatpush3.bf16.msra.mxu1 %v24773_v8  ;;  %8537 = vmatprep.mubr.f32.mxu1 %v28382_v1  ;;  %v28132_v10 = vand.u32 4294901760, %v25083_v24 }
 0x5af   :  { %18536 = vmatprep.subr.bf16.mxu1 %v24779_v62 }
 0x5b0   :  { %v14382_v19 = vpop.f32.mrb[102].mxu1 }
 0x5b1   :  { %v14383_v57 = vpop.f32.mrb[103].mxu1 }
 0x5b2   :  { %v14384_v16 = vadd.f32 %v14383_v57, %v14382_v19  ;;  %18538 = vmatpush3.bf16.msra.mxu1 %v24785_v43  ;;  %v29094_v43 = vld [vmem:[#allocation34_spill] sm:$0xff] }
 0x5b3   :  { %v14341_v63 = vpop.f32.mrb[40].mxu0  ;;  %18540 = vmatprep.subr.bf16.mxu1 %v24791_v31  ;;  %v29095_v31 = vld [vmem:[#allocation20_spill] sm:$0xff] }
 0x5b4   :  { %v14342_v50 = vpop.f32.mrb[41].mxu0 }
 0x5b5   :  { %v14343_v46 = vadd.f32 %v14342_v50, %v14341_v63  ;;  %v8777_v63 = vand.u32 4294901760, %v8776_v7 }
 0x5b6   :  { %18542 = vmatpush3.bf16.msra.mxu1 %v24797_v60  ;;  %v29096_v60 = vld [vmem:[#allocation22_spill] sm:$0xff] }
 0x5b7   :  { %v6886_v5 = vadd.f32 %v14343_v46, %v6711_v58  ;;  %v14344_v45 = vpop.f32.mrb[42].mxu0  ;;  %18544 = vmatprep.subr.bf16.mxu1 %v24803_v4  ;;  %v25019_v4 = vld [vmem:[#allocation2 + $0x910] sm:$0xff]  ;;  %v8804_v46 = vsub.f32 %v25083_v24, %v28132_v10  ;;  %v25136_v10 = vld [vmem:[#allocation2 + $0x938] sm:$0xff] }
 0x5b8   :  { %v14345_v20 = vpop.f32.mrb[43].mxu0 }
 0x5b9   :  { %v14346_v9 = vadd.f32 %v14345_v20, %v14344_v45  ;;  %v24999_v8 = vadd.f32 %v14381_v3, %v6886_v5 }
 0x5ba   :  { %18546 = vmatpush3.bf16.msra.mxu1 %v24809_v36  ;;  %v25021_v36 = vld [vmem:[#allocation2 + $0x918] sm:$0xff] }
 0x5bb   :  { %v6892_v51 = vadd.f32 %v14346_v9, %v6719_v11  ;;  %18548 = vmatprep.subr.bf16.mxu1 %v24815_v0  ;;  %v25023_v0 = vld [vmem:[#allocation2 + $0x890] sm:$0xff] }
 0x5bd   :  { %v25003_v62 = vadd.f32 %v14384_v16, %v6892_v51 }
 0x5be   :  { %18550 = vmatpush3.bf16.msra.mxu1 %v29094_v43 }
 0x5bf   :  { %18552 = vmatprep.subr.bf16.mxu1 %v24827_v41  ;;  %v25026_v41 = vld [vmem:[#allocation2 + $0x898] sm:$0xff] }
 0x5c0   :  { %v8665_v18 = vand.u32 4294901760, %v25026_v41 }
 0x5c2   :  { %18554 = vmatpush3.bf16.msra.mxu1 %v24833_v61  ;;  %v25028_v61 = vld [vmem:[#allocation2 + $0x920] sm:$0xff]  ;;  %v25065_v56 = vsub.f32 %v25026_v41, %v8665_v18 }
 0x5c3   :  { %18556 = vmatprep.subr.bf16.mxu1 %v29095_v31 }
 0x5c6   :  { %18558 = vmatpush3.bf16.msra.mxu1 %v29096_v60  ;;  %v8805_v60 = vand.u32 4294901760, %v8804_v46 }
 0x5c7   :  { %18560 = vmatprep.subr.bf16.mxu1 %v29070_v15  ;;  %v25030_v15 = vld [vmem:[#allocation2 + $0x928] sm:$0xff] }
 0x5c8   :  { %v8719_v14 = vand.u32 4294901760, %v25030_v15 }
 0x5c9   :  { %8538 = vmatmul.mubr.f32.vlgmr.msra.gmra.mrb[120].mxu1 %v28382_v1 }
 0x5ca   :  { %18562 = vmatpush3.bf16.msra.mxu1 %v29072_v55  ;;  %8542 = vmatprep.mubr.f32.mxu1 %v28382_v1  ;;  %v8710_v55 = vand.u32 4294901760, %v25019_v4  ;;  %v25075_v37 = vsub.f32 %v25030_v15, %v8719_v14 }
 0x5cb   :  { %18564 = vmatprep.subr.bf16.mxu1 %v29073_v54  ;;  %v8713_v54 = vand.u32 4294901760, %v25021_v36 }
 0x5cc   :  { %v28134_v17 = vand.u32 4294901760, %v25075_v37 }
 0x5cd   :  { %8543 = vmatmul.mubr.f32.gmra.mrb[122].mxu1 %v28382_v1  ;;  %v25055_v28 = vsub.f32 %v25021_v36, %v8713_v54 }
 0x5ce   :  { %18566 = vmatpush3.bf16.msra.mxu1 %v29075_v39  ;;  %8644 = vmatprep.mubr.f32.mxu1 %v28382_v1  ;;  %v8662_v39 = vand.u32 4294901760, %v25023_v0  ;;  %v8923_v16 = vsub.f32 %v25075_v37, %v28134_v17 }
 0x5cf   :  { %18568 = vmatprep.subr.bf16.mxu1 %v29076_v23  ;;  %v8716_v23 = vand.u32 4294901760, %v25028_v61  ;;  %v28138_v33 = vand.u32 4294901760, %v25055_v28 }
 0x5d0   :  { %v8924_v31 = vand.u32 4294901760, %v8923_v16 }
 0x5d1   :  { %v25070_v25 = vsub.f32 %v25028_v61, %v8716_v23 }
 0x5d2   :  { %18570 = vmatpush3.bf16.msra.mxu1 %v29078_v2  ;;  %v25050_v2 = vsub.f32 %v25019_v4, %v8710_v55  ;;  %v25246_v4 = vpack.c.bf16 %v8665_v18, %v8662_v39 }
 0x5d3   :  { %18572 = vmatprep.subr.bf16.mxu1 %v29079_v44  ;;  %v25060_v44 = vsub.f32 %v25023_v0, %v8662_v39  ;;  %v28135_v11 = vand.u32 4294901760, %v25070_v25 }
 0x5d4   :  { %v28139_v53 = vand.u32 4294901760, %v25050_v2 }
 0x5d5   :  { %v28137_v35 = vand.u32 4294901760, %v25060_v44 }
 0x5d6   :  { %18574 = vmatpush3.bf16.msra.mxu1 %v29081_v12  ;;  %v29097_v12 = vld [vmem:[#allocation24_spill] sm:$0xff]  ;;  %v8902_v3 = vsub.f32 %v25050_v2, %v28139_v53 }
 0x5d7   :  { %18576 = vmatprep.subr.bf16.mxu1 %v29082_v26  ;;  %v28142_v58 = vand.u32 4294901760, %v29097_v12  ;;  %v25088_v26 = vsub.f32 %v25037_v59, %v8671_v49  ;;  %v8790_v19 = vsub.f32 %v25060_v44, %v28137_v35 }
 0x5d8   :  { %v8903_v45 = vand.u32 4294901760, %v8902_v3  ;;  %v28150_v3 = vand.u32 4294901760, %v25136_v10 }
 0x5d9   :  { %29099 = vst [vmem:[#allocation40_spill] sm:$0xff] %v25088_v26  ;;  %v28133_v38 = vand.u32 4294901760, %v25088_v26  ;;  %v8791_v9 = vand.u32 4294901760, %v8790_v19  ;;  %v25143_v19 = vld [vmem:[#allocation2 + $0x8b8] sm:$0xff] }
 0x5da   :  { %18578 = vmatpush3.bf16.msra.mxu1 %v29085_v30  ;;  %v28136_v30 = vand.u32 4294901760, %v25065_v56  ;;  %v29103_v59 = vand.u32 4294901760, %v25143_v19 }
 0x5db   :  { %18580 = vmatprep.subr.bf16.mxu1 %v29086_v47  ;;  %v8783_v47 = vsub.f32 %v29097_v12, %v28142_v58  ;;  %v8811_v5 = vsub.f32 %v25088_v26, %v28133_v38 }
 0x5dc   :  { %v8797_v57 = vsub.f32 %v25065_v56, %v28136_v30 }
 0x5dd   :  { %v8784_v50 = vand.u32 4294901760, %v8783_v47  ;;  %v8812_v7 = vand.u32 4294901760, %v8811_v5  ;;  %v25134_v47 = vld [vmem:[#allocation2 + $0x930] sm:$0xff] }
 0x5de   :  { %18582 = vmatpush3.bf16.msra.mxu1 %v29089_v22  ;;  %v8909_v22 = vsub.f32 %v25055_v28, %v28138_v33  ;;  %v8798_v51 = vand.u32 4294901760, %v8797_v57  ;;  %v28147_v57 = vand.u32 4294901760, %v25143_v19 }
 0x5df   :  { %18584 = vmatprep.subr.bf16.mxu1 %v29090_v32  ;;  %v8916_v32 = vsub.f32 %v25070_v25, %v28135_v11 }
 0x5e0   :  { %v8910_v20 = vand.u32 4294901760, %v8909_v22  ;;  %v25141_v22 = vld [vmem:[#allocation2 + $0x8b0] sm:$0xff]  ;;  %v25166_v5 = vsub.f32 %v25143_v19, %v28147_v57  ;;  %v25314_v19 = vld [vmem:[#allocation2 + $0x8e8] sm:$0xff] }
 0x5e1   :  { %v8917_v43 = vand.u32 4294901760, %v8916_v32  ;;  %v18629_v32 = vpack.c.bf16 %v8798_v51, %v8791_v9  ;;  %v29102_v52 = vand.u32 4294901760, %v25141_v22 }
 0x5e2   :  { %18586 = vmatpush3.bf16.msra.mxu1 %v29091_v27  ;;  %v18625_v27 = vpack.c.bf16 %v8784_v50, %v8777_v63  ;;  %v18627_v38 = vpack.c.bf16 %v8910_v20, %v8903_v45  ;;  %v25156_v63 = vsub.f32 %v25136_v10, %v28150_v3  ;;  %v18633_v50 = vpack.c.bf16 %v8812_v7, %v8805_v60  ;;  %v25168_v45 = vld [vmem:[#allocation2 + $0x940] sm:$0xff]  ;;  %v25170_v20 = vld [vmem:[#allocation2 + $0x948] sm:$0xff] }
 0x5e3   :  { %18588 = vmatprep.subr.bf16.mxu1 %v29092_v6  ;;  %v28152_v6 = vand.u32 4294901760, %v25134_v47  ;;  %v18631_v16 = vpack.c.bf16 %v8924_v31, %v8917_v43  ;;  %v28145_v43 = vand.u32 4294901760, %v25168_v45  ;;  %v28144_v31 = vand.u32 4294901760, %v25170_v20  ;;  %v25179_v60 = vld [vmem:[#allocation2 + $0x8c8] sm:$0xff] }
 0x5e4   :  { %v28141_v51 = vand.u32 4294901760, %v25156_v63  ;;  %v28149_v17 = vand.u32 4294901760, %v25166_v5 }
 0x5e5   :  { %v25194_v33 = vsub.f32 %v25168_v45, %v28145_v43  ;;  %v25199_v53 = vsub.f32 %v25170_v20, %v28144_v31 }
 0x5e6   :  { %18590 = vmatpush3.bf16.msra.mxu1 %v29093_v34  ;;  %v28148_v34 = vand.u32 4294901760, %v25141_v22  ;;  %v8937_v35 = vsub.f32 %v25156_v63, %v28141_v51  ;;  %v8825_v51 = vsub.f32 %v25166_v5, %v28149_v17 }
 0x5e7   :  { %18624 = vmatprep.subr.bf16.mxu1 %v24907_v13  ;;  %v25151_v13 = vsub.f32 %v25134_v47, %v28152_v6  ;;  %v28161_v43 = vand.u32 4294901760, %v25194_v33  ;;  %v25224_v6 = vld [vmem:[#allocation2 + $0x958] sm:$0xff] }
 0x5e8   :  { %v25161_v46 = vsub.f32 %v25141_v22, %v28148_v34  ;;  %v8938_v31 = vand.u32 4294901760, %v8937_v35  ;;  %v8826_v34 = vand.u32 4294901760, %v8825_v51  ;;  %v25238_v51 = vld [vmem:[#allocation2 + $0x8d0] sm:$0xff]  ;;  %v8737_v41 = vand.u32 4294901760, %v25224_v6 }
 0x5e9   :  { %8645 = vmatmul.mubr.f32.vlgmr.msra.gmra.mrb[124].mxu1 %v28382_v1  ;;  %v28140_v9 = vand.u32 4294901760, %v25151_v13 }
 0x5ea   :  { %18626 = vmatpush3.bf16.msra.mxu1 %v18625_v27  ;;  %8649 = vmatprep.mubr.f32.mxu1 %v28382_v1  ;;  %v25177_v27 = vld [vmem:[#allocation2 + $0x8c0] sm:$0xff]  ;;  %v28146_v7 = vand.u32 4294901760, %v25161_v46 }
 0x5eb   :  { %18628 = vmatprep.subr.bf16.mxu1 %v18627_v38  ;;  %v28151_v11 = vand.u32 4294901760, %v25177_v27  ;;  %v28153_v38 = vand.u32 4294901760, %v25179_v60  ;;  %v8930_v30 = vsub.f32 %v25151_v13, %v28140_v9 }
 0x5ec   :  { %v8818_v9 = vsub.f32 %v25161_v46, %v28146_v7  ;;  %v28159_v7 = vand.u32 4294901760, %v25199_v53 }
 0x5ed   :  { %8650 = vmatmul.mubr.f32.gmra.mrb[126].mxu1 %v28382_v1  ;;  %v25211_v58 = vsub.f32 %v25177_v27, %v28151_v11  ;;  %v25216_v48 = vsub.f32 %v25179_v60, %v28153_v38  ;;  %v25222_v11 = vld [vmem:[#allocation2 + $0x950] sm:$0xff]  ;;  %v25240_v38 = vld [vmem:[#allocation2 + $0x8d8] sm:$0xff] }
 0x5ee   :  { %18630 = vmatpush3.bf16.msra.mxu1 %v18629_v32  ;;  %v8931_v32 = vand.u32 4294901760, %v8930_v30  ;;  %v8819_v57 = vand.u32 4294901760, %v8818_v9  ;;  %v25230_v30 = vpack.c.bf16 %v8713_v54, %v8710_v55  ;;  %v8951_v9 = vsub.f32 %v25199_v53, %v28159_v7 }
 0x5ef   :  { %18632 = vmatprep.subr.bf16.mxu1 %v18631_v16  ;;  %v28155_v17 = vand.u32 4294901760, %v25211_v58  ;;  %v28154_v3 = vand.u32 4294901760, %v25216_v48  ;;  %v8944_v16 = vsub.f32 %v25194_v33, %v28161_v43  ;;  %v8734_v0 = vand.u32 4294901760, %v25222_v11 }
 0x5f0   :  { %v18635_v35 = vpack.c.bf16 %v8938_v31, %v8931_v32  ;;  %v18637_v36 = vpack.c.bf16 %v8826_v34, %v8819_v57  ;;  %18596 = vmatprep.subr.bf16.mxu0 %v25230_v30  ;;  %v28163_v34 = vand.u32 4294901760, %v25238_v51  ;;  %v28162_v57 = vand.u32 4294901760, %v25240_v38  ;;  %v25260_v32 = vld [vmem:[#allocation2 + $0x960] sm:$0xff] }
 0x5f1   :  { %v8832_v55 = vsub.f32 %v25211_v58, %v28155_v17  ;;  %v8839_v54 = vsub.f32 %v25216_v48, %v28154_v3  ;;  %v8945_v31 = vand.u32 4294901760, %v8944_v16  ;;  %18598 = vmatpush3.bf16.msra.mxu0 %v25246_v4  ;;  %v25280_v17 = vld [vmem:[#allocation2 + $0x968] sm:$0xff]  ;;  %v25283_v15 = vsub.f32 %v25222_v11, %v8734_v0 }
 0x5f2   :  { %18634 = vmatpush3.bf16.msra.mxu1 %v18633_v50  ;;  %v8952_v50 = vand.u32 4294901760, %v8951_v9  ;;  %v25272_v9 = vpack.c.bf16 %v8671_v49, %v8668_v40  ;;  %v25294_v40 = vld [vmem:[#allocation2 + $0x8e0] sm:$0xff]  ;;  %v25300_v49 = vsub.f32 %v25238_v51, %v28163_v34  ;;  %v25305_v11 = vsub.f32 %v25240_v38, %v28162_v57 }
 0x5f3   :  { %18636 = vmatprep.subr.bf16.mxu1 %v18635_v35  ;;  %v8833_v39 = vand.u32 4294901760, %v8832_v55  ;;  %v8840_v18 = vand.u32 4294901760, %v8839_v54  ;;  %v25266_v35 = vpack.c.bf16 %v8719_v14, %v8716_v23  ;;  %v29100_v55 = vand.u32 4294901760, %v25134_v47 }
 0x5f4   :  { %v18639_v16 = vpack.c.bf16 %v8952_v50, %v8945_v31  ;;  %v29101_v54 = vand.u32 4294901760, %v25136_v10  ;;  %v25286_v23 = vsub.f32 %v25224_v6, %v8737_v41  ;;  %v25292_v14 = vpack.c.bf16 %v29103_v59, %v29102_v52 }
 0x5f5   :  { %v18641_v61 = vpack.c.bf16 %v8840_v18, %v8833_v39  ;;  %18600 = vmatprep.subr.bf16.mxu0 %v25266_v35  ;;  %v29105_v10 = vand.u32 4294901760, %v25168_v45  ;;  %v29106_v47 = vand.u32 4294901760, %v25170_v20  ;;  %v8740_v22 = vand.u32 4294901760, %v25260_v32 }
 0x5f6   :  { %v25278_v3 = vpack.c.bf16 %v29101_v54, %v29100_v55  ;;  %18638 = vmatpush3.bf16.msra.mxu1 %v18637_v36  ;;  %29104 = vst [vmem:[#allocation41_spill] sm:$0xff] %v25292_v14  ;;  %18602 = vmatpush3.bf16.msra.mxu0 %v25272_v9  ;;  %v28157_v36 = vand.u32 4294901760, %v25283_v15  ;;  %v28156_v31 = vand.u32 4294901760, %v25286_v23  ;;  %v8743_v50 = vand.u32 4294901760, %v25280_v17 }
 0x5f7   :  { %18640 = vmatprep.subr.bf16.mxu1 %v18639_v16  ;;  %v25311_v6 = vpack.c.bf16 %v29106_v47, %v29105_v10  ;;  %v29108_v39 = vand.u32 4294901760, %v25177_v27  ;;  %v29109_v45 = vand.u32 4294901760, %v25179_v60  ;;  %v28158_v20 = vand.u32 4294901760, %v25300_v49 }
 0x5f8   :  { %18604 = vmatprep.subr.bf16.mxu0 %v25278_v3  ;;  %v28160_v16 = vand.u32 4294901760, %v25305_v11  ;;  %v25330_v55 = vsub.f32 %v25260_v32, %v8740_v22  ;;  %v8692_v54 = vand.u32 4294901760, %v25294_v40  ;;  %v8958_v27 = vsub.f32 %v25283_v15, %v28157_v36  ;;  %v7763_v36 = vld [vmem:[#allocation2 + $0x970] sm:$0xff] }
 0x5f9   :  { %29107 = vst [vmem:[#allocation23_spill] sm:$0xff] %v25311_v6  ;;  %v25324_v18 = vpack.c.bf16 %v29109_v45, %v29108_v39  ;;  %v8965_v60 = vsub.f32 %v25286_v23, %v28156_v31  ;;  %v25340_v52 = vsub.f32 %v25280_v17, %v8743_v50  ;;  %v8695_v59 = vand.u32 4294901760, %v25314_v19 }
 0x5fa   :  { %18642 = vmatpush3.bf16.msra.mxu1 %v18641_v61  ;;  %v8846_v32 = vsub.f32 %v25300_v49, %v28158_v20  ;;  %v8853_v61 = vsub.f32 %v25305_v11, %v28160_v16  ;;  %v28166_v10 = vand.u32 4294901760, %v25330_v55  ;;  %v25351_v47 = vsub.f32 %v25294_v40, %v8692_v54  ;;  %18606 = vmatpush3.bf16.msra.mxu0 %v25292_v14 }
 0x5fb   :  { %29110 = vst [vmem:[#allocation43_spill] sm:$0xff] %v25324_v18  ;;  %v8959_v39 = vand.u32 4294901760, %v8958_v27  ;;  %v8966_v45 = vand.u32 4294901760, %v8965_v60  ;;  %v28172_v17 = vand.u32 4294901760, %v25340_v52  ;;  %v25356_v31 = vsub.f32 %v25314_v19, %v8695_v59  ;;  %18608 = vmatprep.subr.bf16.mxu0 %v25311_v6  ;;  %v7764_v27 = vld [vmem:[#allocation2 + $0x978] sm:$0xff] }
 0x5fc   :  { %v8847_v20 = vand.u32 4294901760, %v8846_v32  ;;  %v8854_v7 = vand.u32 4294901760, %v8853_v61  ;;  %v8972_v16 = vsub.f32 %v25330_v55, %v28166_v10  ;;  %v28171_v40 = vand.u32 4294901760, %v25351_v47  ;;  %v7747_v32 = vld [vmem:[#allocation2 + $0x8f0] sm:$0xff]  ;;  %v7748_v61 = vld [vmem:[#allocation2 + $0x8f8] sm:$0xff] }
 0x5fd   :  { %v18643_v60 = vpack.c.bf16 %v8966_v45, %v8959_v39  ;;  %v8979_v43 = vsub.f32 %v25340_v52, %v28172_v17  ;;  %v28175_v19 = vand.u32 4294901760, %v25356_v31  ;;  %v25367_v57 = vpack.c.bf16 %v8737_v41, %v8734_v0 }
 0x5fe   :  { %v18645_v34 = vpack.c.bf16 %v8854_v7, %v8847_v20  ;;  %v8973_v6 = vand.u32 4294901760, %v8972_v16  ;;  %v8860_v10 = vsub.f32 %v25351_v47, %v28171_v40  ;;  %v8746_v26 = vand.u32 4294901760, %v7763_v36  ;;  %18610 = vmatpush3.bf16.msra.mxu0 %v25324_v18 }
 0x5ff   :  { %18644 = vmatprep.subr.bf16.mxu1 %v18643_v60  ;;  %v8980_v24 = vand.u32 4294901760, %v8979_v43  ;;  %v8867_v39 = vsub.f32 %v25356_v31, %v28175_v19  ;;  %v8749_v45 = vand.u32 4294901760, %v7764_v27  ;;  %v29111_v0 = vand.u32 4294901760, %v25238_v51  ;;  %18612 = vmatprep.subr.bf16.mxu0 %v25367_v57 }
 0x600   :  { %v29112_v41 = vand.u32 4294901760, %v25240_v38  ;;  %18646 = vmatpush3.bf16.msra.mxu1 %v18645_v34  ;;  %v8861_v20 = vand.u32 4294901760, %v8860_v10  ;;  %v25383_v16 = vsub.f32 %v7763_v36, %v8746_v26  ;;  %v8698_v43 = vand.u32 4294901760, %v7747_v32 }
 0x601   :  { %v8701_v60 = vand.u32 4294901760, %v7748_v61  ;;  %v18647_v40 = vpack.c.bf16 %v8980_v24, %v8973_v6  ;;  %v8868_v17 = vand.u32 4294901760, %v8867_v39  ;;  %v25385_v18 = vsub.f32 %v7764_v27, %v8749_v45 }
 0x602   :  { %v25380_v7 = vpack.c.bf16 %v29112_v41, %v29111_v0  ;;  %v25387_v19 = vpack.c.bf16 %v8743_v50, %v8740_v22  ;;  %v28181_v51 = vand.u32 4294901760, %v25383_v16  ;;  %v25390_v14 = vsub.f32 %v7747_v32, %v8698_v43 }
 0x603   :  { %v25392_v38 = vsub.f32 %v7748_v61, %v8701_v60  ;;  %18648 = vmatprep.subr.bf16.mxu1 %v18647_v40  ;;  %v18649_v34 = vpack.c.bf16 %v8868_v17, %v8861_v20  ;;  %v28180_v10 = vand.u32 4294901760, %v25385_v18  ;;  %v25405_v50 = vpack.c.bf16 %v8695_v59, %v8692_v54  ;;  %v29113_v20 = vld [vmem:[#allocation11_spill] sm:$0xff] }
 0x604   :  { %18614 = vmatpush3.bf16.msra.mxu0 %v25380_v7  ;;  %v8986_v24 = vsub.f32 %v25383_v16, %v28181_v51  ;;  %v28179_v6 = vand.u32 4294901760, %v25390_v14  ;;  %v25414_v61 = vpack.c.bf16 %v8749_v45, %v8746_v26  ;;  %v25416_v41 = vpack.c.bf16 %v8701_v60, %v8698_v43  ;;  %v29120_v43 = vld [vmem:[#allocation23_spill] sm:$0xff] }
 0x605   :  { %v28178_v22 = vand.u32 4294901760, %v25392_v38  ;;  %18616 = vmatprep.subr.bf16.mxu0 %v25387_v19  ;;  %18650 = vmatpush3.bf16.msra.mxu1 %v18649_v34  ;;  %v8993_v36 = vsub.f32 %v25385_v18, %v28180_v10  ;;  %v29114_v34 = vld [vmem:[#allocation18_spill] sm:$0xff]  ;;  %v18667_v26 = vpack.c.bf16 %v25156_v63, %v25151_v13  ;;  %v18669_v45 = vpack.c.bf16 %v25166_v5, %v25161_v46 }
 0x606   :  { %v8987_v17 = vand.u32 4294901760, %v8986_v24  ;;  %v8874_v40 = vsub.f32 %v25390_v14, %v28179_v6  ;;  %v18655_v24 = vpack.c.bf16 %v29114_v34, %v29113_v20  ;;  %v18661_v60 = vpack.c.bf16 %v25065_v56, %v25060_v44 }
 0x607   :  { %v8881_v27 = vsub.f32 %v25392_v38, %v28178_v22  ;;  %v8994_v32 = vand.u32 4294901760, %v8993_v36 }
 0x608   :  { %18618 = vmatpush3.bf16.msra.mxu0 %v25405_v50  ;;  %v8875_v39 = vand.u32 4294901760, %v8874_v40 }
 0x609   :  { %v8882_v0 = vand.u32 4294901760, %v8881_v27  ;;  %v18651_v54 = vpack.c.bf16 %v8994_v32, %v8987_v17  ;;  %18620 = vmatprep.subr.bf16.mxu0 %v25414_v61  ;;  %v18659_v17 = vpack.c.bf16 %v25055_v28, %v25050_v2  ;;  %v10253_v27 = vld [vmem:[#allocation2 + $0xa48] sm:$0xff] }
 0x60b   :  { %v18653_v59 = vpack.c.bf16 %v8882_v0, %v8875_v39  ;;  %18652 = vmatprep.subr.bf16.mxu1 %v18651_v54 }
 0x60c   :  { %18622 = vmatpush3.bf16.msra.mxu0 %v25416_v41 }
 0x60d   :  { %18654 = vmatpush3.bf16.msra.mxu1 %v18653_v59  ;;  %18656 = vmatprep.subr.bf16.mxu0 %v18655_v24 }
 0x60e   :  { %18688 = vmatprep.subr.bf16.mxu1 %v24967_v42 }
 0x673   :  { %v16250_v0 = vpop.f32.mrb[44].mxu0 }
 0x674   :  { %v19555_v54 = vadd.f32 %v16250_v0, %v25003_v62  ;;  %v7678_v59 = vpop.f32.mrb[45].mxu0 }
 0x675   :  { %v19556_v24 = vadd.f32 %v7678_v59, %v24999_v8 }
 0x676   :  { %19629 = vtanh.f32 %v19555_v54 }
 0x677   :  { %19631 = vtanh.f32 %v19556_v24 }
 0x680   :  { %v25445_v22 = vpop.eup %19629 }
 0x681   :  { %v25447_v6 = vpop.eup %19631  ;;  %v7693_v10 = vrot.slane %v25445_v22, 7 }
 0x682   :  { %v7692_v51 = vrot.slane %v25447_v6, 7 }
 0x684   :  { %v7697_v32 = vsel %vm52_vm2, 0.0, %v7692_v51  ;;  %v7694_v39 = vsel %vm52_vm2, %v7692_v51, %v7693_v10 }
 0x685   :  { %v7698_v62 = vsel %vm69_vm3, %v7697_v32, 0.0  ;;  %v7699_v8 = vsel %vm70_vm4, %v7694_v39, 0.0 }
 0x686   :  { %v25457_v54 = vand.u32 4294901760, %v7698_v62  ;;  %v25459_v59 = vand.u32 4294901760, %v7699_v8 }
 0x688   :  { %8997 = vmatprep.mubr.f32.mxu1 %v25457_v54  ;;  %v8752_v24 = vsub.f32 %v7698_v62, %v25457_v54  ;;  %v25464_v40 = vsub.f32 %v7699_v8, %v25459_v59  ;;  %v18657_v8 = vpack.c.bf16 %v29097_v12, %v24884_v21 }
 0x689   :  { %8998 = vmatmul.mubr.f32.vlgmr.msra.gmra.mrb[128].mxu1 %v28382_v1 }
 0x68a   :  { %18690 = vmatpush3.bf16.msra.mxu1 %v24976_v29  ;;  %9003 = vmatprep.mubr.f32.mxu1 %v25459_v59  ;;  %v8753_v51 = vand.u32 4294901760, %v8752_v24  ;;  %v8763_v10 = vand.u32 4294901760, %v25464_v40 }
 0x68b   :  { %18692 = vmatprep.subr.bf16.mxu1 %v25230_v30 }
 0x68c   :  { %v8754_v32 = vsub.f32 %v8752_v24, %v8753_v51  ;;  %v8764_v39 = vsub.f32 %v25464_v40, %v8763_v10 }
 0x68d   :  { %9004 = vmatmul.mubr.f32.gmra.mrb[130].mxu1 %v28382_v1 }
 0x68e   :  { %18694 = vmatpush3.bf16.msra.mxu1 %v25246_v4  ;;  %9251 = vmatprep.mubr.f32.mxu1 %v8753_v51  ;;  %v8755_v62 = vand.u32 4294901760, %v8754_v32  ;;  %v8765_v36 = vand.u32 4294901760, %v8764_v39  ;;  %v18663_v51 = vpack.c.bf16 %v25075_v37, %v25070_v25  ;;  %v29117_v32 = vld [vmem:[#allocation41_spill] sm:$0xff]  ;;  %v29119_v39 = vld [vmem:[#allocation40_spill] sm:$0xff] }
 0x68f   :  { %18696 = vmatprep.subr.bf16.mxu1 %v25266_v35 }
 0x690   :  { %8756 = vmatprep.mubr.f32.mxu0 %v8755_v62  ;;  %v29118_v62 = vld [vmem:[#allocation17_spill] sm:$0xff] }
 0x691   :  { %8757 = vmatmul.mubr.f32.vlgmr.msra.gmra.mrb[46].mxu0 %v28382_v1 }
 0x692   :  { %18658 = vmatpush3.bf16.msra.mxu0 %v18657_v8  ;;  %18698 = vmatpush3.bf16.msra.mxu1 %v25272_v9  ;;  %v18665_v8 = vpack.c.bf16 %v29119_v39, %v29118_v62 }
 0x693   :  { %8766 = vmatprep.mubr.f32.mxu0 %v8765_v36  ;;  %18660 = vmatprep.subr.bf16.mxu0 %v18659_v17  ;;  %v29121_v36 = vld [vmem:[#allocation43_spill] sm:$0xff]  ;;  %v29123_v17 = vpack.c.bf16 %v25216_v48, %v25211_v58 }
 0x694   :  { %18700 = vmatprep.subr.bf16.mxu1 %v25278_v3 }
 0x695   :  { %8767 = vmatmul.mubr.f32.gmra.mrb[48].mxu0 %v28382_v1 }
 0x696   :  { %18662 = vmatpush3.bf16.msra.mxu0 %v18661_v60  ;;  %18702 = vmatpush3.bf16.msra.mxu1 %v29117_v32  ;;  %v29122_v60 = vpack.c.bf16 %v25199_v53, %v25194_v33 }
 0x697   :  { %9139 = vmatprep.mubr.f32.mxu0 %v8752_v24  ;;  %18664 = vmatprep.subr.bf16.mxu0 %v18663_v51  ;;  %v29126_v24 = vpack.c.bf16 %v25340_v52, %v25330_v55  ;;  %v29127_v51 = vpack.c.bf16 %v25356_v31, %v25351_v47 }
 0x698   :  { %18704 = vmatprep.subr.bf16.mxu1 %v29120_v43 }
 0x69a   :  { %18666 = vmatpush3.bf16.msra.mxu0 %v18665_v8  ;;  %18706 = vmatpush3.bf16.msra.mxu1 %v29121_v36  ;;  %v29128_v8 = vpack.c.bf16 %v25385_v18, %v25383_v16 }
 0x69b   :  { %18668 = vmatprep.subr.bf16.mxu0 %v18667_v26  ;;  %18708 = vmatprep.subr.bf16.mxu1 %v25367_v57  ;;  %v29124_v26 = vpack.c.bf16 %v25286_v23, %v25283_v15 }
 0x69e   :  { %18670 = vmatpush3.bf16.msra.mxu0 %v18669_v45  ;;  %18710 = vmatpush3.bf16.msra.mxu1 %v25380_v7  ;;  %v29125_v45 = vpack.c.bf16 %v25305_v11, %v25300_v49 }
 0x69f   :  { %18672 = vmatprep.subr.bf16.mxu0 %v29122_v60  ;;  %18712 = vmatprep.subr.bf16.mxu1 %v25387_v19  ;;  %v29129_v60 = vand.u32 4294901760, %v29113_v20  ;;  %v29134_v20 = vand.u32 4294901760, %v25050_v2  ;;  %v29138_v2 = vand.u32 4294901760, %v25070_v25  ;;  %v29142_v25 = vand.u32 4294901760, %v25151_v13 }
 0x6a0   :  { %v29148_v13 = vand.u32 4294901760, %v25211_v58  ;;  %v29155_v58 = vand.u32 4294901760, %v25340_v52  ;;  %v29160_v52 = vand.u32 4294901760, %v25385_v18  ;;  %v29162_v18 = vand.u32 4294901760, %v25392_v38 }
 0x6a2   :  { %18674 = vmatpush3.bf16.msra.mxu0 %v29123_v17  ;;  %18714 = vmatpush3.bf16.msra.mxu1 %v25405_v50  ;;  %v29130_v17 = vand.u32 4294901760, %v29114_v34 }
 0x6a3   :  { %18676 = vmatprep.subr.bf16.mxu0 %v29124_v26  ;;  %18716 = vmatprep.subr.bf16.mxu1 %v25414_v61 }
 0x6a4   :  { %v18719_v26 = vpack.c.bf16 %v29130_v17, %v29129_v60  ;;  %v25617_v60 = vld [vmem:[#allocation2 + $0x990] sm:$0xff]  ;;  %v25619_v17 = vld [vmem:[#allocation2 + $0x998] sm:$0xff] }
 0x6a6   :  { %18678 = vmatpush3.bf16.msra.mxu0 %v29125_v45  ;;  %18718 = vmatpush3.bf16.msra.mxu1 %v25416_v41 }
 0x6a7   :  { %18680 = vmatprep.subr.bf16.mxu0 %v29126_v24  ;;  %18752 = vmatprep.subr.bf16.mxu1 %v24967_v42  ;;  %v29131_v42 = vpack.c.bf16 %v25392_v38, %v25390_v14  ;;  %v14525_v38 = vpop.f32.mrb[104].mxu1 }
 0x6a9   :  { %9252 = vmatmul.mubr.f32.vlgmr.msra.gmra.mrb[132].mxu1 %v28382_v1 }
 0x6aa   :  { %18682 = vmatpush3.bf16.msra.mxu0 %v29127_v51  ;;  %9259 = vmatprep.mubr.f32.mxu1 %v8763_v10  ;;  %v29133_v10 = vand.u32 4294901760, %v29097_v12  ;;  %v29137_v12 = vand.u32 4294901760, %v25065_v56  ;;  %v29141_v56 = vand.u32 4294901760, %v29119_v39 }
 0x6ab   :  { %18754 = vmatpush3.bf16.msra.mxu1 %v24976_v29  ;;  %18684 = vmatprep.subr.bf16.mxu0 %v29128_v8  ;;  %v29132_v29 = vand.u32 4294901760, %v24884_v21  ;;  %v29136_v21 = vand.u32 4294901760, %v25060_v44  ;;  %v29140_v44 = vand.u32 4294901760, %v29118_v62  ;;  %v29146_v62 = vand.u32 4294901760, %v25194_v33 }
 0x6ac   :  { %18756 = vmatprep.subr.bf16.mxu1 %v25230_v30  ;;  %v29135_v30 = vand.u32 4294901760, %v25055_v28  ;;  %v29139_v28 = vand.u32 4294901760, %v25075_v37  ;;  %v29143_v37 = vand.u32 4294901760, %v25156_v63  ;;  %v29149_v63 = vand.u32 4294901760, %v25216_v48 }
 0x6ad   :  { %9260 = vmatmul.mubr.f32.gmra.mrb[134].mxu1 %v28382_v1  ;;  %v18721_v45 = vpack.c.bf16 %v29133_v10, %v29132_v29  ;;  %v18725_v24 = vpack.c.bf16 %v29137_v12, %v29136_v21  ;;  %v29153_v33 = vand.u32 4294901760, %v25305_v11  ;;  %v29154_v48 = vand.u32 4294901760, %v25330_v55  ;;  %v25640_v29 = vld [vmem:[#allocation2 + $0x9a0] sm:$0xff]  ;;  %v25658_v12 = vld [vmem:[#allocation2 + $0x9b0] sm:$0xff] }
 0x6ae   :  { %18686 = vmatpush3.bf16.msra.mxu0 %v29131_v42  ;;  %9535 = vmatprep.mubr.f32.mxu1 %v25457_v54  ;;  %v18723_v34 = vpack.c.bf16 %v29135_v30, %v29134_v20  ;;  %v29158_v11 = vand.u32 4294901760, %v25356_v31  ;;  %v29159_v55 = vand.u32 4294901760, %v25383_v16  ;;  %v12799_v30 = vld [vmem:[#allocation5 + $0x3] ss:$0 sm:$0xff] }
 0x6af   :  { %18758 = vmatpush3.bf16.msra.mxu1 %v25246_v4  ;;  %18720 = vmatprep.subr.bf16.mxu0 %v18719_v26  ;;  %v18727_v4 = vpack.c.bf16 %v29139_v28, %v29138_v2  ;;  %v9557_v26 = vand.u32 4294901760, %v25619_v17 }
 0x6b0   :  { %18760 = vmatprep.subr.bf16.mxu1 %v25266_v35  ;;  %v18729_v35 = vpack.c.bf16 %v29141_v56, %v29140_v44 }
 0x6b1   :  { %9140 = vmatmul.mubr.f32.vlgmr.msra.gmra.mrb[50].mxu0 %v28382_v1 }
 0x6b2   :  { %9146 = vmatprep.mubr.f32.mxu0 %v25464_v40  ;;  %18722 = vmatpush3.bf16.msra.mxu0 %v18721_v45  ;;  %v29145_v40 = vand.u32 4294901760, %v25166_v5  ;;  %v29151_v5 = vand.u32 4294901760, %v25286_v23  ;;  %v25601_v23 = vld [vmem:[#allocation2 + $0x988] sm:$0xff]  ;;  %v9560_v45 = vand.u32 4294901760, %v25640_v29 }
 0x6b3   :  { %18762 = vmatpush3.bf16.msra.mxu1 %v25272_v9  ;;  %18724 = vmatprep.subr.bf16.mxu0 %v18723_v34  ;;  %v18731_v9 = vpack.c.bf16 %v29143_v37, %v29142_v25  ;;  %v9551_v8 = vand.u32 4294901760, %v25601_v23  ;;  %v14526_v34 = vpop.f32.mrb[105].mxu1  ;;  %v9566_v37 = vand.u32 4294901760, %v25658_v12 }
 0x6b4   :  { %18764 = vmatprep.subr.bf16.mxu1 %v25278_v3  ;;  %v29144_v3 = vand.u32 4294901760, %v25161_v46  ;;  %v29150_v46 = vand.u32 4294901760, %v25283_v15  ;;  %v25599_v15 = vld [vmem:[#allocation2 + $0x980] sm:$0xff]  ;;  %v14527_v2 = vadd.f32 %v14526_v34, %v14525_v38  ;;  %v14528_v28 = vpop.f32.mrb[106].mxu1 }
 0x6b5   :  { %9147 = vmatmul.mubr.f32.gmra.mrb[52].mxu0 %v28382_v1  ;;  %v9548_v51 = vand.u32 4294901760, %v25599_v15 }
 0x6b6   :  { %18726 = vmatpush3.bf16.msra.mxu0 %v18725_v24  ;;  %9426 = vmatprep.mubr.f32.mxu0 %v25457_v54  ;;  %v18733_v54 = vpack.c.bf16 %v29145_v40, %v29144_v3  ;;  %v25660_v24 = vld [vmem:[#allocation2 + $0x9b8] sm:$0xff]  ;;  %v7888_v44 = vadd.f32 %v14527_v2, %v12799_v30 }
 0x6b7   :  { %18766 = vmatpush3.bf16.msra.mxu1 %v29117_v32  ;;  %18728 = vmatprep.subr.bf16.mxu0 %v18727_v4  ;;  %v29147_v32 = vand.u32 4294901760, %v25199_v53  ;;  %v29152_v53 = vand.u32 4294901760, %v25300_v49  ;;  %v29157_v49 = vand.u32 4294901760, %v25351_v47  ;;  %v29161_v47 = vand.u32 4294901760, %v25390_v14  ;;  %v25642_v14 = vld [vmem:[#allocation2 + $0x9a8] sm:$0xff]  ;;  %v14529_v4 = vpop.f32.mrb[107].mxu1 }
 0x6b8   :  { %18768 = vmatprep.subr.bf16.mxu1 %v29120_v43  ;;  %v18737_v43 = vpack.c.bf16 %v29149_v63, %v29148_v13  ;;  %v9563_v20 = vand.u32 4294901760, %v25642_v14  ;;  %v14530_v56 = vadd.f32 %v14529_v4, %v14528_v28 }
 0x6b9   :  { %v18735_v39 = vpack.c.bf16 %v29147_v32, %v29146_v62  ;;  %v18749_v16 = vpack.c.bf16 %v29162_v18, %v29161_v47 }
 0x6ba   :  { %18730 = vmatpush3.bf16.msra.mxu0 %v18729_v35  ;;  %v14563_v35 = vpop.f32.mrb[108].mxu1  ;;  %v25670_v25 = vpack.c.bf16 %v9563_v20, %v9560_v45  ;;  %v7893_v62 = vadd.f32 %v14530_v56, %v12799_v30  ;;  %v25723_v56 = vld [vmem:[#allocation2 + $0x9f8] sm:$0xff] }
 0x6bb   :  { %18770 = vmatpush3.bf16.msra.mxu1 %v29121_v36  ;;  %18732 = vmatprep.subr.bf16.mxu0 %v18731_v9  ;;  %v18739_v36 = vpack.c.bf16 %v29151_v5, %v29150_v46  ;;  %v9569_v9 = vand.u32 4294901760, %v25660_v24  ;;  %v14564_v3 = vpop.f32.mrb[109].mxu1 }
 0x6bc   :  { %18772 = vmatprep.subr.bf16.mxu1 %v25367_v57  ;;  %v18741_v57 = vpack.c.bf16 %v29153_v33, %v29152_v53  ;;  %v14565_v32 = vadd.f32 %v14564_v3, %v14563_v35 }
 0x6bd   :  { %v25685_v5 = vpack.c.bf16 %v9569_v9, %v9566_v37 }
 0x6be   :  { %18734 = vmatpush3.bf16.msra.mxu0 %v18733_v54  ;;  %v25676_v54 = vld [vmem:[#allocation2 + $0x9c8] sm:$0xff]  ;;  %v8123_v63 = vadd.f32 %v14565_v32, %v7888_v44  ;;  %v25721_v44 = vld [vmem:[#allocation2 + $0x9f0] sm:$0xff] }
 0x6bf   :  { %18774 = vmatpush3.bf16.msra.mxu1 %v25380_v7  ;;  %18736 = vmatprep.subr.bf16.mxu0 %v18735_v39  ;;  %v18743_v7 = vpack.c.bf16 %v29155_v58, %v29154_v48  ;;  %v14566_v39 = vpop.f32.mrb[110].mxu1  ;;  %v9575_v53 = vand.u32 4294901760, %v25676_v54  ;;  %v25691_v48 = vld [vmem:[#allocation2 + $0x9d8] sm:$0xff] }
 0x6c0   :  { %18776 = vmatprep.subr.bf16.mxu1 %v25387_v19  ;;  %v25604_v19 = vand.u32 4294901760, %v25447_v6  ;;  %v14567_v13 = vpop.f32.mrb[111].mxu1  ;;  %v9581_v38 = vand.u32 4294901760, %v25691_v48 }
 0x6c1   :  { %v14601_v46 = vpop.f32.mrb[112].mxu1 }
 0x6c2   :  { %18738 = vmatpush3.bf16.msra.mxu0 %v18737_v43  ;;  %29156 = vst [vmem:[#allocation26_spill] sm:$0xff] %v25604_v19  ;;  %v25623_v31 = vsub.f32 %v25447_v6, %v25604_v19  ;;  %v9554_v6 = vand.u32 4294901760, %v25617_v60  ;;  %v14568_v43 = vadd.f32 %v14567_v13, %v14566_v39  ;;  %v14602_v33 = vpop.f32.mrb[113].mxu1  ;;  %v25739_v13 = vand.u32 4294901760, %v25445_v22 }
 0x6c3   :  { %18778 = vmatpush3.bf16.msra.mxu1 %v25405_v50  ;;  %18740 = vmatprep.subr.bf16.mxu0 %v18739_v36  ;;  %v18745_v50 = vpack.c.bf16 %v29158_v11, %v29157_v49  ;;  %v14604_v49 = vpop.f32.mrb[114].mxu1  ;;  %v25696_v11 = vsub.f32 %v25599_v15, %v9548_v51 }
 0x6c4   :  { %18780 = vmatprep.subr.bf16.mxu1 %v25414_v61  ;;  %v18747_v61 = vpack.c.bf16 %v29160_v52, %v29159_v55  ;;  %v28199_v42 = vand.u32 4294901760, %v25623_v31  ;;  %v25650_v10 = vpack.c.bf16 %v9557_v26, %v9554_v6  ;;  %v8128_v58 = vadd.f32 %v14568_v43, %v7893_v62  ;;  %v25699_v55 = vld [vmem:[#allocation2 + $0x9e0] sm:$0xff]  ;;  %v25701_v52 = vld [vmem:[#allocation2 + $0x9e8] sm:$0xff]  ;;  %29168 = vst [vmem:[#allocation21_spill] sm:$0xff] %v25739_v13 }
 0x6c5   :  { %29163 = vst [vmem:[#allocation16_spill] sm:$0xff] %v25696_v11  ;;  %v9587_v2 = vand.u32 4294901760, %v25701_v52  ;;  %v28198_v28 = vand.u32 4294901760, %v25696_v11  ;;  %v25729_v3 = vsub.f32 %v25617_v60, %v9554_v6 }
 0x6c6   :  { %18742 = vmatpush3.bf16.msra.mxu0 %v18741_v57  ;;  %v9631_v21 = vsub.f32 %v25623_v31, %v28199_v42  ;;  %v25689_v57 = vld [vmem:[#allocation2 + $0x9d0] sm:$0xff] }
 0x6c7   :  { %18782 = vmatpush3.bf16.msra.mxu1 %v25416_v41  ;;  %18744 = vmatprep.subr.bf16.mxu0 %v18743_v7  ;;  %v25635_v41 = vpack.c.bf16 %v9551_v8, %v9548_v51  ;;  %v14603_v7 = vadd.f32 %v14602_v33, %v14601_v46  ;;  %v9578_v51 = vand.u32 4294901760, %v25689_v57  ;;  %29166 = vst [vmem:[#allocation39_spill] sm:$0xff] %v25729_v3 }
 0x6c8   :  { %v9632_v40 = vand.u32 4294901760, %v9631_v21 }
 0x6c9   :  { %v8262_v47 = vadd.f32 %v14603_v7, %v8123_v63  ;;  %v25736_v39 = vpack.c.bf16 %v9581_v38, %v9578_v51  ;;  %v25744_v63 = vsub.f32 %v25619_v17, %v9557_v26  ;;  %v9593_v7 = vand.u32 4294901760, %v25723_v56 }
 0x6ca   :  { %9536 = vmatmul.mubr.f32.vlgmr.msra.gmra.mrb[136].mxu1 %v28382_v1  ;;  %18746 = vmatpush3.bf16.msra.mxu0 %v18745_v50  ;;  %v14605_v50 = vpop.f32.mrb[115].mxu1 }
 0x6cb   :  { %9541 = vmatprep.mubr.f32.mxu1 %v25459_v59  ;;  %18748 = vmatprep.subr.bf16.mxu0 %v18747_v61  ;;  %v25706_v61 = vsub.f32 %v25601_v23, %v9551_v8  ;;  %v14606_v18 = vadd.f32 %v14605_v50, %v14604_v49  ;;  %v9584_v8 = vand.u32 4294901760, %v25699_v55  ;;  %29167 = vst [vmem:[#allocation13_spill] sm:$0xff] %v25736_v39  ;;  %29169 = vst [vmem:[#allocation35_spill] sm:$0xff] %v25744_v63 }
 0x6cc   :  { %v9652_v49 = vsub.f32 %v25696_v11, %v28198_v28  ;;  %v28196_v50 = vand.u32 4294901760, %v25729_v3 }
 0x6cd   :  { %29164 = vst [vmem:[#allocation44_spill] sm:$0xff] %v25706_v61  ;;  %v8267_v34 = vadd.f32 %v14606_v18, %v8128_v58  ;;  %v28197_v35 = vand.u32 4294901760, %v25706_v61  ;;  %v25750_v33 = vpack.c.bf16 %v9587_v2, %v9584_v8  ;;  %v9590_v58 = vand.u32 4294901760, %v25721_v44 }
 0x6ce   :  { %18750 = vmatpush3.bf16.msra.mxu0 %v18749_v16  ;;  %9542 = vmatmul.mubr.f32.gmra.mrb[138].mxu1 %v28382_v1  ;;  %v14639_v16 = vpop.f32.mrb[116].mxu1 }
 0x6cf   :  { %18784 = vmatprep.subr.bf16.mxu0 %v25635_v41  ;;  %10428 = vmatprep.mubr.f32.mxu1 %v28382_v1  ;;  %v14640_v30 = vpop.f32.mrb[117].mxu1  ;;  %29170 = vst [vmem:[#allocation47_spill] sm:$0xff] %v25750_v33  ;;  %v9659_v26 = vsub.f32 %v25706_v61, %v28197_v35 }
 0x6d0   :  { %v14641_v21 = vadd.f32 %v14640_v30, %v14639_v16  ;;  %v14642_v23 = vpop.f32.mrb[118].mxu1  ;;  %v25765_v30 = vsub.f32 %v25445_v22, %v25739_v13  ;;  %v25782_v22 = vpack.c.bf16 %v9593_v7, %v9590_v58 }
 0x6d1   :  { %9427 = vmatmul.mubr.f32.vlgmr.msra.gmra.mrb[54].mxu0 %v28382_v1  ;;  %v14643_v4 = vpop.f32.mrb[119].mxu1 }
 0x6d2   :  { %9432 = vmatprep.mubr.f32.mxu0 %v25459_v59  ;;  %18786 = vmatpush3.bf16.msra.mxu0 %v25635_v41  ;;  %v25674_v59 = vld [vmem:[#allocation2 + $0x9c0] sm:$0xff]  ;;  %v14644_v62 = vadd.f32 %v14643_v4, %v14642_v23  ;;  %v14677_v32 = vpop.f32.mrb[120].mxu1  ;;  %v25776_v23 = vsub.f32 %v25642_v14, %v9563_v20  ;;  %29173 = vst [vmem:[#allocation49_spill] sm:$0xff] %v25782_v22  ;;  %v9660_v20 = vand.u32 4294901760, %v9659_v26 }
 0x6d3   :  { %18788 = vmatprep.subr.bf16.mxu0 %v25650_v10  ;;  %v9572_v36 = vand.u32 4294901760, %v25674_v59  ;;  %v14678_v60 = vpop.f32.mrb[121].mxu1  ;;  %v25792_v14 = vsub.f32 %v25660_v24, %v9569_v9 }
 0x6d4   :  { %v8374_v6 = vadd.f32 %v14644_v62, %v8267_v34  ;;  %v14679_v43 = vadd.f32 %v14678_v60, %v14677_v32  ;;  %v14680_v46 = vpop.f32.mrb[122].mxu1  ;;  %v28195_v34 = vand.u32 4294901760, %v25744_v63  ;;  %29172 = vst [vmem:[#allocation48_spill] sm:$0xff] %v25776_v23  ;;  %v9653_v60 = vand.u32 4294901760, %v9652_v49 }
 0x6d5   :  { %9433 = vmatmul.mubr.f32.gmra.mrb[56].mxu0 %v28382_v1  ;;  %v25713_v15 = vpack.c.bf16 %v9575_v53, %v9572_v36  ;;  %v14681_v17 = vpop.f32.mrb[123].mxu1  ;;  %29175 = vst [vmem:[#allocation50_spill] sm:$0xff] %v25792_v14  ;;  %v28184_v9 = vand.u32 4294901760, %v25776_v23  ;;  %v28182_v26 = vand.u32 4294901760, %v25792_v14 }
 0x6d6   :  { %18790 = vmatpush3.bf16.msra.mxu0 %v25650_v10  ;;  %16283 = vmatprep.mubr.f32.mxu0 %v9632_v40  ;;  %v8369_v40 = vadd.f32 %v14641_v21, %v8262_v47  ;;  %v14682_v18 = vadd.f32 %v14681_v17, %v14680_v46  ;;  %v14715_v16 = vpop.f32.mrb[124].mxu1  ;;  %v25771_v21 = vsub.f32 %v25640_v29, %v9560_v45 }
 0x6d7   :  { %18792 = vmatprep.subr.bf16.mxu0 %v25670_v25  ;;  %29165 = vst [vmem:[#allocation37_spill] sm:$0xff] %v25713_v15  ;;  %v14716_v4 = vpop.f32.mrb[125].mxu1  ;;  %v25787_v29 = vsub.f32 %v25658_v12, %v9566_v37  ;;  %v28194_v12 = vand.u32 4294901760, %v25765_v30  ;;  %v9673_v24 = vsub.f32 %v25744_v63, %v28195_v34  ;;  %v25962_v34 = vld [vmem:[#allocation2 + $0xa28] sm:$0xff] }
 0x6d8   :  { %v8540_v47 = vadd.f32 %v14679_v43, %v8369_v40  ;;  %29171 = vst [vmem:[#allocation36_spill] sm:$0xff] %v25771_v21  ;;  %v8545_v40 = vadd.f32 %v14682_v18, %v8374_v6  ;;  %v14717_v62 = vadd.f32 %v14716_v4, %v14715_v16  ;;  %v14718_v32 = vpop.f32.mrb[126].mxu1  ;;  %v9666_v6 = vsub.f32 %v25729_v3, %v28196_v50 }
 0x6d9   :  { %29174 = vst [vmem:[#allocation30_spill] sm:$0xff] %v25787_v29  ;;  %v14719_v45 = vpop.f32.mrb[127].mxu1  ;;  %v28193_v37 = vand.u32 4294901760, %v25771_v21  ;;  %v28183_v17 = vand.u32 4294901760, %v25787_v29  ;;  %v25815_v16 = vsub.f32 %v25674_v59, %v9572_v36  ;;  %v25820_v4 = vsub.f32 %v25676_v54, %v9575_v53 }
 0x6da   :  { %18794 = vmatpush3.bf16.msra.mxu0 %v25670_v25  ;;  %v25798_v43 = vadd.f32 %v14717_v62, %v8540_v47  ;;  %v14720_v46 = vadd.f32 %v14719_v45, %v14718_v32  ;;  %v18815_v47 = vpack.c.bf16 %v9660_v20, %v9653_v60  ;;  %v9667_v18 = vand.u32 4294901760, %v9666_v6 }
 0x6db   :  { %18796 = vmatprep.subr.bf16.mxu0 %v25685_v5  ;;  %29178 = vst [vmem:[#allocation12_spill] sm:$0xff] %v25815_v16  ;;  %29179 = vst [vmem:[#allocation19_spill] sm:$0xff] %v25820_v4  ;;  %v9674_v62 = vand.u32 4294901760, %v9673_v24  ;;  %v9680_v32 = vsub.f32 %v25771_v21, %v28193_v37  ;;  %v9687_v59 = vsub.f32 %v25776_v23, %v28184_v9  ;;  %v28192_v53 = vand.u32 4294901760, %v25815_v16 }
 0x6dc   :  { %29176 = vst [vmem:[#allocation51_spill] sm:$0xff] %v25798_v43  ;;  %v25807_v49 = vadd.f32 %v14720_v46, %v8545_v40  ;;  %v9641_v40 = vsub.f32 %v25765_v30, %v28194_v12  ;;  %v9694_v54 = vsub.f32 %v25787_v29, %v28183_v17  ;;  %v9701_v36 = vsub.f32 %v25792_v14, %v28182_v26  ;;  %v25960_v12 = vld [vmem:[#allocation2 + $0xa20] sm:$0xff]  ;;  %v10254_v43 = vld [vmem:[#allocation2 + $0xa50] sm:$0xff] }
 0x6dd   :  { %v28191_v60 = vand.u32 4294901760, %v25820_v4  ;;  %v25844_v45 = vsub.f32 %v25689_v57, %v9578_v51  ;;  %v25849_v20 = vsub.f32 %v25691_v48, %v9581_v38  ;;  %v18819_v46 = vpack.c.bf16 %v9674_v62, %v9667_v18 }
 0x6de   :  { %18798 = vmatpush3.bf16.msra.mxu0 %v25685_v5  ;;  %29177 = vst [vmem:[#allocation46_spill] sm:$0xff] %v25807_v49  ;;  %v9642_v6 = vand.u32 4294901760, %v9641_v40  ;;  %v9681_v24 = vand.u32 4294901760, %v9680_v32  ;;  %v9688_v26 = vand.u32 4294901760, %v9687_v59  ;;  %v9695_v17 = vand.u32 4294901760, %v9694_v54 }
 0x6df   :  { %18800 = vmatprep.subr.bf16.mxu0 %v25713_v15  ;;  %29180 = vst [vmem:[#allocation25_spill] sm:$0xff] %v25844_v45  ;;  %29181 = vst [vmem:[#allocation38_spill] sm:$0xff] %v25849_v20  ;;  %v9702_v9 = vand.u32 4294901760, %v9701_v36  ;;  %v9708_v57 = vsub.f32 %v25815_v16, %v28192_v53  ;;  %v9715_v48 = vsub.f32 %v25820_v4, %v28191_v60  ;;  %v28190_v51 = vand.u32 4294901760, %v25844_v45  ;;  %v25954_v60 = vld [vmem:[#allocation2 + $0xaa0] sm:$0xff]  ;;  %v25956_v53 = vld [vmem:[#allocation2 + $0xaa8] sm:$0xff] }
 0x6e0   :  { %v28189_v38 = vand.u32 4294901760, %v25849_v20  ;;  %v18823_v18 = vpack.c.bf16 %v9688_v26, %v9681_v24  ;;  %v25868_v40 = vsub.f32 %v25701_v52, %v9587_v2  ;;  %v25881_v52 = vsub.f32 %v25721_v44, %v9590_v58 }
 0x6e1   :  { %v18827_v62 = vpack.c.bf16 %v9702_v9, %v9695_v17  ;;  %v9709_v32 = vand.u32 4294901760, %v9708_v57  ;;  %v9716_v59 = vand.u32 4294901760, %v9715_v48  ;;  %v9722_v54 = vsub.f32 %v25844_v45, %v28190_v51 }
 0x6e2   :  { %18802 = vmatpush3.bf16.msra.mxu0 %v25713_v15  ;;  %29183 = vst [vmem:[#allocation27_spill] sm:$0xff] %v25868_v40  ;;  %v9729_v26 = vsub.f32 %v25849_v20, %v28189_v38  ;;  %29184 = vst [vmem:[#allocation45_spill] sm:$0xff] %v25881_v52  ;;  %v25886_v2 = vsub.f32 %v25723_v56, %v9593_v7  ;;  %v28186_v44 = vand.u32 4294901760, %v25881_v52  ;;  %v28206_v50 = vand.u32 4294901760, %v25954_v60 }
 0x6e3   :  { %18804 = vmatprep.subr.bf16.mxu0 %v25736_v39  ;;  %v18831_v9 = vpack.c.bf16 %v9716_v59, %v9709_v32  ;;  %v9723_v17 = vand.u32 4294901760, %v9722_v54  ;;  %v25902_v54 = vld [vmem:[#allocation2 + $0xa80] sm:$0xff]  ;;  %v18851_v37 = vpack.c.bf16 %v25744_v63, %v25729_v3  ;;  %v28205_v35 = vand.u32 4294901760, %v25956_v53 }
 0x6e4   :  { %29185 = vst [vmem:[#allocation28_spill] sm:$0xff] %v25886_v2  ;;  %v9730_v36 = vand.u32 4294901760, %v9729_v26  ;;  %v28185_v58 = vand.u32 4294901760, %v25886_v2  ;;  %v9750_v57 = vsub.f32 %v25881_v52, %v28186_v44  ;;  %v28211_v26 = vand.u32 4294901760, %v25902_v54  ;;  %v25935_v44 = vld [vmem:[#allocation2 + $0xa18] sm:$0xff] }
 0x6e5   :  { %v28209_v28 = vand.u32 4294901760, %v25960_v12  ;;  %v28208_v42 = vand.u32 4294901760, %v25962_v34  ;;  %v29208_v15 = vand.u32 4294901760, %v25954_v60 }
 0x6e6   :  { %18806 = vmatpush3.bf16.msra.mxu0 %v25736_v39  ;;  %v18835_v56 = vpack.c.bf16 %v9730_v36, %v9723_v17  ;;  %v9757_v48 = vsub.f32 %v25886_v2, %v28185_v58  ;;  %v9751_v32 = vand.u32 4294901760, %v9750_v57  ;;  %v25908_v36 = vld [vmem:[#allocation2 + $0xa00] sm:$0xff]  ;;  %v25926_v57 = vld [vmem:[#allocation2 + $0xa90] sm:$0xff] }
 0x6e7   :  { %18808 = vmatprep.subr.bf16.mxu0 %v25750_v33  ;;  %v25933_v58 = vld [vmem:[#allocation2 + $0xa10] sm:$0xff] }
 0x6e8   :  { %v9758_v59 = vand.u32 4294901760, %v9757_v48  ;;  %v25928_v48 = vld [vmem:[#allocation2 + $0xa98] sm:$0xff] }
 0x6ea   :  { %18810 = vmatpush3.bf16.msra.mxu0 %v25750_v33  ;;  %v10257_v33 = vld [vmem:[#allocation2 + $0xa68] sm:$0xff] }
 0x6eb   :  { %18812 = vmatprep.subr.bf16.mxu0 %v25782_v22 }
 0x6ee   :  { %18814 = vmatpush3.bf16.msra.mxu0 %v25782_v22 }
 0x6ef   :  { %18816 = vmatprep.subr.bf16.mxu0 %v18815_v47 }
 0x6f1   :  { %16284 = vmatmul.mubr.f32.vlgmr.msra.gmra.mrb[58].mxu0 %v9642_v6 }
 0x6f2   :  { %18818 = vmatpush3.bf16.msra.mxu0 %v18815_v47  ;;  %16318 = vmatprep.mubr.f32.mxu0 %v25604_v19  ;;  %v25863_v47 = vsub.f32 %v25699_v55, %v9584_v8  ;;  %v28187_v8 = vand.u32 4294901760, %v25868_v40  ;;  %v10273_v19 = vld [vmem:[#allocation2 + $0xae8] sm:$0xff] }
 0x6f3   :  { %18820 = vmatprep.subr.bf16.mxu0 %v18819_v46 }
 0x6f4   :  { %29182 = vst [vmem:[#allocation42_spill] sm:$0xff] %v25863_v47  ;;  %v28188_v55 = vand.u32 4294901760, %v25863_v47  ;;  %v26030_v22 = vpack.c.bf16 %v25868_v40, %v25863_v47 }
 0x6f6   :  { %18822 = vmatpush3.bf16.msra.mxu0 %v18819_v46  ;;  %v9736_v6 = vsub.f32 %v25863_v47, %v28188_v55  ;;  %v9743_v46 = vsub.f32 %v25868_v40, %v28187_v8  ;;  %v18847_v8 = vpack.c.bf16 %v25706_v61, %v25696_v11  ;;  %v28201_v55 = vand.u32 4294901760, %v25933_v58 }
 0x6f7   :  { %18824 = vmatprep.subr.bf16.mxu0 %v18823_v18  ;;  %v26023_v61 = vpack.c.bf16 %v25849_v20, %v25844_v45  ;;  %v29199_v20 = vand.u32 4294901760, %v25902_v54  ;;  %v29201_v47 = vand.u32 4294901760, %v25908_v36 }
 0x6f8   :  { %v9737_v7 = vand.u32 4294901760, %v9736_v6  ;;  %v9744_v24 = vand.u32 4294901760, %v9743_v46  ;;  %v25910_v6 = vld [vmem:[#allocation2 + $0xa08] sm:$0xff]  ;;  %v18843_v46 = vpack.c.bf16 %v9758_v59, %v9751_v32  ;;  %v28203_v32 = vand.u32 4294901760, %v25926_v57 }
 0x6f9   :  { %v28202_v59 = vand.u32 4294901760, %v25928_v48  ;;  %v26042_v45 = vsub.f32 %v25902_v54, %v29199_v20  ;;  %v26052_v39 = vsub.f32 %v25908_v36, %v29201_v47  ;;  %v29204_v54 = vand.u32 4294901760, %v25928_v48 }
 0x6fa   :  { %18826 = vmatpush3.bf16.msra.mxu0 %v18823_v18  ;;  %v18839_v18 = vpack.c.bf16 %v9744_v24, %v9737_v7  ;;  %v28204_v7 = vand.u32 4294901760, %v25910_v6 }
 0x6fb   :  { %18828 = vmatprep.subr.bf16.mxu0 %v18827_v62  ;;  %v25946_v38 = vpack.c.bf16 %v28202_v59, %v28203_v32  ;;  %v25985_v59 = vld [vmem:[#allocation2 + $0xab8] sm:$0xff]  ;;  %v25987_v32 = vld [vmem:[#allocation2 + $0xa30] sm:$0xff] }
 0x6fd   :  { %29188 = vst [vmem:[#allocation31_spill] sm:$0xff] %v25946_v38 }
 0x6fe   :  { %18830 = vmatpush3.bf16.msra.mxu0 %v18827_v62  ;;  %v25904_v62 = vld [vmem:[#allocation2 + $0xa88] sm:$0xff] }
 0x6ff   :  { %18832 = vmatprep.subr.bf16.mxu0 %v18831_v9  ;;  %v28210_v17 = vand.u32 4294901760, %v25904_v62  ;;  %v29200_v40 = vand.u32 4294901760, %v25904_v62 }
 0x701   :  { %v25918_v24 = vpack.c.bf16 %v28210_v17, %v28211_v26 }
 0x702   :  { %18834 = vmatpush3.bf16.msra.mxu0 %v18831_v9  ;;  %v28207_v9 = vand.u32 4294901760, %v25908_v36  ;;  %v29206_v36 = vand.u32 4294901760, %v25935_v44 }
 0x703   :  { %18836 = vmatprep.subr.bf16.mxu0 %v18835_v56  ;;  %29186 = vst [vmem:[#allocation29_spill] sm:$0xff] %v25918_v24  ;;  %18976 = vmatprep.subr.bf16.mxu1 %v25918_v24 }
 0x706   :  { %18838 = vmatpush3.bf16.msra.mxu0 %v18835_v56  ;;  %v25924_v56 = vpack.c.bf16 %v28204_v7, %v28207_v9  ;;  %v18855_v7 = vpack.c.bf16 %v25776_v23, %v25771_v21  ;;  %v25994_v9 = vld [vmem:[#allocation2 + $0xa38] sm:$0xff]  ;;  %v10360_v21 = vand.u32 4294901760, %v10253_v27 }
 0x707   :  { %18840 = vmatprep.subr.bf16.mxu0 %v18839_v18  ;;  %v10354_v17 = vand.u32 4294901760, %v25994_v9  ;;  %v10255_v23 = vld [vmem:[#allocation2 + $0xa58] sm:$0xff] }
 0x708   :  { %29187 = vst [vmem:[#allocation33_spill] sm:$0xff] %v25924_v56  ;;  %18978 = vmatpush3.bf16.msra.mxu1 %v25924_v56  ;;  %v10271_v56 = vld [vmem:[#allocation2 + $0xad8] sm:$0xff]  ;;  %v10366_v11 = vand.u32 4294901760, %v10255_v23 }
 0x709   :  { %18980 = vmatprep.subr.bf16.mxu1 %v25946_v38  ;;  %v10414_v3 = vand.u32 4294901760, %v10271_v56 }
 0x70a   :  { %18842 = vmatpush3.bf16.msra.mxu0 %v18839_v18  ;;  %v28200_v18 = vand.u32 4294901760, %v25935_v44 }
 0x70b   :  { %18844 = vmatprep.subr.bf16.mxu0 %v18843_v46 }
 0x70c   :  { %v25952_v51 = vpack.c.bf16 %v28200_v18, %v28201_v55  ;;  %v25981_v18 = vpack.c.bf16 %v28208_v42, %v28209_v28  ;;  %v25983_v55 = vld [vmem:[#allocation2 + $0xab0] sm:$0xff]  ;;  %v25996_v42 = vld [vmem:[#allocation2 + $0xac0] sm:$0xff]  ;;  %v25998_v28 = vld [vmem:[#allocation2 + $0xac8] sm:$0xff] }
 0x70d   :  { %v10405_v26 = vand.u32 4294901760, %v25996_v42  ;;  %v10408_v0 = vand.u32 4294901760, %v25998_v28 }
 0x70e   :  { %29189 = vst [vmem:[#allocation32_spill] sm:$0xff] %v25952_v51  ;;  %18846 = vmatpush3.bf16.msra.mxu0 %v18843_v46  ;;  %18982 = vmatpush3.bf16.msra.mxu1 %v25952_v51  ;;  %v25975_v46 = vpack.c.bf16 %v28205_v35, %v28206_v50  ;;  %29191 = vst [vmem:[#allocation20_spill] sm:$0xff] %v25981_v18  ;;  %v10252_v35 = vld [vmem:[#allocation2 + $0xa40] sm:$0xff]  ;;  %v29192_v50 = vand.u32 4294901760, %v25983_v55  ;;  %v29193_v51 = vand.u32 4294901760, %v25985_v59 }
 0x70f   :  { %18848 = vmatprep.subr.bf16.mxu0 %v18847_v8  ;;  %v10357_v38 = vand.u32 4294901760, %v10252_v35  ;;  %v26014_v24 = vpack.c.bf16 %v10408_v0, %v10405_v26 }
 0x710   :  { %29190 = vst [vmem:[#allocation34_spill] sm:$0xff] %v25975_v46  ;;  %18984 = vmatprep.subr.bf16.mxu1 %v25975_v46  ;;  %v10270_v46 = vld [vmem:[#allocation2 + $0xad0] sm:$0xff] }
 0x711   :  { %16319 = vmatmul.mubr.f32.vlgmr.msra.gmra.mrb[58].mxu0 %v25739_v13  ;;  %v26010_v13 = vpack.c.bf16 %v29193_v51, %v29192_v50  ;;  %29196 = vst [vmem:[#allocation11_spill] sm:$0xff] %v26014_v24  ;;  %v18859_v50 = vpack.c.bf16 %v25792_v14, %v25787_v29  ;;  %v18863_v51 = vpack.c.bf16 %v25820_v4, %v25815_v16  ;;  %v10411_v63 = vand.u32 4294901760, %v10270_v46  ;;  %v10256_v29 = vld [vmem:[#allocation2 + $0xa60] sm:$0xff] }
 0x712   :  { %18850 = vmatpush3.bf16.msra.mxu0 %v18847_v8  ;;  %16353 = vmatprep.mubr.f32.mxu0 %v25623_v31  ;;  %v10351_v8 = vand.u32 4294901760, %v25987_v32  ;;  %v10420_v16 = vand.u32 4294901760, %v10273_v19 }
 0x713   :  { %18852 = vmatprep.subr.bf16.mxu0 %v18851_v37  ;;  %18986 = vmatpush3.bf16.msra.mxu1 %v25981_v18  ;;  %29194 = vst [vmem:[#allocation22_spill] sm:$0xff] %v26010_v13  ;;  %v10272_v18 = vld [vmem:[#allocation2 + $0xae0] sm:$0xff]  ;;  %v26033_v14 = vpack.c.bf16 %v10414_v3, %v10411_v63 }
 0x714   :  { %v26012_v49 = vpack.c.bf16 %v10354_v17, %v10351_v8  ;;  %18988 = vmatprep.subr.bf16.mxu1 %v26010_v13  ;;  %v10363_v13 = vand.u32 4294901760, %v10254_v43  ;;  %v10417_v4 = vand.u32 4294901760, %v10272_v18 }
 0x715   :  { %29198 = vst [vmem:[#allocation41_spill] sm:$0xff] %v26033_v14 }
 0x716   :  { %29195 = vst [vmem:[#allocation24_spill] sm:$0xff] %v26012_v49  ;;  %18854 = vmatpush3.bf16.msra.mxu0 %v18851_v37  ;;  %v26026_v37 = vpack.c.bf16 %v10360_v21, %v10357_v38 }
 0x717   :  { %18856 = vmatprep.subr.bf16.mxu0 %v18855_v7  ;;  %18990 = vmatpush3.bf16.msra.mxu1 %v26012_v49  ;;  %v26037_v49 = vpack.c.bf16 %v25886_v2, %v25881_v52  ;;  %v29203_v52 = vand.u32 4294901760, %v25926_v57 }
 0x718   :  { %29197 = vst [vmem:[#allocation18_spill] sm:$0xff] %v26026_v37  ;;  %18992 = vmatprep.subr.bf16.mxu1 %v26014_v24  ;;  %v26047_v24 = vsub.f32 %v25904_v62, %v29200_v40  ;;  %v26067_v40 = vsub.f32 %v25928_v48, %v29204_v54  ;;  %v29205_v62 = vand.u32 4294901760, %v25933_v58  ;;  %v26085_v48 = vsub.f32 %v25954_v60, %v29208_v15 }
 0x719   :  { %v26062_v20 = vsub.f32 %v25926_v57, %v29203_v52  ;;  %v10369_v52 = vand.u32 4294901760, %v10256_v29  ;;  %v10372_v57 = vand.u32 4294901760, %v10257_v33  ;;  %v29209_v54 = vand.u32 4294901760, %v25956_v53 }
 0x71a   :  { %18858 = vmatpush3.bf16.msra.mxu0 %v18855_v7  ;;  %v29202_v7 = vand.u32 4294901760, %v25910_v6  ;;  %v26072_v47 = vsub.f32 %v25933_v58, %v29205_v62  ;;  %v29210_v62 = vand.u32 4294901760, %v25960_v12  ;;  %v29213_v60 = vand.u32 4294901760, %v25983_v55 }
 0x71b   :  { %18860 = vmatprep.subr.bf16.mxu0 %v18859_v50  ;;  %18994 = vmatpush3.bf16.msra.mxu1 %v26026_v37  ;;  %v26090_v58 = vsub.f32 %v25956_v53, %v29209_v54  ;;  %v29212_v37 = vand.u32 4294901760, %v25962_v34  ;;  %v29214_v54 = vand.u32 4294901760, %v25985_v59 }
 0x71c   :  { %v26057_v2 = vsub.f32 %v25910_v6, %v29202_v7  ;;  %v26077_v6 = vsub.f32 %v25935_v44, %v29206_v36  ;;  %v26080_v7 = vpack.c.bf16 %v10366_v11, %v10363_v13  ;;  %v26095_v44 = vsub.f32 %v25960_v12, %v29210_v62  ;;  %18996 = vmatprep.subr.bf16.mxu1 %v26033_v14 }
 0x71d   :  { %v26098_v36 = vpack.c.bf16 %v10420_v16, %v10417_v4  ;;  %v26103_v15 = vsub.f32 %v25962_v34, %v29212_v37  ;;  %v26108_v53 = vsub.f32 %v25983_v55, %v29213_v60  ;;  %v26113_v12 = vsub.f32 %v25985_v59, %v29214_v54 }
 0x71e   :  { %29207 = vst [vmem:[#allocation17_spill] sm:$0xff] %v26080_v7  ;;  %18862 = vmatpush3.bf16.msra.mxu0 %v18859_v50  ;;  %v26116_v62 = vsub.f32 %v25987_v32, %v10351_v8  ;;  %v26119_v50 = vsub.f32 %v25994_v9, %v10354_v17  ;;  %v26122_v34 = vsub.f32 %v25996_v42, %v10405_v26  ;;  %v28286_v54 = vand.u32 4294901760, %v26062_v20 }
 0x71f   :  { %29211 = vst [vmem:[#allocation40_spill] sm:$0xff] %v26098_v36  ;;  %18864 = vmatprep.subr.bf16.mxu0 %v18863_v51  ;;  %v26125_v37 = vsub.f32 %v25998_v28, %v10408_v0  ;;  %v26127_v55 = vsub.f32 %v10252_v35, %v10357_v38  ;;  %v26129_v60 = vsub.f32 %v10253_v27, %v10360_v21  ;;  %v10274_v27 = vld [vmem:[#allocation2 + $0xaf0] sm:$0xff]  ;;  %v10275_v28 = vld [vmem:[#allocation2 + $0xaf8] sm:$0xff]  ;;  %v28264_v38 = vand.u32 4294901760, %v26042_v45 }
 0x720   :  { %v26131_v14 = vsub.f32 %v10270_v46, %v10411_v63  ;;  %v26133_v59 = vsub.f32 %v10271_v56, %v10414_v3  ;;  %18998 = vmatpush3.bf16.msra.mxu1 %v26080_v7  ;;  %v26136_v32 = vpack.c.bf16 %v10372_v57, %v10369_v52  ;;  %v26138_v17 = vsub.f32 %v10254_v43, %v10363_v13  ;;  %v10258_v63 = vld [vmem:[#allocation2 + $0xa70] sm:$0xff]  ;;  %v10259_v21 = vld [vmem:[#allocation2 + $0xa78] sm:$0xff] }
 0x721   :  { %v26140_v9 = vsub.f32 %v10255_v23, %v10366_v11  ;;  %19000 = vmatprep.subr.bf16.mxu1 %v26098_v36  ;;  %v26143_v0 = vsub.f32 %v10272_v18, %v10417_v4  ;;  %v26145_v42 = vsub.f32 %v10273_v19, %v10420_v16  ;;  %v10423_v35 = vand.u32 4294901760, %v10274_v27 }
 0x722   :  { %29215 = vst [vmem:[#allocation23_spill] sm:$0xff] %v26136_v32  ;;  %18866 = vmatpush3.bf16.msra.mxu0 %v18863_v51  ;;  %v10426_v3 = vand.u32 4294901760, %v10275_v28  ;;  %v28262_v13 = vand.u32 4294901760, %v26047_v24  ;;  %v10375_v11 = vand.u32 4294901760, %v10258_v63  ;;  %v10378_v23 = vand.u32 4294901760, %v10259_v21 }
 0x723   :  { %18868 = vmatprep.subr.bf16.mxu0 %v26023_v61  ;;  %v28263_v43 = vand.u32 4294901760, %v26052_v39  ;;  %v28267_v19 = vand.u32 4294901760, %v26057_v2  ;;  %v26153_v16 = vsub.f32 %v10256_v29, %v10369_v52  ;;  %v10555_v26 = vsub.f32 %v26042_v45, %v28264_v38 }
 0x724   :  { %19002 = vmatpush3.bf16.msra.mxu1 %v26136_v32  ;;  %v26155_v4 = vpack.c.bf16 %v10426_v3, %v10423_v35  ;;  %v10562_v56 = vsub.f32 %v26047_v24, %v28262_v13  ;;  %v26163_v18 = vsub.f32 %v10257_v33, %v10372_v57  ;;  %v26165_v46 = vpack.c.bf16 %v10378_v23, %v10375_v11 }
 0x725   :  { %v10443_v8 = vsub.f32 %v26052_v39, %v28263_v43  ;;  %v10450_v29 = vsub.f32 %v26057_v2, %v28267_v19  ;;  %v10556_v51 = vand.u32 4294901760, %v10555_v26  ;;  %v28284_v43 = vand.u32 4294901760, %v26072_v47 }
 0x726   :  { %29216 = vst [vmem:[#allocation43_spill] sm:$0xff] %v26155_v4  ;;  %29217 = vst [vmem:[#allocation52_spill] sm:$0xff] %v26165_v46  ;;  %18870 = vmatpush3.bf16.msra.mxu0 %v26023_v61  ;;  %19004 = vmatprep.subr.bf16.mxu1 %v26155_v4  ;;  %v10563_v52 = vand.u32 4294901760, %v10562_v56  ;;  %v26180_v32 = vsub.f32 %v10274_v27, %v10423_v35  ;;  %v26182_v19 = vsub.f32 %v10275_v28, %v10426_v3 }
 0x727   :  { %18872 = vmatprep.subr.bf16.mxu0 %v26030_v22  ;;  %v10444_v57 = vand.u32 4294901760, %v10443_v8  ;;  %v10451_v13 = vand.u32 4294901760, %v10450_v29  ;;  %v26185_v61 = vsub.f32 %v10258_v63, %v10375_v11  ;;  %v26187_v26 = vsub.f32 %v10259_v21, %v10378_v23 }
 0x728   :  { %19006 = vmatpush3.bf16.msra.mxu1 %v26165_v46  ;;  %v19007_v56 = vpack.c.bf16 %v10563_v52, %v10556_v51  ;;  %v10569_v8 = vsub.f32 %v26062_v20, %v28286_v54  ;;  %v29218_v29 = vand.u32 4294901760, %v26067_v40  ;;  %v10457_v27 = vsub.f32 %v26072_v47, %v28284_v43 }
 0x729   :  { %v19009_v33 = vpack.c.bf16 %v10451_v13, %v10444_v57  ;;  %v29219_v28 = vand.u32 4294901760, %v26077_v6  ;;  %v28283_v3 = vand.u32 4294901760, %v26085_v48  ;;  %v28270_v63 = vand.u32 4294901760, %v26090_v58 }
 0x72a   :  { %v10576_v38 = vsub.f32 %v26067_v40, %v29218_v29  ;;  %18874 = vmatpush3.bf16.msra.mxu0 %v26030_v22  ;;  %19008 = vmatprep.subr.bf16.mxu1 %v19007_v56  ;;  %v10570_v21 = vand.u32 4294901760, %v10569_v8  ;;  %v28269_v11 = vand.u32 4294901760, %v26095_v44  ;;  %v28268_v22 = vand.u32 4294901760, %v26103_v15 }
 0x72b   :  { %v10464_v35 = vsub.f32 %v26077_v6, %v29219_v28  ;;  %18876 = vmatprep.subr.bf16.mxu0 %v26037_v49  ;;  %10429 = vmatmul.mubr.f32.vlgmr.msra.gmra.mrb[140].mxu1 %v28382_v1  ;;  %v10458_v23 = vand.u32 4294901760, %v10457_v27  ;;  %v10583_v52 = vsub.f32 %v26085_v48, %v28283_v3  ;;  %v10590_v57 = vsub.f32 %v26090_v58, %v28270_v63 }
 0x72c   :  { %v10577_v13 = vand.u32 4294901760, %v10576_v38  ;;  %19010 = vmatpush3.bf16.msra.mxu1 %v19009_v33  ;;  %v10471_v38 = vsub.f32 %v26095_v44, %v28269_v11  ;;  %v10478_v8 = vsub.f32 %v26103_v15, %v28268_v22  ;;  %v28282_v29 = vand.u32 4294901760, %v26108_v53  ;;  %10433 = vmatprep.mubr.f32.mxu1 %v28382_v1 }
 0x72d   :  { %v10465_v51 = vand.u32 4294901760, %v10464_v35  ;;  %v10584_v28 = vand.u32 4294901760, %v10583_v52  ;;  %v10591_v35 = vand.u32 4294901760, %v10590_v57  ;;  %v28278_v33 = vand.u32 4294901760, %v26113_v12 }
 0x72e   :  { %v19011_v56 = vpack.c.bf16 %v10577_v13, %v10570_v21  ;;  %18878 = vmatpush3.bf16.msra.mxu0 %v26037_v49  ;;  %v10472_v21 = vand.u32 4294901760, %v10471_v38  ;;  %v10479_v13 = vand.u32 4294901760, %v10478_v8  ;;  %v10597_v22 = vsub.f32 %v26108_v53, %v28282_v29 }
 0x72f   :  { %v19013_v27 = vpack.c.bf16 %v10465_v51, %v10458_v23  ;;  %18880 = vmatprep.subr.bf16.mxu0 %v25635_v41  ;;  %v28272_v11 = vand.u32 4294901760, %v26116_v62  ;;  %v19015_v63 = vpack.c.bf16 %v10591_v35, %v10584_v28  ;;  %v10604_v49 = vsub.f32 %v26113_v12, %v28278_v33  ;;  %10434 = vmatmul.mubr.f32.gmra.mrb[142].mxu1 %v28382_v1 }
 0x730   :  { %19012 = vmatprep.subr.bf16.mxu1 %v19011_v56  ;;  %v28271_v23 = vand.u32 4294901760, %v26119_v50  ;;  %v28273_v51 = vand.u32 4294901760, %v26122_v34  ;;  %v19017_v52 = vpack.c.bf16 %v10479_v13, %v10472_v21  ;;  %v10598_v57 = vand.u32 4294901760, %v10597_v22  ;;  %10663 = vmatprep.mubr.f32.mxu1 %v28382_v1 }
 0x731   :  { %16354 = vmatmul.mubr.f32.vlgmr.msra.gmra.mrb[58].mxu0 %v25765_v30  ;;  %19014 = vmatpush3.bf16.msra.mxu1 %v19013_v27  ;;  %v10485_v56 = vsub.f32 %v26116_v62, %v28272_v11  ;;  %v28274_v38 = vand.u32 4294901760, %v26125_v37  ;;  %v29220_v8 = vand.u32 4294901760, %v25623_v31  ;;  %v10605_v28 = vand.u32 4294901760, %v10604_v49 }
 0x732   :  { %18882 = vmatpush3.bf16.msra.mxu0 %v25635_v41  ;;  %v10492_v35 = vsub.f32 %v26119_v50, %v28271_v23  ;;  %v10611_v22 = vsub.f32 %v26122_v34, %v28273_v51  ;;  %v28275_v27 = vand.u32 4294901760, %v26127_v55  ;;  %19016 = vmatprep.subr.bf16.mxu1 %v19015_v63  ;;  %v28276_v13 = vand.u32 4294901760, %v26129_v60 }
 0x733   :  { %16388 = vmatprep.mubr.f32.mxu0 %v29220_v8  ;;  %18884 = vmatprep.subr.bf16.mxu0 %v25650_v10  ;;  %v10486_v21 = vand.u32 4294901760, %v10485_v56  ;;  %v10618_v31 = vsub.f32 %v26125_v37, %v28274_v38  ;;  %v28277_v49 = vand.u32 4294901760, %v26131_v14  ;;  %v19019_v8 = vpack.c.bf16 %v10605_v28, %v10598_v57 }
 0x734   :  { %v10493_v23 = vand.u32 4294901760, %v10492_v35  ;;  %v10612_v11 = vand.u32 4294901760, %v10611_v22  ;;  %v10499_v51 = vsub.f32 %v26127_v55, %v28275_v27  ;;  %v10506_v56 = vsub.f32 %v26129_v60, %v28276_v13 }
 0x735   :  { %19018 = vmatpush3.bf16.msra.mxu1 %v19017_v52  ;;  %v10619_v63 = vand.u32 4294901760, %v10618_v31  ;;  %v10625_v38 = vsub.f32 %v26131_v14, %v28277_v49  ;;  %v28281_v57 = vand.u32 4294901760, %v26133_v59  ;;  %v28279_v22 = vand.u32 4294901760, %v26138_v17 }
 0x736   :  { %18886 = vmatpush3.bf16.msra.mxu0 %v25650_v10  ;;  %19020 = vmatprep.subr.bf16.mxu1 %v19019_v8  ;;  %v19021_v28 = vpack.c.bf16 %v10493_v23, %v10486_v21  ;;  %v10500_v35 = vand.u32 4294901760, %v10499_v51  ;;  %v28280_v52 = vand.u32 4294901760, %v26140_v9  ;;  %v10507_v27 = vand.u32 4294901760, %v10506_v56 }
 0x737   :  { %18888 = vmatprep.subr.bf16.mxu0 %v25670_v25  ;;  %v19023_v31 = vpack.c.bf16 %v10619_v63, %v10612_v11  ;;  %v10626_v13 = vand.u32 4294901760, %v10625_v38  ;;  %v10632_v49 = vsub.f32 %v26133_v59, %v28281_v57  ;;  %v10513_v33 = vsub.f32 %v26138_v17, %v28279_v22 }
 0x738   :  { %v10520_v23 = vsub.f32 %v26140_v9, %v28280_v52  ;;  %v28285_v51 = vand.u32 4294901760, %v26143_v0  ;;  %v10645_v21 = vand.u32 4294901760, %v26145_v42  ;;  %v19025_v11 = vpack.c.bf16 %v10507_v27, %v10500_v35 }
 0x739   :  { %19022 = vmatpush3.bf16.msra.mxu1 %v19021_v28  ;;  %v10633_v8 = vand.u32 4294901760, %v10632_v49  ;;  %v10526_v38 = vand.u32 4294901760, %v26153_v16  ;;  %v10533_v63 = vand.u32 4294901760, %v26163_v18  ;;  %v10514_v56 = vand.u32 4294901760, %v10513_v33 }
 0x73a   :  { %18890 = vmatpush3.bf16.msra.mxu0 %v25670_v25  ;;  %19024 = vmatprep.subr.bf16.mxu1 %v19023_v31  ;;  %v10521_v22 = vand.u32 4294901760, %v10520_v23  ;;  %v10639_v52 = vsub.f32 %v26143_v0, %v28285_v51  ;;  %v10646_v57 = vsub.f32 %v26145_v42, %v10645_v21  ;;  %v10652_v35 = vand.u32 4294901760, %v26180_v32 }
 0x73b   :  { %18892 = vmatprep.subr.bf16.mxu0 %v25685_v5  ;;  %v19027_v28 = vpack.c.bf16 %v10633_v8, %v10626_v13  ;;  %v10527_v27 = vsub.f32 %v26153_v16, %v10526_v38  ;;  %v10534_v49 = vsub.f32 %v26163_v18, %v10533_v63  ;;  %v10659_v33 = vand.u32 4294901760, %v26182_v19 }
 0x73c   :  { %v19029_v29 = vpack.c.bf16 %v10521_v22, %v10514_v56  ;;  %v10640_v3 = vand.u32 4294901760, %v10639_v52  ;;  %v10647_v31 = vand.u32 4294901760, %v10646_v57  ;;  %v10653_v51 = vsub.f32 %v26180_v32, %v10652_v35  ;;  %v29221_v22 = vld [vmem:[#allocation37_spill] sm:$0xff] }
 0x73d   :  { %19026 = vmatpush3.bf16.msra.mxu1 %v19025_v11  ;;  %v10528_v23 = vand.u32 4294901760, %v10527_v27  ;;  %v10535_v43 = vand.u32 4294901760, %v10534_v49  ;;  %v10540_v54 = vand.u32 4294901760, %v26185_v61  ;;  %v10660_v8 = vsub.f32 %v26182_v19, %v10659_v33 }
 0x73e   :  { %18894 = vmatpush3.bf16.msra.mxu0 %v25685_v5  ;;  %19028 = vmatprep.subr.bf16.mxu1 %v19027_v28  ;;  %v19031_v13 = vpack.c.bf16 %v10647_v31, %v10640_v3  ;;  %v10547_v46 = vand.u32 4294901760, %v26187_v26  ;;  %v10654_v57 = vand.u32 4294901760, %v10653_v51  ;;  %v29222_v31 = vld [vmem:[#allocation13_spill] sm:$0xff]  ;;  %v19039_v36 = vpack.c.bf16 %v26047_v24, %v26042_v45 }
 0x73f   :  { %18896 = vmatprep.subr.bf16.mxu0 %v29221_v22  ;;  %v10541_v52 = vsub.f32 %v26185_v61, %v10540_v54  ;;  %v10661_v11 = vand.u32 4294901760, %v10660_v8  ;;  %v19033_v27 = vpack.c.bf16 %v10535_v43, %v10528_v23  ;;  %v29223_v51 = vand.u32 4294901760, %v26042_v45 }
 0x740   :  { %v10548_v56 = vsub.f32 %v26187_v26, %v10547_v46  ;;  %v29224_v8 = vand.u32 4294901760, %v26047_v24  ;;  %v29225_v43 = vand.u32 4294901760, %v26052_v39  ;;  %v29230_v45 = vand.u32 4294901760, %v26077_v6 }
 0x741   :  { %19030 = vmatpush3.bf16.msra.mxu1 %v19029_v29  ;;  %v10542_v49 = vand.u32 4294901760, %v10541_v52  ;;  %v19035_v28 = vpack.c.bf16 %v10661_v11, %v10654_v57  ;;  %v29226_v29 = vand.u32 4294901760, %v26057_v2  ;;  %v29228_v57 = vand.u32 4294901760, %v26067_v40 }
 0x742   :  { %18898 = vmatpush3.bf16.msra.mxu0 %v29221_v22  ;;  %19032 = vmatprep.subr.bf16.mxu1 %v19031_v13  ;;  %v10549_v3 = vand.u32 4294901760, %v10548_v56  ;;  %v26310_v7 = vpack.c.bf16 %v29224_v8, %v29223_v51  ;;  %v29227_v13 = vand.u32 4294901760, %v26062_v20  ;;  %v29229_v11 = vand.u32 4294901760, %v26072_v47 }
 0x743   :  { %18900 = vmatprep.subr.bf16.mxu0 %v29222_v31  ;;  %v26316_v23 = vpack.c.bf16 %v29226_v29, %v29225_v43  ;;  %v29231_v24 = vand.u32 4294901760, %v26085_v48  ;;  %v29235_v51 = vand.u32 4294901760, %v26103_v15  ;;  %v29237_v43 = vand.u32 4294901760, %v26108_v53 }
 0x744   :  { %v19037_v4 = vpack.c.bf16 %v10549_v3, %v10542_v49  ;;  %v26322_v52 = vpack.c.bf16 %v29228_v57, %v29227_v13  ;;  %v26328_v56 = vpack.c.bf16 %v29230_v45, %v29229_v11  ;;  %v29234_v3 = vand.u32 4294901760, %v26095_v44  ;;  %v29240_v57 = vld [vmem:[#allocation47_spill] sm:$0xff] }
 0x745   :  { %19034 = vmatpush3.bf16.msra.mxu1 %v19033_v27  ;;  %v29232_v27 = vand.u32 4294901760, %v26090_v58  ;;  %v29238_v29 = vand.u32 4294901760, %v26113_v12  ;;  %v29242_v11 = vand.u32 4294901760, %v26119_v50 }
 0x746   :  { %18902 = vmatpush3.bf16.msra.mxu0 %v29222_v31  ;;  %19036 = vmatprep.subr.bf16.mxu1 %v19035_v28  ;;  %v26341_v8 = vpack.c.bf16 %v29235_v51, %v29234_v3  ;;  %v29241_v28 = vand.u32 4294901760, %v26116_v62  ;;  %v29247_v51 = vand.u32 4294901760, %v26127_v55 }
 0x747   :  { %v26335_v49 = vpack.c.bf16 %v29232_v27, %v29231_v24  ;;  %v26347_v13 = vpack.c.bf16 %v29238_v29, %v29237_v43  ;;  %18904 = vmatprep.subr.bf16.mxu0 %v29240_v57  ;;  %v29244_v24 = vand.u32 4294901760, %v26122_v34  ;;  %v29245_v27 = vand.u32 4294901760, %v26125_v37 }
 0x748   :  { %29236 = vst [vmem:[#allocation13_spill] sm:$0xff] %v26341_v8  ;;  %v26354_v45 = vpack.c.bf16 %v29242_v11, %v29241_v28  ;;  %v29248_v8 = vand.u32 4294901760, %v26129_v60  ;;  %v29249_v29 = vand.u32 4294901760, %v26131_v14  ;;  %v29251_v28 = vand.u32 4294901760, %v26138_v17 }
 0x749   :  { %29233 = vst [vmem:[#allocation37_spill] sm:$0xff] %v26335_v49  ;;  %29239 = vst [vmem:[#allocation53_spill] sm:$0xff] %v26347_v13  ;;  %v26360_v3 = vpack.c.bf16 %v29245_v27, %v29244_v24  ;;  %v29250_v13 = vand.u32 4294901760, %v26133_v59  ;;  %v29252_v11 = vand.u32 4294901760, %v26140_v9  ;;  %v29253_v24 = vand.u32 4294901760, %v26143_v0  ;;  %19038 = vmatpush3.bf16.msra.mxu1 %v19037_v4 }
 0x74a   :  { %29243 = vst [vmem:[#allocation47_spill] sm:$0xff] %v26354_v45  ;;  %v26366_v43 = vpack.c.bf16 %v29248_v8, %v29247_v51  ;;  %v26386_v8 = vpack.c.bf16 %v10659_v33, %v10652_v35  ;;  %v19041_v51 = vpack.c.bf16 %v26057_v2, %v26052_v39  ;;  %18906 = vmatpush3.bf16.msra.mxu0 %v29240_v57  ;;  %v29259_v2 = vld [vmem:[#allocation39_spill] sm:$0xff] }
 0x74b   :  { %29246 = vst [vmem:[#allocation54_spill] sm:$0xff] %v26360_v3  ;;  %v26372_v49 = vpack.c.bf16 %v29250_v13, %v29249_v29  ;;  %v26378_v45 = vpack.c.bf16 %v29252_v11, %v29251_v28  ;;  %v26382_v27 = vpack.c.bf16 %v10645_v21, %v29253_v24  ;;  %v26384_v3 = vpack.c.bf16 %v10533_v63, %v10526_v38  ;;  %v29254_v28 = vld [vmem:[#allocation49_spill] sm:$0xff]  ;;  %v29255_v21 = vld [vmem:[#allocation16_spill] sm:$0xff] }
 0x74c   :  { %v26390_v13 = vpack.c.bf16 %v10547_v46, %v10540_v54  ;;  %19040 = vmatprep.subr.bf16.mxu1 %v19039_v36  ;;  %v19043_v29 = vpack.c.bf16 %v26067_v40, %v26062_v20  ;;  %18908 = vmatprep.subr.bf16.mxu0 %v29254_v28  ;;  %v29256_v11 = vand.u32 4294901760, %v29255_v21  ;;  %v29257_v38 = vld [vmem:[#allocation44_spill] sm:$0xff]  ;;  %v19045_v39 = vpack.c.bf16 %v26077_v6, %v26072_v47  ;;  %v29261_v40 = vld [vmem:[#allocation35_spill] sm:$0xff]  ;;  %v29264_v6 = vld [vmem:[#allocation26_spill] sm:$0xff] }
 0x74d   :  { %v29258_v63 = vand.u32 4294901760, %v29257_v38  ;;  %10664 = vmatmul.mubr.f32.vlgmr.msra.gmra.mrb[144].mxu1 %v28382_v1  ;;  %v29260_v20 = vand.u32 4294901760, %v29259_v2  ;;  %v29262_v36 = vand.u32 4294901760, %v29261_v40  ;;  %v19047_v46 = vpack.c.bf16 %v26090_v58, %v26085_v48  ;;  %v29265_v24 = vld [vmem:[#allocation36_spill] sm:$0xff] }
 0x74e   :  { %19042 = vmatpush3.bf16.msra.mxu1 %v19041_v51  ;;  %10668 = vmatprep.mubr.f32.mxu1 %v28382_v1  ;;  %v29263_v54 = vand.u32 4294901760, %v25765_v30  ;;  %v19049_v47 = vpack.c.bf16 %v26103_v15, %v26095_v44  ;;  %v19051_v33 = vpack.c.bf16 %v26113_v12, %v26108_v53  ;;  %v29266_v51 = vand.u32 4294901760, %v29265_v24  ;;  %v29269_v15 = vld [vmem:[#allocation30_spill] sm:$0xff] }
 0x74f   :  { %v18911_v35 = vpack.c.bf16 %v29258_v63, %v29256_v11  ;;  %18910 = vmatpush3.bf16.msra.mxu0 %v29254_v28  ;;  %19044 = vmatprep.subr.bf16.mxu1 %v19043_v29  ;;  %v18915_v4 = vpack.c.bf16 %v29262_v36, %v29260_v20  ;;  %v29267_v29 = vld [vmem:[#allocation48_spill] sm:$0xff]  ;;  %v19053_v30 = vpack.c.bf16 %v26119_v50, %v26116_v62  ;;  %v29270_v53 = vand.u32 4294901760, %v29269_v15  ;;  %v29271_v12 = vld [vmem:[#allocation50_spill] sm:$0xff]  ;;  %v29289_v15 = vld [vmem:[#allocation51_spill] sm:$0xff] }
 0x750   :  { %v29268_v48 = vand.u32 4294901760, %v29267_v29  ;;  %v19055_v44 = vpack.c.bf16 %v26125_v37, %v26122_v34  ;;  %v29272_v21 = vand.u32 4294901760, %v29271_v12  ;;  %v19057_v38 = vpack.c.bf16 %v26129_v60, %v26127_v55  ;;  %v29273_v50 = vld [vmem:[#allocation12_spill] sm:$0xff] }
 0x751   :  { %18912 = vmatprep.subr.bf16.mxu0 %v18911_v35  ;;  %10669 = vmatmul.mubr.f32.gmra.mrb[146].mxu1 %v28382_v1  ;;  %v19059_v62 = vpack.c.bf16 %v26133_v59, %v26131_v14  ;;  %v29274_v63 = vand.u32 4294901760, %v29273_v50  ;;  %v19061_v20 = vpack.c.bf16 %v26140_v9, %v26138_v17  ;;  %v19063_v55 = vpack.c.bf16 %v26145_v42, %v26143_v0  ;;  %v29277_v14 = vld [vmem:[#allocation25_spill] sm:$0xff]  ;;  %v29279_v59 = vld [vmem:[#allocation38_spill] sm:$0xff] }
 0x752   :  { %16389 = vmatmul.mubr.f32.vlgmr.msra.gmra.mrb[58].mxu0 %v29263_v54  ;;  %19046 = vmatpush3.bf16.msra.mxu1 %v19045_v39  ;;  %v18919_v58 = vpack.c.bf16 %v29268_v48, %v29266_v51  ;;  %v18923_v11 = vpack.c.bf16 %v29272_v21, %v29270_v53  ;;  %v29278_v60 = vand.u32 4294901760, %v29277_v14  ;;  %v29280_v36 = vand.u32 4294901760, %v29279_v59  ;;  %v29281_v0 = vld [vmem:[#allocation42_spill] sm:$0xff]  ;;  %v29292_v50 = vld [vmem:[#allocation33_spill] sm:$0xff] }
 0x753   :  { %18914 = vmatpush3.bf16.msra.mxu0 %v18911_v35  ;;  %16423 = vmatprep.mubr.f32.mxu0 %v29264_v6  ;;  %v29275_v35 = vld [vmem:[#allocation19_spill] sm:$0xff]  ;;  %v19067_v9 = vpack.c.bf16 %v26182_v19, %v26180_v32  ;;  %v29282_v42 = vand.u32 4294901760, %v29281_v0  ;;  %v29301_v14 = vld [vmem:[#allocation18_spill] sm:$0xff]  ;;  %v26497_v0 = vld [vmem:[#allocation2 + $0xb80] sm:$0xff] }
 0x754   :  { %18916 = vmatprep.subr.bf16.mxu0 %v18915_v4  ;;  %19048 = vmatprep.subr.bf16.mxu1 %v19047_v46  ;;  %v29276_v34 = vand.u32 4294901760, %v29275_v35  ;;  %v29293_v35 = vld [vmem:[#allocation31_spill] sm:$0xff] }
 0x755   :  { %10802 = vmatprep.mubr.f32.mxu1 %v28382_v1 }
 0x756   :  { %19050 = vmatpush3.bf16.msra.mxu1 %v19049_v47  ;;  %v18927_v37 = vpack.c.bf16 %v29276_v34, %v29274_v63  ;;  %v19065_v47 = vpack.c.bf16 %v26163_v18, %v26153_v16  ;;  %v29285_v16 = vld [vmem:[#allocation45_spill] sm:$0xff] }
 0x757   :  { %18918 = vmatpush3.bf16.msra.mxu0 %v18915_v4  ;;  %19052 = vmatprep.subr.bf16.mxu1 %v19051_v33  ;;  %v18931_v4 = vpack.c.bf16 %v29280_v36, %v29278_v60  ;;  %v29283_v33 = vld [vmem:[#allocation27_spill] sm:$0xff]  ;;  %v29286_v18 = vand.u32 4294901760, %v29285_v16  ;;  %v29294_v34 = vld [vmem:[#allocation21_spill] sm:$0xff] }
 0x758   :  { %18920 = vmatprep.subr.bf16.mxu0 %v18919_v58  ;;  %v29284_v24 = vand.u32 4294901760, %v29283_v33  ;;  %v26509_v16 = vld [vmem:[#allocation2 + $0xb08] sm:$0xff] }
 0x75a   :  { %19054 = vmatpush3.bf16.msra.mxu1 %v19053_v30  ;;  %v18935_v51 = vpack.c.bf16 %v29284_v24, %v29282_v42  ;;  %v26499_v42 = vld [vmem:[#allocation2 + $0xb88] sm:$0xff] }
 0x75b   :  { %18922 = vmatpush3.bf16.msra.mxu0 %v18919_v58  ;;  %19056 = vmatprep.subr.bf16.mxu1 %v19055_v44  ;;  %v19069_v58 = vpack.c.bf16 %v26187_v26, %v26185_v61  ;;  %v29287_v44 = vld [vmem:[#allocation28_spill] sm:$0xff]  ;;  %v29291_v61 = vld [vmem:[#allocation46_spill] sm:$0xff] }
 0x75c   :  { %18924 = vmatprep.subr.bf16.mxu0 %v18923_v11  ;;  %v14791_v39 = vpop.f32.mrb[128].mxu1  ;;  %v29288_v32 = vand.u32 4294901760, %v29287_v44 }
 0x75d   :  { %v14792_v2 = vpop.f32.mrb[129].mxu1 }
 0x75e   :  { %19058 = vmatpush3.bf16.msra.mxu1 %v19057_v38  ;;  %v14793_v40 = vadd.f32 %v14792_v2, %v14791_v39  ;;  %v18939_v19 = vpack.c.bf16 %v29288_v32, %v29286_v18  ;;  %v29296_v39 = vld [vmem:[#allocation34_spill] sm:$0xff]  ;;  %v29297_v2 = vld [vmem:[#allocation20_spill] sm:$0xff] }
 0x75f   :  { %18926 = vmatpush3.bf16.msra.mxu0 %v18923_v11  ;;  %19060 = vmatprep.subr.bf16.mxu1 %v19059_v62  ;;  %v29290_v62 = vld [vmem:[#allocation29_spill] sm:$0xff] }
 0x760   :  { %18928 = vmatprep.subr.bf16.mxu0 %v18927_v37  ;;  %v14794_v46 = vpop.f32.mrb[130].mxu1 }
 0x761   :  { %v14795_v54 = vpop.f32.mrb[131].mxu1 }
 0x762   :  { %19062 = vmatpush3.bf16.msra.mxu1 %v19061_v20  ;;  %v14796_v17 = vadd.f32 %v14795_v54, %v14794_v46  ;;  %v29298_v20 = vld [vmem:[#allocation22_spill] sm:$0xff]  ;;  %v29304_v46 = vld [vmem:[#allocation40_spill] sm:$0xff] }
 0x763   :  { %18930 = vmatpush3.bf16.msra.mxu0 %v18927_v37  ;;  %19064 = vmatprep.subr.bf16.mxu1 %v19063_v55  ;;  %v29295_v37 = vld [vmem:[#allocation32_spill] sm:$0xff] }
 0x764   :  { %18932 = vmatprep.subr.bf16.mxu0 %v18931_v4  ;;  %v14753_v29 = vpop.f32.mrb[46].mxu0 }
 0x765   :  { %v14754_v48 = vpop.f32.mrb[47].mxu0 }
 0x766   :  { %19066 = vmatpush3.bf16.msra.mxu1 %v19065_v47  ;;  %v14755_v30 = vadd.f32 %v14754_v48, %v14753_v29  ;;  %v11247_v29 = vand.u32 4294901760, %v26497_v0  ;;  %v11250_v48 = vand.u32 4294901760, %v26499_v42 }
 0x767   :  { %18934 = vmatpush3.bf16.msra.mxu0 %v18931_v4  ;;  %19068 = vmatprep.subr.bf16.mxu1 %v19067_v9  ;;  %v29303_v4 = vld [vmem:[#allocation17_spill] sm:$0xff]  ;;  %v29306_v9 = vld [vmem:[#allocation43_spill] sm:$0xff] }
 0x768   :  { %18936 = vmatprep.subr.bf16.mxu0 %v18935_v51  ;;  %v8759_v53 = vadd.f32 %v14755_v30, %v29289_v15  ;;  %v14756_v12 = vpop.f32.mrb[48].mxu0  ;;  %v26516_v18 = vpack.c.bf16 %v11250_v48, %v11247_v29  ;;  %v29309_v15 = vld [vmem:[#allocation13_spill] sm:$0xff] }
 0x769   :  { %v14757_v21 = vpop.f32.mrb[49].mxu0 }
 0x76a   :  { %19070 = vmatpush3.bf16.msra.mxu1 %v19069_v58  ;;  %v9000_v11 = vadd.f32 %v14793_v40, %v8759_v53  ;;  %v14758_v38 = vadd.f32 %v14757_v21, %v14756_v12  ;;  %v29299_v40 = vld [vmem:[#allocation24_spill] sm:$0xff]  ;;  %v29312_v53 = vld [vmem:[#allocation54_spill] sm:$0xff] }
 0x76b   :  { %18938 = vmatpush3.bf16.msra.mxu0 %v18935_v51  ;;  %19072 = vmatprep.subr.bf16.mxu1 %v29290_v62  ;;  %v29307_v51 = vld [vmem:[#allocation52_spill] sm:$0xff] }
 0x76c   :  { %18940 = vmatprep.subr.bf16.mxu0 %v18939_v19  ;;  %v8769_v26 = vadd.f32 %v14758_v38, %v29291_v61 }
 0x76d   :  { %10803 = vmatmul.mubr.f32.vlgmr.msra.gmra.mrb[148].mxu1 %v28382_v1 }
 0x76e   :  { %19074 = vmatpush3.bf16.msra.mxu1 %v29292_v50  ;;  %10807 = vmatprep.mubr.f32.mxu1 %v28382_v1  ;;  %v9006_v63 = vadd.f32 %v14796_v17, %v8769_v26  ;;  %v29305_v17 = vld [vmem:[#allocation23_spill] sm:$0xff] }
 0x76f   :  { %18942 = vmatpush3.bf16.msra.mxu0 %v18939_v19  ;;  %19076 = vmatprep.subr.bf16.mxu1 %v29293_v35 }
 0x770   :  { %18944 = vmatprep.subr.bf16.mxu0 %v25635_v41 }
 0x771   :  { %10808 = vmatmul.mubr.f32.gmra.mrb[150].mxu1 %v28382_v1 }
 0x772   :  { %16424 = vmatmul.mubr.f32.vlgmr.msra.gmra.mrb[58].mxu0 %v29294_v34  ;;  %19078 = vmatpush3.bf16.msra.mxu1 %v29295_v37 }
 0x773   :  { %18946 = vmatpush3.bf16.msra.mxu0 %v25635_v41  ;;  %16458 = vmatprep.mubr.f32.mxu0 %v29264_v6  ;;  %v29300_v41 = vld [vmem:[#allocation11_spill] sm:$0xff] }
 0x774   :  { %18948 = vmatprep.subr.bf16.mxu0 %v25650_v10  ;;  %19080 = vmatprep.subr.bf16.mxu1 %v29296_v39 }
 0x775   :  { %10909 = vmatprep.mubr.f32.mxu1 %v28382_v1 }
 0x776   :  { %19082 = vmatpush3.bf16.msra.mxu1 %v29297_v2 }
 0x777   :  { %18950 = vmatpush3.bf16.msra.mxu0 %v25650_v10  ;;  %19084 = vmatprep.subr.bf16.mxu1 %v29298_v20  ;;  %v29302_v10 = vld [vmem:[#allocation41_spill] sm:$0xff] }
 0x778   :  { %18952 = vmatprep.subr.bf16.mxu0 %v25670_v25 }
 0x77a   :  { %19086 = vmatpush3.bf16.msra.mxu1 %v29299_v40 }
 0x77b   :  { %18954 = vmatpush3.bf16.msra.mxu0 %v25670_v25  ;;  %19088 = vmatprep.subr.bf16.mxu1 %v29300_v41 }
 0x77c   :  { %18956 = vmatprep.subr.bf16.mxu0 %v25685_v5  ;;  %v14867_v6 = vpop.f32.mrb[132].mxu1 }
 0x77d   :  { %v14868_v55 = vpop.f32.mrb[133].mxu1 }
 0x77e   :  { %19090 = vmatpush3.bf16.msra.mxu1 %v29301_v14  ;;  %v14869_v60 = vadd.f32 %v14868_v55, %v14867_v6 }
 0x77f   :  { %18958 = vmatpush3.bf16.msra.mxu0 %v25685_v5  ;;  %19092 = vmatprep.subr.bf16.mxu1 %v29302_v10 }
 0x780   :  { %18960 = vmatprep.subr.bf16.mxu0 %v29221_v22  ;;  %v14870_v59 = vpop.f32.mrb[134].mxu1 }
 0x781   :  { %v14871_v36 = vpop.f32.mrb[135].mxu1 }
 0x782   :  { %19094 = vmatpush3.bf16.msra.mxu1 %v29303_v4  ;;  %v14872_v25 = vadd.f32 %v14871_v36, %v14870_v59  ;;  %v26580_v59 = vld [vmem:[#allocation2 + $0xba0] sm:$0xff] }
 0x783   :  { %18962 = vmatpush3.bf16.msra.mxu0 %v29221_v22  ;;  %19096 = vmatprep.subr.bf16.mxu1 %v29304_v46 }
 0x784   :  { %18964 = vmatprep.subr.bf16.mxu0 %v29222_v31  ;;  %v14829_v54 = vpop.f32.mrb[50].mxu0 }
 0x785   :  { %v14830_v47 = vpop.f32.mrb[51].mxu0 }
 0x786   :  { %19098 = vmatpush3.bf16.msra.mxu1 %v29305_v17  ;;  %v14831_v5 = vadd.f32 %v14830_v47, %v14829_v54 }
 0x787   :  { %18966 = vmatpush3.bf16.msra.mxu0 %v29222_v31  ;;  %19100 = vmatprep.subr.bf16.mxu1 %v29306_v9  ;;  %v26507_v31 = vld [vmem:[#allocation2 + $0xb00] sm:$0xff] }
 0x788   :  { %18968 = vmatprep.subr.bf16.mxu0 %v29240_v57  ;;  %v9142_v22 = vadd.f32 %v14831_v5, %v9000_v11  ;;  %v14832_v33 = vpop.f32.mrb[52].mxu0 }
 0x789   :  { %v14833_v24 = vpop.f32.mrb[53].mxu0 }
 0x78a   :  { %19102 = vmatpush3.bf16.msra.mxu1 %v29307_v51  ;;  %v9254_v58 = vadd.f32 %v14869_v60, %v9142_v22  ;;  %v14834_v30 = vadd.f32 %v14833_v24, %v14832_v33  ;;  %v11259_v22 = vand.u32 4294901760, %v26580_v59  ;;  %v26608_v24 = vld [vmem:[#allocation2 + $0xb20] sm:$0xff] }
 0x78b   :  { %18970 = vmatpush3.bf16.msra.mxu0 %v29240_v57  ;;  %19104 = vmatprep.subr.bf16.mxu1 %v26310_v7  ;;  %v11199_v7 = vand.u32 4294901760, %v26507_v31  ;;  %v11202_v57 = vand.u32 4294901760, %v26509_v16 }
 0x78c   :  { %18972 = vmatprep.subr.bf16.mxu0 %v29254_v28  ;;  %v9149_v44 = vadd.f32 %v14834_v30, %v9006_v63 }
 0x78d   :  { %10910 = vmatmul.mubr.f32.vlgmr.msra.gmra.mrb[152].mxu1 %v28382_v1  ;;  %v26526_v19 = vpack.c.bf16 %v11202_v57, %v11199_v7  ;;  %v26585_v36 = vsub.f32 %v26507_v31, %v11199_v7 }
 0x78e   :  { %19106 = vmatpush3.bf16.msra.mxu1 %v26316_v23  ;;  %10914 = vmatprep.mubr.f32.mxu1 %v28382_v1  ;;  %v9262_v32 = vadd.f32 %v14872_v25, %v9149_v44  ;;  %v29308_v23 = vld [vmem:[#allocation37_spill] sm:$0xff] }
 0x78f   :  { %18974 = vmatpush3.bf16.msra.mxu0 %v29254_v28  ;;  %19108 = vmatprep.subr.bf16.mxu1 %v26322_v52  ;;  %v29310_v28 = vld [vmem:[#allocation53_spill] sm:$0xff]  ;;  %v29311_v52 = vld [vmem:[#allocation47_spill] sm:$0xff] }
 0x790   :  { %19168 = vmatprep.subr.bf16.mxu0 %v26516_v18 }
 0x791   :  { %10915 = vmatmul.mubr.f32.gmra.mrb[154].mxu1 %v28382_v1 }
 0x792   :  { %16459 = vmatmul.mubr.f32.vlgmr.msra.gmra.mrb[58].mxu0 %v29294_v34  ;;  %19110 = vmatpush3.bf16.msra.mxu1 %v26328_v56 }
 0x793   :  { %19112 = vmatprep.subr.bf16.mxu1 %v29308_v23  ;;  %11080 = vmatprep.mubr.f32.mxu1 %v28382_v1 }
 0x794   :  { %19170 = vmatpush3.bf16.msra.mxu0 %v26526_v19 }
 0x796   :  { %19114 = vmatpush3.bf16.msra.mxu1 %v29309_v15 }
 0x797   :  { %19116 = vmatprep.subr.bf16.mxu1 %v29310_v28 }
 0x79a   :  { %19118 = vmatpush3.bf16.msra.mxu1 %v29311_v52 }
 0x79b   :  { %19120 = vmatprep.subr.bf16.mxu1 %v29312_v53 }
 0x79d   :  { %v14943_v12 = vpop.f32.mrb[136].mxu1 }
 0x79e   :  { %19122 = vmatpush3.bf16.msra.mxu1 %v26366_v43  ;;  %v14944_v21 = vpop.f32.mrb[137].mxu1 }
 0x79f   :  { %19124 = vmatprep.subr.bf16.mxu1 %v26372_v49  ;;  %v14945_v56 = vadd.f32 %v14944_v21, %v14943_v12 }
 0x7a1   :  { %v14946_v11 = vpop.f32.mrb[138].mxu1 }
 0x7a2   :  { %19126 = vmatpush3.bf16.msra.mxu1 %v26378_v45  ;;  %v14947_v38 = vpop.f32.mrb[139].mxu1 }
 0x7a3   :  { %19128 = vmatprep.subr.bf16.mxu1 %v26382_v27  ;;  %v14948_v61 = vadd.f32 %v14947_v38, %v14946_v11  ;;  %v26557_v27 = vld [vmem:[#allocation2 + $0xb90] sm:$0xff] }
 0x7a4   :  { %v14905_v26 = vpop.f32.mrb[54].mxu0 }
 0x7a5   :  { %v14906_v63 = vpop.f32.mrb[55].mxu0 }
 0x7a6   :  { %19130 = vmatpush3.bf16.msra.mxu1 %v26384_v3  ;;  %v14907_v34 = vadd.f32 %v14906_v63, %v14905_v26 }
 0x7a7   :  { %19132 = vmatprep.subr.bf16.mxu1 %v26386_v8  ;;  %v26560_v8 = vld [vmem:[#allocation2 + $0xb98] sm:$0xff] }
 0x7a8   :  { %v9429_v6 = vadd.f32 %v14907_v34, %v9254_v58  ;;  %v14908_v43 = vpop.f32.mrb[56].mxu0 }
 0x7a9   :  { %v14909_v55 = vpop.f32.mrb[57].mxu0 }
 0x7aa   :  { %19134 = vmatpush3.bf16.msra.mxu1 %v26390_v13  ;;  %v14910_v49 = vadd.f32 %v14909_v55, %v14908_v43  ;;  %v26546_v45 = vadd.f32 %v14945_v56, %v9429_v6  ;;  %v11253_v13 = vand.u32 4294901760, %v26557_v27 }
 0x7ab   :  { %19136 = vmatprep.subr.bf16.mxu1 %v29290_v62  ;;  %v11256_v62 = vand.u32 4294901760, %v26560_v8 }
 0x7ac   :  { %v9435_v60 = vadd.f32 %v14910_v49, %v9262_v32  ;;  %v26593_v25 = vsub.f32 %v26557_v27, %v11253_v13 }
 0x7ad   :  { %11081 = vmatmul.mubr.f32.vlgmr.msra.gmra.mrb[156].mxu1 %v28382_v1  ;;  %v26600_v47 = vsub.f32 %v26560_v8, %v11256_v62 }
 0x7ae   :  { %19138 = vmatpush3.bf16.msra.mxu1 %v29292_v50  ;;  %11085 = vmatprep.mubr.f32.mxu1 %v28382_v1  ;;  %v26552_v3 = vadd.f32 %v14948_v61, %v9435_v60  ;;  %v26565_v50 = vld [vmem:[#allocation2 + $0xb10] sm:$0xff]  ;;  %v28302_v58 = vand.u32 4294901760, %v26593_v25 }
 0x7af   :  { %19140 = vmatprep.subr.bf16.mxu1 %v29293_v35  ;;  %v26571_v35 = vsub.f32 %v26497_v0, %v11247_v29  ;;  %v11205_v54 = vand.u32 4294901760, %v26565_v50  ;;  %v28304_v29 = vand.u32 4294901760, %v26585_v36  ;;  %v28301_v30 = vand.u32 4294901760, %v26600_v47 }
 0x7b0   :  { %v11445_v15 = vsub.f32 %v26593_v25, %v28302_v58 }
 0x7b1   :  { %11086 = vmatmul.mubr.f32.gmra.mrb[158].mxu1 %v28382_v1  ;;  %v28308_v0 = vand.u32 4294901760, %v26571_v35  ;;  %v11452_v52 = vsub.f32 %v26600_v47, %v28301_v30 }
 0x7b2   :  { %19142 = vmatpush3.bf16.msra.mxu1 %v29295_v37  ;;  %11187 = vmatprep.mubr.f32.mxu1 %v28382_v1  ;;  %v26576_v37 = vsub.f32 %v26499_v42, %v11250_v48  ;;  %v11446_v34 = vand.u32 4294901760, %v11445_v15 }
 0x7b3   :  { %19144 = vmatprep.subr.bf16.mxu1 %v29296_v39  ;;  %v26578_v39 = vld [vmem:[#allocation2 + $0xb18] sm:$0xff]  ;;  %v11431_v7 = vsub.f32 %v26571_v35, %v28308_v0  ;;  %v11453_v49 = vand.u32 4294901760, %v11452_v52 }
 0x7b4   :  { %v11208_v5 = vand.u32 4294901760, %v26578_v39  ;;  %v28307_v42 = vand.u32 4294901760, %v26576_v37 }
 0x7b5   :  { %v11432_v56 = vand.u32 4294901760, %v11431_v7  ;;  %v19203_v15 = vpack.c.bf16 %v11453_v49, %v11446_v34  ;;  %v26702_v34 = vld [vmem:[#allocation2 + $0xbb8] sm:$0xff] }
 0x7b6   :  { %19146 = vmatpush3.bf16.msra.mxu1 %v29297_v2  ;;  %v26582_v2 = vld [vmem:[#allocation2 + $0xba8] sm:$0xff]  ;;  %v26625_v31 = vsub.f32 %v26578_v39, %v11208_v5  ;;  %v28314_v49 = vand.u32 4294901760, %v26702_v34  ;;  %v26806_v27 = vpack.c.bf16 %v11208_v5, %v11205_v54 }
 0x7b7   :  { %19148 = vmatprep.subr.bf16.mxu1 %v29298_v20  ;;  %v26588_v20 = vsub.f32 %v26509_v16, %v11202_v57  ;;  %v11262_v33 = vand.u32 4294901760, %v26582_v2  ;;  %v11211_v16 = vand.u32 4294901760, %v26608_v24  ;;  %v26639_v57 = vsub.f32 %v26580_v59, %v11259_v22 }
 0x7b8   :  { %v28299_v53 = vand.u32 4294901760, %v26625_v31 }
 0x7b9   :  { %v28303_v48 = vand.u32 4294901760, %v26588_v20  ;;  %v26644_v32 = vsub.f32 %v26582_v2, %v11262_v33  ;;  %v26664_v12 = vsub.f32 %v26608_v24, %v11211_v16  ;;  %v28298_v11 = vand.u32 4294901760, %v26639_v57 }
 0x7ba   :  { %19150 = vmatpush3.bf16.msra.mxu1 %v29299_v40  ;;  %v26610_v40 = vld [vmem:[#allocation2 + $0xb28] sm:$0xff]  ;;  %v11340_v6 = vsub.f32 %v26625_v31, %v28299_v53 }
 0x7bb   :  { %19152 = vmatprep.subr.bf16.mxu1 %v29300_v41  ;;  %v26618_v41 = vsub.f32 %v26565_v50, %v11205_v54  ;;  %v28318_v44 = vand.u32 4294901760, %v26610_v40  ;;  %29313 = vst [vmem:[#allocation49_spill] sm:$0xff] %v26644_v32  ;;  %v11326_v23 = vsub.f32 %v26588_v20, %v28303_v48  ;;  %29314 = vst [vmem:[#allocation16_spill] sm:$0xff] %v26664_v12  ;;  %v28297_v38 = vand.u32 4294901760, %v26644_v32 }
 0x7bc   :  { %v11459_v60 = vsub.f32 %v26639_v57, %v28298_v11 }
 0x7bd   :  { %v28300_v28 = vand.u32 4294901760, %v26618_v41  ;;  %v26669_v21 = vsub.f32 %v26610_v40, %v28318_v44  ;;  %v11327_v26 = vand.u32 4294901760, %v11326_v23  ;;  %v26800_v44 = vld [vmem:[#allocation2 + $0xb58] sm:$0xff] }
 0x7be   :  { %19154 = vmatpush3.bf16.msra.mxu1 %v29301_v14  ;;  %v11438_v14 = vsub.f32 %v26576_v37, %v28307_v42  ;;  %v11460_v52 = vand.u32 4294901760, %v11459_v60  ;;  %v26706_v60 = vld [vmem:[#allocation2 + $0xb30] sm:$0xff] }
 0x7bf   :  { %19156 = vmatprep.subr.bf16.mxu1 %v29302_v10  ;;  %v11319_v10 = vsub.f32 %v26585_v36, %v28304_v29  ;;  %29315 = vst [vmem:[#allocation44_spill] sm:$0xff] %v26669_v21  ;;  %v11333_v63 = vsub.f32 %v26618_v41, %v28300_v28  ;;  %v28295_v43 = vand.u32 4294901760, %v26669_v21 }
 0x7c1   :  { %v11320_v61 = vand.u32 4294901760, %v11319_v10  ;;  %v11334_v7 = vand.u32 4294901760, %v11333_v63  ;;  %v11341_v10 = vand.u32 4294901760, %v11340_v6  ;;  %v26700_v6 = vld [vmem:[#allocation2 + $0xbb0] sm:$0xff] }
 0x7c2   :  { %19158 = vmatpush3.bf16.msra.mxu1 %v29303_v4  ;;  %v11439_v4 = vand.u32 4294901760, %v11438_v14 }
 0x7c3   :  { %19160 = vmatprep.subr.bf16.mxu1 %v29304_v46  ;;  %v28296_v46 = vand.u32 4294901760, %v26664_v12  ;;  %v19201_v14 = vpack.c.bf16 %v11327_v26, %v11320_v61 }
 0x7c4   :  { %v19199_v55 = vpack.c.bf16 %v11439_v4, %v11432_v56  ;;  %v19205_v4 = vpack.c.bf16 %v11341_v10, %v11334_v7  ;;  %v28312_v7 = vand.u32 4294901760, %v26706_v60 }
 0x7c5   :  { %v11347_v23 = vsub.f32 %v26664_v12, %v28296_v46 }
 0x7c6   :  { %19162 = vmatpush3.bf16.msra.mxu1 %v29305_v17  ;;  %v11466_v17 = vsub.f32 %v26644_v32, %v28297_v38 }
 0x7c7   :  { %19164 = vmatprep.subr.bf16.mxu1 %v29306_v9  ;;  %v11354_v9 = vsub.f32 %v26669_v21, %v28295_v43  ;;  %v11348_v63 = vand.u32 4294901760, %v11347_v23  ;;  %v26720_v23 = vsub.f32 %v26702_v34, %v28314_v49  ;;  %v26742_v43 = vld [vmem:[#allocation2 + $0xb48] sm:$0xff] }
 0x7c8   :  { %v11467_v56 = vand.u32 4294901760, %v11466_v17  ;;  %v26708_v17 = vld [vmem:[#allocation2 + $0xb38] sm:$0xff]  ;;  %v28317_v53 = vand.u32 4294901760, %v26742_v43 }
 0x7c9   :  { %v29321_v24 = vand.u32 4294901760, %v26708_v17 }
 0x7ca   :  { %19166 = vmatpush3.bf16.msra.mxu1 %v29307_v51  ;;  %v11355_v51 = vand.u32 4294901760, %v11354_v9  ;;  %v19207_v61 = vpack.c.bf16 %v11467_v56, %v11460_v52  ;;  %v26725_v9 = vsub.f32 %v26706_v60, %v28312_v7  ;;  %v26732_v52 = vld [vmem:[#allocation2 + $0xbc0] sm:$0xff]  ;;  %v26734_v56 = vld [vmem:[#allocation2 + $0xbc8] sm:$0xff]  ;;  %v26776_v42 = vsub.f32 %v26742_v43, %v28317_v53  ;;  %v26798_v53 = vld [vmem:[#allocation2 + $0xb50] sm:$0xff] }
 0x7cb   :  { %19200 = vmatprep.subr.bf16.mxu1 %v19199_v55  ;;  %v28315_v55 = vand.u32 4294901760, %v26700_v6 }
 0x7cc   :  { %v19209_v26 = vpack.c.bf16 %v11355_v51, %v11348_v63  ;;  %v28306_v63 = vand.u32 4294901760, %v26720_v23  ;;  %v28309_v51 = vand.u32 4294901760, %v26732_v52  ;;  %v28310_v46 = vand.u32 4294901760, %v26725_v9 }
 0x7cd   :  { %11188 = vmatmul.mubr.f32.vlgmr.msra.gmra.mrb[160].mxu1 %v28382_v1  ;;  %v26715_v10 = vsub.f32 %v26700_v6, %v28315_v55  ;;  %v28320_v49 = vand.u32 4294901760, %v26776_v42  ;;  %v26782_v55 = vld [vmem:[#allocation2 + $0xbd0] sm:$0xff] }
 0x7ce   :  { %19202 = vmatpush3.bf16.msra.mxu1 %v19201_v14  ;;  %11192 = vmatprep.mubr.f32.mxu1 %v28382_v1  ;;  %v28311_v14 = vand.u32 4294901760, %v26708_v17  ;;  %v11480_v30 = vsub.f32 %v26720_v23, %v28306_v63  ;;  %v26757_v58 = vsub.f32 %v26732_v52, %v28309_v51  ;;  %v11361_v29 = vsub.f32 %v26725_v9, %v28310_v46 }
 0x7cf   :  { %19204 = vmatprep.subr.bf16.mxu1 %v19203_v15  ;;  %v11277_v50 = vand.u32 4294901760, %v26782_v55 }
 0x7d0   :  { %v26730_v15 = vsub.f32 %v26708_v17, %v28311_v14  ;;  %v11481_v0 = vand.u32 4294901760, %v11480_v30  ;;  %v28324_v51 = vand.u32 4294901760, %v26757_v58  ;;  %v11362_v14 = vand.u32 4294901760, %v11361_v29  ;;  %v26872_v17 = vld [vmem:[#allocation2 + $0xb68] sm:$0xff] }
 0x7d1   :  { %11193 = vmatmul.mubr.f32.gmra.mrb[162].mxu1 %v28382_v1  ;;  %v26843_v2 = vsub.f32 %v26782_v55, %v11277_v50 }
 0x7d2   :  { %19206 = vmatpush3.bf16.msra.mxu1 %v19205_v4  ;;  %v28305_v4 = vand.u32 4294901760, %v26715_v10  ;;  %v28313_v38 = vand.u32 4294901760, %v26730_v15  ;;  %v11487_v29 = vsub.f32 %v26757_v58, %v28324_v51  ;;  %v10306_v51 = vld [vmem:[#allocation2 + $0xbf0] sm:$0xff] }
 0x7d3   :  { %19208 = vmatprep.subr.bf16.mxu1 %v19207_v61  ;;  %v11274_v61 = vand.u32 4294901760, %v26734_v56 }
 0x7d4   :  { %v11473_v28 = vsub.f32 %v26715_v10, %v28305_v4  ;;  %v11368_v4 = vsub.f32 %v26730_v15, %v28313_v38 }
 0x7d5   :  { %v26760_v48 = vsub.f32 %v26734_v56, %v11274_v61 }
 0x7d6   :  { %19210 = vmatpush3.bf16.msra.mxu1 %v19209_v26  ;;  %v26740_v26 = vld [vmem:[#allocation2 + $0xb40] sm:$0xff]  ;;  %v11474_v56 = vand.u32 4294901760, %v11473_v28  ;;  %v11369_v7 = vand.u32 4294901760, %v11368_v4  ;;  %v26790_v28 = vpack.c.bf16 %v11256_v62, %v11253_v13  ;;  %v11382_v62 = vsub.f32 %v26776_v42, %v28320_v49 }
 0x7d7   :  { %v28316_v11 = vand.u32 4294901760, %v26740_v26  ;;  %v28321_v46 = vand.u32 4294901760, %v26760_v48 }
 0x7d8   :  { %v19211_v30 = vpack.c.bf16 %v11481_v0, %v11474_v56  ;;  %v19213_v8 = vpack.c.bf16 %v11369_v7, %v11362_v14  ;;  %19172 = vmatprep.subr.bf16.mxu0 %v26790_v28  ;;  %v11488_v0 = vand.u32 4294901760, %v11487_v29  ;;  %v11383_v5 = vand.u32 4294901760, %v11382_v62 }
 0x7d9   :  { %v26771_v63 = vsub.f32 %v26740_v26, %v28316_v11  ;;  %v26784_v11 = vld [vmem:[#allocation2 + $0xbd8] sm:$0xff]  ;;  %v11494_v4 = vsub.f32 %v26760_v48, %v28321_v46  ;;  %19174 = vmatpush3.bf16.msra.mxu0 %v26806_v27  ;;  %v28328_v7 = vand.u32 4294901760, %v26798_v53  ;;  %v28326_v14 = vand.u32 4294901760, %v26800_v44  ;;  %v26840_v46 = vld [vmem:[#allocation2 + $0xbe8] sm:$0xff] }
 0x7da   :  { %19212 = vmatprep.subr.bf16.mxu1 %v19211_v30  ;;  %v11280_v39 = vand.u32 4294901760, %v26784_v11  ;;  %v26826_v30 = vpack.c.bf16 %v11262_v33, %v11259_v22  ;;  %v29318_v62 = vand.u32 4294901760, %v26702_v34  ;;  %v29320_v33 = vand.u32 4294901760, %v26706_v60 }
 0x7db   :  { %v28319_v38 = vand.u32 4294901760, %v26771_v63  ;;  %v11495_v56 = vand.u32 4294901760, %v11494_v4  ;;  %19214 = vmatpush3.bf16.msra.mxu1 %v19213_v8  ;;  %v29316_v4 = vand.u32 4294901760, %v26610_v40  ;;  %v29323_v34 = vand.u32 4294901760, %v26732_v52 }
 0x7dc   :  { %v26846_v22 = vsub.f32 %v26784_v11, %v11280_v39  ;;  %v26852_v40 = vpack.c.bf16 %v29321_v24, %v29320_v33  ;;  %19176 = vmatprep.subr.bf16.mxu0 %v26826_v30  ;;  %v26865_v11 = vsub.f32 %v26800_v44, %v28326_v14  ;;  %v11238_v33 = vand.u32 4294901760, %v26872_v17 }
 0x7dd   :  { %v11375_v13 = vsub.f32 %v26771_v63, %v28319_v38  ;;  %v26820_v38 = vld [vmem:[#allocation2 + $0xbe0] sm:$0xff]  ;;  %v19215_v29 = vpack.c.bf16 %v11495_v56, %v11488_v0  ;;  %v26832_v8 = vpack.c.bf16 %v29316_v4, %v11211_v16  ;;  %v26869_v55 = vpack.c.bf16 %v11274_v61, %v29323_v34 }
 0x7de   :  { %29322 = vst [vmem:[#allocation35_spill] sm:$0xff] %v26852_v40  ;;  %v26854_v16 = vld [vmem:[#allocation2 + $0xb60] sm:$0xff]  ;;  %v11283_v60 = vand.u32 4294901760, %v26820_v38  ;;  %v28323_v0 = vand.u32 4294901760, %v26843_v2  ;;  %v28322_v56 = vand.u32 4294901760, %v26846_v22  ;;  %v28327_v4 = vand.u32 4294901760, %v26865_v11 }
 0x7df   :  { %v11376_v54 = vand.u32 4294901760, %v11375_v13  ;;  %v29317_v13 = vand.u32 4294901760, %v26700_v6  ;;  %19216 = vmatprep.subr.bf16.mxu1 %v19215_v29  ;;  %v26860_v6 = vsub.f32 %v26798_v53, %v28328_v7  ;;  %29324 = vst [vmem:[#allocation26_spill] sm:$0xff] %v26869_v55  ;;  %19178 = vmatpush3.bf16.msra.mxu0 %v26832_v8  ;;  %v29326_v29 = vand.u32 4294901760, %v26742_v43 }
 0x7e0   :  { %v11508_v43 = vsub.f32 %v26846_v22, %v28322_v56  ;;  %v11396_v24 = vsub.f32 %v26865_v11, %v28327_v4  ;;  %v26925_v21 = vpack.c.bf16 %v11280_v39, %v11277_v50  ;;  %v29328_v50 = vand.u32 4294901760, %v26798_v53 }
 0x7e1   :  { %v26838_v49 = vpack.c.bf16 %v29318_v62, %v29317_v13  ;;  %v19217_v59 = vpack.c.bf16 %v11383_v5, %v11376_v54  ;;  %v11286_v54 = vand.u32 4294901760, %v26840_v46  ;;  %v29325_v5 = vand.u32 4294901760, %v26740_v26 }
 0x7e2   :  { %v28325_v61 = vand.u32 4294901760, %v26860_v6  ;;  %v26888_v13 = vsub.f32 %v26820_v38, %v11283_v60  ;;  %v11235_v62 = vand.u32 4294901760, %v26854_v16  ;;  %v11509_v56 = vand.u32 4294901760, %v11508_v43 }
 0x7e3   :  { %29319 = vst [vmem:[#allocation39_spill] sm:$0xff] %v26838_v49  ;;  %19218 = vmatpush3.bf16.msra.mxu1 %v19217_v59  ;;  %v26882_v52 = vpack.c.bf16 %v29326_v29, %v29325_v5  ;;  %19180 = vmatprep.subr.bf16.mxu0 %v26838_v49  ;;  %v11501_v59 = vsub.f32 %v26843_v2, %v28323_v0  ;;  %v11397_v14 = vand.u32 4294901760, %v11396_v24  ;;  %v10291_v24 = vld [vmem:[#allocation2 + $0xb78] sm:$0xff]  ;;  %v29329_v39 = vand.u32 4294901760, %v26800_v44 }
 0x7e4   :  { %v26898_v26 = vsub.f32 %v26840_v46, %v11286_v54  ;;  %v11389_v38 = vsub.f32 %v26860_v6, %v28325_v61  ;;  %v28335_v34 = vand.u32 4294901760, %v26888_v13  ;;  %v26909_v5 = vsub.f32 %v26854_v16, %v11235_v62  ;;  %19182 = vmatpush3.bf16.msra.mxu0 %v26852_v40 }
 0x7e5   :  { %29327 = vst [vmem:[#allocation36_spill] sm:$0xff] %v26882_v52  ;;  %v11502_v29 = vand.u32 4294901760, %v11501_v59  ;;  %v26914_v0 = vsub.f32 %v26872_v17, %v11238_v33  ;;  %19184 = vmatprep.subr.bf16.mxu0 %v26869_v55  ;;  %v10307_v59 = vld [vmem:[#allocation2 + $0xbf8] sm:$0xff]  ;;  %v11289_v40 = vand.u32 4294901760, %v10306_v51 }
 0x7e6   :  { %v28341_v46 = vand.u32 4294901760, %v26898_v26  ;;  %v11390_v61 = vand.u32 4294901760, %v11389_v38  ;;  %v11515_v4 = vsub.f32 %v26888_v13, %v28335_v34  ;;  %v28340_v16 = vand.u32 4294901760, %v26909_v5  ;;  %v10290_v38 = vld [vmem:[#allocation2 + $0xb70] sm:$0xff] }
 0x7e7   :  { %v19219_v43 = vpack.c.bf16 %v11509_v56, %v11502_v29  ;;  %v28344_v17 = vand.u32 4294901760, %v26914_v0  ;;  %v11292_v29 = vand.u32 4294901760, %v10307_v59 }
 0x7e8   :  { %v11522_v7 = vsub.f32 %v26898_v26, %v28341_v46  ;;  %v19221_v12 = vpack.c.bf16 %v11397_v14, %v11390_v61  ;;  %v11516_v55 = vand.u32 4294901760, %v11515_v4  ;;  %v11403_v34 = vsub.f32 %v26909_v5, %v28340_v16  ;;  %19186 = vmatpush3.bf16.msra.mxu0 %v26882_v52 }
 0x7e9   :  { %19220 = vmatprep.subr.bf16.mxu1 %v19219_v43  ;;  %v11410_v56 = vsub.f32 %v26914_v0, %v28344_v17  ;;  %v26938_v14 = vpack.c.bf16 %v29329_v39, %v29328_v50  ;;  %19188 = vmatprep.subr.bf16.mxu0 %v26925_v21  ;;  %v26941_v4 = vsub.f32 %v10306_v51, %v11289_v40  ;;  %v11244_v43 = vand.u32 4294901760, %v10291_v24 }
 0x7ea   :  { %v11523_v49 = vand.u32 4294901760, %v11522_v7  ;;  %19222 = vmatpush3.bf16.msra.mxu1 %v19221_v12  ;;  %v11404_v61 = vand.u32 4294901760, %v11403_v34  ;;  %v11241_v7 = vand.u32 4294901760, %v10290_v38  ;;  %v26943_v52 = vsub.f32 %v10307_v59, %v11292_v29 }
 0x7eb   :  { %29330 = vst [vmem:[#allocation48_spill] sm:$0xff] %v26938_v14  ;;  %v11411_v46 = vand.u32 4294901760, %v11410_v56  ;;  %v26945_v17 = vpack.c.bf16 %v11286_v54, %v11283_v60  ;;  %v28350_v53 = vand.u32 4294901760, %v26941_v4  ;;  %v26950_v44 = vsub.f32 %v10291_v24, %v11244_v43 }
 0x7ec   :  { %v19223_v16 = vpack.c.bf16 %v11523_v49, %v11516_v55  ;;  %v26948_v32 = vsub.f32 %v10290_v38, %v11241_v7  ;;  %v28349_v34 = vand.u32 4294901760, %v26943_v52  ;;  %19190 = vmatpush3.bf16.msra.mxu0 %v26938_v14  ;;  %v26963_v54 = vpack.c.bf16 %v11238_v33, %v11235_v62 }
 0x7ed   :  { %v19225_v12 = vpack.c.bf16 %v11411_v46, %v11404_v61  ;;  %v11529_v49 = vsub.f32 %v26941_v4, %v28350_v53  ;;  %v28347_v55 = vand.u32 4294901760, %v26950_v44  ;;  %19192 = vmatprep.subr.bf16.mxu0 %v26945_v17  ;;  %v26972_v24 = vpack.c.bf16 %v11292_v29, %v11289_v40  ;;  %v29342_v29 = vld [vmem:[#allocation36_spill] sm:$0xff] }
 0x7ee   :  { %19224 = vmatprep.subr.bf16.mxu1 %v19223_v16  ;;  %v28348_v51 = vand.u32 4294901760, %v26948_v32  ;;  %v11536_v60 = vsub.f32 %v26943_v52, %v28349_v34  ;;  %v26974_v39 = vpack.c.bf16 %v11244_v43, %v11241_v7  ;;  %v19231_v61 = vpack.c.bf16 %v26576_v37, %v26571_v35  ;;  %v29341_v43 = vld [vmem:[#allocation26_spill] sm:$0xff] }
 0x7ef   :  { %19226 = vmatpush3.bf16.msra.mxu1 %v19225_v12  ;;  %v11530_v46 = vand.u32 4294901760, %v11529_v49  ;;  %v11424_v59 = vsub.f32 %v26950_v44, %v28347_v55 }
 0x7f0   :  { %v11417_v16 = vsub.f32 %v26948_v32, %v28348_v51  ;;  %v11537_v38 = vand.u32 4294901760, %v11536_v60  ;;  %19194 = vmatpush3.bf16.msra.mxu0 %v26963_v54  ;;  %v29339_v60 = vld [vmem:[#allocation16_spill] sm:$0xff] }
 0x7f1   :  { %v11425_v50 = vand.u32 4294901760, %v11424_v59  ;;  %19196 = vmatprep.subr.bf16.mxu0 %v26972_v24 }
 0x7f2   :  { %v11418_v56 = vand.u32 4294901760, %v11417_v16  ;;  %v19227_v62 = vpack.c.bf16 %v11537_v38, %v11530_v46  ;;  %v29337_v46 = vld [vmem:[#allocation39_spill] sm:$0xff] }
 0x7f4   :  { %v19229_v33 = vpack.c.bf16 %v11425_v50, %v11418_v56  ;;  %19228 = vmatprep.subr.bf16.mxu1 %v19227_v62  ;;  %19198 = vmatpush3.bf16.msra.mxu0 %v26974_v39 }
 0x7f5   :  { %19232 = vmatprep.subr.bf16.mxu0 %v19231_v61 }
 0x7f6   :  { %19230 = vmatpush3.bf16.msra.mxu1 %v19229_v33 }
 0x7f7   :  { %19264 = vmatprep.subr.bf16.mxu1 %v26516_v18 }
 0x7fe   :  { %v15089_v49 = vpop.f32.mrb[140].mxu1 }
 0x7ff   :  { %v15090_v12 = vpop.f32.mrb[141].mxu1 }
 0x802   :  { %v15092_v7 = vpop.f32.mrb[142].mxu1 }
 0x803   :  { %v15093_v40 = vpop.f32.mrb[143].mxu1 }
 0x865   :  { %v16460_v38 = vpop.f32.mrb[58].mxu0 }
 0x866   :  { %v19557_v56 = vadd.f32 %v16460_v38, %v26552_v3  ;;  %v10221_v50 = vpop.f32.mrb[59].mxu0  ;;  %v19235_v38 = vpack.c.bf16 %v26600_v47, %v26593_v25 }
 0x867   :  { %v19558_v62 = vadd.f32 %v10221_v50, %v26546_v45 }
 0x868   :  { %19633 = vtanh.f32 %v19557_v56 }
 0x869   :  { %19635 = vtanh.f32 %v19558_v62 }
 0x872   :  { %v27003_v33 = vpop.eup %19633 }
 0x873   :  { %29331 = vst [vmem:[#allocation30_spill] sm:$0xff] %v27003_v33  ;;  %v27005_v61 = vpop.eup %19635  ;;  %v10236_v55 = vrot.slane %v27003_v33, 7 }
 0x874   :  { %29332 = vst [vmem:[#allocation50_spill] sm:$0xff] %v27005_v61  ;;  %v10235_v51 = vrot.slane %v27005_v61, 7 }
 0x876   :  { %v10240_v34 = vsel %vm52_vm2, 0.0, %v10235_v51  ;;  %v10237_v53 = vsel %vm52_vm2, %v10235_v51, %v10236_v55 }
 0x877   :  { %v10241_v3 = vsel %vm69_vm3, %v10240_v34, 0.0  ;;  %v10242_v45 = vsel %vm70_vm4, %v10237_v53, 0.0 }
 0x878   :  { %v27015_v56 = vand.u32 4294901760, %v10241_v3  ;;  %v27017_v50 = vand.u32 4294901760, %v10242_v45 }
 0x87a   :  { %29335 = vst [vmem:[#allocation12_spill] sm:$0xff] %v27017_v50  ;;  %11540 = vmatprep.mubr.f32.mxu1 %v27015_v56  ;;  %v11295_v62 = vsub.f32 %v10241_v3, %v27015_v56  ;;  %v27022_v16 = vsub.f32 %v10242_v45, %v27017_v50  ;;  %v19233_v3 = vpack.c.bf16 %v26588_v20, %v26585_v36 }
 0x87b   :  { %11541 = vmatmul.mubr.f32.vlgmr.msra.gmra.mrb[164].mxu1 %v28382_v1 }
 0x87c   :  { %19266 = vmatpush3.bf16.msra.mxu1 %v26526_v19  ;;  %11546 = vmatprep.mubr.f32.mxu1 %v27017_v50  ;;  %v11296_v34 = vand.u32 4294901760, %v11295_v62  ;;  %v28351_v53 = vand.u32 4294901760, %v27022_v16  ;;  %v15094_v50 = vadd.f32 %v15093_v40, %v15092_v7 }
 0x87d   :  { %19268 = vmatprep.subr.bf16.mxu1 %v26790_v28 }
 0x87e   :  { %v11297_v51 = vsub.f32 %v11295_v62, %v11296_v34  ;;  %v11307_v55 = vsub.f32 %v27022_v16, %v28351_v53  ;;  %v19237_v53 = vpack.c.bf16 %v26625_v31, %v26618_v41 }
 0x87f   :  { %11547 = vmatmul.mubr.f32.gmra.mrb[166].mxu1 %v28382_v1 }
 0x880   :  { %19270 = vmatpush3.bf16.msra.mxu1 %v26806_v27  ;;  %11794 = vmatprep.mubr.f32.mxu1 %v11296_v34  ;;  %v11298_v59 = vand.u32 4294901760, %v11297_v51  ;;  %v11308_v45 = vand.u32 4294901760, %v11307_v55  ;;  %v29336_v34 = vld [vmem:[#allocation49_spill] sm:$0xff]  ;;  %v29340_v55 = vld [vmem:[#allocation44_spill] sm:$0xff] }
 0x881   :  { %19272 = vmatprep.subr.bf16.mxu1 %v26826_v30  ;;  %v19239_v51 = vpack.c.bf16 %v29336_v34, %v26639_v57 }
 0x882   :  { %11299 = vmatprep.mubr.f32.mxu0 %v11298_v59  ;;  %v29338_v59 = vld [vmem:[#allocation35_spill] sm:$0xff] }
 0x883   :  { %11300 = vmatmul.mubr.f32.vlgmr.msra.gmra.mrb[60].mxu0 %v28382_v1 }
 0x884   :  { %19234 = vmatpush3.bf16.msra.mxu0 %v19233_v3  ;;  %19274 = vmatpush3.bf16.msra.mxu1 %v26832_v8  ;;  %v19241_v3 = vpack.c.bf16 %v29340_v55, %v29339_v60 }
 0x885   :  { %11309 = vmatprep.mubr.f32.mxu0 %v11308_v45  ;;  %19236 = vmatprep.subr.bf16.mxu0 %v19235_v38  ;;  %v12800_v38 = vld [vmem:[#allocation5 + $0x4] ss:$0 sm:$0xff]  ;;  %v15091_v45 = vadd.f32 %v15090_v12, %v15089_v49  ;;  %v29344_v12 = vpack.c.bf16 %v26730_v15, %v26725_v9 }
 0x886   :  { %19276 = vmatprep.subr.bf16.mxu1 %v29337_v46  ;;  %v10436_v61 = vadd.f32 %v15094_v50, %v12800_v38 }
 0x887   :  { %11310 = vmatmul.mubr.f32.gmra.mrb[62].mxu0 %v28382_v1  ;;  %v10431_v33 = vadd.f32 %v15091_v45, %v12800_v38 }
 0x888   :  { %19238 = vmatpush3.bf16.msra.mxu0 %v19237_v53  ;;  %19278 = vmatpush3.bf16.msra.mxu1 %v29338_v59  ;;  %v29343_v53 = vpack.c.bf16 %v26720_v23, %v26715_v10 }
 0x889   :  { %11682 = vmatprep.mubr.f32.mxu0 %v11295_v62  ;;  %19240 = vmatprep.subr.bf16.mxu0 %v19239_v51  ;;  %v15127_v62 = vpop.f32.mrb[144].mxu1 }
 0x88a   :  { %19280 = vmatprep.subr.bf16.mxu1 %v29341_v43  ;;  %v15128_v51 = vpop.f32.mrb[145].mxu1 }
 0x88b   :  { %v15129_v59 = vadd.f32 %v15128_v51, %v15127_v62  ;;  %v15130_v43 = vpop.f32.mrb[146].mxu1  ;;  %v29346_v51 = vpack.c.bf16 %v26776_v42, %v26771_v63 }
 0x88c   :  { %19242 = vmatpush3.bf16.msra.mxu0 %v19241_v3  ;;  %19282 = vmatpush3.bf16.msra.mxu1 %v29342_v29  ;;  %v15131_v49 = vpop.f32.mrb[147].mxu1  ;;  %v29345_v3 = vpack.c.bf16 %v26760_v48, %v26757_v58 }
 0x88d   :  { %19244 = vmatprep.subr.bf16.mxu0 %v29343_v53  ;;  %19284 = vmatprep.subr.bf16.mxu1 %v26925_v21  ;;  %v10666_v45 = vadd.f32 %v15129_v59, %v10431_v33  ;;  %v15132_v40 = vadd.f32 %v15131_v49, %v15130_v43  ;;  %v15165_v7 = vpop.f32.mrb[148].mxu1 }
 0x88e   :  { %v15166_v53 = vpop.f32.mrb[149].mxu1 }
 0x88f   :  { %v10671_v50 = vadd.f32 %v15132_v40, %v10436_v61  ;;  %v15167_v38 = vadd.f32 %v15166_v53, %v15165_v7  ;;  %v15168_v62 = vpop.f32.mrb[150].mxu1  ;;  %v29348_v7 = vpack.c.bf16 %v26865_v11, %v26860_v6 }
 0x890   :  { %19246 = vmatpush3.bf16.msra.mxu0 %v29344_v12  ;;  %19286 = vmatpush3.bf16.msra.mxu1 %v26938_v14  ;;  %v15169_v12 = vpop.f32.mrb[151].mxu1  ;;  %v29347_v14 = vpack.c.bf16 %v26846_v22, %v26843_v2 }
 0x891   :  { %19248 = vmatprep.subr.bf16.mxu0 %v29345_v3  ;;  %19288 = vmatprep.subr.bf16.mxu1 %v26945_v17  ;;  %v10805_v33 = vadd.f32 %v15167_v38, %v10666_v45  ;;  %v15170_v43 = vadd.f32 %v15169_v12, %v15168_v62  ;;  %v15203_v59 = vpop.f32.mrb[152].mxu1 }
 0x892   :  { %v15204_v49 = vpop.f32.mrb[153].mxu1 }
 0x893   :  { %v10810_v61 = vadd.f32 %v15170_v43, %v10671_v50  ;;  %v15205_v3 = vadd.f32 %v15204_v49, %v15203_v59  ;;  %v15206_v40 = vpop.f32.mrb[154].mxu1  ;;  %v29350_v59 = vpack.c.bf16 %v26914_v0, %v26909_v5  ;;  %v29351_v49 = vand.u32 4294901760, %v27022_v16 }
 0x894   :  { %19250 = vmatpush3.bf16.msra.mxu0 %v29346_v51  ;;  %19290 = vmatpush3.bf16.msra.mxu1 %v26963_v54  ;;  %v15207_v53 = vpop.f32.mrb[155].mxu1  ;;  %v29349_v51 = vpack.c.bf16 %v26898_v26, %v26888_v13 }
 0x895   :  { %19252 = vmatprep.subr.bf16.mxu0 %v29347_v14  ;;  %19292 = vmatprep.subr.bf16.mxu1 %v26972_v24  ;;  %v10912_v14 = vadd.f32 %v15205_v3, %v10805_v33  ;;  %v15208_v45 = vadd.f32 %v15207_v53, %v15206_v40  ;;  %v15241_v38 = vpop.f32.mrb[156].mxu1  ;;  %v29353_v33 = vand.u32 4294901760, %v26571_v35  ;;  %v29357_v35 = vand.u32 4294901760, %v26588_v20 }
 0x896   :  { %v15242_v62 = vpop.f32.mrb[157].mxu1  ;;  %v29361_v20 = vand.u32 4294901760, %v26625_v31  ;;  %v29365_v31 = vand.u32 4294901760, %v29340_v55  ;;  %v29370_v55 = vand.u32 4294901760, %v26725_v9 }
 0x897   :  { %v10917_v50 = vadd.f32 %v15208_v45, %v10810_v61  ;;  %v15243_v12 = vadd.f32 %v15242_v62, %v15241_v38  ;;  %v15244_v43 = vpop.f32.mrb[158].mxu1  ;;  %v29354_v61 = vand.u32 4294901760, %v26576_v37  ;;  %v29356_v45 = vand.u32 4294901760, %v26585_v36 }
 0x898   :  { %19254 = vmatpush3.bf16.msra.mxu0 %v29348_v7  ;;  %19294 = vmatpush3.bf16.msra.mxu1 %v26974_v39  ;;  %v15245_v7 = vpop.f32.mrb[159].mxu1  ;;  %v29360_v36 = vand.u32 4294901760, %v26618_v41  ;;  %v29364_v41 = vand.u32 4294901760, %v29339_v60  ;;  %v27140_v60 = vld [vmem:[#allocation2 + $0xc28] sm:$0xff] }
 0x899   :  { %19256 = vmatprep.subr.bf16.mxu0 %v29349_v51  ;;  %19328 = vmatprep.subr.bf16.mxu1 %v26516_v18  ;;  %v29352_v18 = vpack.c.bf16 %v26943_v52, %v26941_v4  ;;  %v19295_v3 = vpack.c.bf16 %v29354_v61, %v29353_v33  ;;  %v11083_v40 = vadd.f32 %v15243_v12, %v10912_v14  ;;  %v29359_v14 = vand.u32 4294901760, %v26600_v47  ;;  %v10310_v61 = vld [vmem:[#allocation2 + $0xc10] sm:$0xff] }
 0x89a   :  { %v15246_v53 = vadd.f32 %v15245_v7, %v15244_v43  ;;  %v19297_v37 = vpack.c.bf16 %v29357_v35, %v29356_v45  ;;  %v29363_v47 = vand.u32 4294901760, %v29336_v34  ;;  %v29368_v34 = vand.u32 4294901760, %v26720_v23 }
 0x89b   :  { %11795 = vmatmul.mubr.f32.vlgmr.msra.gmra.mrb[168].mxu1 %v28382_v1  ;;  %v29373_v23 = vand.u32 4294901760, %v26760_v48  ;;  %v12097_v45 = vand.u32 4294901760, %v10310_v61  ;;  %v12106_v9 = vand.u32 4294901760, %v27140_v60  ;;  %v29376_v48 = vand.u32 4294901760, %v26776_v42 }
 0x89c   :  { %19258 = vmatpush3.bf16.msra.mxu0 %v29350_v59  ;;  %11802 = vmatprep.mubr.f32.mxu1 %v29351_v49  ;;  %v27096_v51 = vadd.f32 %v15246_v53, %v10917_v50  ;;  %v10308_v59 = vld [vmem:[#allocation2 + $0xc00] sm:$0xff]  ;;  %v29366_v49 = vld [vmem:[#allocation35_spill] sm:$0xff] }
 0x89d   :  { %19330 = vmatpush3.bf16.msra.mxu1 %v26526_v19  ;;  %19260 = vmatprep.subr.bf16.mxu0 %v29352_v18  ;;  %v29355_v19 = vpack.c.bf16 %v26950_v44, %v26948_v32  ;;  %v12091_v7 = vand.u32 4294901760, %v10308_v59  ;;  %v29369_v18 = vld [vmem:[#allocation26_spill] sm:$0xff] }
 0x89e   :  { %19332 = vmatprep.subr.bf16.mxu1 %v26790_v28  ;;  %v29358_v28 = vand.u32 4294901760, %v26593_v25  ;;  %v29362_v25 = vand.u32 4294901760, %v26639_v57  ;;  %v29367_v57 = vand.u32 4294901760, %v26715_v10  ;;  %v29372_v10 = vand.u32 4294901760, %v26757_v58 }
 0x89f   :  { %11803 = vmatmul.mubr.f32.gmra.mrb[170].mxu1 %v28382_v1  ;;  %v29375_v58 = vand.u32 4294901760, %v26771_v63 }
 0x8a0   :  { %19262 = vmatpush3.bf16.msra.mxu0 %v29355_v19  ;;  %12078 = vmatprep.mubr.f32.mxu1 %v27015_v56  ;;  %v15279_v38 = vpop.f32.mrb[160].mxu1  ;;  %v19299_v62 = vpack.c.bf16 %v29359_v14, %v29358_v28  ;;  %v19311_v19 = vpack.c.bf16 %v29373_v23, %v29372_v10  ;;  %v29374_v28 = vld [vmem:[#allocation50_spill] sm:$0xff]  ;;  %v29387_v10 = vand.u32 4294901760, %v26943_v52 }
 0x8a1   :  { %19334 = vmatpush3.bf16.msra.mxu1 %v26806_v27  ;;  %19296 = vmatprep.subr.bf16.mxu0 %v19295_v3  ;;  %v15280_v50 = vpop.f32.mrb[161].mxu1  ;;  %v19301_v27 = vpack.c.bf16 %v29361_v20, %v29360_v36  ;;  %v10311_v3 = vld [vmem:[#allocation2 + $0xc18] sm:$0xff]  ;;  %v19313_v14 = vpack.c.bf16 %v29376_v48, %v29375_v58  ;;  %v29379_v36 = vand.u32 4294901760, %v26846_v22  ;;  %v29388_v48 = vand.u32 4294901760, %v26948_v32 }
 0x8a2   :  { %19336 = vmatprep.subr.bf16.mxu1 %v26826_v30  ;;  %v15281_v12 = vadd.f32 %v15280_v50, %v15279_v38  ;;  %v19303_v30 = vpack.c.bf16 %v29363_v47, %v29362_v25  ;;  %v12100_v35 = vand.u32 4294901760, %v10311_v3  ;;  %v27167_v50 = vld [vmem:[#allocation2 + $0xc38] sm:$0xff]  ;;  %v27175_v25 = vsub.f32 %v10310_v61, %v12097_v45 }
 0x8a3   :  { %11683 = vmatmul.mubr.f32.vlgmr.msra.gmra.mrb[64].mxu0 %v28382_v1 }
 0x8a4   :  { %11689 = vmatprep.mubr.f32.mxu0 %v27022_v16  ;;  %19298 = vmatpush3.bf16.msra.mxu0 %v19297_v37  ;;  %v27118_v43 = vadd.f32 %v15281_v12, %v11083_v40  ;;  %v10309_v16 = vld [vmem:[#allocation2 + $0xc08] sm:$0xff]  ;;  %v29371_v40 = vand.u32 4294901760, %v26730_v15  ;;  %v27151_v37 = vsub.f32 %v10308_v59, %v12091_v7  ;;  %v29378_v12 = vand.u32 4294901760, %v26843_v2  ;;  %v15282_v58 = vpop.f32.mrb[162].mxu1 }
 0x8a5   :  { %19338 = vmatpush3.bf16.msra.mxu1 %v26832_v8  ;;  %19300 = vmatprep.subr.bf16.mxu0 %v19299_v62  ;;  %v19305_v8 = vpack.c.bf16 %v29365_v31, %v29364_v41  ;;  %v12094_v33 = vand.u32 4294901760, %v10309_v16  ;;  %v27165_v62 = vld [vmem:[#allocation2 + $0xc30] sm:$0xff]  ;;  %v27177_v63 = vsub.f32 %v10311_v3, %v12100_v35  ;;  %v27189_v2 = vsub.f32 %v27140_v60, %v12106_v9  ;;  %v27201_v31 = vld [vmem:[#allocation2 + $0xc40] sm:$0xff] }
 0x8a6   :  { %19340 = vmatprep.subr.bf16.mxu1 %v29337_v46  ;;  %v19307_v46 = vpack.c.bf16 %v29368_v34, %v29367_v57  ;;  %v19309_v53 = vpack.c.bf16 %v29371_v40, %v29370_v55  ;;  %v19315_v20 = vpack.c.bf16 %v29379_v36, %v29378_v12  ;;  %v29380_v59 = vand.u32 4294901760, %v26860_v6 }
 0x8a7   :  { %11690 = vmatmul.mubr.f32.gmra.mrb[66].mxu0 %v28382_v1  ;;  %v27156_v15 = vsub.f32 %v10309_v16, %v12094_v33  ;;  %v29381_v16 = vand.u32 4294901760, %v26865_v11  ;;  %v12215_v6 = vand.u32 4294901760, %v27177_v63  ;;  %v27213_v11 = vld [vmem:[#allocation2 + $0xc48] sm:$0xff]  ;;  %v12115_v3 = vand.u32 4294901760, %v27201_v31 }
 0x8a8   :  { %19302 = vmatpush3.bf16.msra.mxu0 %v19301_v27  ;;  %11969 = vmatprep.mubr.f32.mxu0 %v27015_v56  ;;  %v27138_v56 = vld [vmem:[#allocation2 + $0xc20] sm:$0xff]  ;;  %v12194_v27 = vand.u32 4294901760, %v27151_v37 }
 0x8a9   :  { %19342 = vmatpush3.bf16.msra.mxu1 %v29366_v49  ;;  %19304 = vmatprep.subr.bf16.mxu0 %v19303_v30  ;;  %v12103_v38 = vand.u32 4294901760, %v27138_v56  ;;  %v12201_v42 = vand.u32 4294901760, %v27156_v15  ;;  %v12109_v30 = vand.u32 4294901760, %v27165_v62  ;;  %v19317_v41 = vpack.c.bf16 %v29381_v16, %v29380_v59 }
 0x8aa   :  { %19344 = vmatprep.subr.bf16.mxu1 %v29369_v18  ;;  %v29383_v49 = vand.u32 4294901760, %v26898_v26  ;;  %v12195_v34 = vsub.f32 %v27151_v37, %v12194_v27  ;;  %v27216_v18 = vpack.c.bf16 %v12094_v33, %v12091_v7  ;;  %v29384_v7 = vand.u32 4294901760, %v26909_v5 }
 0x8ab   :  { %v27184_v47 = vsub.f32 %v27138_v56, %v12103_v38  ;;  %v27228_v55 = vsub.f32 %v27165_v62, %v12109_v30  ;;  %v29385_v33 = vand.u32 4294901760, %v26914_v0  ;;  %v29389_v5 = vand.u32 4294901760, %v26950_v44 }
 0x8ac   :  { %19306 = vmatpush3.bf16.msra.mxu0 %v19305_v8  ;;  %v29382_v8 = vand.u32 4294901760, %v26888_v13  ;;  %v12202_v13 = vsub.f32 %v27156_v15, %v12201_v42  ;;  %v12196_v0 = vand.u32 4294901760, %v12195_v34  ;;  %v12216_v52 = vsub.f32 %v27177_v63, %v12215_v6  ;;  %v29390_v34 = vld [vmem:[#allocation12_spill] sm:$0xff] }
 0x8ad   :  { %19346 = vmatpush3.bf16.msra.mxu1 %v29342_v29  ;;  %19308 = vmatprep.subr.bf16.mxu0 %v19307_v46  ;;  %v27159_v29 = vand.u32 4294901760, %v29374_v28  ;;  %v12208_v46 = vand.u32 4294901760, %v27175_v25  ;;  %v12222_v26 = vand.u32 4294901760, %v27184_v47  ;;  %v19321_v40 = vpack.c.bf16 %v29385_v33, %v29384_v7 }
 0x8ae   :  { %19348 = vmatprep.subr.bf16.mxu1 %v26925_v21  ;;  %v29377_v21 = vld [vmem:[#allocation48_spill] sm:$0xff]  ;;  %v19319_v57 = vpack.c.bf16 %v29383_v49, %v29382_v8  ;;  %v12203_v32 = vand.u32 4294901760, %v12202_v13  ;;  %v27276_v16 = vsub.f32 %v27201_v31, %v12115_v3  ;;  %v12217_v7 = vand.u32 4294901760, %v12216_v52 }
 0x8af   :  { %v27193_v22 = vsub.f32 %v29374_v28, %v27159_v29  ;;  %v12118_v28 = vand.u32 4294901760, %v27213_v11  ;;  %v12223_v44 = vsub.f32 %v27184_v47, %v12222_v26  ;;  %v27296_v33 = vpack.c.bf16 %v12106_v9, %v12103_v38 }
 0x8b0   :  { %19310 = vmatpush3.bf16.msra.mxu0 %v19309_v53  ;;  %v29386_v53 = vand.u32 4294901760, %v26941_v4  ;;  %v12209_v4 = vsub.f32 %v27175_v25, %v12208_v46  ;;  %v12250_v60 = vand.u32 4294901760, %v27276_v16 }
 0x8b1   :  { %19350 = vmatpush3.bf16.msra.mxu1 %v29377_v21  ;;  %19312 = vmatprep.subr.bf16.mxu0 %v19311_v19  ;;  %v12173_v61 = vand.u32 4294901760, %v27193_v22  ;;  %v27243_v19 = vpack.c.bf16 %v12100_v35, %v12097_v45  ;;  %v27257_v45 = vld [vmem:[#allocation2 + $0xc50] sm:$0xff]  ;;  %v27259_v35 = vld [vmem:[#allocation2 + $0xc58] sm:$0xff]  ;;  %v27284_v49 = vsub.f32 %v27213_v11, %v12118_v28 }
 0x8b2   :  { %19352 = vmatprep.subr.bf16.mxu1 %v26945_v17  ;;  %v12112_v17 = vand.u32 4294901760, %v27167_v50  ;;  %v19323_v23 = vpack.c.bf16 %v29387_v10, %v29386_v53  ;;  %v12124_v8 = vand.u32 4294901760, %v27259_v35  ;;  %v12210_v13 = vand.u32 4294901760, %v12209_v4  ;;  %v27298_v10 = vld [vmem:[#allocation2 + $0xc60] sm:$0xff] }
 0x8b3   :  { %v12174_v36 = vsub.f32 %v27193_v22, %v12173_v61  ;;  %v12224_v53 = vand.u32 4294901760, %v12223_v44  ;;  %v12257_v38 = vand.u32 4294901760, %v27284_v49 }
 0x8b4   :  { %19314 = vmatpush3.bf16.msra.mxu0 %v19313_v14  ;;  %v19325_v14 = vpack.c.bf16 %v29389_v5, %v29388_v48  ;;  %v27319_v5 = vsub.f32 %v27259_v35, %v12124_v8  ;;  %v27329_v52 = vpack.c.bf16 %v12112_v17, %v12109_v30 }
 0x8b5   :  { %19354 = vmatpush3.bf16.msra.mxu1 %v26963_v54  ;;  %19316 = vmatprep.subr.bf16.mxu0 %v19315_v20  ;;  %v12229_v54 = vand.u32 4294901760, %v27189_v2  ;;  %v12236_v20 = vand.u32 4294901760, %v27228_v55  ;;  %v12258_v62 = vsub.f32 %v27284_v49, %v12257_v38 }
 0x8b6   :  { %19356 = vmatprep.subr.bf16.mxu1 %v26972_v24  ;;  %v27233_v24 = vsub.f32 %v27167_v50, %v12112_v17  ;;  %v12271_v30 = vand.u32 4294901760, %v27319_v5 }
 0x8b7   :  { %v12230_v21 = vsub.f32 %v27189_v2, %v12229_v54 }
 0x8b8   :  { %19318 = vmatpush3.bf16.msra.mxu0 %v19317_v41  ;;  %v12243_v59 = vand.u32 4294901760, %v27233_v24  ;;  %v12121_v41 = vand.u32 4294901760, %v27257_v45  ;;  %v12272_v31 = vsub.f32 %v27319_v5, %v12271_v30 }
 0x8b9   :  { %19358 = vmatpush3.bf16.msra.mxu1 %v26974_v39  ;;  %19320 = vmatprep.subr.bf16.mxu0 %v19319_v57  ;;  %v15283_v39 = vpop.f32.mrb[163].mxu1  ;;  %v12231_v48 = vand.u32 4294901760, %v12230_v21 }
 0x8ba   :  { %19360 = vmatprep.subr.bf16.mxu1 %v27216_v18  ;;  %v15284_v12 = vadd.f32 %v15283_v39, %v15282_v58  ;;  %v12175_v58 = vand.u32 4294901760, %v12174_v36  ;;  %v12244_v56 = vsub.f32 %v27233_v24, %v12243_v59  ;;  %v27314_v9 = vsub.f32 %v27257_v45, %v12121_v41  ;;  %v10322_v39 = vld [vmem:[#allocation2 + $0xc70] sm:$0xff] }
 0x8bb   :  { %v19399_v44 = vpack.c.bf16 %v12231_v48, %v12224_v53  ;;  %v12251_v36 = vsub.f32 %v27276_v16, %v12250_v60  ;;  %v12133_v17 = vand.u32 4294901760, %v10322_v39  ;;  %v27375_v48 = vpack.c.bf16 %v12124_v8, %v12121_v41 }
 0x8bc   :  { %12079 = vmatmul.mubr.f32.vlgmr.msra.gmra.mrb[172].mxu1 %v28382_v1  ;;  %19322 = vmatpush3.bf16.msra.mxu0 %v19321_v40  ;;  %v27287_v57 = vadd.f32 %v15284_v12, %v27096_v51  ;;  %v19391_v40 = vpack.c.bf16 %v12203_v32, %v12196_v0  ;;  %v27300_v51 = vld [vmem:[#allocation2 + $0xc68] sm:$0xff]  ;;  %v19395_v0 = vpack.c.bf16 %v12217_v7, %v12210_v13  ;;  %v10323_v32 = vld [vmem:[#allocation2 + $0xc78] sm:$0xff]  ;;  %v12245_v12 = vand.u32 4294901760, %v12244_v56 }
 0x8bd   :  { %12084 = vmatprep.mubr.f32.mxu1 %v29390_v34  ;;  %19362 = vmatpush3.bf16.msra.mxu1 %v27216_v18  ;;  %v12130_v4 = vand.u32 4294901760, %v27300_v51  ;;  %v12264_v50 = vand.u32 4294901760, %v27314_v9  ;;  %v12136_v13 = vand.u32 4294901760, %v10323_v32 }
 0x8be   :  { %19324 = vmatprep.subr.bf16.mxu0 %v19323_v23  ;;  %19364 = vmatprep.subr.bf16.mxu1 %v27243_v19  ;;  %v12237_v23 = vsub.f32 %v27228_v55, %v12236_v20 }
 0x8bf   :  { %v27346_v7 = vsub.f32 %v27300_v51, %v12130_v4  ;;  %v12265_v51 = vsub.f32 %v27314_v9, %v12264_v50 }
 0x8c0   :  { %12085 = vmatmul.mubr.f32.gmra.mrb[174].mxu1 %v28382_v1  ;;  %19326 = vmatpush3.bf16.msra.mxu0 %v19325_v14  ;;  %v12127_v14 = vand.u32 4294901760, %v27298_v10  ;;  %v12238_v21 = vand.u32 4294901760, %v12237_v23  ;;  %v29391_v23 = vld [vmem:[#allocation30_spill] sm:$0xff] }
 0x8c1   :  { %19366 = vmatpush3.bf16.msra.mxu1 %v27243_v19  ;;  %16493 = vmatprep.mubr.f32.mxu1 %v12175_v58  ;;  %v12252_v58 = vand.u32 4294901760, %v12251_v36  ;;  %v27378_v56 = vand.u32 4294901760, %v29391_v23 }
 0x8c2   :  { %19368 = vmatprep.subr.bf16.mxu1 %v27296_v33  ;;  %19392 = vmatprep.subr.bf16.mxu0 %v19391_v40  ;;  %v19403_v53 = vpack.c.bf16 %v12245_v12, %v12238_v21  ;;  %v12266_v21 = vand.u32 4294901760, %v12265_v51  ;;  %v12273_v12 = vand.u32 4294901760, %v12272_v31  ;;  %v27390_v8 = vpack.c.bf16 %v12130_v4, %v12127_v14 }
 0x8c3   :  { %11970 = vmatmul.mubr.f32.vlgmr.msra.gmra.mrb[68].mxu0 %v28382_v1  ;;  %v27404_v4 = vpack.c.bf16 %v12136_v13, %v12133_v17 }
 0x8c4   :  { %11975 = vmatprep.mubr.f32.mxu0 %v29390_v34  ;;  %19394 = vmatpush3.bf16.msra.mxu0 %v19391_v40  ;;  %v27343_v34 = vsub.f32 %v27298_v10, %v12127_v14  ;;  %v27353_v40 = vpack.c.bf16 %v12118_v28, %v12115_v3  ;;  %v12259_v10 = vand.u32 4294901760, %v12258_v62  ;;  %v27366_v3 = vsub.f32 %v10322_v39, %v12133_v17 }
 0x8c5   :  { %19370 = vmatpush3.bf16.msra.mxu1 %v27296_v33  ;;  %19396 = vmatprep.subr.bf16.mxu0 %v19395_v0  ;;  %v27368_v28 = vsub.f32 %v10323_v32, %v12136_v13  ;;  %v27394_v32 = vsub.f32 %v29391_v23, %v27378_v56 }
 0x8c6   :  { %19372 = vmatprep.subr.bf16.mxu1 %v27329_v52  ;;  %v12278_v11 = vand.u32 4294901760, %v27343_v34  ;;  %v12292_v35 = vand.u32 4294901760, %v27366_v3 }
 0x8c7   :  { %11976 = vmatmul.mubr.f32.gmra.mrb[70].mxu0 %v28382_v1  ;;  %v12285_v1 = vand.u32 4294901760, %v27346_v7  ;;  %v12299_v41 = vand.u32 4294901760, %v27368_v28 }
 0x8c8   :  { %19398 = vmatpush3.bf16.msra.mxu0 %v19395_v0  ;;  %16528 = vmatprep.mubr.f32.mxu0 %v27159_v29  ;;  %v19407_v0 = vpack.c.bf16 %v12259_v10, %v12252_v58  ;;  %v12279_v39 = vsub.f32 %v27343_v34, %v12278_v11  ;;  %v12293_v58 = vsub.f32 %v27366_v3, %v12292_v35 }
 0x8c9   :  { %19374 = vmatpush3.bf16.msra.mxu1 %v27329_v52  ;;  %19400 = vmatprep.subr.bf16.mxu0 %v19399_v44  ;;  %v12286_v45 = vsub.f32 %v27346_v7, %v12285_v1  ;;  %v12300_v14 = vsub.f32 %v27368_v28, %v12299_v41 }
 0x8ca   :  { %19376 = vmatprep.subr.bf16.mxu1 %v27353_v40  ;;  %v12280_v36 = vand.u32 4294901760, %v12279_v39  ;;  %v12294_v51 = vand.u32 4294901760, %v12293_v58  ;;  %v19435_v39 = vpack.c.bf16 %v27233_v24, %v27228_v55 }
 0x8cb   :  { %v12287_v62 = vand.u32 4294901760, %v12286_v45  ;;  %v12301_v31 = vand.u32 4294901760, %v12300_v14  ;;  %v19439_v45 = vpack.c.bf16 %v27284_v49, %v27276_v16 }
 0x8cc   :  { %19402 = vmatpush3.bf16.msra.mxu0 %v19399_v44  ;;  %v19411_v44 = vpack.c.bf16 %v12273_v12, %v12266_v21  ;;  %v19427_v21 = vpack.c.bf16 %v27177_v63, %v27175_v25  ;;  %v19431_v12 = vpack.c.bf16 %v27189_v2, %v27184_v47  ;;  %v19507_v25 = vpack.c.bf16 %v12271_v30, %v12264_v50 }
 0x8cd   :  { %19378 = vmatpush3.bf16.msra.mxu1 %v27353_v40  ;;  %19404 = vmatprep.subr.bf16.mxu0 %v19403_v53  ;;  %v19415_v10 = vpack.c.bf16 %v12287_v62, %v12280_v36  ;;  %v19419_v17 = vpack.c.bf16 %v12301_v31, %v12294_v51  ;;  %v19447_v36 = vpack.c.bf16 %v27346_v7, %v27343_v34 }
 0x8ce   :  { %19380 = vmatprep.subr.bf16.mxu1 %v27375_v48  ;;  %v19451_v62 = vpack.c.bf16 %v27368_v28, %v27366_v3  ;;  %v19511_v63 = vpack.c.bf16 %v12285_v1, %v12278_v11 }
 0x8d0   :  { %19406 = vmatpush3.bf16.msra.mxu0 %v19403_v53  ;;  %v12183_v53 = vand.u32 4294901760, %v27394_v32 }
 0x8d1   :  { %19382 = vmatpush3.bf16.msra.mxu1 %v27375_v48  ;;  %19408 = vmatprep.subr.bf16.mxu0 %v19407_v0 }
 0x8d2   :  { %19384 = vmatprep.subr.bf16.mxu1 %v27390_v8  ;;  %v12184_v23 = vsub.f32 %v27394_v32, %v12183_v53 }
 0x8d4   :  { %19410 = vmatpush3.bf16.msra.mxu0 %v19407_v0  ;;  %v12185_v13 = vand.u32 4294901760, %v12184_v23  ;;  %v19423_v0 = vpack.c.bf16 %v27156_v15, %v27151_v37  ;;  %v19495_v37 = vpack.c.bf16 %v12229_v54, %v12222_v26  ;;  %v19499_v15 = vpack.c.bf16 %v12243_v59, %v12236_v20 }
 0x8d5   :  { %19386 = vmatpush3.bf16.msra.mxu1 %v27390_v8  ;;  %19412 = vmatprep.subr.bf16.mxu0 %v19411_v44 }
 0x8d6   :  { %19388 = vmatprep.subr.bf16.mxu1 %v27404_v4 }
 0x8d8   :  { %19414 = vmatpush3.bf16.msra.mxu0 %v19411_v44  ;;  %v19443_v44 = vpack.c.bf16 %v27319_v5, %v27314_v9 }
 0x8d9   :  { %19390 = vmatpush3.bf16.msra.mxu1 %v27404_v4  ;;  %19416 = vmatprep.subr.bf16.mxu0 %v19415_v10 }
 0x8dc   :  { %16494 = vmatmul.mubr.f32.vlgmr.msra.gmra.mrb[176].mxu1 %v12185_v13  ;;  %19418 = vmatpush3.bf16.msra.mxu0 %v19415_v10 }
 0x8dd   :  { %19420 = vmatprep.subr.bf16.mxu0 %v19419_v17 }
 0x8e0   :  { %19422 = vmatpush3.bf16.msra.mxu0 %v19419_v17 }
 0x8e1   :  { %19424 = vmatprep.subr.bf16.mxu0 %v19423_v0 }
 0x8e3   :  { %16529 = vmatmul.mubr.f32.vlgmr.msra.gmra.mrb[72].mxu0 %v27378_v56 }
 0x8e4   :  { %19426 = vmatpush3.bf16.msra.mxu0 %v19423_v0  ;;  %16563 = vmatprep.mubr.f32.mxu0 %v27193_v22  ;;  %v19487_v22 = vpack.c.bf16 %v12201_v42, %v12194_v27  ;;  %v19503_v27 = vpack.c.bf16 %v12257_v38, %v12250_v60  ;;  %v19515_v42 = vpack.c.bf16 %v12299_v41, %v12292_v35 }
 0x8e5   :  { %19428 = vmatprep.subr.bf16.mxu0 %v19427_v21 }
 0x8e8   :  { %19430 = vmatpush3.bf16.msra.mxu0 %v19427_v21 }
 0x8e9   :  { %19432 = vmatprep.subr.bf16.mxu0 %v19431_v12 }
 0x8ec   :  { %19434 = vmatpush3.bf16.msra.mxu0 %v19431_v12 }
 0x8ed   :  { %19436 = vmatprep.subr.bf16.mxu0 %v19435_v39 }
 0x8f0   :  { %19438 = vmatpush3.bf16.msra.mxu0 %v19435_v39 }
 0x8f1   :  { %19440 = vmatprep.subr.bf16.mxu0 %v19439_v45 }
 0x8f4   :  { %19442 = vmatpush3.bf16.msra.mxu0 %v19439_v45 }
 0x8f5   :  { %19444 = vmatprep.subr.bf16.mxu0 %v19443_v44 }
 0x8f8   :  { %19446 = vmatpush3.bf16.msra.mxu0 %v19443_v44 }
 0x8f9   :  { %19448 = vmatprep.subr.bf16.mxu0 %v19447_v36 }
 0x8fc   :  { %19450 = vmatpush3.bf16.msra.mxu0 %v19447_v36 }
 0x8fd   :  { %19452 = vmatprep.subr.bf16.mxu0 %v19451_v62 }
 0x900   :  { %19454 = vmatpush3.bf16.msra.mxu0 %v19451_v62 }
 0x901   :  { %19456 = vmatprep.subr.bf16.mxu0 %v27216_v18 }
 0x903   :  { %16564 = vmatmul.mubr.f32.vlgmr.msra.gmra.mrb[72].mxu0 %v27394_v32 }
 0x904   :  { %19458 = vmatpush3.bf16.msra.mxu0 %v27216_v18  ;;  %16598 = vmatprep.mubr.f32.mxu0 %v12173_v61  ;;  %v19491_v61 = vpack.c.bf16 %v12215_v6, %v12208_v46 }
 0x905   :  { %19460 = vmatprep.subr.bf16.mxu0 %v27243_v19 }
 0x908   :  { %19462 = vmatpush3.bf16.msra.mxu0 %v27243_v19 }
 0x909   :  { %19464 = vmatprep.subr.bf16.mxu0 %v27296_v33 }
 0x90c   :  { %19466 = vmatpush3.bf16.msra.mxu0 %v27296_v33 }
 0x90d   :  { %19468 = vmatprep.subr.bf16.mxu0 %v27329_v52 }
 0x910   :  { %19470 = vmatpush3.bf16.msra.mxu0 %v27329_v52 }
 0x911   :  { %19472 = vmatprep.subr.bf16.mxu0 %v27353_v40 }
 0x914   :  { %19474 = vmatpush3.bf16.msra.mxu0 %v27353_v40 }
 0x915   :  { %19476 = vmatprep.subr.bf16.mxu0 %v27375_v48 }
 0x918   :  { %19478 = vmatpush3.bf16.msra.mxu0 %v27375_v48 }
 0x919   :  { %19480 = vmatprep.subr.bf16.mxu0 %v27390_v8 }
 0x91c   :  { %19482 = vmatpush3.bf16.msra.mxu0 %v27390_v8 }
 0x91d   :  { %19484 = vmatprep.subr.bf16.mxu0 %v27404_v4 }
 0x920   :  { %19486 = vmatpush3.bf16.msra.mxu0 %v27404_v4 }
 0x921   :  { %19488 = vmatprep.subr.bf16.mxu0 %v19487_v22 }
 0x923   :  { %16599 = vmatmul.mubr.f32.vlgmr.msra.gmra.mrb[72].mxu0 %v12183_v53 }
 0x924   :  { %19490 = vmatpush3.bf16.msra.mxu0 %v19487_v22  ;;  %16633 = vmatprep.mubr.f32.mxu0 %v27159_v29  ;;  %v19637_v22 = vld [vmem:[%s27527_s0 + $0x8] sm:$0xff] }
 0x925   :  { %19492 = vmatprep.subr.bf16.mxu0 %v19491_v61 }
 0x928   :  { %19494 = vmatpush3.bf16.msra.mxu0 %v19491_v61 }
 0x929   :  { %19496 = vmatprep.subr.bf16.mxu0 %v19495_v37 }
 0x92c   :  { %19498 = vmatpush3.bf16.msra.mxu0 %v19495_v37  ;;  %v19638_v37 = vld [vmem:[%s27527_s0] sm:$0xff] }
 0x92d   :  { %19500 = vmatprep.subr.bf16.mxu0 %v19499_v15 }
 0x930   :  { %19502 = vmatpush3.bf16.msra.mxu0 %v19499_v15 }
 0x931   :  { %19504 = vmatprep.subr.bf16.mxu0 %v19503_v27 }
 0x934   :  { %19506 = vmatpush3.bf16.msra.mxu0 %v19503_v27 }
 0x935   :  { %19508 = vmatprep.subr.bf16.mxu0 %v19507_v25 }
 0x938   :  { %19510 = vmatpush3.bf16.msra.mxu0 %v19507_v25 }
 0x939   :  { %19512 = vmatprep.subr.bf16.mxu0 %v19511_v63 }
 0x93c   :  { %19514 = vmatpush3.bf16.msra.mxu0 %v19511_v63 }
 0x93d   :  { %19516 = vmatprep.subr.bf16.mxu0 %v19515_v42 }
 0x940   :  { %19518 = vmatpush3.bf16.msra.mxu0 %v19515_v42 }
 0x941   :  { %19520 = vmatprep.subr.bf16.mxu0 %v27216_v18 }
 0x943   :  { %16634 = vmatmul.mubr.f32.vlgmr.msra.gmra.mrb[72].mxu0 %v27378_v56 }
 0x944   :  { %19522 = vmatpush3.bf16.msra.mxu0 %v27216_v18  ;;  %16668 = vmatprep.mubr.f32.mxu0 %v27159_v29 }
 0x945   :  { %19524 = vmatprep.subr.bf16.mxu0 %v27243_v19 }
 0x948   :  { %19526 = vmatpush3.bf16.msra.mxu0 %v27243_v19 }
 0x949   :  { %19528 = vmatprep.subr.bf16.mxu0 %v27296_v33 }
 0x94c   :  { %19530 = vmatpush3.bf16.msra.mxu0 %v27296_v33 }
 0x94d   :  { %19532 = vmatprep.subr.bf16.mxu0 %v27329_v52 }
 0x94e   :  { %v15355_v47 = vpop.f32.mrb[164].mxu1 }
 0x94f   :  { %v15356_v2 = vpop.f32.mrb[165].mxu1 }
 0x950   :  { %19534 = vmatpush3.bf16.msra.mxu0 %v27329_v52  ;;  %v15357_v46 = vadd.f32 %v15356_v2, %v15355_v47 }
 0x951   :  { %19536 = vmatprep.subr.bf16.mxu0 %v27353_v40 }
 0x952   :  { %v15358_v6 = vpop.f32.mrb[166].mxu1 }
 0x953   :  { %v15359_v18 = vpop.f32.mrb[167].mxu1 }
 0x954   :  { %19538 = vmatpush3.bf16.msra.mxu0 %v27353_v40  ;;  %v15360_v29 = vadd.f32 %v15359_v18, %v15358_v6 }
 0x955   :  { %19540 = vmatprep.subr.bf16.mxu0 %v27375_v48 }
 0x956   :  { %v15317_v26 = vpop.f32.mrb[60].mxu0 }
 0x957   :  { %v15318_v54 = vpop.f32.mrb[61].mxu0 }
 0x958   :  { %v15319_v55 = vadd.f32 %v15318_v54, %v15317_v26  ;;  %19542 = vmatpush3.bf16.msra.mxu0 %v27375_v48 }
 0x959   :  { %19544 = vmatprep.subr.bf16.mxu0 %v27390_v8 }
 0x95a   :  { %v11302_v24 = vadd.f32 %v15319_v55, %v27118_v43  ;;  %v15320_v19 = vpop.f32.mrb[62].mxu0 }
 0x95b   :  { %v15321_v20 = vpop.f32.mrb[63].mxu0 }
 0x95c   :  { %v11543_v59 = vadd.f32 %v15357_v46, %v11302_v24  ;;  %v15322_v16 = vadd.f32 %v15321_v20, %v15320_v19  ;;  %19546 = vmatpush3.bf16.msra.mxu0 %v27390_v8 }
 0x95d   :  { %19548 = vmatprep.subr.bf16.mxu0 %v27404_v4 }
 0x95e   :  { %v11312_v49 = vadd.f32 %v15322_v16, %v27287_v57 }
 0x960   :  { %v11549_v33 = vadd.f32 %v15360_v29, %v11312_v49  ;;  %19550 = vmatpush3.bf16.msra.mxu0 %v27404_v4 }
 0x963   :  { %16669 = vmatmul.mubr.f32.vlgmr.msra.gmra.mrb[72].mxu0 %v27378_v56 }
 0x96e   :  { %v15431_v60 = vpop.f32.mrb[168].mxu1 }
 0x96f   :  { %v15432_v38 = vpop.f32.mrb[169].mxu1 }
 0x970   :  { %v15433_v9 = vadd.f32 %v15432_v38, %v15431_v60 }
 0x972   :  { %v15434_v5 = vpop.f32.mrb[170].mxu1 }
 0x973   :  { %v15435_v43 = vpop.f32.mrb[171].mxu1 }
 0x974   :  { %v15436_v52 = vadd.f32 %v15435_v43, %v15434_v5 }
 0x976   :  { %v15393_v50 = vpop.f32.mrb[64].mxu0 }
 0x977   :  { %v15394_v30 = vpop.f32.mrb[65].mxu0 }
 0x978   :  { %v15395_v34 = vadd.f32 %v15394_v30, %v15393_v50 }
 0x97a   :  { %v11685_v7 = vadd.f32 %v15395_v34, %v11543_v59  ;;  %v15396_v40 = vpop.f32.mrb[66].mxu0 }
 0x97b   :  { %v15397_v11 = vpop.f32.mrb[67].mxu0 }
 0x97c   :  { %v11797_v1 = vadd.f32 %v15433_v9, %v11685_v7  ;;  %v15398_v3 = vadd.f32 %v15397_v11, %v15396_v40 }
 0x97e   :  { %v11692_v57 = vadd.f32 %v15398_v3, %v11549_v33 }
 0x980   :  { %v11805_v28 = vadd.f32 %v15436_v52, %v11692_v57 }
 0x98f   :  { %v15507_v48 = vpop.f32.mrb[172].mxu1 }
 0x990   :  { %v15508_v35 = vpop.f32.mrb[173].mxu1 }
 0x991   :  { %v15509_v41 = vadd.f32 %v15508_v35, %v15507_v48 }
 0x993   :  { %v15510_v56 = vpop.f32.mrb[174].mxu1 }
 0x994   :  { %v15511_v8 = vpop.f32.mrb[175].mxu1 }
 0x995   :  { %v15512_v32 = vadd.f32 %v15511_v8, %v15510_v56 }
 0x996   :  { %v15469_v58 = vpop.f32.mrb[68].mxu0 }
 0x997   :  { %v15470_v14 = vpop.f32.mrb[69].mxu0 }
 0x998   :  { %v15471_v4 = vadd.f32 %v15470_v14, %v15469_v58 }
 0x99a   :  { %v11972_v53 = vadd.f32 %v15471_v4, %v11797_v1  ;;  %v15472_v10 = vpop.f32.mrb[70].mxu0 }
 0x99b   :  { %v15473_v51 = vpop.f32.mrb[71].mxu0 }
 0x99c   :  { %v15474_v31 = vadd.f32 %v15473_v51, %v15472_v10  ;;  %v12081_v23 = vadd.f32 %v15509_v41, %v11972_v53 }
 0x99e   :  { %v11978_v17 = vadd.f32 %v15474_v31, %v11805_v28 }
 0x9a0   :  { %v12087_v13 = vadd.f32 %v15512_v32, %v11978_v17 }
 0x9af   :  { %v16495_v0 = vpop.f32.mrb[176].mxu1 }
 0x9b0   :  { %v12188_v21 = vadd.f32 %v16495_v0, %v12087_v13  ;;  %v12177_v12 = vpop.f32.mrb[177].mxu1 }
 0x9b1   :  { %v12178_v39 = vadd.f32 %v12177_v12, %v12081_v23 }
 0xa36   :  { %v16670_v45 = vpop.f32.mrb[72].mxu0 }
 0xa37   :  { %v19560_v44 = vadd.f32 %v16670_v45, %v12188_v21  ;;  %v12764_v36 = vpop.f32.mrb[73].mxu0 }
 0xa38   :  { %v19562_v62 = vadd.f32 %v12764_v36, %v12178_v39 }
 0xa39   :  { %v12775_v61 = vadd.f32 %v19637_v22, %v19560_v44 }
 0xa3a   :  { %v12774_v15 = vadd.f32 %v19638_v37, %v19562_v62 }
 0xa3b   :  { %12777 = vst [vmem:[#allocation7 + $0x8] sm:$0xff] %v12775_v61 }
 0xa3c   :  { %12776 = vst [vmem:[#allocation7] sm:$0xff] %v12774_v15 }
 0xa3d   :  { %19694 = shalt.err (!%p19691_p6)
}
 0xa3e   :  { %s19695_s8 = scalar_lea.hbm %s27531_s4, 256 }
 0xa3f   :  { %p19696_p7 = scmp.ne.s32.totalorder %s27531_s4, %s19695_s8  ;;  %p19699_p8 = scmp.lt.u32.totalorder %s19695_s8, %s27531_s4 }
 0xa41   :  { %p19701_p9 = pnand %p19699_p8, %p19696_p7 }
 0xa43   :  { %19704 = shalt.err (!%p19701_p9)
}
 0xa44   :  { %12789 = dma.vmem_to_hbm [thread:$0]  %s12784_s24, 256, %s27531_s4, [#allocation4], %s19712_s25, %s19712_s25, %s19713_s26  }
 0xa45   :  { %19709 = dma.done.wait [#allocation4], 256  }
 0xa46   :  { %19710 = vsyncadd [#allocation4], 4294967040 }
 0xa47   :  { %12793 = vsyncpa [#allocation3], 1 }
 0xa48   :  { %12794 = vsyncpa [#allocation6], 1 }
 0xa49   :  { %12795 = vsyncpa [#allocation4], 1 }

</bundles_post_ra>
